<compile_context>
chip_gen: v5e
topology: v5e:2x2
jax: 0.10.0
libtpu: 0.0.40
codegen_flags: <defaults>
</compile_context>

<pallas_src>
import jax
import jax.numpy as jnp
from jax.experimental import pallas as pl
from jax.experimental.pallas import tpu as pltpu


PAD_TOP = 8   # data rows start sublane-tile aligned -> unmasked interior stores


def _make_interpolation_kernel(H, W, C, n_resgroups, n_resblocks,
                               neg_slope, compute_dtype):
    WC = W * C
    inv_hw = 1.0 / (H * W)

    def kernel(x_ref, w3_ref, b3_ref, wd1_ref, bd1_ref, wd2_ref, bd2_ref,
               o_ref, pad_ref):
        # Zero the padded-row buffer once per grid step.  Rows PAD_TOP-1 and
        # PAD_TOP+H are the vertical "same" padding; rows PAD_TOP..PAD_TOP+H-1
        # are fully overwritten by every conv.  Done every step so it stays
        # correct when the parallel batch axis is sharded across TensorCores.
        pad_ref[...] = jnp.zeros_like(pad_ref)

        def conv3x3(src, li):
            """3x3 'same' conv in lane-packed layout: (H, W*C) -> (H, W*C).

            Horizontal taps + horizontal zero padding live inside the banded
            block-Toeplitz weight (W*C, W*C) per kh; vertical taps are the
            three row-shifted reads of pad_ref.  One aligned full-width store,
            three MXU matmuls, no im2col materialization.
            """
            pad_ref[PAD_TOP:PAD_TOP + H, :] = src.astype(compute_dtype)
            out = b3_ref[li]                                   # (1, W*C) f32
            for kh in range(3):
                r0 = PAD_TOP - 1 + kh
                out = out + jnp.dot(pad_ref[r0:r0 + H, :], w3_ref[li, kh],
                                    preferred_element_type=jnp.float32)
            return out                                         # (H, W*C) f32

        def ca_scale(h, bi):
            """Channel attention -> (1, W*C) scale.  VPU/XLU only (no MXU)."""
            # Global average pool: sublane reduce, then halve the lane axis
            # down to one C-group (W is a power of two).
            t = jnp.sum(h, axis=0, keepdims=True)              # (1, W*C)
            width = WC
            while width > C:
                width //= 2
                t = t[:, :width] + t[:, width:]
            y = t * inv_hw                                     # (1, C)
            # 1x1 conv C->C/r, ReLU, 1x1 conv C/r->C, sigmoid via
            # broadcast-multiply + sum (keeps the tiny matmuls off the MXU).
            z = jnp.sum(y * wd1_ref[bi], axis=1, keepdims=True) + bd1_ref[bi]
            z = jnp.maximum(z, 0.0)                            # (C/r, 1)
            a = jnp.sum(z * wd2_ref[bi], axis=0, keepdims=True) + bd2_ref[bi]
            a = jax.nn.sigmoid(a)                              # (1, C)
            while a.shape[1] < WC:                             # tile across W groups
                a = jnp.concatenate([a, a], axis=1)
            return a                                           # (1, W*C)

        x = x_ref[0].astype(jnp.float32)                       # (H, W*C)

        # TODO(synk): for large n_resgroups/n_resblocks convert these static
        # loops to lax.fori_loop with dynamic li/bi indexing into the weight
        # refs; at 12 convs (4 vregs per live residual in this layout) the full
        # unroll is small and keeps LLO scheduling visibility.
        li = 0
        bi = 0
        head = conv3x3(x, li); li += 1                         # headConv
        cur = head
        for _g in range(n_resgroups):
            gin = cur
            for _r in range(n_resblocks):
                rin = cur
                h = conv3x3(cur, li); li += 1
                h = jnp.where(h > 0, h, neg_slope * h)         # LeakyReLU(0.2)
                h = conv3x3(h, li); li += 1
                cur = h * ca_scale(h, bi) + rin                # RCAB residual
                bi += 1
            cur = conv3x3(cur, li) + gin; li += 1              # group tail conv
        res = cur + head
        out = conv3x3(res, li); li += 1                        # tailConv

        o_ref[0] = out.astype(o_ref.dtype)                     # lane-dense store

    return kernel


def interpolation_forward(x_nchw, w3, b3, wd1, bd1, wd2, bd2, *,
                          n_resgroups, n_resblocks, neg_slope=0.2,
                          compute_dtype=jnp.float32):
    """Full Interpolation forward.

    x_nchw: (B, C, H, W) float32 (PyTorch layout).
    w3 : (L3, 3, W*C, W*C) banded block-Toeplitz per-kh conv weights
         (layer order: head, [g0: rcab0_c1, rcab0_c2, ..., group_conv], ..., tail).
    b3 : (L3, 1, W*C)  lane-tiled biases.
    wd1: (NR, Cr, C); bd1: (NR, Cr, 1); wd2: (NR, Cr, C); bd2: (NR, 1, C).
    """
    B, C, H, W = x_nchw.shape
    WC = W * C
    assert W & (W - 1) == 0, "lane-fold GAP / CA tiling assume W is a power of 2"

    # NCHW -> lane-packed (B, H, W*C): channel-minor within each pixel group,
    # minor dim a multiple of 128 so all in-kernel vld/vst are full-width.
    x = jnp.transpose(x_nchw, (0, 2, 3, 1)).reshape(B, H, WC)

    def full(shape):
        return pl.BlockSpec(shape, lambda b: (0,) * len(shape))

    out = pl.pallas_call(
        _make_interpolation_kernel(H, W, C, n_resgroups, n_resblocks,
                                   neg_slope, compute_dtype),
        out_shape=jax.ShapeDtypeStruct((B, H, WC), jnp.float32),
        grid_spec=pltpu.PrefetchScalarGridSpec(
            num_scalar_prefetch=0,
            grid=(B,),
            in_specs=[
                pl.BlockSpec((1, H, WC), lambda b: (b, 0, 0)),
                full(w3.shape), full(b3.shape),
                full(wd1.shape), full(bd1.shape),
                full(wd2.shape), full(bd2.shape),
            ],
            out_specs=pl.BlockSpec((1, H, WC), lambda b: (b, 0, 0)),
            scratch_shapes=[
                pltpu.VMEM((PAD_TOP + H + 1, WC), compute_dtype),  # padded rows
            ],
        ),
        compiler_params=pltpu.CompilerParams(
            dimension_semantics=("parallel",),            # batch across TCs (v7x)
            vmem_limit_bytes=40 * 1024 * 1024),           # expanded weights ~9.4 MiB f32
    )(x, w3, b3, wd1, bd1, wd2, bd2)

    return jnp.transpose(out.reshape(B, H, W, C), (0, 3, 1, 2))


def pack_params(conv_ws, conv_bs, ca_w1s, ca_b1s, ca_w2s, ca_b2s, W, compute_dtype):
    """Repack PyTorch-layout weights for the lane-packed kernel.

    Each 3x3 conv weight becomes, per kh tap, a banded block-Toeplitz matrix
    (W*Cin, W*Cout): output column group wo only receives contributions from
    input column groups wo-1, wo, wo+1; out-of-range groups simply have zero
    weight rows, which implements the horizontal zero padding for free.
    Only the conv matmul operands (w3, and pad_ref inside the kernel) are cast
    to compute_dtype; biases and the CA branch stay f32.
    """
    C = conv_ws[0].shape[0]
    Cr = ca_w1s[0].shape[0]
    win = jnp.arange(W)[:, None]
    wo = jnp.arange(W)[None, :]

    def expand(w):                                             # (Cout, Cin, 3, 3)
        wt = jnp.transpose(w, (2, 3, 1, 0)).astype(jnp.float32)  # (kh, kw, Cin, Cout)
        mats = []
        for kh in range(3):
            e = jnp.zeros((W, C, W, C), jnp.float32)
            for kw in range(3):
                band = (win == wo + kw - 1).astype(jnp.float32)   # (W, W)
                e = e + band[:, None, :, None] * wt[kh, kw][None, :, None, :]
            mats.append(e.reshape(W * C, W * C))
        return jnp.stack(mats)                                 # (3, W*C, W*C)

    w3 = jnp.stack([expand(w) for w in conv_ws]).astype(compute_dtype)
    b3 = jnp.stack([jnp.tile(b, W).reshape(1, W * C) for b in conv_bs])   # f32
    wd1 = jnp.stack([w[:, :, 0, 0] for w in ca_w1s])                      # (Cr, C)
    bd1 = jnp.stack([b.reshape(Cr, 1) for b in ca_b1s])                   # (Cr, 1)
    wd2 = jnp.stack([jnp.transpose(w[:, :, 0, 0]) for w in ca_w2s])       # (Cr, C)
    bd2 = jnp.stack([b.reshape(1, C) for b in ca_b2s])                    # (1, C)
    return w3, b3, wd1, bd1, wd2, bd2


# ---------------- pure-JAX reference (NCHW, matches PyTorch semantics) ----------------
def interpolation_reference(x, conv_ws, conv_bs, ca_w1s, ca_b1s, ca_w2s, ca_b2s,
                            n_resgroups, n_resblocks, neg_slope=0.2):
    dn = ('NCHW', 'OIHW', 'NCHW')

    def conv(a, w, b, pad):
        return (jax.lax.conv_general_dilated(
                    a, w, (1, 1), ((pad, pad), (pad, pad)),
                    dimension_numbers=dn)
                + b[None, :, None, None])

    li = 0
    bi = 0
    head = conv(x, conv_ws[li], conv_bs[li], 1); li += 1
    cur = head
    for _g in range(n_resgroups):
        gin = cur
        for _r in range(n_resblocks):
            rin = cur
            h = conv(cur, conv_ws[li], conv_bs[li], 1); li += 1
            h = jnp.where(h > 0, h, neg_slope * h)
            h = conv(h, conv_ws[li], conv_bs[li], 1); li += 1
            y = jnp.mean(h, axis=(2, 3), keepdims=True)
            z = jnp.maximum(conv(y, ca_w1s[bi], ca_b1s[bi], 0), 0.0)
            a = jax.nn.sigmoid(conv(z, ca_w2s[bi], ca_b2s[bi], 0))
            bi += 1
            cur = h * a + rin
        cur = conv(cur, conv_ws[li], conv_bs[li], 1) + gin; li += 1
    res = cur + head
    return conv(res, conv_ws[li], conv_bs[li], 1)


if __name__ == "__main__":
    B, C, H, W = 2, 16, 16, 16
    n_resgroups, n_resblocks, reduction = 2, 2, 4
    Cr = C // reduction
    L3 = 1 + n_resgroups * (2 * n_resblocks + 1) + 1      # 12 conv3x3 layers
    NR = n_resgroups * n_resblocks                        # 4 RCABs

    # f32 keeps the correctness check tight; flip to jnp.bfloat16 on v6e/v7x
    # for ~2x MXU rate and half the weight/pad traffic (loosen the tolerance).
    COMPUTE_DTYPE = jnp.float32

    key = jax.random.PRNGKey(0)
    ks = iter(jax.random.split(key, 1 + 2 * L3 + 4 * NR))

    # PyTorch-layout parameters (deterministic synthetic init)
    x = jax.random.normal(next(ks), (B, C, H, W), jnp.float32)
    conv_ws = [0.1 * jax.random.normal(next(ks), (C, C, 3, 3), jnp.float32)
               for _ in range(L3)]                                      # (Cout,Cin,3,3)
    conv_bs = [0.05 * jax.random.normal(next(ks), (C,), jnp.float32)
               for _ in range(L3)]
    ca_w1s = [0.2 * jax.random.normal(next(ks), (Cr, C, 1, 1), jnp.float32)
              for _ in range(NR)]
    ca_b1s = [0.05 * jax.random.normal(next(ks), (Cr,), jnp.float32)
              for _ in range(NR)]
    ca_w2s = [0.2 * jax.random.normal(next(ks), (C, Cr, 1, 1), jnp.float32)
              for _ in range(NR)]
    ca_b2s = [0.05 * jax.random.normal(next(ks), (C,), jnp.float32)
              for _ in range(NR)]

    params = pack_params(conv_ws, conv_bs, ca_w1s, ca_b1s, ca_w2s, ca_b2s,
                         W, COMPUTE_DTYPE)

    out = jax.block_until_ready(
        interpolation_forward(x, *params,
                              n_resgroups=n_resgroups,
                              n_resblocks=n_resblocks,
                              compute_dtype=COMPUTE_DTYPE))
    ref = jax.block_until_ready(
        interpolation_reference(x, conv_ws, conv_bs, ca_w1s, ca_b1s,
                                ca_w2s, ca_b2s, n_resgroups, n_resblocks))

    assert out.shape == (B, C, H, W) and out.dtype == jnp.float32
    max_err = float(jnp.max(jnp.abs(out - ref)))
    # Tolerance covers 12 chained convs and MXU-vs-XLA precision-mode deltas;
    # real layout/indexing bugs produce O(1) errors.
    assert jnp.allclose(out, ref, rtol=1e-2, atol=1e-2), \
        f"max abs err = {max_err}"
    print("KERNEL_OK")
</pallas_src>

<mosaic_0001>
module attributes {stable_mosaic.version = 11 : i64} {
  func.func @kernel(%arg0: i32, %arg1: memref<1x16x256xf32, #tpu.memory_space<vmem>>, %arg2: memref<12x3x256x256xf32, #tpu.memory_space<vmem>>, %arg3: memref<12x1x256xf32, #tpu.memory_space<vmem>>, %arg4: memref<4x4x16xf32, #tpu.memory_space<vmem>>, %arg5: memref<4x4x1xf32, #tpu.memory_space<vmem>>, %arg6: memref<4x4x16xf32, #tpu.memory_space<vmem>>, %arg7: memref<4x1x16xf32, #tpu.memory_space<vmem>>, %arg8: memref<1x16x256xf32, #tpu.memory_space<vmem>>, %arg9: memref<25x256xf32, #tpu.memory_space<vmem>>) attributes {dimension_semantics = [#tpu.dimension_semantics<parallel>], iteration_bounds = array<i64: 2>, scalar_prefetch = 0 : i64, scratch_operands = 1 : i64, tpu.core_type = #tpu.core_type<tc>, window_params = [{transform_indices = @transform_0, window_bounds = array<i64: 1, 16, 256>}, {pipeline_mode = #tpu.pipeline_mode<synchronous>, transform_indices = @transform_1, window_bounds = array<i64: 12, 3, 256, 256>}, {pipeline_mode = #tpu.pipeline_mode<synchronous>, transform_indices = @transform_2, window_bounds = array<i64: 12, 1, 256>}, {pipeline_mode = #tpu.pipeline_mode<synchronous>, transform_indices = @transform_3, window_bounds = array<i64: 4, 4, 16>}, {pipeline_mode = #tpu.pipeline_mode<synchronous>, transform_indices = @transform_4, window_bounds = array<i64: 4, 4, 1>}, {pipeline_mode = #tpu.pipeline_mode<synchronous>, transform_indices = @transform_5, window_bounds = array<i64: 4, 4, 16>}, {pipeline_mode = #tpu.pipeline_mode<synchronous>, transform_indices = @transform_6, window_bounds = array<i64: 4, 1, 16>}, {transform_indices = @transform_7, window_bounds = array<i64: 1, 16, 256>}]} {
    %cst = arith.constant 0.000000e+00 : f32
    %0 = vector.broadcast %cst : f32 to vector<25x256xf32>
    %c0 = arith.constant 0 : index
    %c0_0 = arith.constant 0 : index
    %1 = vector.load %arg9[%c0, %c0_0] : memref<25x256xf32, #tpu.memory_space<vmem>>, vector<25x256xf32>
    tpu.vector_store %arg9[%c0, %c0_0], %0 {strides = array<i32>} : memref<25x256xf32, #tpu.memory_space<vmem>>, vector<25x256xf32>,
    %c0_1 = arith.constant 0 : index
    %c0_2 = arith.constant 0 : index
    %c0_3 = arith.constant 0 : index
    %2 = vector.load %arg1[%c0_1, %c0_2, %c0_3] : memref<1x16x256xf32, #tpu.memory_space<vmem>>, vector<1x16x256xf32>
    %3 = vector.shape_cast %2 : vector<1x16x256xf32> to vector<16x256xf32>
    %c8 = arith.constant 8 : index
    %c0_4 = arith.constant 0 : index
    %4 = vector.load %arg9[%c8, %c0_4] : memref<25x256xf32, #tpu.memory_space<vmem>>, vector<16x256xf32>
    tpu.vector_store %arg9[%c8, %c0_4], %3 {strides = array<i32>} : memref<25x256xf32, #tpu.memory_space<vmem>>, vector<16x256xf32>,
    %c0_5 = arith.constant 0 : index
    %c0_6 = arith.constant 0 : index
    %c0_7 = arith.constant 0 : index
    %5 = vector.load %arg3[%c0_5, %c0_6, %c0_7] : memref<12x1x256xf32, #tpu.memory_space<vmem>>, vector<1x1x256xf32>
    %6 = vector.shape_cast %5 : vector<1x1x256xf32> to vector<1x256xf32>
    %c7 = arith.constant 7 : index
    %c0_8 = arith.constant 0 : index
    %7 = vector.load %arg9[%c7, %c0_8] : memref<25x256xf32, #tpu.memory_space<vmem>>, vector<16x256xf32>
    %c0_9 = arith.constant 0 : index
    %c0_10 = arith.constant 0 : index
    %c0_11 = arith.constant 0 : index
    %c0_12 = arith.constant 0 : index
    %8 = vector.load %arg2[%c0_9, %c0_10, %c0_11, %c0_12] : memref<12x3x256x256xf32, #tpu.memory_space<vmem>>, vector<1x1x256x256xf32>
    %9 = vector.shape_cast %8 : vector<1x1x256x256xf32> to vector<256x256xf32>
    %cst_13 = arith.constant dense<0.000000e+00> : vector<16x256xf32>
    %10 = tpu.matmul %7, %9, %cst_13 {dimension_numbers = #tpu.dot_dimension_numbers<[1], [0], [0], [1], [0, 0, 1, 1], [], []>} : vector<16x256xf32>, vector<256x256xf32>, vector<16x256xf32> -> vector<16x256xf32>
    %11 = vector.broadcast %6 : vector<1x256xf32> to vector<16x256xf32>
    %12 = arith.addf %11, %10 : vector<16x256xf32>
    %c8_14 = arith.constant 8 : index
    %c0_15 = arith.constant 0 : index
    %13 = vector.load %arg9[%c8_14, %c0_15] : memref<25x256xf32, #tpu.memory_space<vmem>>, vector<16x256xf32>
    %c0_16 = arith.constant 0 : index
    %c1 = arith.constant 1 : index
    %c0_17 = arith.constant 0 : index
    %c0_18 = arith.constant 0 : index
    %14 = vector.load %arg2[%c0_16, %c1, %c0_17, %c0_18] : memref<12x3x256x256xf32, #tpu.memory_space<vmem>>, vector<1x1x256x256xf32>
    %15 = vector.shape_cast %14 : vector<1x1x256x256xf32> to vector<256x256xf32>
    %cst_19 = arith.constant dense<0.000000e+00> : vector<16x256xf32>
    %16 = tpu.matmul %13, %15, %cst_19 {dimension_numbers = #tpu.dot_dimension_numbers<[1], [0], [0], [1], [0, 0, 1, 1], [], []>} : vector<16x256xf32>, vector<256x256xf32>, vector<16x256xf32> -> vector<16x256xf32>
    %17 = arith.addf %12, %16 : vector<16x256xf32>
    %c9 = arith.constant 9 : index
    %c0_20 = arith.constant 0 : index
    %18 = vector.load %arg9[%c9, %c0_20] : memref<25x256xf32, #tpu.memory_space<vmem>>, vector<16x256xf32>
    %c0_21 = arith.constant 0 : index
    %c2 = arith.constant 2 : index
    %c0_22 = arith.constant 0 : index
    %c0_23 = arith.constant 0 : index
    %19 = vector.load %arg2[%c0_21, %c2, %c0_22, %c0_23] : memref<12x3x256x256xf32, #tpu.memory_space<vmem>>, vector<1x1x256x256xf32>
    %20 = vector.shape_cast %19 : vector<1x1x256x256xf32> to vector<256x256xf32>
    %cst_24 = arith.constant dense<0.000000e+00> : vector<16x256xf32>
    %21 = tpu.matmul %18, %20, %cst_24 {dimension_numbers = #tpu.dot_dimension_numbers<[1], [0], [0], [1], [0, 0, 1, 1], [], []>} : vector<16x256xf32>, vector<256x256xf32>, vector<16x256xf32> -> vector<16x256xf32>
    %22 = arith.addf %17, %21 : vector<16x256xf32>
    %c8_25 = arith.constant 8 : index
    %c0_26 = arith.constant 0 : index
    %23 = vector.load %arg9[%c8_25, %c0_26] : memref<25x256xf32, #tpu.memory_space<vmem>>, vector<16x256xf32>
    tpu.vector_store %arg9[%c8_25, %c0_26], %22 {strides = array<i32>} : memref<25x256xf32, #tpu.memory_space<vmem>>, vector<16x256xf32>,
    %c1_27 = arith.constant 1 : index
    %c0_28 = arith.constant 0 : index
    %c0_29 = arith.constant 0 : index
    %24 = vector.load %arg3[%c1_27, %c0_28, %c0_29] : memref<12x1x256xf32, #tpu.memory_space<vmem>>, vector<1x1x256xf32>
    %25 = vector.shape_cast %24 : vector<1x1x256xf32> to vector<1x256xf32>
    %c7_30 = arith.constant 7 : index
    %c0_31 = arith.constant 0 : index
    %26 = vector.load %arg9[%c7_30, %c0_31] : memref<25x256xf32, #tpu.memory_space<vmem>>, vector<16x256xf32>
    %c1_32 = arith.constant 1 : index
    %c0_33 = arith.constant 0 : index
    %c0_34 = arith.constant 0 : index
    %c0_35 = arith.constant 0 : index
    %27 = vector.load %arg2[%c1_32, %c0_33, %c0_34, %c0_35] : memref<12x3x256x256xf32, #tpu.memory_space<vmem>>, vector<1x1x256x256xf32>
    %28 = vector.shape_cast %27 : vector<1x1x256x256xf32> to vector<256x256xf32>
    %cst_36 = arith.constant dense<0.000000e+00> : vector<16x256xf32>
    %29 = tpu.matmul %26, %28, %cst_36 {dimension_numbers = #tpu.dot_dimension_numbers<[1], [0], [0], [1], [0, 0, 1, 1], [], []>} : vector<16x256xf32>, vector<256x256xf32>, vector<16x256xf32> -> vector<16x256xf32>
    %30 = vector.broadcast %25 : vector<1x256xf32> to vector<16x256xf32>
    %31 = arith.addf %30, %29 : vector<16x256xf32>
    %c8_37 = arith.constant 8 : index
    %c0_38 = arith.constant 0 : index
    %32 = vector.load %arg9[%c8_37, %c0_38] : memref<25x256xf32, #tpu.memory_space<vmem>>, vector<16x256xf32>
    %c1_39 = arith.constant 1 : index
    %c1_40 = arith.constant 1 : index
    %c0_41 = arith.constant 0 : index
    %c0_42 = arith.constant 0 : index
    %33 = vector.load %arg2[%c1_39, %c1_40, %c0_41, %c0_42] : memref<12x3x256x256xf32, #tpu.memory_space<vmem>>, vector<1x1x256x256xf32>
    %34 = vector.shape_cast %33 : vector<1x1x256x256xf32> to vector<256x256xf32>
    %cst_43 = arith.constant dense<0.000000e+00> : vector<16x256xf32>
    %35 = tpu.matmul %32, %34, %cst_43 {dimension_numbers = #tpu.dot_dimension_numbers<[1], [0], [0], [1], [0, 0, 1, 1], [], []>} : vector<16x256xf32>, vector<256x256xf32>, vector<16x256xf32> -> vector<16x256xf32>
    %36 = arith.addf %31, %35 : vector<16x256xf32>
    %c9_44 = arith.constant 9 : index
    %c0_45 = arith.constant 0 : index
    %37 = vector.load %arg9[%c9_44, %c0_45] : memref<25x256xf32, #tpu.memory_space<vmem>>, vector<16x256xf32>
    %c1_46 = arith.constant 1 : index
    %c2_47 = arith.constant 2 : index
    %c0_48 = arith.constant 0 : index
    %c0_49 = arith.constant 0 : index
    %38 = vector.load %arg2[%c1_46, %c2_47, %c0_48, %c0_49] : memref<12x3x256x256xf32, #tpu.memory_space<vmem>>, vector<1x1x256x256xf32>
    %39 = vector.shape_cast %38 : vector<1x1x256x256xf32> to vector<256x256xf32>
    %cst_50 = arith.constant dense<0.000000e+00> : vector<16x256xf32>
    %40 = tpu.matmul %37, %39, %cst_50 {dimension_numbers = #tpu.dot_dimension_numbers<[1], [0], [0], [1], [0, 0, 1, 1], [], []>} : vector<16x256xf32>, vector<256x256xf32>, vector<16x256xf32> -> vector<16x256xf32>
    %41 = arith.addf %36, %40 : vector<16x256xf32>
    %cst_51 = arith.constant 0.000000e+00 : f32
    %42 = vector.broadcast %cst_51 : f32 to vector<16x256xf32>
    %43 = arith.cmpf ogt, %41, %42 : vector<16x256xf32>
    %cst_52 = arith.constant 2.000000e-01 : f32
    %44 = vector.broadcast %cst_52 : f32 to vector<16x256xf32>
    %45 = arith.mulf %44, %41 : vector<16x256xf32>
    %46 = arith.select %43, %41, %45 : vector<16x256xi1>, vector<16x256xf32>
    %c8_53 = arith.constant 8 : index
    %c0_54 = arith.constant 0 : index
    %47 = vector.load %arg9[%c8_53, %c0_54] : memref<25x256xf32, #tpu.memory_space<vmem>>, vector<16x256xf32>
    tpu.vector_store %arg9[%c8_53, %c0_54], %46 {strides = array<i32>} : memref<25x256xf32, #tpu.memory_space<vmem>>, vector<16x256xf32>,
    %c2_55 = arith.constant 2 : index
    %c0_56 = arith.constant 0 : index
    %c0_57 = arith.constant 0 : index
    %48 = vector.load %arg3[%c2_55, %c0_56, %c0_57] : memref<12x1x256xf32, #tpu.memory_space<vmem>>, vector<1x1x256xf32>
    %49 = vector.shape_cast %48 : vector<1x1x256xf32> to vector<1x256xf32>
    %c7_58 = arith.constant 7 : index
    %c0_59 = arith.constant 0 : index
    %50 = vector.load %arg9[%c7_58, %c0_59] : memref<25x256xf32, #tpu.memory_space<vmem>>, vector<16x256xf32>
    %c2_60 = arith.constant 2 : index
    %c0_61 = arith.constant 0 : index
    %c0_62 = arith.constant 0 : index
    %c0_63 = arith.constant 0 : index
    %51 = vector.load %arg2[%c2_60, %c0_61, %c0_62, %c0_63] : memref<12x3x256x256xf32, #tpu.memory_space<vmem>>, vector<1x1x256x256xf32>
    %52 = vector.shape_cast %51 : vector<1x1x256x256xf32> to vector<256x256xf32>
    %cst_64 = arith.constant dense<0.000000e+00> : vector<16x256xf32>
    %53 = tpu.matmul %50, %52, %cst_64 {dimension_numbers = #tpu.dot_dimension_numbers<[1], [0], [0], [1], [0, 0, 1, 1], [], []>} : vector<16x256xf32>, vector<256x256xf32>, vector<16x256xf32> -> vector<16x256xf32>
    %54 = vector.broadcast %49 : vector<1x256xf32> to vector<16x256xf32>
    %55 = arith.addf %54, %53 : vector<16x256xf32>
    %c8_65 = arith.constant 8 : index
    %c0_66 = arith.constant 0 : index
    %56 = vector.load %arg9[%c8_65, %c0_66] : memref<25x256xf32, #tpu.memory_space<vmem>>, vector<16x256xf32>
    %c2_67 = arith.constant 2 : index
    %c1_68 = arith.constant 1 : index
    %c0_69 = arith.constant 0 : index
    %c0_70 = arith.constant 0 : index
    %57 = vector.load %arg2[%c2_67, %c1_68, %c0_69, %c0_70] : memref<12x3x256x256xf32, #tpu.memory_space<vmem>>, vector<1x1x256x256xf32>
    %58 = vector.shape_cast %57 : vector<1x1x256x256xf32> to vector<256x256xf32>
    %cst_71 = arith.constant dense<0.000000e+00> : vector<16x256xf32>
    %59 = tpu.matmul %56, %58, %cst_71 {dimension_numbers = #tpu.dot_dimension_numbers<[1], [0], [0], [1], [0, 0, 1, 1], [], []>} : vector<16x256xf32>, vector<256x256xf32>, vector<16x256xf32> -> vector<16x256xf32>
    %60 = arith.addf %55, %59 : vector<16x256xf32>
    %c9_72 = arith.constant 9 : index
    %c0_73 = arith.constant 0 : index
    %61 = vector.load %arg9[%c9_72, %c0_73] : memref<25x256xf32, #tpu.memory_space<vmem>>, vector<16x256xf32>
    %c2_74 = arith.constant 2 : index
    %c2_75 = arith.constant 2 : index
    %c0_76 = arith.constant 0 : index
    %c0_77 = arith.constant 0 : index
    %62 = vector.load %arg2[%c2_74, %c2_75, %c0_76, %c0_77] : memref<12x3x256x256xf32, #tpu.memory_space<vmem>>, vector<1x1x256x256xf32>
    %63 = vector.shape_cast %62 : vector<1x1x256x256xf32> to vector<256x256xf32>
    %cst_78 = arith.constant dense<0.000000e+00> : vector<16x256xf32>
    %64 = tpu.matmul %61, %63, %cst_78 {dimension_numbers = #tpu.dot_dimension_numbers<[1], [0], [0], [1], [0, 0, 1, 1], [], []>} : vector<16x256xf32>, vector<256x256xf32>, vector<16x256xf32> -> vector<16x256xf32>
    %65 = arith.addf %60, %64 : vector<16x256xf32>
    %cst_79 = arith.constant dense<0.000000e+00> : vector<256xf32>
    %66 = vector.multi_reduction <add>, %65, %cst_79 [0] : vector<16x256xf32> to vector<256xf32>
    %67 = vector.shape_cast %66 : vector<256xf32> to vector<1x256xf32>
    %68 = vector.extract_strided_slice %67 {offsets = [0, 0], sizes = [1, 128], strides = [1, 1]} : vector<1x256xf32> to vector<1x128xf32>
    %69 = vector.extract_strided_slice %67 {offsets = [0, 128], sizes = [1, 128], strides = [1, 1]} : vector<1x256xf32> to vector<1x128xf32>
    %70 = arith.addf %68, %69 : vector<1x128xf32>
    %71 = vector.extract_strided_slice %70 {offsets = [0, 0], sizes = [1, 64], strides = [1, 1]} : vector<1x128xf32> to vector<1x64xf32>
    %72 = vector.extract_strided_slice %70 {offsets = [0, 64], sizes = [1, 64], strides = [1, 1]} : vector<1x128xf32> to vector<1x64xf32>
    %73 = arith.addf %71, %72 : vector<1x64xf32>
    %74 = vector.extract_strided_slice %73 {offsets = [0, 0], sizes = [1, 32], strides = [1, 1]} : vector<1x64xf32> to vector<1x32xf32>
    %75 = vector.extract_strided_slice %73 {offsets = [0, 32], sizes = [1, 32], strides = [1, 1]} : vector<1x64xf32> to vector<1x32xf32>
    %76 = arith.addf %74, %75 : vector<1x32xf32>
    %77 = vector.extract_strided_slice %76 {offsets = [0, 0], sizes = [1, 16], strides = [1, 1]} : vector<1x32xf32> to vector<1x16xf32>
    %78 = vector.extract_strided_slice %76 {offsets = [0, 16], sizes = [1, 16], strides = [1, 1]} : vector<1x32xf32> to vector<1x16xf32>
    %79 = arith.addf %77, %78 : vector<1x16xf32>
    %cst_80 = arith.constant 3.906250e-03 : f32
    %80 = vector.broadcast %cst_80 : f32 to vector<1x16xf32>
    %81 = arith.mulf %79, %80 : vector<1x16xf32>
    %c0_81 = arith.constant 0 : index
    %c0_82 = arith.constant 0 : index
    %c0_83 = arith.constant 0 : index
    %82 = vector.load %arg4[%c0_81, %c0_82, %c0_83] : memref<4x4x16xf32, #tpu.memory_space<vmem>>, vector<1x4x16xf32>
    %83 = vector.shape_cast %82 : vector<1x4x16xf32> to vector<4x16xf32>
    %84 = vector.broadcast %81 : vector<1x16xf32> to vector<4x16xf32>
    %85 = arith.mulf %84, %83 : vector<4x16xf32>
    %cst_84 = arith.constant dense<0.000000e+00> : vector<4xf32>
    %86 = vector.multi_reduction <add>, %85, %cst_84 [1] : vector<4x16xf32> to vector<4xf32>
    %87 = vector.shape_cast %86 : vector<4xf32> to vector<4x1xf32>
    %c0_85 = arith.constant 0 : index
    %c0_86 = arith.constant 0 : index
    %c0_87 = arith.constant 0 : index
    %88 = vector.load %arg5[%c0_85, %c0_86, %c0_87] : memref<4x4x1xf32, #tpu.memory_space<vmem>>, vector<1x4x1xf32>
    %89 = vector.shape_cast %88 : vector<1x4x1xf32> to vector<4x1xf32>
    %90 = arith.addf %87, %89 : vector<4x1xf32>
    %cst_88 = arith.constant 0.000000e+00 : f32
    %91 = vector.broadcast %cst_88 : f32 to vector<4x1xf32>
    %92 = arith.maximumf %90, %91 : vector<4x1xf32>
    %c0_89 = arith.constant 0 : index
    %c0_90 = arith.constant 0 : index
    %c0_91 = arith.constant 0 : index
    %93 = vector.load %arg6[%c0_89, %c0_90, %c0_91] : memref<4x4x16xf32, #tpu.memory_space<vmem>>, vector<1x4x16xf32>
    %94 = vector.shape_cast %93 : vector<1x4x16xf32> to vector<4x16xf32>
    %95 = vector.broadcast %92 : vector<4x1xf32> to vector<4x16xf32>
    %96 = arith.mulf %95, %94 : vector<4x16xf32>
    %cst_92 = arith.constant dense<0.000000e+00> : vector<16xf32>
    %97 = vector.multi_reduction <add>, %96, %cst_92 [0] : vector<4x16xf32> to vector<16xf32>
    %98 = vector.shape_cast %97 : vector<16xf32> to vector<1x16xf32>
    %c0_93 = arith.constant 0 : index
    %c0_94 = arith.constant 0 : index
    %c0_95 = arith.constant 0 : index
    %99 = vector.load %arg7[%c0_93, %c0_94, %c0_95] : memref<4x1x16xf32, #tpu.memory_space<vmem>>, vector<1x1x16xf32>
    %100 = vector.shape_cast %99 : vector<1x1x16xf32> to vector<1x16xf32>
    %101 = arith.addf %98, %100 : vector<1x16xf32>
    %102 = arith.negf %101 : vector<1x16xf32>
    %103 = math.exp %102 : vector<1x16xf32>
    %cst_96 = arith.constant 1.000000e+00 : f32
    %104 = vector.broadcast %cst_96 : f32 to vector<1x16xf32>
    %105 = arith.addf %104, %103 : vector<1x16xf32>
    %106 = arith.divf %104, %105 : vector<1x16xf32>
    %107 = tpu.concatenate %106, %106 in 1 : vector<1x16xf32>, vector<1x16xf32> -> vector<1x32xf32>
    %108 = tpu.concatenate %107, %107 in 1 : vector<1x32xf32>, vector<1x32xf32> -> vector<1x64xf32>
    %109 = tpu.concatenate %108, %108 in 1 : vector<1x64xf32>, vector<1x64xf32> -> vector<1x128xf32>
    %110 = tpu.concatenate %109, %109 in 1 : vector<1x128xf32>, vector<1x128xf32> -> vector<1x256xf32>
    %111 = vector.broadcast %110 : vector<1x256xf32> to vector<16x256xf32>
    %112 = arith.mulf %65, %111 : vector<16x256xf32>
    %113 = arith.addf %112, %22 : vector<16x256xf32>
    %c8_97 = arith.constant 8 : index
    %c0_98 = arith.constant 0 : index
    %114 = vector.load %arg9[%c8_97, %c0_98] : memref<25x256xf32, #tpu.memory_space<vmem>>, vector<16x256xf32>
    tpu.vector_store %arg9[%c8_97, %c0_98], %113 {strides = array<i32>} : memref<25x256xf32, #tpu.memory_space<vmem>>, vector<16x256xf32>,
    %c3 = arith.constant 3 : index
    %c0_99 = arith.constant 0 : index
    %c0_100 = arith.constant 0 : index
    %115 = vector.load %arg3[%c3, %c0_99, %c0_100] : memref<12x1x256xf32, #tpu.memory_space<vmem>>, vector<1x1x256xf32>
    %116 = vector.shape_cast %115 : vector<1x1x256xf32> to vector<1x256xf32>
    %c7_101 = arith.constant 7 : index
    %c0_102 = arith.constant 0 : index
    %117 = vector.load %arg9[%c7_101, %c0_102] : memref<25x256xf32, #tpu.memory_space<vmem>>, vector<16x256xf32>
    %c3_103 = arith.constant 3 : index
    %c0_104 = arith.constant 0 : index
    %c0_105 = arith.constant 0 : index
    %c0_106 = arith.constant 0 : index
    %118 = vector.load %arg2[%c3_103, %c0_104, %c0_105, %c0_106] : memref<12x3x256x256xf32, #tpu.memory_space<vmem>>, vector<1x1x256x256xf32>
    %119 = vector.shape_cast %118 : vector<1x1x256x256xf32> to vector<256x256xf32>
    %cst_107 = arith.constant dense<0.000000e+00> : vector<16x256xf32>
    %120 = tpu.matmul %117, %119, %cst_107 {dimension_numbers = #tpu.dot_dimension_numbers<[1], [0], [0], [1], [0, 0, 1, 1], [], []>} : vector<16x256xf32>, vector<256x256xf32>, vector<16x256xf32> -> vector<16x256xf32>
    %121 = vector.broadcast %116 : vector<1x256xf32> to vector<16x256xf32>
    %122 = arith.addf %121, %120 : vector<16x256xf32>
    %c8_108 = arith.constant 8 : index
    %c0_109 = arith.constant 0 : index
    %123 = vector.load %arg9[%c8_108, %c0_109] : memref<25x256xf32, #tpu.memory_space<vmem>>, vector<16x256xf32>
    %c3_110 = arith.constant 3 : index
    %c1_111 = arith.constant 1 : index
    %c0_112 = arith.constant 0 : index
    %c0_113 = arith.constant 0 : index
    %124 = vector.load %arg2[%c3_110, %c1_111, %c0_112, %c0_113] : memref<12x3x256x256xf32, #tpu.memory_space<vmem>>, vector<1x1x256x256xf32>
    %125 = vector.shape_cast %124 : vector<1x1x256x256xf32> to vector<256x256xf32>
    %cst_114 = arith.constant dense<0.000000e+00> : vector<16x256xf32>
    %126 = tpu.matmul %123, %125, %cst_114 {dimension_numbers = #tpu.dot_dimension_numbers<[1], [0], [0], [1], [0, 0, 1, 1], [], []>} : vector<16x256xf32>, vector<256x256xf32>, vector<16x256xf32> -> vector<16x256xf32>
    %127 = arith.addf %122, %126 : vector<16x256xf32>
    %c9_115 = arith.constant 9 : index
    %c0_116 = arith.constant 0 : index
    %128 = vector.load %arg9[%c9_115, %c0_116] : memref<25x256xf32, #tpu.memory_space<vmem>>, vector<16x256xf32>
    %c3_117 = arith.constant 3 : index
    %c2_118 = arith.constant 2 : index
    %c0_119 = arith.constant 0 : index
    %c0_120 = arith.constant 0 : index
    %129 = vector.load %arg2[%c3_117, %c2_118, %c0_119, %c0_120] : memref<12x3x256x256xf32, #tpu.memory_space<vmem>>, vector<1x1x256x256xf32>
    %130 = vector.shape_cast %129 : vector<1x1x256x256xf32> to vector<256x256xf32>
    %cst_121 = arith.constant dense<0.000000e+00> : vector<16x256xf32>
    %131 = tpu.matmul %128, %130, %cst_121 {dimension_numbers = #tpu.dot_dimension_numbers<[1], [0], [0], [1], [0, 0, 1, 1], [], []>} : vector<16x256xf32>, vector<256x256xf32>, vector<16x256xf32> -> vector<16x256xf32>
    %132 = arith.addf %127, %131 : vector<16x256xf32>
    %cst_122 = arith.constant 0.000000e+00 : f32
    %133 = vector.broadcast %cst_122 : f32 to vector<16x256xf32>
    %134 = arith.cmpf ogt, %132, %133 : vector<16x256xf32>
    %cst_123 = arith.constant 2.000000e-01 : f32
    %135 = vector.broadcast %cst_123 : f32 to vector<16x256xf32>
    %136 = arith.mulf %135, %132 : vector<16x256xf32>
    %137 = arith.select %134, %132, %136 : vector<16x256xi1>, vector<16x256xf32>
    %c8_124 = arith.constant 8 : index
    %c0_125 = arith.constant 0 : index
    %138 = vector.load %arg9[%c8_124, %c0_125] : memref<25x256xf32, #tpu.memory_space<vmem>>, vector<16x256xf32>
    tpu.vector_store %arg9[%c8_124, %c0_125], %137 {strides = array<i32>} : memref<25x256xf32, #tpu.memory_space<vmem>>, vector<16x256xf32>,
    %c4 = arith.constant 4 : index
    %c0_126 = arith.constant 0 : index
    %c0_127 = arith.constant 0 : index
    %139 = vector.load %arg3[%c4, %c0_126, %c0_127] : memref<12x1x256xf32, #tpu.memory_space<vmem>>, vector<1x1x256xf32>
    %140 = vector.shape_cast %139 : vector<1x1x256xf32> to vector<1x256xf32>
    %c7_128 = arith.constant 7 : index
    %c0_129 = arith.constant 0 : index
    %141 = vector.load %arg9[%c7_128, %c0_129] : memref<25x256xf32, #tpu.memory_space<vmem>>, vector<16x256xf32>
    %c4_130 = arith.constant 4 : index
    %c0_131 = arith.constant 0 : index
    %c0_132 = arith.constant 0 : index
    %c0_133 = arith.constant 0 : index
    %142 = vector.load %arg2[%c4_130, %c0_131, %c0_132, %c0_133] : memref<12x3x256x256xf32, #tpu.memory_space<vmem>>, vector<1x1x256x256xf32>
    %143 = vector.shape_cast %142 : vector<1x1x256x256xf32> to vector<256x256xf32>
    %cst_134 = arith.constant dense<0.000000e+00> : vector<16x256xf32>
    %144 = tpu.matmul %141, %143, %cst_134 {dimension_numbers = #tpu.dot_dimension_numbers<[1], [0], [0], [1], [0, 0, 1, 1], [], []>} : vector<16x256xf32>, vector<256x256xf32>, vector<16x256xf32> -> vector<16x256xf32>
    %145 = vector.broadcast %140 : vector<1x256xf32> to vector<16x256xf32>
    %146 = arith.addf %145, %144 : vector<16x256xf32>
    %c8_135 = arith.constant 8 : index
    %c0_136 = arith.constant 0 : index
    %147 = vector.load %arg9[%c8_135, %c0_136] : memref<25x256xf32, #tpu.memory_space<vmem>>, vector<16x256xf32>
    %c4_137 = arith.constant 4 : index
    %c1_138 = arith.constant 1 : index
    %c0_139 = arith.constant 0 : index
    %c0_140 = arith.constant 0 : index
    %148 = vector.load %arg2[%c4_137, %c1_138, %c0_139, %c0_140] : memref<12x3x256x256xf32, #tpu.memory_space<vmem>>, vector<1x1x256x256xf32>
    %149 = vector.shape_cast %148 : vector<1x1x256x256xf32> to vector<256x256xf32>
    %cst_141 = arith.constant dense<0.000000e+00> : vector<16x256xf32>
    %150 = tpu.matmul %147, %149, %cst_141 {dimension_numbers = #tpu.dot_dimension_numbers<[1], [0], [0], [1], [0, 0, 1, 1], [], []>} : vector<16x256xf32>, vector<256x256xf32>, vector<16x256xf32> -> vector<16x256xf32>
    %151 = arith.addf %146, %150 : vector<16x256xf32>
    %c9_142 = arith.constant 9 : index
    %c0_143 = arith.constant 0 : index
    %152 = vector.load %arg9[%c9_142, %c0_143] : memref<25x256xf32, #tpu.memory_space<vmem>>, vector<16x256xf32>
    %c4_144 = arith.constant 4 : index
    %c2_145 = arith.constant 2 : index
    %c0_146 = arith.constant 0 : index
    %c0_147 = arith.constant 0 : index
    %153 = vector.load %arg2[%c4_144, %c2_145, %c0_146, %c0_147] : memref<12x3x256x256xf32, #tpu.memory_space<vmem>>, vector<1x1x256x256xf32>
    %154 = vector.shape_cast %153 : vector<1x1x256x256xf32> to vector<256x256xf32>
    %cst_148 = arith.constant dense<0.000000e+00> : vector<16x256xf32>
    %155 = tpu.matmul %152, %154, %cst_148 {dimension_numbers = #tpu.dot_dimension_numbers<[1], [0], [0], [1], [0, 0, 1, 1], [], []>} : vector<16x256xf32>, vector<256x256xf32>, vector<16x256xf32> -> vector<16x256xf32>
    %156 = arith.addf %151, %155 : vector<16x256xf32>
    %cst_149 = arith.constant dense<0.000000e+00> : vector<256xf32>
    %157 = vector.multi_reduction <add>, %156, %cst_149 [0] : vector<16x256xf32> to vector<256xf32>
    %158 = vector.shape_cast %157 : vector<256xf32> to vector<1x256xf32>
    %159 = vector.extract_strided_slice %158 {offsets = [0, 0], sizes = [1, 128], strides = [1, 1]} : vector<1x256xf32> to vector<1x128xf32>
    %160 = vector.extract_strided_slice %158 {offsets = [0, 128], sizes = [1, 128], strides = [1, 1]} : vector<1x256xf32> to vector<1x128xf32>
    %161 = arith.addf %159, %160 : vector<1x128xf32>
    %162 = vector.extract_strided_slice %161 {offsets = [0, 0], sizes = [1, 64], strides = [1, 1]} : vector<1x128xf32> to vector<1x64xf32>
    %163 = vector.extract_strided_slice %161 {offsets = [0, 64], sizes = [1, 64], strides = [1, 1]} : vector<1x128xf32> to vector<1x64xf32>
    %164 = arith.addf %162, %163 : vector<1x64xf32>
    %165 = vector.extract_strided_slice %164 {offsets = [0, 0], sizes = [1, 32], strides = [1, 1]} : vector<1x64xf32> to vector<1x32xf32>
    %166 = vector.extract_strided_slice %164 {offsets = [0, 32], sizes = [1, 32], strides = [1, 1]} : vector<1x64xf32> to vector<1x32xf32>
    %167 = arith.addf %165, %166 : vector<1x32xf32>
    %168 = vector.extract_strided_slice %167 {offsets = [0, 0], sizes = [1, 16], strides = [1, 1]} : vector<1x32xf32> to vector<1x16xf32>
    %169 = vector.extract_strided_slice %167 {offsets = [0, 16], sizes = [1, 16], strides = [1, 1]} : vector<1x32xf32> to vector<1x16xf32>
    %170 = arith.addf %168, %169 : vector<1x16xf32>
    %cst_150 = arith.constant 3.906250e-03 : f32
    %171 = vector.broadcast %cst_150 : f32 to vector<1x16xf32>
    %172 = arith.mulf %170, %171 : vector<1x16xf32>
    %c1_151 = arith.constant 1 : index
    %c0_152 = arith.constant 0 : index
    %c0_153 = arith.constant 0 : index
    %173 = vector.load %arg4[%c1_151, %c0_152, %c0_153] : memref<4x4x16xf32, #tpu.memory_space<vmem>>, vector<1x4x16xf32>
    %174 = vector.shape_cast %173 : vector<1x4x16xf32> to vector<4x16xf32>
    %175 = vector.broadcast %172 : vector<1x16xf32> to vector<4x16xf32>
    %176 = arith.mulf %175, %174 : vector<4x16xf32>
    %cst_154 = arith.constant dense<0.000000e+00> : vector<4xf32>
    %177 = vector.multi_reduction <add>, %176, %cst_154 [1] : vector<4x16xf32> to vector<4xf32>
    %178 = vector.shape_cast %177 : vector<4xf32> to vector<4x1xf32>
    %c1_155 = arith.constant 1 : index
    %c0_156 = arith.constant 0 : index
    %c0_157 = arith.constant 0 : index
    %179 = vector.load %arg5[%c1_155, %c0_156, %c0_157] : memref<4x4x1xf32, #tpu.memory_space<vmem>>, vector<1x4x1xf32>
    %180 = vector.shape_cast %179 : vector<1x4x1xf32> to vector<4x1xf32>
    %181 = arith.addf %178, %180 : vector<4x1xf32>
    %cst_158 = arith.constant 0.000000e+00 : f32
    %182 = vector.broadcast %cst_158 : f32 to vector<4x1xf32>
    %183 = arith.maximumf %181, %182 : vector<4x1xf32>
    %c1_159 = arith.constant 1 : index
    %c0_160 = arith.constant 0 : index
    %c0_161 = arith.constant 0 : index
    %184 = vector.load %arg6[%c1_159, %c0_160, %c0_161] : memref<4x4x16xf32, #tpu.memory_space<vmem>>, vector<1x4x16xf32>
    %185 = vector.shape_cast %184 : vector<1x4x16xf32> to vector<4x16xf32>
    %186 = vector.broadcast %183 : vector<4x1xf32> to vector<4x16xf32>
    %187 = arith.mulf %186, %185 : vector<4x16xf32>
    %cst_162 = arith.constant dense<0.000000e+00> : vector<16xf32>
    %188 = vector.multi_reduction <add>, %187, %cst_162 [0] : vector<4x16xf32> to vector<16xf32>
    %189 = vector.shape_cast %188 : vector<16xf32> to vector<1x16xf32>
    %c1_163 = arith.constant 1 : index
    %c0_164 = arith.constant 0 : index
    %c0_165 = arith.constant 0 : index
    %190 = vector.load %arg7[%c1_163, %c0_164, %c0_165] : memref<4x1x16xf32, #tpu.memory_space<vmem>>, vector<1x1x16xf32>
    %191 = vector.shape_cast %190 : vector<1x1x16xf32> to vector<1x16xf32>
    %192 = arith.addf %189, %191 : vector<1x16xf32>
    %193 = arith.negf %192 : vector<1x16xf32>
    %194 = math.exp %193 : vector<1x16xf32>
    %cst_166 = arith.constant 1.000000e+00 : f32
    %195 = vector.broadcast %cst_166 : f32 to vector<1x16xf32>
    %196 = arith.addf %195, %194 : vector<1x16xf32>
    %197 = arith.divf %195, %196 : vector<1x16xf32>
    %198 = tpu.concatenate %197, %197 in 1 : vector<1x16xf32>, vector<1x16xf32> -> vector<1x32xf32>
    %199 = tpu.concatenate %198, %198 in 1 : vector<1x32xf32>, vector<1x32xf32> -> vector<1x64xf32>
    %200 = tpu.concatenate %199, %199 in 1 : vector<1x64xf32>, vector<1x64xf32> -> vector<1x128xf32>
    %201 = tpu.concatenate %200, %200 in 1 : vector<1x128xf32>, vector<1x128xf32> -> vector<1x256xf32>
    %202 = vector.broadcast %201 : vector<1x256xf32> to vector<16x256xf32>
    %203 = arith.mulf %156, %202 : vector<16x256xf32>
    %204 = arith.addf %203, %113 : vector<16x256xf32>
    %c8_167 = arith.constant 8 : index
    %c0_168 = arith.constant 0 : index
    %205 = vector.load %arg9[%c8_167, %c0_168] : memref<25x256xf32, #tpu.memory_space<vmem>>, vector<16x256xf32>
    tpu.vector_store %arg9[%c8_167, %c0_168], %204 {strides = array<i32>} : memref<25x256xf32, #tpu.memory_space<vmem>>, vector<16x256xf32>,
    %c5 = arith.constant 5 : index
    %c0_169 = arith.constant 0 : index
    %c0_170 = arith.constant 0 : index
    %206 = vector.load %arg3[%c5, %c0_169, %c0_170] : memref<12x1x256xf32, #tpu.memory_space<vmem>>, vector<1x1x256xf32>
    %207 = vector.shape_cast %206 : vector<1x1x256xf32> to vector<1x256xf32>
    %c7_171 = arith.constant 7 : index
    %c0_172 = arith.constant 0 : index
    %208 = vector.load %arg9[%c7_171, %c0_172] : memref<25x256xf32, #tpu.memory_space<vmem>>, vector<16x256xf32>
    %c5_173 = arith.constant 5 : index
    %c0_174 = arith.constant 0 : index
    %c0_175 = arith.constant 0 : index
    %c0_176 = arith.constant 0 : index
    %209 = vector.load %arg2[%c5_173, %c0_174, %c0_175, %c0_176] : memref<12x3x256x256xf32, #tpu.memory_space<vmem>>, vector<1x1x256x256xf32>
    %210 = vector.shape_cast %209 : vector<1x1x256x256xf32> to vector<256x256xf32>
    %cst_177 = arith.constant dense<0.000000e+00> : vector<16x256xf32>
    %211 = tpu.matmul %208, %210, %cst_177 {dimension_numbers = #tpu.dot_dimension_numbers<[1], [0], [0], [1], [0, 0, 1, 1], [], []>} : vector<16x256xf32>, vector<256x256xf32>, vector<16x256xf32> -> vector<16x256xf32>
    %212 = vector.broadcast %207 : vector<1x256xf32> to vector<16x256xf32>
    %213 = arith.addf %212, %211 : vector<16x256xf32>
    %c8_178 = arith.constant 8 : index
    %c0_179 = arith.constant 0 : index
    %214 = vector.load %arg9[%c8_178, %c0_179] : memref<25x256xf32, #tpu.memory_space<vmem>>, vector<16x256xf32>
    %c5_180 = arith.constant 5 : index
    %c1_181 = arith.constant 1 : index
    %c0_182 = arith.constant 0 : index
    %c0_183 = arith.constant 0 : index
    %215 = vector.load %arg2[%c5_180, %c1_181, %c0_182, %c0_183] : memref<12x3x256x256xf32, #tpu.memory_space<vmem>>, vector<1x1x256x256xf32>
    %216 = vector.shape_cast %215 : vector<1x1x256x256xf32> to vector<256x256xf32>
    %cst_184 = arith.constant dense<0.000000e+00> : vector<16x256xf32>
    %217 = tpu.matmul %214, %216, %cst_184 {dimension_numbers = #tpu.dot_dimension_numbers<[1], [0], [0], [1], [0, 0, 1, 1], [], []>} : vector<16x256xf32>, vector<256x256xf32>, vector<16x256xf32> -> vector<16x256xf32>
    %218 = arith.addf %213, %217 : vector<16x256xf32>
    %c9_185 = arith.constant 9 : index
    %c0_186 = arith.constant 0 : index
    %219 = vector.load %arg9[%c9_185, %c0_186] : memref<25x256xf32, #tpu.memory_space<vmem>>, vector<16x256xf32>
    %c5_187 = arith.constant 5 : index
    %c2_188 = arith.constant 2 : index
    %c0_189 = arith.constant 0 : index
    %c0_190 = arith.constant 0 : index
    %220 = vector.load %arg2[%c5_187, %c2_188, %c0_189, %c0_190] : memref<12x3x256x256xf32, #tpu.memory_space<vmem>>, vector<1x1x256x256xf32>
    %221 = vector.shape_cast %220 : vector<1x1x256x256xf32> to vector<256x256xf32>
    %cst_191 = arith.constant dense<0.000000e+00> : vector<16x256xf32>
    %222 = tpu.matmul %219, %221, %cst_191 {dimension_numbers = #tpu.dot_dimension_numbers<[1], [0], [0], [1], [0, 0, 1, 1], [], []>} : vector<16x256xf32>, vector<256x256xf32>, vector<16x256xf32> -> vector<16x256xf32>
    %223 = arith.addf %218, %222 : vector<16x256xf32>
    %224 = arith.addf %223, %22 : vector<16x256xf32>
    %c8_192 = arith.constant 8 : index
    %c0_193 = arith.constant 0 : index
    %225 = vector.load %arg9[%c8_192, %c0_193] : memref<25x256xf32, #tpu.memory_space<vmem>>, vector<16x256xf32>
    tpu.vector_store %arg9[%c8_192, %c0_193], %224 {strides = array<i32>} : memref<25x256xf32, #tpu.memory_space<vmem>>, vector<16x256xf32>,
    %c6 = arith.constant 6 : index
    %c0_194 = arith.constant 0 : index
    %c0_195 = arith.constant 0 : index
    %226 = vector.load %arg3[%c6, %c0_194, %c0_195] : memref<12x1x256xf32, #tpu.memory_space<vmem>>, vector<1x1x256xf32>
    %227 = vector.shape_cast %226 : vector<1x1x256xf32> to vector<1x256xf32>
    %c7_196 = arith.constant 7 : index
    %c0_197 = arith.constant 0 : index
    %228 = vector.load %arg9[%c7_196, %c0_197] : memref<25x256xf32, #tpu.memory_space<vmem>>, vector<16x256xf32>
    %c6_198 = arith.constant 6 : index
    %c0_199 = arith.constant 0 : index
    %c0_200 = arith.constant 0 : index
    %c0_201 = arith.constant 0 : index
    %229 = vector.load %arg2[%c6_198, %c0_199, %c0_200, %c0_201] : memref<12x3x256x256xf32, #tpu.memory_space<vmem>>, vector<1x1x256x256xf32>
    %230 = vector.shape_cast %229 : vector<1x1x256x256xf32> to vector<256x256xf32>
    %cst_202 = arith.constant dense<0.000000e+00> : vector<16x256xf32>
    %231 = tpu.matmul %228, %230, %cst_202 {dimension_numbers = #tpu.dot_dimension_numbers<[1], [0], [0], [1], [0, 0, 1, 1], [], []>} : vector<16x256xf32>, vector<256x256xf32>, vector<16x256xf32> -> vector<16x256xf32>
    %232 = vector.broadcast %227 : vector<1x256xf32> to vector<16x256xf32>
    %233 = arith.addf %232, %231 : vector<16x256xf32>
    %c8_203 = arith.constant 8 : index
    %c0_204 = arith.constant 0 : index
    %234 = vector.load %arg9[%c8_203, %c0_204] : memref<25x256xf32, #tpu.memory_space<vmem>>, vector<16x256xf32>
    %c6_205 = arith.constant 6 : index
    %c1_206 = arith.constant 1 : index
    %c0_207 = arith.constant 0 : index
    %c0_208 = arith.constant 0 : index
    %235 = vector.load %arg2[%c6_205, %c1_206, %c0_207, %c0_208] : memref<12x3x256x256xf32, #tpu.memory_space<vmem>>, vector<1x1x256x256xf32>
    %236 = vector.shape_cast %235 : vector<1x1x256x256xf32> to vector<256x256xf32>
    %cst_209 = arith.constant dense<0.000000e+00> : vector<16x256xf32>
    %237 = tpu.matmul %234, %236, %cst_209 {dimension_numbers = #tpu.dot_dimension_numbers<[1], [0], [0], [1], [0, 0, 1, 1], [], []>} : vector<16x256xf32>, vector<256x256xf32>, vector<16x256xf32> -> vector<16x256xf32>
    %238 = arith.addf %233, %237 : vector<16x256xf32>
    %c9_210 = arith.constant 9 : index
    %c0_211 = arith.constant 0 : index
    %239 = vector.load %arg9[%c9_210, %c0_211] : memref<25x256xf32, #tpu.memory_space<vmem>>, vector<16x256xf32>
    %c6_212 = arith.constant 6 : index
    %c2_213 = arith.constant 2 : index
    %c0_214 = arith.constant 0 : index
    %c0_215 = arith.constant 0 : index
    %240 = vector.load %arg2[%c6_212, %c2_213, %c0_214, %c0_215] : memref<12x3x256x256xf32, #tpu.memory_space<vmem>>, vector<1x1x256x256xf32>
    %241 = vector.shape_cast %240 : vector<1x1x256x256xf32> to vector<256x256xf32>
    %cst_216 = arith.constant dense<0.000000e+00> : vector<16x256xf32>
    %242 = tpu.matmul %239, %241, %cst_216 {dimension_numbers = #tpu.dot_dimension_numbers<[1], [0], [0], [1], [0, 0, 1, 1], [], []>} : vector<16x256xf32>, vector<256x256xf32>, vector<16x256xf32> -> vector<16x256xf32>
    %243 = arith.addf %238, %242 : vector<16x256xf32>
    %cst_217 = arith.constant 0.000000e+00 : f32
    %244 = vector.broadcast %cst_217 : f32 to vector<16x256xf32>
    %245 = arith.cmpf ogt, %243, %244 : vector<16x256xf32>
    %cst_218 = arith.constant 2.000000e-01 : f32
    %246 = vector.broadcast %cst_218 : f32 to vector<16x256xf32>
    %247 = arith.mulf %246, %243 : vector<16x256xf32>
    %248 = arith.select %245, %243, %247 : vector<16x256xi1>, vector<16x256xf32>
    %c8_219 = arith.constant 8 : index
    %c0_220 = arith.constant 0 : index
    %249 = vector.load %arg9[%c8_219, %c0_220] : memref<25x256xf32, #tpu.memory_space<vmem>>, vector<16x256xf32>
    tpu.vector_store %arg9[%c8_219, %c0_220], %248 {strides = array<i32>} : memref<25x256xf32, #tpu.memory_space<vmem>>, vector<16x256xf32>,
    %c7_221 = arith.constant 7 : index
    %c0_222 = arith.constant 0 : index
    %c0_223 = arith.constant 0 : index
    %250 = vector.load %arg3[%c7_221, %c0_222, %c0_223] : memref<12x1x256xf32, #tpu.memory_space<vmem>>, vector<1x1x256xf32>
    %251 = vector.shape_cast %250 : vector<1x1x256xf32> to vector<1x256xf32>
    %c7_224 = arith.constant 7 : index
    %c0_225 = arith.constant 0 : index
    %252 = vector.load %arg9[%c7_224, %c0_225] : memref<25x256xf32, #tpu.memory_space<vmem>>, vector<16x256xf32>
    %c7_226 = arith.constant 7 : index
    %c0_227 = arith.constant 0 : index
    %c0_228 = arith.constant 0 : index
    %c0_229 = arith.constant 0 : index
    %253 = vector.load %arg2[%c7_226, %c0_227, %c0_228, %c0_229] : memref<12x3x256x256xf32, #tpu.memory_space<vmem>>, vector<1x1x256x256xf32>
    %254 = vector.shape_cast %253 : vector<1x1x256x256xf32> to vector<256x256xf32>
    %cst_230 = arith.constant dense<0.000000e+00> : vector<16x256xf32>
    %255 = tpu.matmul %252, %254, %cst_230 {dimension_numbers = #tpu.dot_dimension_numbers<[1], [0], [0], [1], [0, 0, 1, 1], [], []>} : vector<16x256xf32>, vector<256x256xf32>, vector<16x256xf32> -> vector<16x256xf32>
    %256 = vector.broadcast %251 : vector<1x256xf32> to vector<16x256xf32>
    %257 = arith.addf %256, %255 : vector<16x256xf32>
    %c8_231 = arith.constant 8 : index
    %c0_232 = arith.constant 0 : index
    %258 = vector.load %arg9[%c8_231, %c0_232] : memref<25x256xf32, #tpu.memory_space<vmem>>, vector<16x256xf32>
    %c7_233 = arith.constant 7 : index
    %c1_234 = arith.constant 1 : index
    %c0_235 = arith.constant 0 : index
    %c0_236 = arith.constant 0 : index
    %259 = vector.load %arg2[%c7_233, %c1_234, %c0_235, %c0_236] : memref<12x3x256x256xf32, #tpu.memory_space<vmem>>, vector<1x1x256x256xf32>
    %260 = vector.shape_cast %259 : vector<1x1x256x256xf32> to vector<256x256xf32>
    %cst_237 = arith.constant dense<0.000000e+00> : vector<16x256xf32>
    %261 = tpu.matmul %258, %260, %cst_237 {dimension_numbers = #tpu.dot_dimension_numbers<[1], [0], [0], [1], [0, 0, 1, 1], [], []>} : vector<16x256xf32>, vector<256x256xf32>, vector<16x256xf32> -> vector<16x256xf32>
    %262 = arith.addf %257, %261 : vector<16x256xf32>
    %c9_238 = arith.constant 9 : index
    %c0_239 = arith.constant 0 : index
    %263 = vector.load %arg9[%c9_238, %c0_239] : memref<25x256xf32, #tpu.memory_space<vmem>>, vector<16x256xf32>
    %c7_240 = arith.constant 7 : index
    %c2_241 = arith.constant 2 : index
    %c0_242 = arith.constant 0 : index
    %c0_243 = arith.constant 0 : index
    %264 = vector.load %arg2[%c7_240, %c2_241, %c0_242, %c0_243] : memref<12x3x256x256xf32, #tpu.memory_space<vmem>>, vector<1x1x256x256xf32>
    %265 = vector.shape_cast %264 : vector<1x1x256x256xf32> to vector<256x256xf32>
    %cst_244 = arith.constant dense<0.000000e+00> : vector<16x256xf32>
    %266 = tpu.matmul %263, %265, %cst_244 {dimension_numbers = #tpu.dot_dimension_numbers<[1], [0], [0], [1], [0, 0, 1, 1], [], []>} : vector<16x256xf32>, vector<256x256xf32>, vector<16x256xf32> -> vector<16x256xf32>
    %267 = arith.addf %262, %266 : vector<16x256xf32>
    %cst_245 = arith.constant dense<0.000000e+00> : vector<256xf32>
    %268 = vector.multi_reduction <add>, %267, %cst_245 [0] : vector<16x256xf32> to vector<256xf32>
    %269 = vector.shape_cast %268 : vector<256xf32> to vector<1x256xf32>
    %270 = vector.extract_strided_slice %269 {offsets = [0, 0], sizes = [1, 128], strides = [1, 1]} : vector<1x256xf32> to vector<1x128xf32>
    %271 = vector.extract_strided_slice %269 {offsets = [0, 128], sizes = [1, 128], strides = [1, 1]} : vector<1x256xf32> to vector<1x128xf32>
    %272 = arith.addf %270, %271 : vector<1x128xf32>
    %273 = vector.extract_strided_slice %272 {offsets = [0, 0], sizes = [1, 64], strides = [1, 1]} : vector<1x128xf32> to vector<1x64xf32>
    %274 = vector.extract_strided_slice %272 {offsets = [0, 64], sizes = [1, 64], strides = [1, 1]} : vector<1x128xf32> to vector<1x64xf32>
    %275 = arith.addf %273, %274 : vector<1x64xf32>
    %276 = vector.extract_strided_slice %275 {offsets = [0, 0], sizes = [1, 32], strides = [1, 1]} : vector<1x64xf32> to vector<1x32xf32>
    %277 = vector.extract_strided_slice %275 {offsets = [0, 32], sizes = [1, 32], strides = [1, 1]} : vector<1x64xf32> to vector<1x32xf32>
    %278 = arith.addf %276, %277 : vector<1x32xf32>
    %279 = vector.extract_strided_slice %278 {offsets = [0, 0], sizes = [1, 16], strides = [1, 1]} : vector<1x32xf32> to vector<1x16xf32>
    %280 = vector.extract_strided_slice %278 {offsets = [0, 16], sizes = [1, 16], strides = [1, 1]} : vector<1x32xf32> to vector<1x16xf32>
    %281 = arith.addf %279, %280 : vector<1x16xf32>
    %cst_246 = arith.constant 3.906250e-03 : f32
    %282 = vector.broadcast %cst_246 : f32 to vector<1x16xf32>
    %283 = arith.mulf %281, %282 : vector<1x16xf32>
    %c2_247 = arith.constant 2 : index
    %c0_248 = arith.constant 0 : index
    %c0_249 = arith.constant 0 : index
    %284 = vector.load %arg4[%c2_247, %c0_248, %c0_249] : memref<4x4x16xf32, #tpu.memory_space<vmem>>, vector<1x4x16xf32>
    %285 = vector.shape_cast %284 : vector<1x4x16xf32> to vector<4x16xf32>
    %286 = vector.broadcast %283 : vector<1x16xf32> to vector<4x16xf32>
    %287 = arith.mulf %286, %285 : vector<4x16xf32>
    %cst_250 = arith.constant dense<0.000000e+00> : vector<4xf32>
    %288 = vector.multi_reduction <add>, %287, %cst_250 [1] : vector<4x16xf32> to vector<4xf32>
    %289 = vector.shape_cast %288 : vector<4xf32> to vector<4x1xf32>
    %c2_251 = arith.constant 2 : index
    %c0_252 = arith.constant 0 : index
    %c0_253 = arith.constant 0 : index
    %290 = vector.load %arg5[%c2_251, %c0_252, %c0_253] : memref<4x4x1xf32, #tpu.memory_space<vmem>>, vector<1x4x1xf32>
    %291 = vector.shape_cast %290 : vector<1x4x1xf32> to vector<4x1xf32>
    %292 = arith.addf %289, %291 : vector<4x1xf32>
    %cst_254 = arith.constant 0.000000e+00 : f32
    %293 = vector.broadcast %cst_254 : f32 to vector<4x1xf32>
    %294 = arith.maximumf %292, %293 : vector<4x1xf32>
    %c2_255 = arith.constant 2 : index
    %c0_256 = arith.constant 0 : index
    %c0_257 = arith.constant 0 : index
    %295 = vector.load %arg6[%c2_255, %c0_256, %c0_257] : memref<4x4x16xf32, #tpu.memory_space<vmem>>, vector<1x4x16xf32>
    %296 = vector.shape_cast %295 : vector<1x4x16xf32> to vector<4x16xf32>
    %297 = vector.broadcast %294 : vector<4x1xf32> to vector<4x16xf32>
    %298 = arith.mulf %297, %296 : vector<4x16xf32>
    %cst_258 = arith.constant dense<0.000000e+00> : vector<16xf32>
    %299 = vector.multi_reduction <add>, %298, %cst_258 [0] : vector<4x16xf32> to vector<16xf32>
    %300 = vector.shape_cast %299 : vector<16xf32> to vector<1x16xf32>
    %c2_259 = arith.constant 2 : index
    %c0_260 = arith.constant 0 : index
    %c0_261 = arith.constant 0 : index
    %301 = vector.load %arg7[%c2_259, %c0_260, %c0_261] : memref<4x1x16xf32, #tpu.memory_space<vmem>>, vector<1x1x16xf32>
    %302 = vector.shape_cast %301 : vector<1x1x16xf32> to vector<1x16xf32>
    %303 = arith.addf %300, %302 : vector<1x16xf32>
    %304 = arith.negf %303 : vector<1x16xf32>
    %305 = math.exp %304 : vector<1x16xf32>
    %cst_262 = arith.constant 1.000000e+00 : f32
    %306 = vector.broadcast %cst_262 : f32 to vector<1x16xf32>
    %307 = arith.addf %306, %305 : vector<1x16xf32>
    %308 = arith.divf %306, %307 : vector<1x16xf32>
    %309 = tpu.concatenate %308, %308 in 1 : vector<1x16xf32>, vector<1x16xf32> -> vector<1x32xf32>
    %310 = tpu.concatenate %309, %309 in 1 : vector<1x32xf32>, vector<1x32xf32> -> vector<1x64xf32>
    %311 = tpu.concatenate %310, %310 in 1 : vector<1x64xf32>, vector<1x64xf32> -> vector<1x128xf32>
    %312 = tpu.concatenate %311, %311 in 1 : vector<1x128xf32>, vector<1x128xf32> -> vector<1x256xf32>
    %313 = vector.broadcast %312 : vector<1x256xf32> to vector<16x256xf32>
    %314 = arith.mulf %267, %313 : vector<16x256xf32>
    %315 = arith.addf %314, %224 : vector<16x256xf32>
    %c8_263 = arith.constant 8 : index
    %c0_264 = arith.constant 0 : index
    %316 = vector.load %arg9[%c8_263, %c0_264] : memref<25x256xf32, #tpu.memory_space<vmem>>, vector<16x256xf32>
    tpu.vector_store %arg9[%c8_263, %c0_264], %315 {strides = array<i32>} : memref<25x256xf32, #tpu.memory_space<vmem>>, vector<16x256xf32>,
    %c8_265 = arith.constant 8 : index
    %c0_266 = arith.constant 0 : index
    %c0_267 = arith.constant 0 : index
    %317 = vector.load %arg3[%c8_265, %c0_266, %c0_267] : memref<12x1x256xf32, #tpu.memory_space<vmem>>, vector<1x1x256xf32>
    %318 = vector.shape_cast %317 : vector<1x1x256xf32> to vector<1x256xf32>
    %c7_268 = arith.constant 7 : index
    %c0_269 = arith.constant 0 : index
    %319 = vector.load %arg9[%c7_268, %c0_269] : memref<25x256xf32, #tpu.memory_space<vmem>>, vector<16x256xf32>
    %c8_270 = arith.constant 8 : index
    %c0_271 = arith.constant 0 : index
    %c0_272 = arith.constant 0 : index
    %c0_273 = arith.constant 0 : index
    %320 = vector.load %arg2[%c8_270, %c0_271, %c0_272, %c0_273] : memref<12x3x256x256xf32, #tpu.memory_space<vmem>>, vector<1x1x256x256xf32>
    %321 = vector.shape_cast %320 : vector<1x1x256x256xf32> to vector<256x256xf32>
    %cst_274 = arith.constant dense<0.000000e+00> : vector<16x256xf32>
    %322 = tpu.matmul %319, %321, %cst_274 {dimension_numbers = #tpu.dot_dimension_numbers<[1], [0], [0], [1], [0, 0, 1, 1], [], []>} : vector<16x256xf32>, vector<256x256xf32>, vector<16x256xf32> -> vector<16x256xf32>
    %323 = vector.broadcast %318 : vector<1x256xf32> to vector<16x256xf32>
    %324 = arith.addf %323, %322 : vector<16x256xf32>
    %c8_275 = arith.constant 8 : index
    %c0_276 = arith.constant 0 : index
    %325 = vector.load %arg9[%c8_275, %c0_276] : memref<25x256xf32, #tpu.memory_space<vmem>>, vector<16x256xf32>
    %c8_277 = arith.constant 8 : index
    %c1_278 = arith.constant 1 : index
    %c0_279 = arith.constant 0 : index
    %c0_280 = arith.constant 0 : index
    %326 = vector.load %arg2[%c8_277, %c1_278, %c0_279, %c0_280] : memref<12x3x256x256xf32, #tpu.memory_space<vmem>>, vector<1x1x256x256xf32>
    %327 = vector.shape_cast %326 : vector<1x1x256x256xf32> to vector<256x256xf32>
    %cst_281 = arith.constant dense<0.000000e+00> : vector<16x256xf32>
    %328 = tpu.matmul %325, %327, %cst_281 {dimension_numbers = #tpu.dot_dimension_numbers<[1], [0], [0], [1], [0, 0, 1, 1], [], []>} : vector<16x256xf32>, vector<256x256xf32>, vector<16x256xf32> -> vector<16x256xf32>
    %329 = arith.addf %324, %328 : vector<16x256xf32>
    %c9_282 = arith.constant 9 : index
    %c0_283 = arith.constant 0 : index
    %330 = vector.load %arg9[%c9_282, %c0_283] : memref<25x256xf32, #tpu.memory_space<vmem>>, vector<16x256xf32>
    %c8_284 = arith.constant 8 : index
    %c2_285 = arith.constant 2 : index
    %c0_286 = arith.constant 0 : index
    %c0_287 = arith.constant 0 : index
    %331 = vector.load %arg2[%c8_284, %c2_285, %c0_286, %c0_287] : memref<12x3x256x256xf32, #tpu.memory_space<vmem>>, vector<1x1x256x256xf32>
    %332 = vector.shape_cast %331 : vector<1x1x256x256xf32> to vector<256x256xf32>
    %cst_288 = arith.constant dense<0.000000e+00> : vector<16x256xf32>
    %333 = tpu.matmul %330, %332, %cst_288 {dimension_numbers = #tpu.dot_dimension_numbers<[1], [0], [0], [1], [0, 0, 1, 1], [], []>} : vector<16x256xf32>, vector<256x256xf32>, vector<16x256xf32> -> vector<16x256xf32>
    %334 = arith.addf %329, %333 : vector<16x256xf32>
    %cst_289 = arith.constant 0.000000e+00 : f32
    %335 = vector.broadcast %cst_289 : f32 to vector<16x256xf32>
    %336 = arith.cmpf ogt, %334, %335 : vector<16x256xf32>
    %cst_290 = arith.constant 2.000000e-01 : f32
    %337 = vector.broadcast %cst_290 : f32 to vector<16x256xf32>
    %338 = arith.mulf %337, %334 : vector<16x256xf32>
    %339 = arith.select %336, %334, %338 : vector<16x256xi1>, vector<16x256xf32>
    %c8_291 = arith.constant 8 : index
    %c0_292 = arith.constant 0 : index
    %340 = vector.load %arg9[%c8_291, %c0_292] : memref<25x256xf32, #tpu.memory_space<vmem>>, vector<16x256xf32>
    tpu.vector_store %arg9[%c8_291, %c0_292], %339 {strides = array<i32>} : memref<25x256xf32, #tpu.memory_space<vmem>>, vector<16x256xf32>,
    %c9_293 = arith.constant 9 : index
    %c0_294 = arith.constant 0 : index
    %c0_295 = arith.constant 0 : index
    %341 = vector.load %arg3[%c9_293, %c0_294, %c0_295] : memref<12x1x256xf32, #tpu.memory_space<vmem>>, vector<1x1x256xf32>
    %342 = vector.shape_cast %341 : vector<1x1x256xf32> to vector<1x256xf32>
    %c7_296 = arith.constant 7 : index
    %c0_297 = arith.constant 0 : index
    %343 = vector.load %arg9[%c7_296, %c0_297] : memref<25x256xf32, #tpu.memory_space<vmem>>, vector<16x256xf32>
    %c9_298 = arith.constant 9 : index
    %c0_299 = arith.constant 0 : index
    %c0_300 = arith.constant 0 : index
    %c0_301 = arith.constant 0 : index
    %344 = vector.load %arg2[%c9_298, %c0_299, %c0_300, %c0_301] : memref<12x3x256x256xf32, #tpu.memory_space<vmem>>, vector<1x1x256x256xf32>
    %345 = vector.shape_cast %344 : vector<1x1x256x256xf32> to vector<256x256xf32>
    %cst_302 = arith.constant dense<0.000000e+00> : vector<16x256xf32>
    %346 = tpu.matmul %343, %345, %cst_302 {dimension_numbers = #tpu.dot_dimension_numbers<[1], [0], [0], [1], [0, 0, 1, 1], [], []>} : vector<16x256xf32>, vector<256x256xf32>, vector<16x256xf32> -> vector<16x256xf32>
    %347 = vector.broadcast %342 : vector<1x256xf32> to vector<16x256xf32>
    %348 = arith.addf %347, %346 : vector<16x256xf32>
    %c8_303 = arith.constant 8 : index
    %c0_304 = arith.constant 0 : index
    %349 = vector.load %arg9[%c8_303, %c0_304] : memref<25x256xf32, #tpu.memory_space<vmem>>, vector<16x256xf32>
    %c9_305 = arith.constant 9 : index
    %c1_306 = arith.constant 1 : index
    %c0_307 = arith.constant 0 : index
    %c0_308 = arith.constant 0 : index
    %350 = vector.load %arg2[%c9_305, %c1_306, %c0_307, %c0_308] : memref<12x3x256x256xf32, #tpu.memory_space<vmem>>, vector<1x1x256x256xf32>
    %351 = vector.shape_cast %350 : vector<1x1x256x256xf32> to vector<256x256xf32>
    %cst_309 = arith.constant dense<0.000000e+00> : vector<16x256xf32>
    %352 = tpu.matmul %349, %351, %cst_309 {dimension_numbers = #tpu.dot_dimension_numbers<[1], [0], [0], [1], [0, 0, 1, 1], [], []>} : vector<16x256xf32>, vector<256x256xf32>, vector<16x256xf32> -> vector<16x256xf32>
    %353 = arith.addf %348, %352 : vector<16x256xf32>
    %c9_310 = arith.constant 9 : index
    %c0_311 = arith.constant 0 : index
    %354 = vector.load %arg9[%c9_310, %c0_311] : memref<25x256xf32, #tpu.memory_space<vmem>>, vector<16x256xf32>
    %c9_312 = arith.constant 9 : index
    %c2_313 = arith.constant 2 : index
    %c0_314 = arith.constant 0 : index
    %c0_315 = arith.constant 0 : index
    %355 = vector.load %arg2[%c9_312, %c2_313, %c0_314, %c0_315] : memref<12x3x256x256xf32, #tpu.memory_space<vmem>>, vector<1x1x256x256xf32>
    %356 = vector.shape_cast %355 : vector<1x1x256x256xf32> to vector<256x256xf32>
    %cst_316 = arith.constant dense<0.000000e+00> : vector<16x256xf32>
    %357 = tpu.matmul %354, %356, %cst_316 {dimension_numbers = #tpu.dot_dimension_numbers<[1], [0], [0], [1], [0, 0, 1, 1], [], []>} : vector<16x256xf32>, vector<256x256xf32>, vector<16x256xf32> -> vector<16x256xf32>
    %358 = arith.addf %353, %357 : vector<16x256xf32>
    %cst_317 = arith.constant dense<0.000000e+00> : vector<256xf32>
    %359 = vector.multi_reduction <add>, %358, %cst_317 [0] : vector<16x256xf32> to vector<256xf32>
    %360 = vector.shape_cast %359 : vector<256xf32> to vector<1x256xf32>
    %361 = vector.extract_strided_slice %360 {offsets = [0, 0], sizes = [1, 128], strides = [1, 1]} : vector<1x256xf32> to vector<1x128xf32>
    %362 = vector.extract_strided_slice %360 {offsets = [0, 128], sizes = [1, 128], strides = [1, 1]} : vector<1x256xf32> to vector<1x128xf32>
    %363 = arith.addf %361, %362 : vector<1x128xf32>
    %364 = vector.extract_strided_slice %363 {offsets = [0, 0], sizes = [1, 64], strides = [1, 1]} : vector<1x128xf32> to vector<1x64xf32>
    %365 = vector.extract_strided_slice %363 {offsets = [0, 64], sizes = [1, 64], strides = [1, 1]} : vector<1x128xf32> to vector<1x64xf32>
    %366 = arith.addf %364, %365 : vector<1x64xf32>
    %367 = vector.extract_strided_slice %366 {offsets = [0, 0], sizes = [1, 32], strides = [1, 1]} : vector<1x64xf32> to vector<1x32xf32>
    %368 = vector.extract_strided_slice %366 {offsets = [0, 32], sizes = [1, 32], strides = [1, 1]} : vector<1x64xf32> to vector<1x32xf32>
    %369 = arith.addf %367, %368 : vector<1x32xf32>
    %370 = vector.extract_strided_slice %369 {offsets = [0, 0], sizes = [1, 16], strides = [1, 1]} : vector<1x32xf32> to vector<1x16xf32>
    %371 = vector.extract_strided_slice %369 {offsets = [0, 16], sizes = [1, 16], strides = [1, 1]} : vector<1x32xf32> to vector<1x16xf32>
    %372 = arith.addf %370, %371 : vector<1x16xf32>
    %cst_318 = arith.constant 3.906250e-03 : f32
    %373 = vector.broadcast %cst_318 : f32 to vector<1x16xf32>
    %374 = arith.mulf %372, %373 : vector<1x16xf32>
    %c3_319 = arith.constant 3 : index
    %c0_320 = arith.constant 0 : index
    %c0_321 = arith.constant 0 : index
    %375 = vector.load %arg4[%c3_319, %c0_320, %c0_321] : memref<4x4x16xf32, #tpu.memory_space<vmem>>, vector<1x4x16xf32>
    %376 = vector.shape_cast %375 : vector<1x4x16xf32> to vector<4x16xf32>
    %377 = vector.broadcast %374 : vector<1x16xf32> to vector<4x16xf32>
    %378 = arith.mulf %377, %376 : vector<4x16xf32>
    %cst_322 = arith.constant dense<0.000000e+00> : vector<4xf32>
    %379 = vector.multi_reduction <add>, %378, %cst_322 [1] : vector<4x16xf32> to vector<4xf32>
    %380 = vector.shape_cast %379 : vector<4xf32> to vector<4x1xf32>
    %c3_323 = arith.constant 3 : index
    %c0_324 = arith.constant 0 : index
    %c0_325 = arith.constant 0 : index
    %381 = vector.load %arg5[%c3_323, %c0_324, %c0_325] : memref<4x4x1xf32, #tpu.memory_space<vmem>>, vector<1x4x1xf32>
    %382 = vector.shape_cast %381 : vector<1x4x1xf32> to vector<4x1xf32>
    %383 = arith.addf %380, %382 : vector<4x1xf32>
    %cst_326 = arith.constant 0.000000e+00 : f32
    %384 = vector.broadcast %cst_326 : f32 to vector<4x1xf32>
    %385 = arith.maximumf %383, %384 : vector<4x1xf32>
    %c3_327 = arith.constant 3 : index
    %c0_328 = arith.constant 0 : index
    %c0_329 = arith.constant 0 : index
    %386 = vector.load %arg6[%c3_327, %c0_328, %c0_329] : memref<4x4x16xf32, #tpu.memory_space<vmem>>, vector<1x4x16xf32>
    %387 = vector.shape_cast %386 : vector<1x4x16xf32> to vector<4x16xf32>
    %388 = vector.broadcast %385 : vector<4x1xf32> to vector<4x16xf32>
    %389 = arith.mulf %388, %387 : vector<4x16xf32>
    %cst_330 = arith.constant dense<0.000000e+00> : vector<16xf32>
    %390 = vector.multi_reduction <add>, %389, %cst_330 [0] : vector<4x16xf32> to vector<16xf32>
    %391 = vector.shape_cast %390 : vector<16xf32> to vector<1x16xf32>
    %c3_331 = arith.constant 3 : index
    %c0_332 = arith.constant 0 : index
    %c0_333 = arith.constant 0 : index
    %392 = vector.load %arg7[%c3_331, %c0_332, %c0_333] : memref<4x1x16xf32, #tpu.memory_space<vmem>>, vector<1x1x16xf32>
    %393 = vector.shape_cast %392 : vector<1x1x16xf32> to vector<1x16xf32>
    %394 = arith.addf %391, %393 : vector<1x16xf32>
    %395 = arith.negf %394 : vector<1x16xf32>
    %396 = math.exp %395 : vector<1x16xf32>
    %cst_334 = arith.constant 1.000000e+00 : f32
    %397 = vector.broadcast %cst_334 : f32 to vector<1x16xf32>
    %398 = arith.addf %397, %396 : vector<1x16xf32>
    %399 = arith.divf %397, %398 : vector<1x16xf32>
    %400 = tpu.concatenate %399, %399 in 1 : vector<1x16xf32>, vector<1x16xf32> -> vector<1x32xf32>
    %401 = tpu.concatenate %400, %400 in 1 : vector<1x32xf32>, vector<1x32xf32> -> vector<1x64xf32>
    %402 = tpu.concatenate %401, %401 in 1 : vector<1x64xf32>, vector<1x64xf32> -> vector<1x128xf32>
    %403 = tpu.concatenate %402, %402 in 1 : vector<1x128xf32>, vector<1x128xf32> -> vector<1x256xf32>
    %404 = vector.broadcast %403 : vector<1x256xf32> to vector<16x256xf32>
    %405 = arith.mulf %358, %404 : vector<16x256xf32>
    %406 = arith.addf %405, %315 : vector<16x256xf32>
    %c8_335 = arith.constant 8 : index
    %c0_336 = arith.constant 0 : index
    %407 = vector.load %arg9[%c8_335, %c0_336] : memref<25x256xf32, #tpu.memory_space<vmem>>, vector<16x256xf32>
    tpu.vector_store %arg9[%c8_335, %c0_336], %406 {strides = array<i32>} : memref<25x256xf32, #tpu.memory_space<vmem>>, vector<16x256xf32>,
    %c10 = arith.constant 10 : index
    %c0_337 = arith.constant 0 : index
    %c0_338 = arith.constant 0 : index
    %408 = vector.load %arg3[%c10, %c0_337, %c0_338] : memref<12x1x256xf32, #tpu.memory_space<vmem>>, vector<1x1x256xf32>
    %409 = vector.shape_cast %408 : vector<1x1x256xf32> to vector<1x256xf32>
    %c7_339 = arith.constant 7 : index
    %c0_340 = arith.constant 0 : index
    %410 = vector.load %arg9[%c7_339, %c0_340] : memref<25x256xf32, #tpu.memory_space<vmem>>, vector<16x256xf32>
    %c10_341 = arith.constant 10 : index
    %c0_342 = arith.constant 0 : index
    %c0_343 = arith.constant 0 : index
    %c0_344 = arith.constant 0 : index
    %411 = vector.load %arg2[%c10_341, %c0_342, %c0_343, %c0_344] : memref<12x3x256x256xf32, #tpu.memory_space<vmem>>, vector<1x1x256x256xf32>
    %412 = vector.shape_cast %411 : vector<1x1x256x256xf32> to vector<256x256xf32>
    %cst_345 = arith.constant dense<0.000000e+00> : vector<16x256xf32>
    %413 = tpu.matmul %410, %412, %cst_345 {dimension_numbers = #tpu.dot_dimension_numbers<[1], [0], [0], [1], [0, 0, 1, 1], [], []>} : vector<16x256xf32>, vector<256x256xf32>, vector<16x256xf32> -> vector<16x256xf32>
    %414 = vector.broadcast %409 : vector<1x256xf32> to vector<16x256xf32>
    %415 = arith.addf %414, %413 : vector<16x256xf32>
    %c8_346 = arith.constant 8 : index
    %c0_347 = arith.constant 0 : index
    %416 = vector.load %arg9[%c8_346, %c0_347] : memref<25x256xf32, #tpu.memory_space<vmem>>, vector<16x256xf32>
    %c10_348 = arith.constant 10 : index
    %c1_349 = arith.constant 1 : index
    %c0_350 = arith.constant 0 : index
    %c0_351 = arith.constant 0 : index
    %417 = vector.load %arg2[%c10_348, %c1_349, %c0_350, %c0_351] : memref<12x3x256x256xf32, #tpu.memory_space<vmem>>, vector<1x1x256x256xf32>
    %418 = vector.shape_cast %417 : vector<1x1x256x256xf32> to vector<256x256xf32>
    %cst_352 = arith.constant dense<0.000000e+00> : vector<16x256xf32>
    %419 = tpu.matmul %416, %418, %cst_352 {dimension_numbers = #tpu.dot_dimension_numbers<[1], [0], [0], [1], [0, 0, 1, 1], [], []>} : vector<16x256xf32>, vector<256x256xf32>, vector<16x256xf32> -> vector<16x256xf32>
    %420 = arith.addf %415, %419 : vector<16x256xf32>
    %c9_353 = arith.constant 9 : index
    %c0_354 = arith.constant 0 : index
    %421 = vector.load %arg9[%c9_353, %c0_354] : memref<25x256xf32, #tpu.memory_space<vmem>>, vector<16x256xf32>
    %c10_355 = arith.constant 10 : index
    %c2_356 = arith.constant 2 : index
    %c0_357 = arith.constant 0 : index
    %c0_358 = arith.constant 0 : index
    %422 = vector.load %arg2[%c10_355, %c2_356, %c0_357, %c0_358] : memref<12x3x256x256xf32, #tpu.memory_space<vmem>>, vector<1x1x256x256xf32>
    %423 = vector.shape_cast %422 : vector<1x1x256x256xf32> to vector<256x256xf32>
    %cst_359 = arith.constant dense<0.000000e+00> : vector<16x256xf32>
    %424 = tpu.matmul %421, %423, %cst_359 {dimension_numbers = #tpu.dot_dimension_numbers<[1], [0], [0], [1], [0, 0, 1, 1], [], []>} : vector<16x256xf32>, vector<256x256xf32>, vector<16x256xf32> -> vector<16x256xf32>
    %425 = arith.addf %420, %424 : vector<16x256xf32>
    %426 = arith.addf %425, %224 : vector<16x256xf32>
    %427 = arith.addf %426, %22 : vector<16x256xf32>
    %c8_360 = arith.constant 8 : index
    %c0_361 = arith.constant 0 : index
    %428 = vector.load %arg9[%c8_360, %c0_361] : memref<25x256xf32, #tpu.memory_space<vmem>>, vector<16x256xf32>
    tpu.vector_store %arg9[%c8_360, %c0_361], %427 {strides = array<i32>} : memref<25x256xf32, #tpu.memory_space<vmem>>, vector<16x256xf32>,
    %c11 = arith.constant 11 : index
    %c0_362 = arith.constant 0 : index
    %c0_363 = arith.constant 0 : index
    %429 = vector.load %arg3[%c11, %c0_362, %c0_363] : memref<12x1x256xf32, #tpu.memory_space<vmem>>, vector<1x1x256xf32>
    %430 = vector.shape_cast %429 : vector<1x1x256xf32> to vector<1x256xf32>
    %c7_364 = arith.constant 7 : index
    %c0_365 = arith.constant 0 : index
    %431 = vector.load %arg9[%c7_364, %c0_365] : memref<25x256xf32, #tpu.memory_space<vmem>>, vector<16x256xf32>
    %c11_366 = arith.constant 11 : index
    %c0_367 = arith.constant 0 : index
    %c0_368 = arith.constant 0 : index
    %c0_369 = arith.constant 0 : index
    %432 = vector.load %arg2[%c11_366, %c0_367, %c0_368, %c0_369] : memref<12x3x256x256xf32, #tpu.memory_space<vmem>>, vector<1x1x256x256xf32>
    %433 = vector.shape_cast %432 : vector<1x1x256x256xf32> to vector<256x256xf32>
    %cst_370 = arith.constant dense<0.000000e+00> : vector<16x256xf32>
    %434 = tpu.matmul %431, %433, %cst_370 {dimension_numbers = #tpu.dot_dimension_numbers<[1], [0], [0], [1], [0, 0, 1, 1], [], []>} : vector<16x256xf32>, vector<256x256xf32>, vector<16x256xf32> -> vector<16x256xf32>
    %435 = vector.broadcast %430 : vector<1x256xf32> to vector<16x256xf32>
    %436 = arith.addf %435, %434 : vector<16x256xf32>
    %c8_371 = arith.constant 8 : index
    %c0_372 = arith.constant 0 : index
    %437 = vector.load %arg9[%c8_371, %c0_372] : memref<25x256xf32, #tpu.memory_space<vmem>>, vector<16x256xf32>
    %c11_373 = arith.constant 11 : index
    %c1_374 = arith.constant 1 : index
    %c0_375 = arith.constant 0 : index
    %c0_376 = arith.constant 0 : index
    %438 = vector.load %arg2[%c11_373, %c1_374, %c0_375, %c0_376] : memref<12x3x256x256xf32, #tpu.memory_space<vmem>>, vector<1x1x256x256xf32>
    %439 = vector.shape_cast %438 : vector<1x1x256x256xf32> to vector<256x256xf32>
    %cst_377 = arith.constant dense<0.000000e+00> : vector<16x256xf32>
    %440 = tpu.matmul %437, %439, %cst_377 {dimension_numbers = #tpu.dot_dimension_numbers<[1], [0], [0], [1], [0, 0, 1, 1], [], []>} : vector<16x256xf32>, vector<256x256xf32>, vector<16x256xf32> -> vector<16x256xf32>
    %441 = arith.addf %436, %440 : vector<16x256xf32>
    %c9_378 = arith.constant 9 : index
    %c0_379 = arith.constant 0 : index
    %442 = vector.load %arg9[%c9_378, %c0_379] : memref<25x256xf32, #tpu.memory_space<vmem>>, vector<16x256xf32>
    %c11_380 = arith.constant 11 : index
    %c2_381 = arith.constant 2 : index
    %c0_382 = arith.constant 0 : index
    %c0_383 = arith.constant 0 : index
    %443 = vector.load %arg2[%c11_380, %c2_381, %c0_382, %c0_383] : memref<12x3x256x256xf32, #tpu.memory_space<vmem>>, vector<1x1x256x256xf32>
    %444 = vector.shape_cast %443 : vector<1x1x256x256xf32> to vector<256x256xf32>
    %cst_384 = arith.constant dense<0.000000e+00> : vector<16x256xf32>
    %445 = tpu.matmul %442, %444, %cst_384 {dimension_numbers = #tpu.dot_dimension_numbers<[1], [0], [0], [1], [0, 0, 1, 1], [], []>} : vector<16x256xf32>, vector<256x256xf32>, vector<16x256xf32> -> vector<16x256xf32>
    %446 = arith.addf %441, %445 : vector<16x256xf32>
    %c0_385 = arith.constant 0 : index
    %c0_386 = arith.constant 0 : index
    %c0_387 = arith.constant 0 : index
    %447 = vector.load %arg8[%c0_385, %c0_386, %c0_387] : memref<1x16x256xf32, #tpu.memory_space<vmem>>, vector<1x16x256xf32>
    %448 = vector.shape_cast %447 : vector<1x16x256xf32> to vector<16x256xf32>
    %449 = vector.shape_cast %446 : vector<16x256xf32> to vector<1x16x256xf32>
    tpu.vector_store %arg8[%c0_385, %c0_386, %c0_387], %449 {strides = array<i32>} : memref<1x16x256xf32, #tpu.memory_space<vmem>>, vector<1x16x256xf32>,
    return
  }
  func.func @transform_0(%arg0: i32) -> (i32, i32, i32) {
    %c0_i32 = arith.constant 0 : i32
    %c0_i32_0 = arith.constant 0 : i32
    %c0_i32_1 = arith.constant 0 : i32
    return %arg0, %c0_i32, %c0_i32_0 : i32, i32, i32
  }
  func.func @transform_1(%arg0: i32) -> (i32, i32, i32, i32) {
    %c0_i32 = arith.constant 0 : i32
    %c0_i32_0 = arith.constant 0 : i32
    %c0_i32_1 = arith.constant 0 : i32
    %c0_i32_2 = arith.constant 0 : i32
    %c0_i32_3 = arith.constant 0 : i32
    return %c0_i32, %c0_i32_0, %c0_i32_1, %c0_i32_2 : i32, i32, i32, i32
  }
  func.func @transform_2(%arg0: i32) -> (i32, i32, i32) {
    %c0_i32 = arith.constant 0 : i32
    %c0_i32_0 = arith.constant 0 : i32
    %c0_i32_1 = arith.constant 0 : i32
    %c0_i32_2 = arith.constant 0 : i32
    return %c0_i32, %c0_i32_0, %c0_i32_1 : i32, i32, i32
  }
  func.func @transform_3(%arg0: i32) -> (i32, i32, i32) {
    %c0_i32 = arith.constant 0 : i32
    %c0_i32_0 = arith.constant 0 : i32
    %c0_i32_1 = arith.constant 0 : i32
    %c0_i32_2 = arith.constant 0 : i32
    return %c0_i32, %c0_i32_0, %c0_i32_1 : i32, i32, i32
  }
  func.func @transform_4(%arg0: i32) -> (i32, i32, i32) {
    %c0_i32 = arith.constant 0 : i32
    %c0_i32_0 = arith.constant 0 : i32
    %c0_i32_1 = arith.constant 0 : i32
    %c0_i32_2 = arith.constant 0 : i32
    return %c0_i32, %c0_i32_0, %c0_i32_1 : i32, i32, i32
  }
  func.func @transform_5(%arg0: i32) -> (i32, i32, i32) {
    %c0_i32 = arith.constant 0 : i32
    %c0_i32_0 = arith.constant 0 : i32
    %c0_i32_1 = arith.constant 0 : i32
    %c0_i32_2 = arith.constant 0 : i32
    return %c0_i32, %c0_i32_0, %c0_i32_1 : i32, i32, i32
  }
  func.func @transform_6(%arg0: i32) -> (i32, i32, i32) {
    %c0_i32 = arith.constant 0 : i32
    %c0_i32_0 = arith.constant 0 : i32
    %c0_i32_1 = arith.constant 0 : i32
    %c0_i32_2 = arith.constant 0 : i32
    return %c0_i32, %c0_i32_0, %c0_i32_1 : i32, i32, i32
  }
  func.func @transform_7(%arg0: i32) -> (i32, i32, i32) {
    %c0_i32 = arith.constant 0 : i32
    %c0_i32_0 = arith.constant 0 : i32
    %c0_i32_1 = arith.constant 0 : i32
    return %arg0, %c0_i32, %c0_i32_0 : i32, i32, i32
  }
}

</mosaic_0001>

<bundles_post_ra>
// kernel: tpu_custom_call.1
= control target key start
LH: loop header
LB: loop body
LE: loop exit
PB: predicated region body
PF: predicated region fallthrough
CT: control target
= control target key end

     0   :  { %s9059_s0 = inlined_call_operand.hbm [shape: f32[2,16,256], index: 0, kind: input, shape index: {}]   ;;  %s9060_s1 = inlined_call_operand.hbm [shape: f32[12,3,256,256], index: 1, kind: input, shape index: {}]   ;;  %s9061_s2 = inlined_call_operand.hbm [shape: f32[12,1,256], index: 2, kind: input, shape index: {}]   ;;  %s9062_s3 = inlined_call_operand.hbm [shape: f32[4,4,16], index: 3, kind: input, shape index: {}]   ;;  %s9063_s4 = inlined_call_operand.vmem [shape: f32[4,4,1], index: 4, kind: input, shape index: {}]   ;;  %s9064_s5 = inlined_call_operand.hbm [shape: f32[4,4,16], index: 5, kind: input, shape index: {}]   ;;  %s9065_s6 = inlined_call_operand.hbm [shape: f32[4,1,16], index: 6, kind: input, shape index: {}]   ;;  %s9066_s7 = inlined_call_operand.hbm [shape: f32[2,16,256], index: 7, kind: output, shape index: {}]  }
   0x1   :  { %9069 = sst [smem:[#allocation20_spill]] %s9060_s1 }
   0x2   :  { %9070 = sst [smem:[#allocation21_spill]] %s9061_s2 }
   0x3   :  { %12 = vsyncpa [#allocation4], 0 }
   0x4   :  { %14 = vsyncpa [#allocation4 + $0x1], 0 }
   0x5   :  { %15 = vsyncpa [#allocation7], 0 }
   0x6   :  { %16 = vsyncpa [#allocation10], 0 }
   0x7   :  { %17 = vsyncpa [#allocation13], 0 }
   0x8   :  { %18 = vsyncpa [#allocation5], 0 }
   0x9   :  { %20 = vsyncpa [#allocation5 + $0x1], 0  ;;  %s8067_s24 = smov 0   ;;  %s8069_s25 = smov 0  }
   0xa   :  { %s8071_s26 = smov 0   ;;  %s8073_s27 = smov 0  }
   0xb LB: > { %s9071_s1 = sld [smem:[#allocation20_spill]]  ;;  %s8091_s8 = sadd.s32 4294967295, %s8005_s27   ;;  %s8005_s27 = sphi %s8073_s27, %s9086_s27   ;;  %s8001_s26 = sphi %s8071_s26, %s9085_s26   ;;  %s7997_s25 = sphi %s8069_s25, %s9084_s25   ;;  %s7993_s24 = sphi %s8067_s24, %s9083_s24  }
   0xc   : > { %p7584_p0 = scmp.ge.s32.totalorder %s8005_s27, 1  ;;  %p47_p1 = scmp.eq.s32.totalorder %s8091_s8, 0 }
   0xd   : > { %p209_p2 = scmp.lt.s32.totalorder %s8005_s27, 3  ;;  %s8007_s10 = smov [#allocation6]  }
   0xe   : > { %s222_s11 = sshll.u32 %s8007_s10, 4  ;;  %s248_s14 = sshll.u32 %s9062_s3, 4  ;;  %s223_s11 = int_to_ptr.vmem [resolvable:$true] %s222_s11  ;;  %s249_s14 = int_to_ptr.hbm [resolvable:$true] %s248_s14 }
   0xf   : > { %p8096_p3 = pnand %p7584_p0, %p209_p2  ;;  %s8008_s16 = smov [#allocation9]  }
  0x10   : > { %s250_s17 = sshll.u32 %s8008_s16, 4  ;;  %s9067_s18 = smov 256   ;;  %s251_s17 = int_to_ptr.vmem [resolvable:$true] %s250_s17 }
  0x11   : > { %s220_s30 = sshll.u32 %s9071_s1, 4  ;;  %p7640_p4 = pneg %p8096_p3  ;;  %s221_s30 = int_to_ptr.hbm [resolvable:$true] %s220_s30 }
  0x12   : > { %s9068_s19 = smov 16   ;;  %s8011_s20 = smov 64  }
  0x13   : > { %p8108_p6 = pnand %p7640_p4, %p47_p1  ;;  %s8012_s21 = smov 4  }
  0x14   : > { %s9074_s2 = sld [smem:[#allocation21_spill]]  ;;  %s8013_s29 = smov [#allocation8]  }
  0x15   : > { %7643 = dma.hbm_to_vmem [thread:$0]  (!%p8108_p6), %s221_s30, 294912, %s223_s11, [#allocation7], %s9067_s18, %s9067_s18, %s9068_s19  }
  0x16   : > { %7649 = dma.hbm_to_vmem [thread:$0]  (!%p8108_p6), %s249_s14, 256, %s251_s17, [#allocation10], %s8011_s20, %s8011_s20, %s8012_s21  }
  0x17   : > { %s236_s10 = sshll.u32 %s8013_s29, 4  ;;  %s265_s16 = sshll.u32 %s9064_s5, 4  ;;  %s237_s10 = int_to_ptr.vmem [resolvable:$true] %s236_s10  ;;  %s266_s16 = int_to_ptr.hbm [resolvable:$true] %s265_s16 }
  0x18   : > { %s8014_s30 = smov 32   ;;  %s8015_s11 = smov 2  }
  0x19   : > { %s8016_s14 = smov [#allocation11]   ;;  %s279_s29 = sshll.u32 %s9065_s6, 4  ;;  %s280_s29 = int_to_ptr.hbm [resolvable:$true] %s279_s29 }
  0x1a   : > { %s234_s28 = sshll.u32 %s9074_s2, 4  ;;  %s267_s17 = sshll.u32 %s8016_s14, 4  ;;  %s235_s28 = int_to_ptr.hbm [resolvable:$true] %s234_s28  ;;  %s268_s17 = int_to_ptr.vmem [resolvable:$true] %s267_s17 }
  0x1b   : > { %7646 = dma.hbm_to_vmem [thread:$0]  (!%p8108_p6), %s235_s28, 384, %s237_s10, [#allocation7], %s8014_s30, %s8014_s30, %s8015_s11  }
  0x1c   : > { %7652 = dma.hbm_to_vmem [thread:$0]  (!%p8108_p6), %s266_s16, 256, %s268_s17, [#allocation10], %s8011_s20, %s8011_s20, %s8012_s21  }
  0x1d   : > { %s8017_s28 = smov [#allocation12]   ;;  %s8018_s12 = smov 1  }
  0x1e   : > { %s281_s10 = sshll.u32 %s8017_s28, 4  ;;  %s7583_s13 = sadd.s32 4294967294, %s8005_s27   ;;  %s282_s10 = int_to_ptr.vmem [resolvable:$true] %s281_s10 }
  0x1f   : > { %7655 = dma.hbm_to_vmem [thread:$0]  (!%p8108_p6), %s280_s29, 64, %s282_s10, [#allocation13], %s9068_s19, %s9068_s19, %s8018_s12  }
  0x20   : > { %s8138_s30 = sadd.s32 1, %s8005_s27   ;;  %s33_s14 = sadd.s32 1, %s8001_s26 }
  0x21   : > { %s30_s11 = ssub.s32 %s8005_s27, %s8138_s30  ;;  %p40_p8 = scmp.ne.s32.totalorder %s8001_s26, %s7997_s25 }
  0x22   : > { %p31_p7 = scmp.eq.s32.totalorder %s30_s11, 0  ;;  %p41_p9 = scmp.eq.s32.totalorder %s8005_s27, 0 }
  0x23   : > { %p46_p10 = scmp.ne.s32.totalorder %s7997_s25, %s7993_s24  ;;  %p196_p13 = scmp.eq.s32.totalorder %s8091_s8, 1 }
  0x24   : > { %s8149_s20 = scalar_select %p31_p7, %s8001_s26, %s33_s14  }
  0x25   : > { %p8151_p11 = por %p41_p9, %p40_p8  ;;  %p8157_p12 = por %p47_p1, %p46_p10 }
  0x26   : > { %p202_p0 = scmp.eq.s32.totalorder %s7583_s13, 1  ;;  %p7669_p2 = scmp.lt.s32.totalorder %s8005_s27, 2 }
  0x27   : > { %s295_s16 = sand.u32 1, %s8001_s26   ;;  %p8164_p4 = por %p196_p13, %p40_p8 }
  0x28   : > { %p8168_p6 = por %p202_p0, %p46_p10  ;;  %s7591_s23 = sshll.u32 %s295_s16, 5 }
  0x29   : > { %s7614_s29 = sshll.u32 %s8005_s27, 5  ;;  %s299_s11 = scalar_lea.vmem [#allocation3], %s7591_s23 }
  0x2a   : > { %s304_s12 = scalar_lea.hbm %s9059_s0, %s7614_s29  ;;  %s307_s14 = sshll.u32 %s299_s11, 4  ;;  %s308_s14 = int_to_ptr.vmem [resolvable:$true] %s307_s14 }
  0x2b   : > { %s305_s18 = sshll.u32 %s304_s12, 4  ;;  %p8178_p7 = pnand %p7669_p2, %p8151_p11  ;;  %s306_s18 = int_to_ptr.hbm [resolvable:$true] %s305_s18 }
  0x2c   : > { %s296_s19 = scalar_lea.sflag [#allocation4], %s295_s16  ;;  %s7897_s1 = sshra.s32 %s306_s18, 4  ;;  %s7898_s1 = int_to_ptr.hbm [resolvable:$true] %s7897_s1 }
  0x2d   : > { %s7899_s2 = scalar_lea.hbm %s7898_s1, 32  ;;  %p7901_p9 = pneg %p8178_p7 }
  0x2e   : > { %p7900_p8 = scmp.ne.s32.totalorder %s7898_s1, %s7899_s2  ;;  %s7904_s28 = scalar_lea.hbm %s9059_s0, 64 }
  0x2f   : > { %p7905_p11 = scmp.lt.s32.totalorder %s7898_s1, %s9059_s0  ;;  %p7906_p0 = scmp.lt.s32.totalorder %s7904_s28, %s7899_s2 }
  0x30   : > { %p7902_p10 = pnand %p7901_p9, %p7900_p8 }
  0x31   : > { %p7907_p2 = por %p7906_p0, %p7905_p11 }
  0x32   : > { %p7903_p13 = pneg %p7902_p10 }
  0x34   : > { %p7908_p5 = pnand %p7907_p2, %p7903_p13 }
  0x36   : > { %7911 = shalt.err (!%p7908_p5)
}
  0x37   : > { %s9080_s16 = smov 16   ;;  %s9081_s12 = smov 256  }
  0x38   : > { %7659 = dma.hbm_to_vmem [thread:$0]  (!%p8178_p7), %s306_s18, 512, %s308_s14, %s296_s19, %s9081_s12, %s9081_s12, %s9080_s16  }
  0x39   : > { %319 = sbr.rel (%p8096_p3) target bundleno = 6114 (0x17e2), region = 48  ;;  %s8198_s11 = sand.u32 (!%p8096_p3), 1, %s7997_s25  }
  0x3a   : > { %s7595_s1 = sshll.u32 (!%p8096_p3), %s8198_s11, 5  ;;  %s322_s2 = scalar_lea.sflag (!%p8096_p3), [#allocation4], %s8198_s11 }
  0x3b   : > { %s8204_s23 = scalar_lea.vmem (!%p8096_p3), [#allocation3], %s7595_s1 }
  0x3e   : > { %7972 = dma.done.wait (%p8157_p12), %s322_s2, 512  }
  0x3f   : > { %7974 = vsyncadd (%p8157_p12), %s322_s2, 4294966784 }
  0x40   : > { %7976 = dma.done.wait (%p47_p1), [#allocation7], 295296  }
  0x41   : > { %7978 = vsyncadd (%p47_p1), [#allocation7], 4294672000 }
  0x42   : > { %7980 = dma.done.wait (%p47_p1), [#allocation10], 512  }
  0x43   : > { %7982 = vsyncadd (%p47_p1), [#allocation10], 4294966784 }
  0x44   : > { %7984 = dma.done.wait (%p47_p1), [#allocation13], 64  }
  0x45   : > { %7986 = vsyncadd (%p47_p1), [#allocation13], 4294967232  ;;  %v435_v0 = vld [vmem:[#allocation6 + $0xf0] sm:$0xff]  ;;  %v436_v2 = vld [vmem:[#allocation6 + $0xf8] sm:$0xff]  ;;  %v8019_v20 = vmov 0.0   ;;  %vm475_vm0 = vcmask 1040384  }
  0x46   : > { %v467_v1 = vld [vmem:[#allocation6 + $0x1f0] sm:$0xff]  ;;  %490 = vmatpush.msra.mxu0 %v435_v0  ;;  %v468_v3 = vld [vmem:[#allocation6 + $0x1f8] sm:$0xff]  ;;  %v433_v4 = vld [vmem:[#allocation6 + $0xe0] sm:$0xff]  ;;  %536 = vmatpush.msra.mxu2 %v436_v2  ;;  %382 = vst [vmem:[#allocation2 + $0x30] sm:$0xff] %v8019_v20  ;;  %vm831_vm1 = vcmask 1046528   ;;  %s8020_s9 = smov 64  }
  0x47   : > { %513 = vmatpush.msra.mxu1 %v467_v1  ;;  %v465_v5 = vld [vmem:[#allocation6 + $0x1e0] sm:$0xff]  ;;  %559 = vmatpush.msra.mxu3 %v468_v3  ;;  %v434_v6 = vld [vmem:[#allocation6 + $0xe8] sm:$0xff]  ;;  %v431_v8 = vld [vmem:[#allocation6 + $0xd0] sm:$0xff]  ;;  %383 = vst [vmem:[#allocation2] sm:$0xff] %v8019_v20  ;;  %s8021_s18 = smov 96   ;;  %s8022_s19 = smov 112  }
  0x48   : > { %v466_v7 = vld [vmem:[#allocation6 + $0x1e8] sm:$0xff]  ;;  %491 = vmatpush.msra.mxu0 %v433_v4  ;;  %v463_v9 = vld [vmem:[#allocation6 + $0x1d0] sm:$0xff]  ;;  %v432_v10 = vld [vmem:[#allocation6 + $0xd8] sm:$0xff]  ;;  %537 = vmatpush.msra.mxu2 %v434_v6  ;;  %388 = vst [vmem:[#allocation2 + $0x28] sm:$0x1] %v8019_v20  ;;  %vm2084_vm6 = vcmask 125952  }
  0x49   : > { %514 = vmatpush.msra.mxu1 %v465_v5  ;;  %v464_v11 = vld [vmem:[#allocation6 + $0x1d8] sm:$0xff]  ;;  %560 = vmatpush.msra.mxu3 %v466_v7  ;;  %v429_v12 = vld [vmem:[#allocation6 + $0xc0] sm:$0xff]  ;;  %v430_v14 = vld [vmem:[#allocation6 + $0xc8] sm:$0xff]  ;;  %389 = vst [vmem:[#allocation2 + $0x38] sm:$0x1] %v8019_v20  ;;  %s8024_s13 = smov 16  }
  0x4a   : > { %v461_v13 = vld [vmem:[#allocation6 + $0x1c0] sm:$0xff]  ;;  %492 = vmatpush.msra.mxu0 %v431_v8  ;;  %v462_v15 = vld [vmem:[#allocation6 + $0x1c8] sm:$0xff]  ;;  %538 = vmatpush.msra.mxu2 %v432_v10  ;;  %v427_v16 = vld [vmem:[#allocation6 + $0xb0] sm:$0xff]  ;;  %vm2130_vm11 = vcmask 130048   ;;  %s8025_s29 = smov 32   ;;  %vm2136_vm12 = vcmask 261120  }
  0x4b   : > { %515 = vmatpush.msra.mxu1 %v463_v9  ;;  %561 = vmatpush.msra.mxu3 %v464_v11  ;;  %v459_v17 = vld [vmem:[#allocation6 + $0x1b0] sm:$0xff]  ;;  %v428_v18 = vld [vmem:[#allocation6 + $0xb8] sm:$0xff]  ;;  %v425_v21 = vld [vmem:[#allocation6 + $0xa0] sm:$0xff]  ;;  %vm2142_vm13 = vcmask 523264   ;;  %s7947_s16 = scalar_lea.hbm %s9066_s7, 64 }
  0x4c   : > { %493 = vmatpush.msra.mxu0 %v429_v12  ;;  %v460_v19 = vld [vmem:[#allocation6 + $0x1b8] sm:$0xff]  ;;  %539 = vmatpush.msra.mxu2 %v430_v14  ;;  %v457_v22 = vld [vmem:[#allocation6 + $0x1a0] sm:$0xff]  ;;  %v426_v23 = vld [vmem:[#allocation6 + $0xa8] sm:$0xff] }
  0x4d   : > { %516 = vmatpush.msra.mxu1 %v461_v13  ;;  %562 = vmatpush.msra.mxu3 %v462_v15  ;;  %v458_v24 = vld [vmem:[#allocation6 + $0x1a8] sm:$0xff]  ;;  %v423_v25 = vld [vmem:[#allocation6 + $0x90] sm:$0xff]  ;;  %v424_v27 = vld [vmem:[#allocation6 + $0x98] sm:$0xff] }
  0x4e   : > { %494 = vmatpush.msra.mxu0 %v427_v16  ;;  %540 = vmatpush.msra.mxu2 %v428_v18  ;;  %v455_v26 = vld [vmem:[#allocation6 + $0x190] sm:$0xff]  ;;  %v456_v28 = vld [vmem:[#allocation6 + $0x198] sm:$0xff]  ;;  %v421_v29 = vld [vmem:[#allocation6 + $0x80] sm:$0xff] }
  0x4f   : > { %517 = vmatpush.msra.mxu1 %v459_v17  ;;  %563 = vmatpush.msra.mxu3 %v460_v19  ;;  %v453_v30 = vld [vmem:[#allocation6 + $0x180] sm:$0xff]  ;;  %v422_v31 = vld [vmem:[#allocation6 + $0x88] sm:$0xff]  ;;  %v419_v33 = vld [vmem:[#allocation6 + $0x70] sm:$0xff] }
  0x50   : > { %495 = vmatpush.msra.mxu0 %v425_v21  ;;  %541 = vmatpush.msra.mxu2 %v426_v23  ;;  %v454_v32 = vld [vmem:[#allocation6 + $0x188] sm:$0xff]  ;;  %v451_v34 = vld [vmem:[#allocation6 + $0x170] sm:$0xff]  ;;  %v420_v35 = vld [vmem:[#allocation6 + $0x78] sm:$0xff] }
  0x51   : > { %518 = vmatpush.msra.mxu1 %v457_v22  ;;  %564 = vmatpush.msra.mxu3 %v458_v24  ;;  %v452_v36 = vld [vmem:[#allocation6 + $0x178] sm:$0xff]  ;;  %v417_v37 = vld [vmem:[#allocation6 + $0x60] sm:$0xff]  ;;  %v418_v39 = vld [vmem:[#allocation6 + $0x68] sm:$0xff] }
  0x52   : > { %496 = vmatpush.msra.mxu0 %v423_v25  ;;  %542 = vmatpush.msra.mxu2 %v424_v27  ;;  %v449_v38 = vld [vmem:[#allocation6 + $0x160] sm:$0xff]  ;;  %v450_v40 = vld [vmem:[#allocation6 + $0x168] sm:$0xff]  ;;  %v415_v41 = vld [vmem:[#allocation6 + $0x50] sm:$0xff] }
  0x53   : > { %519 = vmatpush.msra.mxu1 %v455_v26  ;;  %565 = vmatpush.msra.mxu3 %v456_v28  ;;  %v447_v42 = vld [vmem:[#allocation6 + $0x150] sm:$0xff]  ;;  %v416_v43 = vld [vmem:[#allocation6 + $0x58] sm:$0xff]  ;;  %v413_v45 = vld [vmem:[#allocation6 + $0x40] sm:$0xff] }
  0x54   : > { %497 = vmatpush.msra.mxu0 %v421_v29  ;;  %543 = vmatpush.msra.mxu2 %v422_v31  ;;  %v448_v44 = vld [vmem:[#allocation6 + $0x158] sm:$0xff]  ;;  %v445_v46 = vld [vmem:[#allocation6 + $0x140] sm:$0xff]  ;;  %v414_v47 = vld [vmem:[#allocation6 + $0x48] sm:$0xff] }
  0x55   : > { %520 = vmatpush.msra.mxu1 %v453_v30  ;;  %566 = vmatpush.msra.mxu3 %v454_v32  ;;  %v446_v48 = vld [vmem:[#allocation6 + $0x148] sm:$0xff]  ;;  %v411_v49 = vld [vmem:[#allocation6 + $0x30] sm:$0xff]  ;;  %v412_v51 = vld [vmem:[#allocation6 + $0x38] sm:$0xff] }
  0x56   : > { %498 = vmatpush.msra.mxu0 %v419_v33  ;;  %544 = vmatpush.msra.mxu2 %v420_v35  ;;  %v443_v50 = vld [vmem:[#allocation6 + $0x130] sm:$0xff]  ;;  %v444_v52 = vld [vmem:[#allocation6 + $0x138] sm:$0xff]  ;;  %v409_v53 = vld [vmem:[#allocation6 + $0x20] sm:$0xff] }
  0x57   : > { %521 = vmatpush.msra.mxu1 %v451_v34  ;;  %567 = vmatpush.msra.mxu3 %v452_v36  ;;  %v441_v54 = vld [vmem:[#allocation6 + $0x120] sm:$0xff]  ;;  %v410_v55 = vld [vmem:[#allocation6 + $0x28] sm:$0xff]  ;;  %v407_v57 = vld [vmem:[#allocation6 + $0x10] sm:$0xff] }
  0x58   : > { %499 = vmatpush.msra.mxu0 %v417_v37  ;;  %545 = vmatpush.msra.mxu2 %v418_v39  ;;  %v442_v56 = vld [vmem:[#allocation6 + $0x128] sm:$0xff]  ;;  %v439_v58 = vld [vmem:[#allocation6 + $0x110] sm:$0xff]  ;;  %v408_v59 = vld [vmem:[#allocation6 + $0x18] sm:$0xff] }
  0x59   : > { %522 = vmatpush.msra.mxu1 %v449_v38  ;;  %568 = vmatpush.msra.mxu3 %v450_v40  ;;  %v440_v60 = vld [vmem:[#allocation6 + $0x118] sm:$0xff]  ;;  %v405_v61 = vld [vmem:[#allocation6] sm:$0xff]  ;;  %v406_v63 = vld [vmem:[#allocation6 + $0x8] sm:$0xff] }
  0x5a   : > { %500 = vmatpush.msra.mxu0 %v415_v41  ;;  %546 = vmatpush.msra.mxu2 %v416_v43  ;;  %v437_v62 = vld [vmem:[#allocation6 + $0x100] sm:$0xff]  ;;  %v438_v0 = vld [vmem:[#allocation6 + $0x108] sm:$0xff]  ;;  %v624_v1 = vld [vmem:[#allocation6 + $0x2f0] sm:$0xff] }
  0x5b   : > { %523 = vmatpush.msra.mxu1 %v447_v42  ;;  %569 = vmatpush.msra.mxu3 %v448_v44  ;;  %v656_v2 = vld [vmem:[#allocation6 + $0x3f0] sm:$0xff]  ;;  %v625_v3 = vld [vmem:[#allocation6 + $0x2f8] sm:$0xff]  ;;  %v622_v5 = vld [vmem:[#allocation6 + $0x2e0] sm:$0xff] }
  0x5c   : > { %501 = vmatpush.msra.mxu0 %v413_v45  ;;  %547 = vmatpush.msra.mxu2 %v414_v47  ;;  %v657_v4 = vld [vmem:[#allocation6 + $0x3f8] sm:$0xff]  ;;  %v654_v6 = vld [vmem:[#allocation6 + $0x3e0] sm:$0xff]  ;;  %v623_v8 = vld [vmem:[#allocation6 + $0x2e8] sm:$0xff] }
  0x5d   : > { %524 = vmatpush.msra.mxu1 %v445_v46  ;;  %570 = vmatpush.msra.mxu3 %v446_v48  ;;  %v8223_v7 = vld [vmem:[%s8204_s23] sm:$0xff]  ;;  %v655_v9 = vld [vmem:[#allocation6 + $0x3e8] sm:$0xff]  ;;  %v620_v11 = vld [vmem:[#allocation6 + $0x2d0] sm:$0xff] }
  0x5e   : > { %502 = vmatpush.msra.mxu0 %v411_v49  ;;  %548 = vmatpush.msra.mxu2 %v412_v51  ;;  %394 = vst [vmem:[#allocation2 + $0x18] sm:$0xff] %v8223_v7  ;;  %v8227_v10 = vld [vmem:[%s8204_s23 + $0x8] sm:$0xff]  ;;  %v652_v12 = vld [vmem:[#allocation6 + $0x3d0] sm:$0xff]  ;;  %v621_v13 = vld [vmem:[#allocation6 + $0x2d8] sm:$0xff]  ;;  %v477_v34 = vrot.slane %v8223_v7, 7 }
  0x5f   : > { %525 = vmatpush.msra.mxu1 %v443_v50  ;;  %571 = vmatpush.msra.mxu3 %v444_v52  ;;  %395 = vst [vmem:[#allocation2 + $0x10] sm:$0xff] %v8227_v10  ;;  %v653_v14 = vld [vmem:[#allocation6 + $0x3d8] sm:$0xff]  ;;  %v618_v15 = vld [vmem:[#allocation6 + $0x2c0] sm:$0xff]  ;;  %v619_v17 = vld [vmem:[#allocation6 + $0x2c8] sm:$0xff]  ;;  %v480_v36 = vrot.slane %v8227_v10, 7 }
  0x60   : > { %503 = vmatpush.msra.mxu0 %v409_v53  ;;  %549 = vmatpush.msra.mxu2 %v410_v55  ;;  %v650_v16 = vld [vmem:[#allocation6 + $0x3c0] sm:$0xff]  ;;  %v651_v18 = vld [vmem:[#allocation6 + $0x3c8] sm:$0xff]  ;;  %v616_v19 = vld [vmem:[#allocation6 + $0x2b0] sm:$0xff] }
  0x61   : > { %526 = vmatpush.msra.mxu1 %v441_v54  ;;  %572 = vmatpush.msra.mxu3 %v442_v56  ;;  %v648_v20 = vld [vmem:[#allocation6 + $0x3b0] sm:$0xff]  ;;  %v617_v21 = vld [vmem:[#allocation6 + $0x2b8] sm:$0xff]  ;;  %v400_v24 = vld [vmem:[#allocation2] sm:$0x80] }
  0x62   : > { %504 = vmatpush.msra.mxu0 %v407_v57  ;;  %550 = vmatpush.msra.mxu2 %v408_v59  ;;  %v649_v22 = vld [vmem:[#allocation6 + $0x3b8] sm:$0xff]  ;;  %v399_v23 = vld [vmem:[#allocation2 + $0x30] sm:$0x80]  ;;  %v614_v27 = vld [vmem:[#allocation6 + $0x2a0] sm:$0xff]  ;;  %v479_v35 = vrot.slane %v400_v24, 7 }
  0x63   : > { %527 = vmatpush.msra.mxu1 %v439_v58  ;;  %573 = vmatpush.msra.mxu3 %v440_v60  ;;  %v8231_v25 = vld [vmem:[%s8204_s23 + $0x10] sm:$0xff]  ;;  %v8234_v26 = vld [vmem:[%s8204_s23 + $0x18] sm:$0xff]  ;;  %v646_v28 = vld [vmem:[#allocation6 + $0x3a0] sm:$0xff]  ;;  %v476_v33 = vrot.slane %v399_v23, 7  ;;  %s381_s23 = scalar_lea.vmem [#allocation14], %s7595_s1 }
  0x64   : > { %505 = vmatpush.msra.mxu0 %v405_v61  ;;  %551 = vmatpush.msra.mxu2 %v406_v63  ;;  %396 = vst [vmem:[#allocation2 + $0x8] sm:$0xff] %v8231_v25  ;;  %v615_v29 = vld [vmem:[#allocation6 + $0x2a8] sm:$0xff]  ;;  %v612_v31 = vld [vmem:[#allocation6 + $0x290] sm:$0xff]  ;;  %v613_v37 = vld [vmem:[#allocation6 + $0x298] sm:$0xff]  ;;  %v481_v44 = vsel %vm475_vm0, %v479_v35, %v480_v36  ;;  %s7459_s15 = sshll.u32 %s381_s23, 4  ;;  %s7460_s15 = int_to_ptr.vmem [resolvable:$true] %s7459_s15 }
  0x65   : > { %528 = vmatpush.msra.mxu1 %v437_v62  ;;  %574 = vmatpush.msra.mxu3 %v438_v0  ;;  %v647_v30 = vld [vmem:[#allocation6 + $0x3a8] sm:$0xff]  ;;  %397 = vst [vmem:[#allocation2 + $0x20] sm:$0xff] %v8234_v26  ;;  %v644_v32 = vld [vmem:[#allocation6 + $0x390] sm:$0xff]  ;;  %v645_v38 = vld [vmem:[#allocation6 + $0x398] sm:$0xff]  ;;  %v478_v43 = vsel %vm475_vm0, %v476_v33, %v477_v34 }
  0x66   : > { %658 = vmatpush.msrb.mxu0 %v624_v1  ;;  %704 = vmatpush.msrb.mxu2 %v625_v3  ;;  %v610_v39 = vld [vmem:[#allocation6 + $0x280] sm:$0xff]  ;;  %v611_v41 = vld [vmem:[#allocation6 + $0x288] sm:$0xff]  ;;  %v608_v45 = vld [vmem:[#allocation6 + $0x270] sm:$0xff] }
  0x67   : > { %681 = vmatpush.msrb.mxu1 %v656_v2  ;;  %727 = vmatpush.msrb.mxu3 %v657_v4  ;;  %v642_v40 = vld [vmem:[#allocation6 + $0x380] sm:$0xff]  ;;  %v643_v42 = vld [vmem:[#allocation6 + $0x388] sm:$0xff]  ;;  %v640_v46 = vld [vmem:[#allocation6 + $0x370] sm:$0xff] }
  0x68   : > { %659 = vmatpush.msrb.mxu0 %v622_v5  ;;  %705 = vmatpush.msrb.mxu2 %v623_v8  ;;  %v609_v47 = vld [vmem:[#allocation6 + $0x278] sm:$0xff]  ;;  %v606_v49 = vld [vmem:[#allocation6 + $0x260] sm:$0xff]  ;;  %v607_v53 = vld [vmem:[#allocation6 + $0x268] sm:$0xff] }
  0x69   : > { %682 = vmatpush.msrb.mxu1 %v654_v6  ;;  %728 = vmatpush.msrb.mxu3 %v655_v9  ;;  %v641_v48 = vld [vmem:[#allocation6 + $0x378] sm:$0xff]  ;;  %v638_v50 = vld [vmem:[#allocation6 + $0x360] sm:$0xff]  ;;  %v639_v54 = vld [vmem:[#allocation6 + $0x368] sm:$0xff] }
  0x6a   : > { %660 = vmatpush.msrb.mxu0 %v620_v11  ;;  %706 = vmatpush.msrb.mxu2 %v621_v13  ;;  %v604_v55 = vld [vmem:[#allocation6 + $0x250] sm:$0xff]  ;;  %v605_v57 = vld [vmem:[#allocation6 + $0x258] sm:$0xff]  ;;  %v602_v61 = vld [vmem:[#allocation6 + $0x240] sm:$0xff] }
  0x6b   : > { %683 = vmatpush.msrb.mxu1 %v652_v12  ;;  %729 = vmatpush.msrb.mxu3 %v653_v14  ;;  %v403_v51 = vld [vmem:[#allocation2 + $0x8] sm:$0x7f]  ;;  %v636_v56 = vld [vmem:[#allocation6 + $0x350] sm:$0xff]  ;;  %v637_v58 = vld [vmem:[#allocation6 + $0x358] sm:$0xff] }
  0x6c   : > { %661 = vmatpush.msrb.mxu0 %v618_v15  ;;  %707 = vmatpush.msrb.mxu2 %v619_v17  ;;  %v404_v52 = vld [vmem:[#allocation2 + $0x20] sm:$0x7f]  ;;  %v482_v59 = vrot.slane %v403_v51, 7  ;;  %v603_v63 = vld [vmem:[#allocation6 + $0x248] sm:$0xff]  ;;  %v600_v3 = vld [vmem:[#allocation6 + $0x230] sm:$0xff] }
  0x6d   : > { %684 = vmatpush.msrb.mxu1 %v650_v16  ;;  %730 = vmatpush.msrb.mxu3 %v651_v18  ;;  %v484_v60 = vrot.slane %v404_v52, 7  ;;  %v634_v62 = vld [vmem:[#allocation6 + $0x340] sm:$0xff]  ;;  %v635_v0 = vld [vmem:[#allocation6 + $0x348] sm:$0xff]  ;;  %v632_v4 = vld [vmem:[#allocation6 + $0x330] sm:$0xff] }
  0x6e   : > { %662 = vmatpush.msrb.mxu0 %v616_v19  ;;  %708 = vmatpush.msrb.mxu2 %v617_v21  ;;  %v483_v1 = vsel %vm475_vm0, %v477_v34, %v482_v59  ;;  %v601_v5 = vld [vmem:[#allocation6 + $0x238] sm:$0xff]  ;;  %v598_v8 = vld [vmem:[#allocation6 + $0x220] sm:$0xff]  ;;  %v599_v11 = vld [vmem:[#allocation6 + $0x228] sm:$0xff] }
  0x6f   : > { %685 = vmatpush.msrb.mxu1 %v648_v20  ;;  %731 = vmatpush.msrb.mxu3 %v649_v22  ;;  %v485_v2 = vsel %vm475_vm0, %v480_v36, %v484_v60  ;;  %v633_v6 = vld [vmem:[#allocation6 + $0x338] sm:$0xff]  ;;  %v630_v9 = vld [vmem:[#allocation6 + $0x320] sm:$0xff]  ;;  %v631_v12 = vld [vmem:[#allocation6 + $0x328] sm:$0xff] }
  0x70   : > { %663 = vmatpush.msrb.mxu0 %v614_v27  ;;  %709 = vmatpush.msrb.mxu2 %v615_v29  ;;  %v596_v13 = vld [vmem:[#allocation6 + $0x210] sm:$0xff]  ;;  %v597_v15 = vld [vmem:[#allocation6 + $0x218] sm:$0xff]  ;;  %v594_v17 = vld [vmem:[#allocation6 + $0x200] sm:$0xff] }
  0x71   : > { %686 = vmatpush.msrb.mxu1 %v646_v28  ;;  %732 = vmatpush.msrb.mxu3 %v647_v30  ;;  %v628_v14 = vld [vmem:[#allocation6 + $0x310] sm:$0xff]  ;;  %v629_v16 = vld [vmem:[#allocation6 + $0x318] sm:$0xff]  ;;  %v626_v18 = vld [vmem:[#allocation6 + $0x300] sm:$0xff] }
  0x72   : > { %664 = vmatpush.msrb.mxu0 %v612_v31  ;;  %710 = vmatpush.msrb.mxu2 %v613_v37  ;;  %v595_v19 = vld [vmem:[#allocation6 + $0x208] sm:$0xff]  ;;  %v791_v21 = vld [vmem:[#allocation6 + $0x4f0] sm:$0xff]  ;;  %v792_v23 = vld [vmem:[#allocation6 + $0x4f8] sm:$0xff] }
  0x73   : > { %687 = vmatpush.msrb.mxu1 %v644_v32  ;;  %733 = vmatpush.msrb.mxu3 %v645_v38  ;;  %v627_v20 = vld [vmem:[#allocation6 + $0x308] sm:$0xff]  ;;  %v823_v22 = vld [vmem:[#allocation6 + $0x5f0] sm:$0xff]  ;;  %v824_v24 = vld [vmem:[#allocation6 + $0x5f8] sm:$0xff] }
  0x74   : > { %665 = vmatpush.msrb.mxu0 %v610_v39  ;;  %711 = vmatpush.msrb.mxu2 %v611_v41  ;;  %v789_v27 = vld [vmem:[#allocation6 + $0x4e0] sm:$0xff]  ;;  %v790_v29 = vld [vmem:[#allocation6 + $0x4e8] sm:$0xff]  ;;  %v787_v31 = vld [vmem:[#allocation6 + $0x4d0] sm:$0xff] }
  0x75   : > { %688 = vmatpush.msrb.mxu1 %v642_v40  ;;  %734 = vmatpush.msrb.mxu3 %v643_v42  ;;  %v821_v28 = vld [vmem:[#allocation6 + $0x5e0] sm:$0xff]  ;;  %v822_v30 = vld [vmem:[#allocation6 + $0x5e8] sm:$0xff]  ;;  %v819_v32 = vld [vmem:[#allocation6 + $0x5d0] sm:$0xff] }
  0x76   : > { %552 = vmatmul.f32.vlgmr.msra.gmra.mxu2 %v478_v43  ;;  %575 = vmatmul.f32.vlgmr.msra.gmra.mxu3 %v481_v44  ;;  %v788_v33 = vld [vmem:[#allocation6 + $0x4d8] sm:$0xff]  ;;  %v785_v35 = vld [vmem:[#allocation6 + $0x4c0] sm:$0xff]  ;;  %v786_v37 = vld [vmem:[#allocation6 + $0x4c8] sm:$0xff] }
  0x77   : > { %666 = vmatpush.msrb.mxu0 %v608_v45  ;;  %689 = vmatpush.msrb.mxu1 %v640_v46  ;;  %v820_v34 = vld [vmem:[#allocation6 + $0x5d8] sm:$0xff]  ;;  %v817_v36 = vld [vmem:[#allocation6 + $0x5c0] sm:$0xff]  ;;  %v818_v38 = vld [vmem:[#allocation6 + $0x5c8] sm:$0xff] }
  0x78   : > { %712 = vmatpush.msrb.mxu2 %v609_v47  ;;  %735 = vmatpush.msrb.mxu3 %v641_v48  ;;  %v783_v39 = vld [vmem:[#allocation6 + $0x4b0] sm:$0xff]  ;;  %v784_v41 = vld [vmem:[#allocation6 + $0x4b8] sm:$0xff]  ;;  %v782_v45 = vld [vmem:[#allocation6 + $0x4a8] sm:$0xff] }
  0x79   : > { %667 = vmatpush.msrb.mxu0 %v606_v49  ;;  %690 = vmatpush.msrb.mxu1 %v638_v50  ;;  %v815_v40 = vld [vmem:[#allocation6 + $0x5b0] sm:$0xff]  ;;  %v816_v42 = vld [vmem:[#allocation6 + $0x5b8] sm:$0xff]  ;;  %v814_v46 = vld [vmem:[#allocation6 + $0x5a8] sm:$0xff] }
  0x7a   : > { %713 = vmatpush.msrb.mxu2 %v607_v53  ;;  %736 = vmatpush.msrb.mxu3 %v639_v54  ;;  %v779_v47 = vld [vmem:[#allocation6 + $0x490] sm:$0xff]  ;;  %v780_v49 = vld [vmem:[#allocation6 + $0x498] sm:$0xff]  ;;  %v809_v50 = vld [vmem:[#allocation6 + $0x580] sm:$0xff] }
  0x7b   : > { %668 = vmatpush.msrb.mxu0 %v604_v55  ;;  %691 = vmatpush.msrb.mxu1 %v636_v56  ;;  %v811_v48 = vld [vmem:[#allocation6 + $0x590] sm:$0xff]  ;;  %v778_v51 = vld [vmem:[#allocation6 + $0x488] sm:$0xff]  ;;  %v776_v55 = vld [vmem:[#allocation6 + $0x478] sm:$0xff] }
  0x7c   : > { %714 = vmatpush.msrb.mxu2 %v605_v57  ;;  %737 = vmatpush.msrb.mxu3 %v637_v58  ;;  %v810_v52 = vld [vmem:[#allocation6 + $0x588] sm:$0xff]  ;;  %v775_v53 = vld [vmem:[#allocation6 + $0x470] sm:$0xff]  ;;  %v808_v56 = vld [vmem:[#allocation6 + $0x578] sm:$0xff] }
  0x7d   : > { %506 = vmatmul.f32.vlgmr.msra.gmra.mxu0 %v478_v43  ;;  %529 = vmatmul.f32.vlgmr.msra.gmra.mxu1 %v481_v44  ;;  %v781_v43 = vld [vmem:[#allocation6 + $0x4a0] sm:$0xff]  ;;  %v807_v54 = vld [vmem:[#allocation6 + $0x570] sm:$0xff]  ;;  %v774_v59 = vld [vmem:[#allocation6 + $0x468] sm:$0xff] }
  0x7e   : > { %669 = vmatpush.msrb.mxu0 %v602_v61  ;;  %692 = vmatpush.msrb.mxu1 %v634_v62  ;;  %v813_v44 = vld [vmem:[#allocation6 + $0x5a0] sm:$0xff]  ;;  %v806_v60 = vld [vmem:[#allocation6 + $0x568] sm:$0xff]  ;;  %v771_v61 = vld [vmem:[#allocation6 + $0x450] sm:$0xff] }
  0x7f   : > { %715 = vmatpush.msrb.mxu2 %v603_v63  ;;  %738 = vmatpush.msrb.mxu3 %v635_v0  ;;  %v773_v57 = vld [vmem:[#allocation6 + $0x460] sm:$0xff]  ;;  %v803_v62 = vld [vmem:[#allocation6 + $0x550] sm:$0xff]  ;;  %v772_v63 = vld [vmem:[#allocation6 + $0x458] sm:$0xff] }
  0x80   : > { %555 = vmatmul.f32.gmra.mxu2 %v483_v1  ;;  %578 = vmatmul.f32.gmra.mxu3 %v485_v2  ;;  %v805_v58 = vld [vmem:[#allocation6 + $0x560] sm:$0xff]  ;;  %v804_v0 = vld [vmem:[#allocation6 + $0x558] sm:$0xff] }
  0x81   : > { %670 = vmatpush.msrb.mxu0 %v600_v3  ;;  %693 = vmatpush.msrb.mxu1 %v632_v4  ;;  %v770_v3 = vld [vmem:[#allocation6 + $0x448] sm:$0xff] }
  0x82   : > { %716 = vmatpush.msrb.mxu2 %v601_v5  ;;  %739 = vmatpush.msrb.mxu3 %v633_v6  ;;  %v802_v4 = vld [vmem:[#allocation6 + $0x548] sm:$0xff]  ;;  %v767_v5 = vld [vmem:[#allocation6 + $0x430] sm:$0xff] }
  0x83   : > { %671 = vmatpush.msrb.mxu0 %v598_v8  ;;  %694 = vmatpush.msrb.mxu1 %v630_v9  ;;  %v799_v6 = vld [vmem:[#allocation6 + $0x530] sm:$0xff]  ;;  %v768_v8 = vld [vmem:[#allocation6 + $0x438] sm:$0xff] }
  0x84   : > { %717 = vmatpush.msrb.mxu2 %v599_v11  ;;  %740 = vmatpush.msrb.mxu3 %v631_v12  ;;  %v800_v9 = vld [vmem:[#allocation6 + $0x538] sm:$0xff]  ;;  %v755_v12 = vld [vmem:[#allocation2 + $0x10] sm:$0xfe] }
  0x85   : > { %672 = vmatpush.msrb.mxu0 %v596_v13  ;;  %695 = vmatpush.msrb.mxu1 %v628_v14  ;;  %v754_v11 = vld [vmem:[#allocation2 + $0x18] sm:$0xfe]  ;;  %v765_v13 = vld [vmem:[#allocation6 + $0x420] sm:$0xff] }
  0x86   : > { %718 = vmatpush.msrb.mxu2 %v597_v15  ;;  %741 = vmatpush.msrb.mxu3 %v629_v16  ;;  %v797_v14 = vld [vmem:[#allocation6 + $0x520] sm:$0xff]  ;;  %v766_v15 = vld [vmem:[#allocation6 + $0x428] sm:$0xff] }
  0x87   : > { %509 = vmatmul.f32.gmra.mxu0 %v483_v1  ;;  %532 = vmatmul.f32.gmra.mxu1 %v485_v2  ;;  %v769_v1 = vld [vmem:[#allocation6 + $0x440] sm:$0xff]  ;;  %v798_v16 = vld [vmem:[#allocation6 + $0x528] sm:$0xff] }
  0x88   : > { %673 = vmatpush.msrb.mxu0 %v594_v17  ;;  %696 = vmatpush.msrb.mxu1 %v626_v18  ;;  %v801_v2 = vld [vmem:[#allocation6 + $0x540] sm:$0xff]  ;;  %v763_v17 = vld [vmem:[#allocation6 + $0x410] sm:$0xff] }
  0x89   : > { %719 = vmatpush.msrb.mxu2 %v595_v19  ;;  %742 = vmatpush.msrb.mxu3 %v627_v20  ;;  %v795_v18 = vld [vmem:[#allocation6 + $0x510] sm:$0xff]  ;;  %v832_v19 = vrot.slane %v754_v11, 1  ;;  %v833_v20 = vrot.slane %v8231_v25, 1  ;;  %v963_v11 = vld [vmem:[#allocation6 + $0x640] sm:$0xff] }
  0x8a   : > { %846 = vmatpush.msra.mxu0 %v791_v21  ;;  %869 = vmatpush.msra.mxu1 %v823_v22  ;;  %v835_v21 = vrot.slane %v755_v12, 1  ;;  %v836_v22 = vrot.slane %v8234_v26, 1  ;;  %v1001_v12 = vld [vmem:[#allocation6 + $0x770] sm:$0xff] }
  0x8b   : > { %892 = vmatpush.msra.mxu2 %v792_v23  ;;  %915 = vmatpush.msra.mxu3 %v824_v24  ;;  %v764_v23 = vld [vmem:[#allocation6 + $0x418] sm:$0xff] }
  0x8c   : > { %720 = vmatmul.f32.vlgmr.msrb.gmra.mxu2 %v8223_v7  ;;  %743 = vmatmul.f32.vlgmr.msrb.gmra.mxu3 %v8227_v10  ;;  %v796_v24 = vld [vmem:[#allocation6 + $0x518] sm:$0xff] }
  0x8d   : > { %847 = vmatpush.msra.mxu0 %v789_v27  ;;  %870 = vmatpush.msra.mxu1 %v821_v28  ;;  %v761_v27 = vld [vmem:[#allocation6 + $0x400] sm:$0xff] }
  0x8e   : > { %893 = vmatpush.msra.mxu2 %v790_v29  ;;  %916 = vmatpush.msra.mxu3 %v822_v30  ;;  %v793_v28 = vld [vmem:[#allocation6 + $0x500] sm:$0xff]  ;;  %v762_v29 = vld [vmem:[#allocation6 + $0x408] sm:$0xff] }
  0x8f   : > { %848 = vmatpush.msra.mxu0 %v787_v31  ;;  %871 = vmatpush.msra.mxu1 %v819_v32  ;;  %v794_v30 = vld [vmem:[#allocation6 + $0x508] sm:$0xff]  ;;  %v837_v31 = vsel %vm831_vm1, %v835_v21, %v836_v22  ;;  %v759_v32 = vld [vmem:[#allocation2 + $0x38] sm:$0x1] }
  0x90   : > { %894 = vmatpush.msra.mxu2 %v788_v33  ;;  %917 = vmatpush.msra.mxu3 %v820_v34  ;;  %v985_v33 = vld [vmem:[#allocation6 + $0x6f0] sm:$0xff]  ;;  %v986_v34 = vld [vmem:[#allocation6 + $0x6f8] sm:$0xff]  ;;  %v960_v21 = vld [vmem:[#allocation6 + $0x628] sm:$0xff] }
  0x91   : > { %849 = vmatpush.msra.mxu0 %v785_v35  ;;  %872 = vmatpush.msra.mxu1 %v817_v36  ;;  %v840_v36 = vrot.slane %v759_v32, 1  ;;  %v1174_v32 = vld [vmem:[#allocation6 + $0x8f8] sm:$0xff] }
  0x92   : > { %895 = vmatpush.msra.mxu2 %v786_v37  ;;  %918 = vmatpush.msra.mxu3 %v818_v38  ;;  %v983_v37 = vld [vmem:[#allocation6 + $0x6e0] sm:$0xff]  ;;  %v984_v38 = vld [vmem:[#allocation6 + $0x6e8] sm:$0xff] }
  0x93   : > { %674 = vmatmul.f32.vlgmr.msrb.gmra.mxu0 %v8223_v7  ;;  %697 = vmatmul.f32.vlgmr.msrb.gmra.mxu1 %v8227_v10  ;;  %v812_v7 = vld [vmem:[#allocation6 + $0x598] sm:$0xff]  ;;  %v777_v10 = vld [vmem:[#allocation6 + $0x480] sm:$0xff] }
  0x94   : > { %850 = vmatpush.msra.mxu0 %v783_v39  ;;  %873 = vmatpush.msra.mxu1 %v815_v40  ;;  %v981_v39 = vld [vmem:[#allocation6 + $0x6d0] sm:$0xff]  ;;  %v982_v40 = vld [vmem:[#allocation6 + $0x6d8] sm:$0xff] }
  0x95   : > { %896 = vmatpush.msra.mxu2 %v784_v41  ;;  %919 = vmatpush.msra.mxu3 %v816_v42  ;;  %v841_v42 = vsel %vm831_vm1, %v836_v22, %v840_v36  ;;  %v998_v22 = vld [vmem:[#allocation6 + $0x758] sm:$0xff]  ;;  %v1172_v36 = vld [vmem:[#allocation6 + $0x8e8] sm:$0xff] }
  0x96   : > { %723 = vmatmul.f32.gmra.mxu2 %v8231_v25  ;;  %746 = vmatmul.f32.gmra.mxu3 %v8234_v26 }
  0x97   : > { %851 = vmatpush.msra.mxu0 %v781_v43  ;;  %874 = vmatpush.msra.mxu1 %v813_v44  ;;  %v979_v43 = vld [vmem:[#allocation6 + $0x6c0] sm:$0xff]  ;;  %v1017_v44 = vld [vmem:[#allocation6 + $0x7f0] sm:$0xff] }
  0x98   : > { %897 = vmatpush.msra.mxu2 %v782_v45  ;;  %920 = vmatpush.msra.mxu3 %v814_v46  ;;  %v980_v45 = vld [vmem:[#allocation6 + $0x6c8] sm:$0xff]  ;;  %v1018_v46 = vld [vmem:[#allocation6 + $0x7f8] sm:$0xff] }
  0x99   : > { %852 = vmatpush.msra.mxu0 %v779_v47  ;;  %875 = vmatpush.msra.mxu1 %v811_v48  ;;  %v977_v47 = vld [vmem:[#allocation6 + $0x6b0] sm:$0xff]  ;;  %v1015_v48 = vld [vmem:[#allocation6 + $0x7e0] sm:$0xff] }
  0x9a   : > { %898 = vmatpush.msra.mxu2 %v780_v49  ;;  %921 = vmatpush.msra.mxu3 %v812_v7  ;;  %v978_v49 = vld [vmem:[#allocation6 + $0x6b8] sm:$0xff]  ;;  %v1016_v7 = vld [vmem:[#allocation6 + $0x7e8] sm:$0xff] }
  0x9b   : > { %853 = vmatpush.msra.mxu0 %v777_v10  ;;  %876 = vmatpush.msra.mxu1 %v809_v50  ;;  %v975_v10 = vld [vmem:[#allocation6 + $0x6a0] sm:$0xff]  ;;  %v1013_v50 = vld [vmem:[#allocation6 + $0x7d0] sm:$0xff] }
  0x9c   : > { %899 = vmatpush.msra.mxu2 %v778_v51  ;;  %922 = vmatpush.msra.mxu3 %v810_v52  ;;  %v976_v51 = vld [vmem:[#allocation6 + $0x6a8] sm:$0xff]  ;;  %v1014_v52 = vld [vmem:[#allocation6 + $0x7d8] sm:$0xff] }
  0x9d   : > { %677 = vmatmul.f32.gmra.mxu0 %v8231_v25  ;;  %700 = vmatmul.f32.gmra.mxu1 %v8234_v26  ;;  %v834_v25 = vsel %vm831_vm1, %v832_v19, %v833_v20  ;;  %v758_v26 = vld [vmem:[#allocation2 + $0x28] sm:$0x1]  ;;  %v959_v19 = vld [vmem:[#allocation6 + $0x620] sm:$0xff] }
  0x9e   : > { %854 = vmatpush.msra.mxu0 %v775_v53  ;;  %877 = vmatpush.msra.mxu1 %v807_v54  ;;  %v838_v35 = vrot.slane %v758_v26, 1  ;;  %v973_v53 = vld [vmem:[#allocation6 + $0x690] sm:$0xff]  ;;  %v1011_v54 = vld [vmem:[#allocation6 + $0x7c0] sm:$0xff] }
  0x9f   : > { %900 = vmatpush.msra.mxu2 %v776_v55  ;;  %923 = vmatpush.msra.mxu3 %v808_v56  ;;  %v974_v55 = vld [vmem:[#allocation6 + $0x698] sm:$0xff]  ;;  %v1012_v56 = vld [vmem:[#allocation6 + $0x7c8] sm:$0xff]  ;;  %v1173_v26 = vld [vmem:[#allocation6 + $0x8f0] sm:$0xff] }
  0xa0   : > { %855 = vmatpush.msra.mxu0 %v773_v57  ;;  %878 = vmatpush.msra.mxu1 %v805_v58  ;;  %v839_v41 = vsel %vm831_vm1, %v833_v20, %v838_v35  ;;  %v971_v57 = vld [vmem:[#allocation6 + $0x680] sm:$0xff]  ;;  %v1009_v58 = vld [vmem:[#allocation6 + $0x7b0] sm:$0xff] }
  0xa1   : > { %901 = vmatpush.msra.mxu2 %v774_v59  ;;  %924 = vmatpush.msra.mxu3 %v806_v60  ;;  %v972_v59 = vld [vmem:[#allocation6 + $0x688] sm:$0xff]  ;;  %v1010_v60 = vld [vmem:[#allocation6 + $0x7b8] sm:$0xff]  ;;  %v997_v20 = vld [vmem:[#allocation6 + $0x750] sm:$0xff] }
  0xa2   : > { %856 = vmatpush.msra.mxu0 %v771_v61  ;;  %879 = vmatpush.msra.mxu1 %v803_v62  ;;  %v969_v61 = vld [vmem:[#allocation6 + $0x670] sm:$0xff]  ;;  %v1007_v62 = vld [vmem:[#allocation6 + $0x7a0] sm:$0xff] }
  0xa3   : > { %902 = vmatpush.msra.mxu2 %v772_v63  ;;  %925 = vmatpush.msra.mxu3 %v804_v0  ;;  %v970_v63 = vld [vmem:[#allocation6 + $0x678] sm:$0xff]  ;;  %v1008_v0 = vld [vmem:[#allocation6 + $0x7a8] sm:$0xff]  ;;  %v1171_v35 = vld [vmem:[#allocation6 + $0x8e0] sm:$0xff] }
  0xa4   : > { %857 = vmatpush.msra.mxu0 %v769_v1  ;;  %880 = vmatpush.msra.mxu1 %v801_v2  ;;  %v967_v1 = vld [vmem:[#allocation6 + $0x660] sm:$0xff]  ;;  %v1005_v2 = vld [vmem:[#allocation6 + $0x790] sm:$0xff] }
  0xa5   : > { %903 = vmatpush.msra.mxu2 %v770_v3  ;;  %926 = vmatpush.msra.mxu3 %v802_v4  ;;  %v968_v3 = vld [vmem:[#allocation6 + $0x668] sm:$0xff]  ;;  %v1006_v4 = vld [vmem:[#allocation6 + $0x798] sm:$0xff] }
  0xa6   : > { %858 = vmatpush.msra.mxu0 %v767_v5  ;;  %881 = vmatpush.msra.mxu1 %v799_v6  ;;  %v965_v5 = vld [vmem:[#allocation6 + $0x650] sm:$0xff]  ;;  %v1003_v6 = vld [vmem:[#allocation6 + $0x780] sm:$0xff] }
  0xa7   : > { %904 = vmatpush.msra.mxu2 %v768_v8  ;;  %927 = vmatpush.msra.mxu3 %v800_v9  ;;  %v966_v8 = vld [vmem:[#allocation6 + $0x658] sm:$0xff]  ;;  %v1004_v9 = vld [vmem:[#allocation6 + $0x788] sm:$0xff] }
  0xa8   : > { %859 = vmatpush.msra.mxu0 %v765_v13  ;;  %882 = vmatpush.msra.mxu1 %v797_v14  ;;  %v964_v13 = vld [vmem:[#allocation6 + $0x648] sm:$0xff]  ;;  %v1002_v14 = vld [vmem:[#allocation6 + $0x778] sm:$0xff] }
  0xa9   : > { %905 = vmatpush.msra.mxu2 %v766_v15  ;;  %928 = vmatpush.msra.mxu3 %v798_v16  ;;  %v961_v15 = vld [vmem:[#allocation6 + $0x630] sm:$0xff]  ;;  %v999_v16 = vld [vmem:[#allocation6 + $0x760] sm:$0xff] }
  0xaa   : > { %860 = vmatpush.msra.mxu0 %v763_v17  ;;  %883 = vmatpush.msra.mxu1 %v795_v18  ;;  %v962_v17 = vld [vmem:[#allocation6 + $0x638] sm:$0xff]  ;;  %v1000_v18 = vld [vmem:[#allocation6 + $0x768] sm:$0xff] }
  0xab   : > { %906 = vmatpush.msra.mxu2 %v764_v23  ;;  %929 = vmatpush.msra.mxu3 %v796_v24  ;;  %v957_v23 = vld [vmem:[#allocation6 + $0x610] sm:$0xff]  ;;  %v995_v24 = vld [vmem:[#allocation6 + $0x740] sm:$0xff] }
  0xac   : > { %861 = vmatpush.msra.mxu0 %v761_v27  ;;  %884 = vmatpush.msra.mxu1 %v793_v28  ;;  %v958_v27 = vld [vmem:[#allocation6 + $0x618] sm:$0xff]  ;;  %v996_v28 = vld [vmem:[#allocation6 + $0x748] sm:$0xff] }
  0xad   : > { %907 = vmatpush.msra.mxu2 %v762_v29  ;;  %930 = vmatpush.msra.mxu3 %v794_v30  ;;  %v955_v29 = vld [vmem:[#allocation6 + $0x600] sm:$0xff]  ;;  %v993_v30 = vld [vmem:[#allocation6 + $0x730] sm:$0xff] }
  0xae   : > { %862 = vmatmul.f32.vlgmr.msra.gmra.mxu0 %v834_v25  ;;  %885 = vmatmul.f32.vlgmr.msra.gmra.mxu1 %v837_v31 }
  0xaf   : > { %908 = vmatmul.f32.vlgmr.msra.gmra.mxu2 %v834_v25  ;;  %931 = vmatmul.f32.vlgmr.msra.gmra.mxu3 %v837_v31  ;;  %v956_v25 = vld [vmem:[#allocation6 + $0x608] sm:$0xff]  ;;  %v994_v31 = vld [vmem:[#allocation6 + $0x738] sm:$0xff] }
  0xb0   : > { %1039 = vmatpush.msrb.mxu0 %v985_v33  ;;  %1085 = vmatpush.msrb.mxu2 %v986_v34  ;;  %v991_v33 = vld [vmem:[#allocation6 + $0x720] sm:$0xff]  ;;  %v992_v34 = vld [vmem:[#allocation6 + $0x728] sm:$0xff] }
  0xb1   : > { %1062 = vmatpush.msrb.mxu1 %v1017_v44  ;;  %1108 = vmatpush.msrb.mxu3 %v1018_v46  ;;  %v1205_v44 = vld [vmem:[#allocation6 + $0x9f0] sm:$0xff]  ;;  %v1206_v46 = vld [vmem:[#allocation6 + $0x9f8] sm:$0xff] }
  0xb2   : > { %1040 = vmatpush.msrb.mxu0 %v983_v37  ;;  %1086 = vmatpush.msrb.mxu2 %v984_v38  ;;  %v989_v37 = vld [vmem:[#allocation6 + $0x710] sm:$0xff]  ;;  %v990_v38 = vld [vmem:[#allocation6 + $0x718] sm:$0xff] }
  0xb3   : > { %1063 = vmatpush.msrb.mxu1 %v1015_v48  ;;  %1109 = vmatpush.msrb.mxu3 %v1016_v7  ;;  %v1203_v48 = vld [vmem:[#allocation6 + $0x9e0] sm:$0xff] }
  0xb4   : > { %1041 = vmatpush.msrb.mxu0 %v981_v39  ;;  %1087 = vmatpush.msrb.mxu2 %v982_v40  ;;  %v1169_v39 = vld [vmem:[#allocation6 + $0x8d0] sm:$0xff]  ;;  %v1170_v40 = vld [vmem:[#allocation6 + $0x8d8] sm:$0xff] }
  0xb5   : > { %1064 = vmatpush.msrb.mxu1 %v1013_v50  ;;  %1110 = vmatpush.msrb.mxu3 %v1014_v52  ;;  %v1204_v50 = vld [vmem:[#allocation6 + $0x9e8] sm:$0xff]  ;;  %v1201_v52 = vld [vmem:[#allocation6 + $0x9d0] sm:$0xff] }
  0xb6   : > { %865 = vmatmul.f32.gmra.mxu0 %v839_v41  ;;  %888 = vmatmul.f32.gmra.mxu1 %v841_v42 }
  0xb7   : > { %911 = vmatmul.f32.gmra.mxu2 %v839_v41  ;;  %934 = vmatmul.f32.gmra.mxu3 %v841_v42  ;;  %v987_v41 = vld [vmem:[#allocation6 + $0x700] sm:$0xff]  ;;  %v988_v42 = vld [vmem:[#allocation6 + $0x708] sm:$0xff] }
  0xb8   : > { %1042 = vmatpush.msrb.mxu0 %v979_v43  ;;  %1088 = vmatpush.msrb.mxu2 %v980_v45  ;;  %v1167_v43 = vld [vmem:[#allocation6 + $0x8c0] sm:$0xff]  ;;  %v1168_v45 = vld [vmem:[#allocation6 + $0x8c8] sm:$0xff] }
  0xb9   : > { %1065 = vmatpush.msrb.mxu1 %v1011_v54  ;;  %1111 = vmatpush.msrb.mxu3 %v1012_v56  ;;  %v1202_v54 = vld [vmem:[#allocation6 + $0x9d8] sm:$0xff]  ;;  %v1199_v56 = vld [vmem:[#allocation6 + $0x9c0] sm:$0xff] }
  0xba   : > { %1043 = vmatpush.msrb.mxu0 %v977_v47  ;;  %1089 = vmatpush.msrb.mxu2 %v978_v49  ;;  %v1165_v47 = vld [vmem:[#allocation6 + $0x8b0] sm:$0xff] }
  0xbb   : > { %1066 = vmatpush.msrb.mxu1 %v1009_v58  ;;  %1112 = vmatpush.msrb.mxu3 %v1010_v60  ;;  %v1200_v58 = vld [vmem:[#allocation6 + $0x9c8] sm:$0xff]  ;;  %v1197_v60 = vld [vmem:[#allocation6 + $0x9b0] sm:$0xff] }
  0xbc   : > { %1044 = vmatpush.msrb.mxu0 %v975_v10  ;;  %1090 = vmatpush.msrb.mxu2 %v976_v51  ;;  %v1166_v10 = vld [vmem:[#allocation6 + $0x8b8] sm:$0xff]  ;;  %v1163_v51 = vld [vmem:[#allocation6 + $0x8a0] sm:$0xff] }
  0xbd   : > { %1067 = vmatpush.msrb.mxu1 %v1007_v62  ;;  %1113 = vmatpush.msrb.mxu3 %v1008_v0  ;;  %v1198_v0 = vld [vmem:[#allocation6 + $0x9b8] sm:$0xff] }
  0xbe   : > { %1045 = vmatpush.msrb.mxu0 %v973_v53  ;;  %1091 = vmatpush.msrb.mxu2 %v974_v55  ;;  %v1164_v53 = vld [vmem:[#allocation6 + $0x8a8] sm:$0xff]  ;;  %v1161_v55 = vld [vmem:[#allocation6 + $0x890] sm:$0xff] }
  0xbf   : > { %1068 = vmatpush.msrb.mxu1 %v1005_v2  ;;  %1114 = vmatpush.msrb.mxu3 %v1006_v4  ;;  %v1195_v2 = vld [vmem:[#allocation6 + $0x9a0] sm:$0xff]  ;;  %v1196_v4 = vld [vmem:[#allocation6 + $0x9a8] sm:$0xff] }
  0xc0   : > { %1046 = vmatpush.msrb.mxu0 %v971_v57  ;;  %1092 = vmatpush.msrb.mxu2 %v972_v59  ;;  %v1162_v57 = vld [vmem:[#allocation6 + $0x898] sm:$0xff]  ;;  %v1159_v59 = vld [vmem:[#allocation6 + $0x880] sm:$0xff] }
  0xc1   : > { %1069 = vmatpush.msrb.mxu1 %v1003_v6  ;;  %1115 = vmatpush.msrb.mxu3 %v1004_v9  ;;  %v1193_v9 = vld [vmem:[#allocation6 + $0x990] sm:$0xff] }
  0xc2   : > { %1047 = vmatpush.msrb.mxu0 %v969_v61  ;;  %1093 = vmatpush.msrb.mxu2 %v970_v63  ;;  %v1160_v61 = vld [vmem:[#allocation6 + $0x888] sm:$0xff] }
  0xc3   : > { %1070 = vmatpush.msrb.mxu1 %v1001_v12  ;;  %1116 = vmatpush.msrb.mxu3 %v1002_v14  ;;  %v1194_v12 = vld [vmem:[#allocation6 + $0x998] sm:$0xff]  ;;  %v1191_v14 = vld [vmem:[#allocation6 + $0x980] sm:$0xff] }
  0xc4   : > { %1048 = vmatpush.msrb.mxu0 %v967_v1  ;;  %1094 = vmatpush.msrb.mxu2 %v968_v3  ;;  %v1157_v1 = vld [vmem:[#allocation6 + $0x870] sm:$0xff]  ;;  %v1158_v3 = vld [vmem:[#allocation6 + $0x878] sm:$0xff] }
  0xc5   : > { %1071 = vmatpush.msrb.mxu1 %v999_v16  ;;  %1117 = vmatpush.msrb.mxu3 %v1000_v18  ;;  %v1192_v16 = vld [vmem:[#allocation6 + $0x988] sm:$0xff]  ;;  %v1189_v18 = vld [vmem:[#allocation6 + $0x970] sm:$0xff] }
  0xc6   : > { %1049 = vmatpush.msrb.mxu0 %v965_v5  ;;  %1095 = vmatpush.msrb.mxu2 %v966_v8  ;;  %v1155_v8 = vld [vmem:[#allocation6 + $0x860] sm:$0xff] }
  0xc7   : > { %1072 = vmatpush.msrb.mxu1 %v997_v20  ;;  %1118 = vmatpush.msrb.mxu3 %v998_v22  ;;  %v1190_v20 = vld [vmem:[#allocation6 + $0x978] sm:$0xff]  ;;  %v1187_v22 = vld [vmem:[#allocation6 + $0x960] sm:$0xff] }
  0xc8   : > { %1050 = vmatpush.msrb.mxu0 %v963_v11  ;;  %1096 = vmatpush.msrb.mxu2 %v964_v13  ;;  %v1156_v11 = vld [vmem:[#allocation6 + $0x868] sm:$0xff]  ;;  %v1153_v13 = vld [vmem:[#allocation6 + $0x850] sm:$0xff] }
  0xc9   : > { %1073 = vmatpush.msrb.mxu1 %v995_v24  ;;  %1119 = vmatpush.msrb.mxu3 %v996_v28  ;;  %v1188_v28 = vld [vmem:[#allocation6 + $0x968] sm:$0xff] }
  0xca   : > { %1051 = vmatpush.msrb.mxu0 %v961_v15  ;;  %1097 = vmatpush.msrb.mxu2 %v962_v17  ;;  %v1154_v15 = vld [vmem:[#allocation6 + $0x858] sm:$0xff]  ;;  %v1151_v17 = vld [vmem:[#allocation6 + $0x840] sm:$0xff] }
  0xcb   : > { %1074 = vmatpush.msrb.mxu1 %v993_v30  ;;  %1120 = vmatpush.msrb.mxu3 %v994_v31  ;;  %v1185_v30 = vld [vmem:[#allocation6 + $0x950] sm:$0xff]  ;;  %v1186_v31 = vld [vmem:[#allocation6 + $0x958] sm:$0xff] }
  0xcc   : > { %1052 = vmatpush.msrb.mxu0 %v959_v19  ;;  %1098 = vmatpush.msrb.mxu2 %v960_v21  ;;  %v1152_v19 = vld [vmem:[#allocation6 + $0x848] sm:$0xff]  ;;  %v1149_v21 = vld [vmem:[#allocation6 + $0x830] sm:$0xff] }
  0xcd   : > { %1075 = vmatpush.msrb.mxu1 %v991_v33  ;;  %1121 = vmatpush.msrb.mxu3 %v992_v34  ;;  %v1145_v33 = vld [vmem:[#allocation6 + $0x810] sm:$0xff]  ;;  %v1183_v34 = vld [vmem:[#allocation6 + $0x940] sm:$0xff] }
  0xce   : > { %1053 = vmatpush.msrb.mxu0 %v957_v23  ;;  %1099 = vmatpush.msrb.mxu2 %v958_v27  ;;  %v1150_v23 = vld [vmem:[#allocation6 + $0x838] sm:$0xff] }
  0xcf   : > { %1076 = vmatpush.msrb.mxu1 %v989_v37  ;;  %1122 = vmatpush.msrb.mxu3 %v990_v38  ;;  %v1143_v37 = vld [vmem:[#allocation6 + $0x800] sm:$0xff]  ;;  %v1181_v38 = vld [vmem:[#allocation6 + $0x930] sm:$0xff] }
  0xd0   : > { %1054 = vmatpush.msrb.mxu0 %v955_v29  ;;  %1100 = vmatpush.msrb.mxu2 %v956_v25  ;;  %v1147_v29 = vld [vmem:[#allocation6 + $0x820] sm:$0xff]  ;;  %v1148_v25 = vld [vmem:[#allocation6 + $0x828] sm:$0xff] }
  0xd1   : > { %1077 = vmatpush.msrb.mxu1 %v987_v41  ;;  %1123 = vmatpush.msrb.mxu3 %v988_v42  ;;  %v1179_v41 = vld [vmem:[#allocation6 + $0x920] sm:$0xff]  ;;  %v1180_v42 = vld [vmem:[#allocation6 + $0x928] sm:$0xff] }
  0xd2   : > { %1207 = vmatpush.msra.mxu0 %v1173_v26  ;;  %1253 = vmatpush.msra.mxu2 %v1174_v32 }
  0xd3   : > { %1230 = vmatpush.msra.mxu1 %v1205_v44  ;;  %1276 = vmatpush.msra.mxu3 %v1206_v46  ;;  %v1178_v44 = vld [vmem:[#allocation6 + $0x918] sm:$0xff] }
  0xd4   : > { %1208 = vmatpush.msra.mxu0 %v1171_v35  ;;  %1254 = vmatpush.msra.mxu2 %v1172_v36  ;;  %v1146_v35 = vld [vmem:[#allocation6 + $0x818] sm:$0xff]  ;;  %v1184_v36 = vld [vmem:[#allocation6 + $0x948] sm:$0xff] }
  0xd5   : > { %1231 = vmatpush.msra.mxu1 %v1203_v48  ;;  %1277 = vmatpush.msra.mxu3 %v1204_v50  ;;  %v398_v48 = vld [vmem:[#allocation8] sm:$0x3] }
  0xd6   : > { %1209 = vmatpush.msra.mxu0 %v1169_v39  ;;  %1255 = vmatpush.msra.mxu2 %v1170_v40  ;;  %v1144_v39 = vld [vmem:[#allocation6 + $0x808] sm:$0xff]  ;;  %v1182_v40 = vld [vmem:[#allocation6 + $0x938] sm:$0xff] }
  0xd7   : > { %1232 = vmatpush.msra.mxu1 %v1201_v52  ;;  %1278 = vmatpush.msra.mxu3 %v1202_v54 }
  0xd8   : > { %1210 = vmatpush.msra.mxu0 %v1167_v43  ;;  %1256 = vmatpush.msra.mxu2 %v1168_v45  ;;  %v1177_v43 = vld [vmem:[#allocation6 + $0x910] sm:$0xff] }
  0xd9   : > { %1233 = vmatpush.msra.mxu1 %v1199_v56  ;;  %1279 = vmatpush.msra.mxu3 %v1200_v58 }
  0xda   : > { %1211 = vmatpush.msra.mxu0 %v1165_v47  ;;  %1257 = vmatpush.msra.mxu2 %v1166_v10  ;;  %v1175_v47 = vld [vmem:[#allocation6 + $0x900] sm:$0xff]  ;;  %v1176_v10 = vld [vmem:[#allocation6 + $0x908] sm:$0xff] }
  0xdb   : > { %1234 = vmatpush.msra.mxu1 %v1197_v60  ;;  %1280 = vmatpush.msra.mxu3 %v1198_v0  ;;  %v948_v0 = vld [vmem:[#allocation2 + $0x30] sm:$0x80] }
  0xdc   : > { %1212 = vmatpush.msra.mxu0 %v1163_v51  ;;  %1258 = vmatpush.msra.mxu2 %v1164_v53  ;;  %v583_v53 = vperm.slane %v398_v48, 0 }
  0xdd   : > { %1235 = vmatpush.msra.mxu1 %v1195_v2  ;;  %1281 = vmatpush.msra.mxu3 %v1196_v4 }
  0xde   : > { %1213 = vmatpush.msra.mxu0 %v1161_v55  ;;  %1259 = vmatpush.msra.mxu2 %v1162_v57 }
  0xdf   : > { %1236 = vmatpush.msra.mxu1 %v1193_v9  ;;  %1282 = vmatpush.msra.mxu3 %v1194_v12  ;;  %v1341_v12 = vld [vmem:[#allocation6 + $0xaf8] sm:$0xff] }
  0xe0   : > { %1214 = vmatpush.msra.mxu0 %v1159_v59  ;;  %1260 = vmatpush.msra.mxu2 %v1160_v61  ;;  %v584_v59 = vperm.slane %v398_v48, 1  ;;  %v1331_v48 = vld [vmem:[#allocation6 + $0xaa8] sm:$0xff] }
  0xe1   : > { %1237 = vmatpush.msra.mxu1 %v1191_v14  ;;  %1283 = vmatpush.msra.mxu3 %v1192_v16 }
  0xe2   : > { %1215 = vmatpush.msra.mxu0 %v1157_v1  ;;  %1261 = vmatpush.msra.mxu2 %v1158_v3 }
  0xe3   : > { %1238 = vmatpush.msra.mxu1 %v1189_v18  ;;  %1284 = vmatpush.msra.mxu3 %v1190_v20  ;;  %v1338_v20 = vld [vmem:[#allocation6 + $0xae0] sm:$0xff] }
  0xe4   : > { %1216 = vmatpush.msra.mxu0 %v1155_v8  ;;  %1262 = vmatpush.msra.mxu2 %v1156_v11 }
  0xe5   : > { %1239 = vmatpush.msra.mxu1 %v1187_v22  ;;  %1285 = vmatpush.msra.mxu3 %v1188_v28 }
  0xe6   : > { %1217 = vmatpush.msra.mxu0 %v1153_v13  ;;  %1263 = vmatpush.msra.mxu2 %v1154_v15 }
  0xe7   : > { %1240 = vmatpush.msra.mxu1 %v1185_v30  ;;  %1286 = vmatpush.msra.mxu3 %v1186_v31  ;;  %v1337_v30 = vld [vmem:[#allocation6 + $0xad8] sm:$0xff] }
  0xe8   : > { %1218 = vmatpush.msra.mxu0 %v1151_v17  ;;  %1264 = vmatpush.msra.mxu2 %v1152_v19 }
  0xe9   : > { %1241 = vmatpush.msra.mxu1 %v1183_v34  ;;  %1287 = vmatpush.msra.mxu3 %v1184_v36  ;;  %v1373_v36 = vld [vmem:[#allocation6 + $0xbf8] sm:$0xff] }
  0xea   : > { %1219 = vmatpush.msra.mxu0 %v1149_v21  ;;  %1265 = vmatpush.msra.mxu2 %v1150_v23  ;;  %v1339_v21 = vld [vmem:[#allocation6 + $0xae8] sm:$0xff] }
  0xeb   : > { %1242 = vmatpush.msra.mxu1 %v1181_v38  ;;  %1288 = vmatpush.msra.mxu3 %v1182_v40  ;;  %v1370_v40 = vld [vmem:[#allocation6 + $0xbe0] sm:$0xff] }
  0xec   : > { %1220 = vmatpush.msra.mxu0 %v1147_v29  ;;  %1266 = vmatpush.msra.mxu2 %v1148_v25  ;;  %v1336_v29 = vld [vmem:[#allocation6 + $0xad0] sm:$0xff] }
  0xed   : > { %1243 = vmatpush.msra.mxu1 %v1179_v41  ;;  %1289 = vmatpush.msra.mxu3 %v1180_v42 }
  0xee   : > { %1221 = vmatpush.msra.mxu0 %v1145_v33  ;;  %1267 = vmatpush.msra.mxu2 %v1146_v35  ;;  %v1372_v33 = vld [vmem:[#allocation6 + $0xbf0] sm:$0xff]  ;;  %v1335_v35 = vld [vmem:[#allocation6 + $0xac8] sm:$0xff] }
  0xef   : > { %1244 = vmatpush.msra.mxu1 %v1177_v43  ;;  %1290 = vmatpush.msra.mxu3 %v1178_v44  ;;  %v1333_v43 = vld [vmem:[#allocation6 + $0xab8] sm:$0xff]  ;;  %v1371_v44 = vld [vmem:[#allocation6 + $0xbe8] sm:$0xff] }
  0xf0   : > { %1222 = vmatpush.msra.mxu0 %v1143_v37  ;;  %1268 = vmatpush.msra.mxu2 %v1144_v39  ;;  %v1332_v39 = vld [vmem:[#allocation6 + $0xab0] sm:$0xff] }
  0xf1   : > { %1245 = vmatpush.msra.mxu1 %v1175_v47  ;;  %1291 = vmatpush.msra.mxu3 %v1176_v10  ;;  %v1369_v10 = vld [vmem:[#allocation6 + $0xbd8] sm:$0xff] }
  0xf9   : > { %v8262_v62 = vpop.f32.mrf.mxu2  ;;  %v8264_v63 = vpop.f32.mrf.mxu3 }
  0xfa   : > { %v8258_v49 = vpop.f32.mrf.mxu0  ;;  %v8260_v7 = vpop.f32.mrf.mxu1  ;;  %v577_v58 = vadd.f32 %v8264_v63, %v8262_v62  ;;  %v1340_v63 = vld [vmem:[#allocation6 + $0xaf0] sm:$0xff] }
  0xfb   : > { %v531_v52 = vadd.f32 %v8260_v7, %v8258_v49  ;;  %v1025_v49 = vrot.slane %v948_v0, 7  ;;  %v1362_v0 = vld [vmem:[#allocation6 + $0xba0] sm:$0xff] }
  0xfc   : > { %v588_v7 = vadd.f32 %v584_v59, %v577_v58 }
  0xfd   : > { %v587_v54 = vadd.f32 %v583_v53, %v531_v52 }
 0x103   : > { %v8270_v24 = vpop.f32.mrf.mxu2  ;;  %v8272_v27 = vpop.f32.mrf.mxu3 }
 0x104   : > { %v8266_v5 = vpop.f32.mrf.mxu0  ;;  %v8268_v6 = vpop.f32.mrf.mxu1  ;;  %v580_v15 = vadd.f32 %v8272_v27, %v8270_v24 }
 0x105   : > { %v534_v1 = vadd.f32 %v8268_v6, %v8266_v5  ;;  %v949_v6 = vld [vmem:[#allocation2] sm:$0x80] }
 0x106   : > { %v1028_v25 = vrot.slane %v949_v6, 7  ;;  %v590_v24 = vadd.f32 %v584_v59, %v580_v15  ;;  %v1327_v59 = vld [vmem:[#allocation6 + $0xa88] sm:$0xff]  ;;  %v1356_v6 = vld [vmem:[#allocation6 + $0xb70] sm:$0xff] }
 0x107   : > { %v589_v9 = vadd.f32 %v583_v53, %v534_v1  ;;  %v1329_v53 = vld [vmem:[#allocation6 + $0xa98] sm:$0xff]  ;;  %v1319_v15 = vld [vmem:[#allocation6 + $0xa48] sm:$0xff] }
 0x108   : > { %v1325_v1 = vld [vmem:[#allocation6 + $0xa78] sm:$0xff] }
 0x10f   : > { %v721_v45 = vpop.f32.mrf.mxu2  ;;  %v744_v46 = vpop.f32.mrf.mxu3 }
 0x110   : > { %v675_v26 = vpop.f32.mrf.mxu0  ;;  %v698_v32 = vpop.f32.mrf.mxu1  ;;  %v745_v8 = vadd.f32 %v744_v46, %v721_v45  ;;  %v1330_v45 = vld [vmem:[#allocation6 + $0xaa0] sm:$0xff]  ;;  %v1368_v46 = vld [vmem:[#allocation6 + $0xbd0] sm:$0xff] }
 0x111   : > { %v699_v55 = vadd.f32 %v698_v32, %v675_v26  ;;  %v1334_v32 = vld [vmem:[#allocation6 + $0xac0] sm:$0xff] }
 0x112   : > { %v751_v16 = vadd.f32 %v745_v8, %v588_v7  ;;  %v1323_v8 = vld [vmem:[#allocation6 + $0xa68] sm:$0xff] }
 0x113   : > { %v750_v2 = vadd.f32 %v699_v55, %v587_v54  ;;  %v1367_v54 = vld [vmem:[#allocation6 + $0xbc8] sm:$0xff] }
 0x119   : > { %v724_v56 = vpop.f32.mrf.mxu2  ;;  %v747_v57 = vpop.f32.mrf.mxu3 }
 0x11a   : > { %v678_v50 = vpop.f32.mrf.mxu0  ;;  %v701_v51 = vpop.f32.mrf.mxu1  ;;  %v748_v27 = vadd.f32 %v747_v57, %v724_v56  ;;  %v1326_v56 = vld [vmem:[#allocation6 + $0xa80] sm:$0xff]  ;;  %v1364_v57 = vld [vmem:[#allocation6 + $0xbb0] sm:$0xff] }
 0x11b   : > { %v702_v11 = vadd.f32 %v701_v51, %v678_v50  ;;  %v1328_v50 = vld [vmem:[#allocation6 + $0xa90] sm:$0xff]  ;;  %v1366_v51 = vld [vmem:[#allocation6 + $0xbc0] sm:$0xff] }
 0x11c   : > { %v753_v41 = vadd.f32 %v748_v27, %v590_v24  ;;  %v1313_v27 = vld [vmem:[#allocation6 + $0xa18] sm:$0xff] }
 0x11d   : > { %v752_v22 = vadd.f32 %v702_v11, %v589_v9  ;;  %v1361_v9 = vld [vmem:[#allocation6 + $0xb98] sm:$0xff] }
 0x12b   : > { %v863_v60 = vpop.f32.mrf.mxu0  ;;  %v886_v61 = vpop.f32.mrf.mxu1 }
 0x12c   : > { %v887_v3 = vadd.f32 %v886_v61, %v863_v60  ;;  %v1365_v60 = vld [vmem:[#allocation6 + $0xbb8] sm:$0xff]  ;;  %v1324_v61 = vld [vmem:[#allocation6 + $0xa70] sm:$0xff] }
 0x12e   : > { %v8280_v4 = vadd.f32 %v887_v3, %v750_v2  ;;  %v1363_v2 = vld [vmem:[#allocation6 + $0xba8] sm:$0xff]  ;;  %v1322_v3 = vld [vmem:[#allocation6 + $0xa60] sm:$0xff] }
 0x130   : > { %942 = vst [vmem:[#allocation2 + $0x18] sm:$0xff] %v8280_v4  ;;  %v1026_v62 = vrot.slane %v8280_v4, 7 }
 0x132   : > { %v909_v13 = vpop.f32.mrf.mxu2  ;;  %v932_v14 = vpop.f32.mrf.mxu3  ;;  %v1027_v5 = vsel %vm475_vm0, %v1025_v49, %v1026_v62  ;;  %v1360_v49 = vld [vmem:[#allocation6 + $0xb90] sm:$0xff] }
 0x133   : > { %v933_v17 = vadd.f32 %v932_v14, %v909_v13  ;;  %v866_v18 = vpop.f32.mrf.mxu0  ;;  %v889_v19 = vpop.f32.mrf.mxu1  ;;  %1055 = vmatmul.f32.vlgmr.msrb.gmra.mxu0 %v1027_v5  ;;  %1101 = vmatmul.f32.vlgmr.msrb.gmra.mxu2 %v1027_v5  ;;  %v1321_v13 = vld [vmem:[#allocation6 + $0xa58] sm:$0xff]  ;;  %v1359_v14 = vld [vmem:[#allocation6 + $0xb88] sm:$0xff]  ;;  %v1318_v5 = vld [vmem:[#allocation6 + $0xa40] sm:$0xff] }
 0x134   : > { %v890_v23 = vadd.f32 %v889_v19, %v866_v18  ;;  %1394 = vmatpush.msrb.mxu0 %v1340_v63  ;;  %1440 = vmatpush.msrb.mxu2 %v1341_v12  ;;  %v1320_v63 = vld [vmem:[#allocation6 + $0xa50] sm:$0xff]  ;;  %v1358_v12 = vld [vmem:[#allocation6 + $0xb80] sm:$0xff]  ;;  %v1317_v19 = vld [vmem:[#allocation6 + $0xa38] sm:$0xff] }
 0x135   : > { %v8289_v28 = vadd.f32 %v933_v17, %v751_v16  ;;  %v1357_v16 = vld [vmem:[#allocation6 + $0xb78] sm:$0xff]  ;;  %v1316_v17 = vld [vmem:[#allocation6 + $0xa30] sm:$0xff]  ;;  %v1354_v18 = vld [vmem:[#allocation6 + $0xb60] sm:$0xff] }
 0x136   : > { %v8291_v31 = vadd.f32 %v890_v23, %v752_v22  ;;  %1395 = vmatpush.msrb.mxu0 %v1338_v20  ;;  %1441 = vmatpush.msrb.mxu2 %v1339_v21  ;;  %v1355_v20 = vld [vmem:[#allocation6 + $0xb68] sm:$0xff]  ;;  %v1314_v21 = vld [vmem:[#allocation6 + $0xa20] sm:$0xff]  ;;  %v1352_v22 = vld [vmem:[#allocation6 + $0xb50] sm:$0xff] }
 0x137   : > { %943 = vst [vmem:[#allocation2 + $0x10] sm:$0xff] %v8289_v28  ;;  %v1029_v26 = vrot.slane %v8289_v28, 7  ;;  %v1315_v23 = vld [vmem:[#allocation6 + $0xa28] sm:$0xff]  ;;  %v1303_v24 = vld [vmem:[#allocation2 + $0x18] sm:$0xfe] }
 0x138   : > { %944 = vst [vmem:[#allocation2 + $0x8] sm:$0xff] %v8291_v31  ;;  %1396 = vmatpush.msrb.mxu0 %v1336_v29  ;;  %1442 = vmatpush.msrb.mxu2 %v1337_v30  ;;  %v1353_v29 = vld [vmem:[#allocation6 + $0xb58] sm:$0xff]  ;;  %v1312_v30 = vld [vmem:[#allocation6 + $0xa10] sm:$0xff] }
 0x139   : > { %v1030_v34 = vsel %vm475_vm0, %v1028_v25, %v1029_v26  ;;  %v1350_v25 = vld [vmem:[#allocation6 + $0xb40] sm:$0xff] }
 0x13a   : > { %v912_v37 = vpop.f32.mrf.mxu2  ;;  %v935_v38 = vpop.f32.mrf.mxu3  ;;  %1078 = vmatmul.f32.vlgmr.msrb.gmra.mxu1 %v1030_v34  ;;  %1124 = vmatmul.f32.vlgmr.msrb.gmra.mxu3 %v1030_v34  ;;  %v1311_v34 = vld [vmem:[#allocation6 + $0xa08] sm:$0xff] }
 0x13b   : > { %v936_v42 = vadd.f32 %v935_v38, %v912_v37  ;;  %1397 = vmatpush.msrb.mxu0 %v1334_v32  ;;  %1417 = vmatpush.msrb.mxu1 %v1372_v33  ;;  %v1310_v32 = vld [vmem:[#allocation6 + $0xa00] sm:$0xff]  ;;  %v1348_v33 = vld [vmem:[#allocation6 + $0xb30] sm:$0xff]  ;;  %v1381_v37 = vrot.slane %v8291_v31, 1 }
 0x13c   : > { %1443 = vmatpush.msrb.mxu2 %v1335_v35  ;;  %1463 = vmatpush.msrb.mxu3 %v1373_v36  ;;  %v1349_v35 = vld [vmem:[#allocation6 + $0xb38] sm:$0xff]  ;;  %v1380_v36 = vrot.slane %v1303_v24, 1  ;;  %v1346_v38 = vld [vmem:[#allocation6 + $0xb20] sm:$0xff]  ;;  %v1525_v24 = vld [vmem:[#allocation6 + $0xc50] sm:$0xff] }
 0x13d   : > { %v8299_v47 = vadd.f32 %v936_v42, %v753_v41  ;;  %1398 = vmatpush.msrb.mxu0 %v1332_v39  ;;  %1418 = vmatpush.msrb.mxu1 %v1370_v40  ;;  %v1347_v39 = vld [vmem:[#allocation6 + $0xb28] sm:$0xff]  ;;  %v1545_v42 = vld [vmem:[#allocation6 + $0xcf0] sm:$0xff] }
 0x13e   : > { %1444 = vmatpush.msrb.mxu2 %v1333_v43  ;;  %1464 = vmatpush.msrb.mxu3 %v1371_v44  ;;  %v1382_v40 = vsel %vm831_vm1, %v1380_v36, %v1381_v37  ;;  %v1304_v41 = vld [vmem:[#allocation2 + $0x10] sm:$0xfe]  ;;  %v1546_v43 = vld [vmem:[#allocation6 + $0xcf8] sm:$0xff] }
 0x13f   : > { %945 = vst [vmem:[#allocation2 + $0x20] sm:$0xff] %v8299_v47  ;;  %v952_v52 = vld [vmem:[#allocation2 + $0x8] sm:$0x7f]  ;;  %1399 = vmatpush.msrb.mxu0 %v1330_v45  ;;  %1419 = vmatpush.msrb.mxu1 %v1368_v46  ;;  %v1344_v44 = vld [vmem:[#allocation6 + $0xb10] sm:$0xff]  ;;  %v1345_v45 = vld [vmem:[#allocation6 + $0xb18] sm:$0xff] }
 0x140   : > { %v1031_v55 = vrot.slane %v952_v52, 7  ;;  %1445 = vmatpush.msrb.mxu2 %v1331_v48  ;;  %1465 = vmatpush.msrb.mxu3 %v1369_v10  ;;  %v1307_v46 = vld [vmem:[#allocation2 + $0x28] sm:$0x1]  ;;  %v1543_v48 = vld [vmem:[#allocation6 + $0xce0] sm:$0xff]  ;;  %v1383_v52 = vrot.slane %v1304_v41, 1  ;;  %v1562_v36 = vld [vmem:[#allocation6 + $0xd78] sm:$0xff] }
 0x141   : > { %1400 = vmatpush.msrb.mxu0 %v1328_v50  ;;  %1420 = vmatpush.msrb.mxu1 %v1366_v51  ;;  %v1544_v10 = vld [vmem:[#allocation6 + $0xce8] sm:$0xff]  ;;  %v1342_v50 = vld [vmem:[#allocation6 + $0xb00] sm:$0xff] }
 0x142   : > { %v1032_v58 = vsel %vm475_vm0, %v1026_v62, %v1031_v55  ;;  %1446 = vmatpush.msrb.mxu2 %v1329_v53  ;;  %1466 = vmatpush.msrb.mxu3 %v1367_v54  ;;  %v1343_v51 = vld [vmem:[#allocation6 + $0xb08] sm:$0xff]  ;;  %v1384_v53 = vrot.slane %v8299_v47, 1  ;;  %v1386_v54 = vrot.slane %v1307_v46, 1  ;;  %v1519_v41 = vld [vmem:[#allocation6 + $0xc20] sm:$0xff] }
 0x143   : > { %1058 = vmatmul.f32.gmra.mxu0 %v1032_v58  ;;  %1104 = vmatmul.f32.gmra.mxu2 %v1032_v58  ;;  %v1555_v46 = vld [vmem:[#allocation6 + $0xd40] sm:$0xff] }
 0x144   : > { %1401 = vmatpush.msrb.mxu0 %v1326_v56  ;;  %1421 = vmatpush.msrb.mxu1 %v1364_v57  ;;  %v1385_v55 = vsel %vm831_vm1, %v1383_v52, %v1384_v53  ;;  %v1387_v56 = vsel %vm831_vm1, %v1381_v37, %v1386_v54  ;;  %v1308_v57 = vld [vmem:[#allocation2 + $0x38] sm:$0x1]  ;;  %v1521_v37 = vld [vmem:[#allocation6 + $0xc30] sm:$0xff]  ;;  %v1516_v52 = vld [vmem:[#allocation6 + $0xc08] sm:$0xff] }
 0x145   : > { %1447 = vmatpush.msrb.mxu2 %v1327_v59  ;;  %1467 = vmatpush.msrb.mxu3 %v1365_v60  ;;  %v1388_v58 = vrot.slane %v1308_v57, 1  ;;  %v1541_v60 = vld [vmem:[#allocation6 + $0xcd0] sm:$0xff]  ;;  %v1552_v57 = vld [vmem:[#allocation6 + $0xd28] sm:$0xff] }
 0x146   : > { %v953_v7 = vld [vmem:[#allocation2 + $0x20] sm:$0x7f]  ;;  %1402 = vmatpush.msrb.mxu0 %v1324_v61  ;;  %1422 = vmatpush.msrb.mxu1 %v1362_v0  ;;  %v1542_v61 = vld [vmem:[#allocation6 + $0xcd8] sm:$0xff]  ;;  %v1733_v54 = vld [vmem:[#allocation6 + $0xef0] sm:$0xff] }
 0x147   : > { %v1033_v11 = vrot.slane %v953_v7, 7  ;;  %1448 = vmatpush.msrb.mxu2 %v1325_v1  ;;  %1468 = vmatpush.msrb.mxu3 %v1363_v2  ;;  %v1389_v59 = vsel %vm831_vm1, %v1384_v53, %v1388_v58  ;;  %v1539_v0 = vld [vmem:[#allocation6 + $0xcc0] sm:$0xff]  ;;  %v1577_v1 = vld [vmem:[#allocation6 + $0xdf0] sm:$0xff]  ;;  %v1540_v2 = vld [vmem:[#allocation6 + $0xcc8] sm:$0xff] }
 0x148   : > { %1403 = vmatpush.msrb.mxu0 %v1322_v3  ;;  %1423 = vmatpush.msrb.mxu1 %v1360_v49  ;;  %v1578_v3 = vld [vmem:[#allocation6 + $0xdf8] sm:$0xff]  ;;  %v1537_v49 = vld [vmem:[#allocation6 + $0xcb0] sm:$0xff]  ;;  %v1575_v7 = vld [vmem:[#allocation6 + $0xde0] sm:$0xff] }
 0x149   : > { %v1034_v62 = vsel %vm475_vm0, %v1029_v26, %v1033_v11  ;;  %1449 = vmatpush.msrb.mxu2 %v1323_v8  ;;  %1469 = vmatpush.msrb.mxu3 %v1361_v9  ;;  %v1351_v26 = vld [vmem:[#allocation6 + $0xb48] sm:$0xff]  ;;  %v1538_v8 = vld [vmem:[#allocation6 + $0xcb8] sm:$0xff]  ;;  %v1535_v11 = vld [vmem:[#allocation6 + $0xca0] sm:$0xff] }
 0x14a   : > { %1081 = vmatmul.f32.gmra.mxu1 %v1034_v62  ;;  %1127 = vmatmul.f32.gmra.mxu3 %v1034_v62  ;;  %v1576_v9 = vld [vmem:[#allocation6 + $0xde8] sm:$0xff]  ;;  %v1573_v62 = vld [vmem:[#allocation6 + $0xdd0] sm:$0xff]  ;;  %v1554_v53 = vld [vmem:[#allocation6 + $0xd38] sm:$0xff] }
 0x14b   : > { %1223 = vmatmul.f32.vlgmr.msra.gmra.mxu0 %v8280_v4  ;;  %1269 = vmatmul.f32.vlgmr.msra.gmra.mxu2 %v8280_v4  ;;  %v1731_v58 = vld [vmem:[#allocation6 + $0xee0] sm:$0xff] }
 0x14c   : > { %1404 = vmatpush.msrb.mxu0 %v1320_v63  ;;  %1424 = vmatpush.msrb.mxu1 %v1358_v12  ;;  %v1536_v63 = vld [vmem:[#allocation6 + $0xca8] sm:$0xff]  ;;  %v1574_v12 = vld [vmem:[#allocation6 + $0xdd8] sm:$0xff] }
 0x14d   : > { %1450 = vmatpush.msrb.mxu2 %v1321_v13  ;;  %1470 = vmatpush.msrb.mxu3 %v1359_v14  ;;  %v1533_v13 = vld [vmem:[#allocation6 + $0xc90] sm:$0xff]  ;;  %v1571_v14 = vld [vmem:[#allocation6 + $0xdc0] sm:$0xff] }
 0x14e   : > { %1405 = vmatpush.msrb.mxu0 %v1318_v5  ;;  %1425 = vmatpush.msrb.mxu1 %v1356_v6  ;;  %v1534_v5 = vld [vmem:[#allocation6 + $0xc98] sm:$0xff]  ;;  %v1572_v6 = vld [vmem:[#allocation6 + $0xdc8] sm:$0xff] }
 0x14f   : > { %1451 = vmatpush.msrb.mxu2 %v1319_v15  ;;  %1471 = vmatpush.msrb.mxu3 %v1357_v16  ;;  %v1531_v15 = vld [vmem:[#allocation6 + $0xc80] sm:$0xff]  ;;  %v1569_v16 = vld [vmem:[#allocation6 + $0xdb0] sm:$0xff] }
 0x150   : > { %1406 = vmatpush.msrb.mxu0 %v1316_v17  ;;  %1426 = vmatpush.msrb.mxu1 %v1354_v18  ;;  %v1532_v17 = vld [vmem:[#allocation6 + $0xc88] sm:$0xff]  ;;  %v1570_v18 = vld [vmem:[#allocation6 + $0xdb8] sm:$0xff] }
 0x151   : > { %1452 = vmatpush.msrb.mxu2 %v1317_v19  ;;  %1472 = vmatpush.msrb.mxu3 %v1355_v20  ;;  %v1529_v19 = vld [vmem:[#allocation6 + $0xc70] sm:$0xff]  ;;  %v1567_v20 = vld [vmem:[#allocation6 + $0xda0] sm:$0xff] }
 0x152   : > { %1246 = vmatmul.f32.vlgmr.msra.gmra.mxu1 %v8289_v28  ;;  %1292 = vmatmul.f32.vlgmr.msra.gmra.mxu3 %v8289_v28 }
 0x153   : > { %1226 = vmatmul.f32.gmra.mxu0 %v8291_v31  ;;  %1272 = vmatmul.f32.gmra.mxu2 %v8291_v31 }
 0x154   : > { %1407 = vmatpush.msrb.mxu0 %v1314_v21  ;;  %1427 = vmatpush.msrb.mxu1 %v1352_v22  ;;  %v1530_v21 = vld [vmem:[#allocation6 + $0xc78] sm:$0xff]  ;;  %v1568_v22 = vld [vmem:[#allocation6 + $0xda8] sm:$0xff] }
 0x155   : > { %1453 = vmatpush.msrb.mxu2 %v1315_v23  ;;  %1473 = vmatpush.msrb.mxu3 %v1353_v29  ;;  %v1527_v23 = vld [vmem:[#allocation6 + $0xc60] sm:$0xff]  ;;  %v1565_v29 = vld [vmem:[#allocation6 + $0xd90] sm:$0xff] }
 0x156   : > { %1408 = vmatpush.msrb.mxu0 %v1312_v30  ;;  %1428 = vmatpush.msrb.mxu1 %v1350_v25  ;;  %v1528_v30 = vld [vmem:[#allocation6 + $0xc68] sm:$0xff]  ;;  %v1566_v25 = vld [vmem:[#allocation6 + $0xd98] sm:$0xff] }
 0x157   : > { %1454 = vmatpush.msrb.mxu2 %v1313_v27  ;;  %1474 = vmatpush.msrb.mxu3 %v1351_v26  ;;  %v1563_v27 = vld [vmem:[#allocation6 + $0xd80] sm:$0xff]  ;;  %v1526_v26 = vld [vmem:[#allocation6 + $0xc58] sm:$0xff] }
 0x158   : > { %1409 = vmatpush.msrb.mxu0 %v1310_v32  ;;  %1429 = vmatpush.msrb.mxu1 %v1348_v33  ;;  %v1564_v32 = vld [vmem:[#allocation6 + $0xd88] sm:$0xff]  ;;  %v1523_v33 = vld [vmem:[#allocation6 + $0xc40] sm:$0xff] }
 0x159   : > { %1455 = vmatpush.msrb.mxu2 %v1311_v34  ;;  %1475 = vmatpush.msrb.mxu3 %v1349_v35  ;;  %v1561_v34 = vld [vmem:[#allocation6 + $0xd70] sm:$0xff]  ;;  %v1524_v35 = vld [vmem:[#allocation6 + $0xc48] sm:$0xff] }
 0x15a   : > { %1249 = vmatmul.f32.gmra.mxu1 %v8299_v47  ;;  %1295 = vmatmul.f32.gmra.mxu3 %v8299_v47 }
 0x15b   : > { %1410 = vmatmul.f32.vlgmr.msrb.gmra.mxu0 %v1382_v40  ;;  %1456 = vmatmul.f32.vlgmr.msrb.gmra.mxu2 %v1382_v40  ;;  %v1560_v40 = vld [vmem:[#allocation6 + $0xd68] sm:$0xff] }
 0x15c   : > { %1430 = vmatpush.msrb.mxu1 %v1346_v38  ;;  %1476 = vmatpush.msrb.mxu3 %v1347_v39  ;;  %v1559_v38 = vld [vmem:[#allocation6 + $0xd60] sm:$0xff]  ;;  %v1522_v39 = vld [vmem:[#allocation6 + $0xc38] sm:$0xff] }
 0x15d   : > { %1599 = vmatpush.msra.mxu0 %v1545_v42  ;;  %1645 = vmatpush.msra.mxu2 %v1546_v43  ;;  %v1557_v42 = vld [vmem:[#allocation6 + $0xd50] sm:$0xff]  ;;  %v1520_v43 = vld [vmem:[#allocation6 + $0xc28] sm:$0xff] }
 0x15e   : > { %1431 = vmatpush.msrb.mxu1 %v1344_v44  ;;  %1477 = vmatpush.msrb.mxu3 %v1345_v45  ;;  %v1558_v44 = vld [vmem:[#allocation6 + $0xd58] sm:$0xff]  ;;  %v1517_v45 = vld [vmem:[#allocation6 + $0xc10] sm:$0xff] }
 0x15f   : > { %1600 = vmatpush.msra.mxu0 %v1543_v48  ;;  %1646 = vmatpush.msra.mxu2 %v1544_v10  ;;  %v1518_v48 = vld [vmem:[#allocation6 + $0xc18] sm:$0xff]  ;;  %v1556_v10 = vld [vmem:[#allocation6 + $0xd48] sm:$0xff] }
 0x160   : > { %1432 = vmatpush.msrb.mxu1 %v1342_v50  ;;  %1478 = vmatpush.msrb.mxu3 %v1343_v51  ;;  %v1515_v50 = vld [vmem:[#allocation6 + $0xc00] sm:$0xff]  ;;  %v1553_v51 = vld [vmem:[#allocation6 + $0xd30] sm:$0xff] }
 0x161   : > { %1601 = vmatpush.msra.mxu0 %v1541_v60  ;;  %1647 = vmatpush.msra.mxu2 %v1542_v61  ;;  %v1549_v60 = vld [vmem:[#allocation6 + $0xd10] sm:$0xff]  ;;  %v1550_v61 = vld [vmem:[#allocation6 + $0xd18] sm:$0xff] }
 0x162   : > { %1433 = vmatmul.f32.vlgmr.msrb.gmra.mxu1 %v1385_v55  ;;  %1479 = vmatmul.f32.vlgmr.msrb.gmra.mxu3 %v1385_v55  ;;  %v1734_v55 = vld [vmem:[#allocation6 + $0xef8] sm:$0xff] }
 0x163   : > { %1413 = vmatmul.f32.gmra.mxu0 %v1387_v56  ;;  %1459 = vmatmul.f32.gmra.mxu2 %v1387_v56  ;;  %v1551_v56 = vld [vmem:[#allocation6 + $0xd20] sm:$0xff] }
 0x164   : > { %1622 = vmatpush.msra.mxu1 %v1577_v1  ;;  %1668 = vmatpush.msra.mxu3 %v1578_v3  ;;  %v1730_v1 = vld [vmem:[#allocation6 + $0xed8] sm:$0xff]  ;;  %v1547_v3 = vld [vmem:[#allocation6 + $0xd00] sm:$0xff] }
 0x165   : > { %1602 = vmatpush.msra.mxu0 %v1539_v0  ;;  %1648 = vmatpush.msra.mxu2 %v1540_v2  ;;  %v1729_v0 = vld [vmem:[#allocation6 + $0xed0] sm:$0xff] }
 0x166   : > { %1623 = vmatpush.msra.mxu1 %v1575_v7  ;;  %1669 = vmatpush.msra.mxu3 %v1576_v9  ;;  %v1727_v7 = vld [vmem:[#allocation6 + $0xec0] sm:$0xff]  ;;  %v1728_v9 = vld [vmem:[#allocation6 + $0xec8] sm:$0xff] }
 0x167   : > { %1603 = vmatpush.msra.mxu0 %v1537_v49  ;;  %1649 = vmatpush.msra.mxu2 %v1538_v8  ;;  %v1548_v49 = vld [vmem:[#allocation6 + $0xd08] sm:$0xff]  ;;  %v1765_v8 = vld [vmem:[#allocation6 + $0xff0] sm:$0xff] }
 0x168   : > { %1624 = vmatpush.msra.mxu1 %v1573_v62  ;;  %1670 = vmatpush.msra.mxu3 %v1574_v12  ;;  %v1725_v62 = vld [vmem:[#allocation6 + $0xeb0] sm:$0xff]  ;;  %v1726_v12 = vld [vmem:[#allocation6 + $0xeb8] sm:$0xff] }
 0x169   : > { %1604 = vmatpush.msra.mxu0 %v1535_v11  ;;  %1650 = vmatpush.msra.mxu2 %v1536_v63  ;;  %v1766_v11 = vld [vmem:[#allocation6 + $0xff8] sm:$0xff]  ;;  %v1763_v63 = vld [vmem:[#allocation6 + $0xfe0] sm:$0xff] }
 0x16a   : > { %1436 = vmatmul.f32.gmra.mxu1 %v1389_v59  ;;  %1482 = vmatmul.f32.gmra.mxu3 %v1389_v59  ;;  %v1732_v59 = vld [vmem:[#allocation6 + $0xee8] sm:$0xff] }
 0x16b   : > { %1605 = vmatpush.msra.mxu0 %v1533_v13  ;;  %1625 = vmatpush.msra.mxu1 %v1571_v14  ;;  %v1764_v13 = vld [vmem:[#allocation6 + $0xfe8] sm:$0xff]  ;;  %v1723_v14 = vld [vmem:[#allocation6 + $0xea0] sm:$0xff] }
 0x16c   : > { %1651 = vmatpush.msra.mxu2 %v1534_v5  ;;  %1671 = vmatpush.msra.mxu3 %v1572_v6  ;;  %v1761_v5 = vld [vmem:[#allocation6 + $0xfd0] sm:$0xff]  ;;  %v1724_v6 = vld [vmem:[#allocation6 + $0xea8] sm:$0xff] }
 0x16d   : > { %1606 = vmatpush.msra.mxu0 %v1531_v15  ;;  %1626 = vmatpush.msra.mxu1 %v1569_v16  ;;  %v1762_v16 = vld [vmem:[#allocation6 + $0xfd8] sm:$0xff] }
 0x16e   : > { %1652 = vmatpush.msra.mxu2 %v1532_v17  ;;  %1672 = vmatpush.msra.mxu3 %v1570_v18  ;;  %v1721_v18 = vld [vmem:[#allocation6 + $0xe90] sm:$0xff] }
 0x16f   : > { %1607 = vmatpush.msra.mxu0 %v1529_v19  ;;  %1627 = vmatpush.msra.mxu1 %v1567_v20  ;;  %v1759_v19 = vld [vmem:[#allocation6 + $0xfc0] sm:$0xff]  ;;  %v1722_v20 = vld [vmem:[#allocation6 + $0xe98] sm:$0xff] }
 0x170   : > { %1653 = vmatpush.msra.mxu2 %v1530_v21  ;;  %1673 = vmatpush.msra.mxu3 %v1568_v22  ;;  %v1760_v22 = vld [vmem:[#allocation6 + $0xfc8] sm:$0xff] }
 0x171   : > { %1608 = vmatpush.msra.mxu0 %v1527_v23  ;;  %1628 = vmatpush.msra.mxu1 %v1565_v29  ;;  %v1719_v23 = vld [vmem:[#allocation6 + $0xe80] sm:$0xff]  ;;  %v1757_v29 = vld [vmem:[#allocation6 + $0xfb0] sm:$0xff] }
 0x172   : > { %1654 = vmatpush.msra.mxu2 %v1528_v30  ;;  %1674 = vmatpush.msra.mxu3 %v1566_v25  ;;  %v1720_v30 = vld [vmem:[#allocation6 + $0xe88] sm:$0xff]  ;;  %v1758_v25 = vld [vmem:[#allocation6 + $0xfb8] sm:$0xff] }
 0x173   : > { %1609 = vmatpush.msra.mxu0 %v1525_v24  ;;  %1629 = vmatpush.msra.mxu1 %v1563_v27  ;;  %v1717_v24 = vld [vmem:[#allocation6 + $0xe70] sm:$0xff]  ;;  %v1755_v27 = vld [vmem:[#allocation6 + $0xfa0] sm:$0xff] }
 0x174   : > { %1655 = vmatpush.msra.mxu2 %v1526_v26  ;;  %1675 = vmatpush.msra.mxu3 %v1564_v32  ;;  %v1718_v26 = vld [vmem:[#allocation6 + $0xe78] sm:$0xff]  ;;  %v1756_v32 = vld [vmem:[#allocation6 + $0xfa8] sm:$0xff] }
 0x175   : > { %1610 = vmatpush.msra.mxu0 %v1523_v33  ;;  %1630 = vmatpush.msra.mxu1 %v1561_v34  ;;  %v1715_v34 = vld [vmem:[#allocation6 + $0xe60] sm:$0xff] }
 0x176   : > { %1656 = vmatpush.msra.mxu2 %v1524_v35  ;;  %1676 = vmatpush.msra.mxu3 %v1562_v36  ;;  %v1753_v35 = vld [vmem:[#allocation6 + $0xf90] sm:$0xff]  ;;  %v1716_v36 = vld [vmem:[#allocation6 + $0xe68] sm:$0xff] }
 0x177   : > { %1611 = vmatpush.msra.mxu0 %v1521_v37  ;;  %1631 = vmatpush.msra.mxu1 %v1559_v38  ;;  %v1754_v38 = vld [vmem:[#allocation6 + $0xf98] sm:$0xff] }
 0x178   : > { %1657 = vmatpush.msra.mxu2 %v1522_v39  ;;  %1677 = vmatpush.msra.mxu3 %v1560_v40  ;;  %v1713_v40 = vld [vmem:[#allocation6 + $0xe50] sm:$0xff] }
 0x179   : > { %1612 = vmatpush.msra.mxu0 %v1519_v41  ;;  %1632 = vmatpush.msra.mxu1 %v1557_v42  ;;  %v1751_v41 = vld [vmem:[#allocation6 + $0xf80] sm:$0xff]  ;;  %v1714_v42 = vld [vmem:[#allocation6 + $0xe58] sm:$0xff] }
 0x17a   : > { %1658 = vmatpush.msra.mxu2 %v1520_v43  ;;  %1678 = vmatpush.msra.mxu3 %v1558_v44  ;;  %v1752_v43 = vld [vmem:[#allocation6 + $0xf88] sm:$0xff] }
 0x17b   : > { %1613 = vmatpush.msra.mxu0 %v1517_v45  ;;  %1633 = vmatpush.msra.mxu1 %v1555_v46  ;;  %v1711_v45 = vld [vmem:[#allocation6 + $0xe40] sm:$0xff]  ;;  %v1749_v46 = vld [vmem:[#allocation6 + $0xf70] sm:$0xff] }
 0x17c   : > { %1659 = vmatpush.msra.mxu2 %v1518_v48  ;;  %1679 = vmatpush.msra.mxu3 %v1556_v10  ;;  %v1712_v48 = vld [vmem:[#allocation6 + $0xe48] sm:$0xff]  ;;  %v1750_v10 = vld [vmem:[#allocation6 + $0xf78] sm:$0xff] }
 0x17d   : > { %1614 = vmatpush.msra.mxu0 %v1515_v50  ;;  %1634 = vmatpush.msra.mxu1 %v1553_v51  ;;  %v1709_v50 = vld [vmem:[#allocation6 + $0xe30] sm:$0xff]  ;;  %v1747_v51 = vld [vmem:[#allocation6 + $0xf60] sm:$0xff] }
 0x17e   : > { %1660 = vmatpush.msra.mxu2 %v1516_v52  ;;  %1680 = vmatpush.msra.mxu3 %v1554_v53  ;;  %v1710_v52 = vld [vmem:[#allocation6 + $0xe38] sm:$0xff]  ;;  %v1748_v53 = vld [vmem:[#allocation6 + $0xf68] sm:$0xff] }
 0x17f   : > { %1767 = vmatpush.msrb.mxu0 %v1733_v54  ;;  %1635 = vmatpush.msra.mxu1 %v1551_v56  ;;  %v1745_v56 = vld [vmem:[#allocation6 + $0xf50] sm:$0xff] }
 0x180   : > { %1813 = vmatpush.msrb.mxu2 %v1734_v55  ;;  %1681 = vmatpush.msra.mxu3 %v1552_v57  ;;  %v1707_v55 = vld [vmem:[#allocation6 + $0xe20] sm:$0xff]  ;;  %v1708_v57 = vld [vmem:[#allocation6 + $0xe28] sm:$0xff] }
 0x181   : > { %1768 = vmatpush.msrb.mxu0 %v1731_v58  ;;  %1636 = vmatpush.msra.mxu1 %v1549_v60  ;;  %v1746_v58 = vld [vmem:[#allocation6 + $0xf58] sm:$0xff] }
 0x182   : > { %1814 = vmatpush.msrb.mxu2 %v1732_v59  ;;  %1682 = vmatpush.msra.mxu3 %v1550_v61  ;;  %v1705_v61 = vld [vmem:[#allocation6 + $0xe10] sm:$0xff] }
 0x183   : > { %1769 = vmatpush.msrb.mxu0 %v1729_v0  ;;  %1637 = vmatpush.msra.mxu1 %v1547_v3  ;;  %v1743_v0 = vld [vmem:[#allocation6 + $0xf40] sm:$0xff]  ;;  %v1744_v3 = vld [vmem:[#allocation6 + $0xf48] sm:$0xff] }
 0x184   : > { %1815 = vmatpush.msrb.mxu2 %v1730_v1  ;;  %1683 = vmatpush.msra.mxu3 %v1548_v49  ;;  %v1706_v1 = vld [vmem:[#allocation6 + $0xe18] sm:$0xff]  ;;  %v1703_v49 = vld [vmem:[#allocation6 + $0xe00] sm:$0xff] }
 0x185   : > { %1770 = vmatpush.msrb.mxu0 %v1727_v7  ;;  %1790 = vmatpush.msrb.mxu1 %v1765_v8  ;;  %v1741_v7 = vld [vmem:[#allocation6 + $0xf30] sm:$0xff]  ;;  %v1704_v8 = vld [vmem:[#allocation6 + $0xe08] sm:$0xff] }
 0x186   : > { %1816 = vmatpush.msrb.mxu2 %v1728_v9  ;;  %1836 = vmatpush.msrb.mxu3 %v1766_v11  ;;  %v1742_v9 = vld [vmem:[#allocation6 + $0xf38] sm:$0xff] }
 0x187   : > { %1771 = vmatpush.msrb.mxu0 %v1725_v62  ;;  %1791 = vmatpush.msrb.mxu1 %v1763_v63  ;;  %v1739_v62 = vld [vmem:[#allocation6 + $0xf20] sm:$0xff]  ;;  %v1740_v63 = vld [vmem:[#allocation6 + $0xf28] sm:$0xff] }
 0x188   : > { %1817 = vmatpush.msrb.mxu2 %v1726_v12  ;;  %1837 = vmatpush.msrb.mxu3 %v1764_v13  ;;  %v1737_v13 = vld [vmem:[#allocation6 + $0xf10] sm:$0xff] }
 0x189   : > { %1772 = vmatpush.msrb.mxu0 %v1723_v14  ;;  %1792 = vmatpush.msrb.mxu1 %v1761_v5  ;;  %v1738_v14 = vld [vmem:[#allocation6 + $0xf18] sm:$0xff]  ;;  %v1735_v5 = vld [vmem:[#allocation6 + $0xf00] sm:$0xff] }
 0x18a   : > { %1818 = vmatpush.msrb.mxu2 %v1724_v6  ;;  %1838 = vmatpush.msrb.mxu3 %v1762_v16  ;;  %v947_v6 = vld [vmem:[#allocation8 + $0x2] sm:$0x3] }
 0x18b   : > { %1773 = vmatpush.msrb.mxu0 %v1721_v18  ;;  %1793 = vmatpush.msrb.mxu1 %v1759_v19  ;;  %v1736_v18 = vld [vmem:[#allocation6 + $0xf08] sm:$0xff] }
 0x18c   : > { %1819 = vmatpush.msrb.mxu2 %v1722_v20  ;;  %1839 = vmatpush.msrb.mxu3 %v1760_v22  ;;  %v1132_v22 = vperm.slane %v947_v6, 0 }
 0x18d   : > { %1774 = vmatpush.msrb.mxu0 %v1719_v23  ;;  %1794 = vmatpush.msrb.mxu1 %v1757_v29 }
 0x18e   : > { %1820 = vmatpush.msrb.mxu2 %v1720_v30  ;;  %1840 = vmatpush.msrb.mxu3 %v1758_v25 }
 0x18f   : > { %1775 = vmatpush.msrb.mxu0 %v1717_v24  ;;  %1795 = vmatpush.msrb.mxu1 %v1755_v27 }
 0x190   : > { %1821 = vmatpush.msrb.mxu2 %v1718_v26  ;;  %1841 = vmatpush.msrb.mxu3 %v1756_v32  ;;  %v1133_v26 = vperm.slane %v947_v6, 1  ;;  %v1895_v6 = vld [vmem:[#allocation6 + $0x10c8] sm:$0xff] }
 0x191   : > { %1776 = vmatpush.msrb.mxu0 %v1715_v34  ;;  %1796 = vmatpush.msrb.mxu1 %v1753_v35 }
 0x192   : > { %1822 = vmatpush.msrb.mxu2 %v1716_v36  ;;  %1842 = vmatpush.msrb.mxu3 %v1754_v38 }
 0x193   : > { %1777 = vmatpush.msrb.mxu0 %v1713_v40  ;;  %1797 = vmatpush.msrb.mxu1 %v1751_v41 }
 0x194   : > { %1823 = vmatpush.msrb.mxu2 %v1714_v42  ;;  %1843 = vmatpush.msrb.mxu3 %v1752_v43 }
 0x195   : > { %1778 = vmatpush.msrb.mxu0 %v1711_v45  ;;  %1798 = vmatpush.msrb.mxu1 %v1749_v46 }
 0x196   : > { %1824 = vmatpush.msrb.mxu2 %v1712_v48  ;;  %1844 = vmatpush.msrb.mxu3 %v1750_v10 }
 0x197   : > { %1779 = vmatpush.msrb.mxu0 %v1709_v50  ;;  %1799 = vmatpush.msrb.mxu1 %v1747_v51 }
 0x198   : > { %1825 = vmatpush.msrb.mxu2 %v1710_v52  ;;  %1845 = vmatpush.msrb.mxu3 %v1748_v53  ;;  %v1900_v53 = vld [vmem:[#allocation6 + $0x10f0] sm:$0xff] }
 0x199   : > { %1780 = vmatpush.msrb.mxu0 %v1707_v55  ;;  %1800 = vmatpush.msrb.mxu1 %v1745_v56  ;;  %v1901_v55 = vld [vmem:[#allocation6 + $0x10f8] sm:$0xff]  ;;  %v1509_v56 = vld [vmem:[#allocation2] sm:$0x80] }
 0x19a   : > { %1826 = vmatpush.msrb.mxu2 %v1708_v57  ;;  %1846 = vmatpush.msrb.mxu3 %v1746_v58 }
 0x19b   : > { %1781 = vmatpush.msrb.mxu0 %v1705_v61  ;;  %1801 = vmatpush.msrb.mxu1 %v1743_v0  ;;  %v1898_v61 = vld [vmem:[#allocation6 + $0x10e0] sm:$0xff]  ;;  %v1899_v0 = vld [vmem:[#allocation6 + $0x10e8] sm:$0xff] }
 0x19c   : > { %1827 = vmatpush.msrb.mxu2 %v1706_v1  ;;  %1847 = vmatpush.msrb.mxu3 %v1744_v3 }
 0x19d   : > { %1782 = vmatpush.msrb.mxu0 %v1703_v49  ;;  %1802 = vmatpush.msrb.mxu1 %v1741_v7  ;;  %v1896_v49 = vld [vmem:[#allocation6 + $0x10d0] sm:$0xff]  ;;  %v1897_v7 = vld [vmem:[#allocation6 + $0x10d8] sm:$0xff] }
 0x19e   : > { %1828 = vmatpush.msrb.mxu2 %v1704_v8  ;;  %1848 = vmatpush.msrb.mxu3 %v1742_v9 }
 0x19f   : > { %1803 = vmatpush.msrb.mxu1 %v1739_v62 }
 0x1a0   : > { %1849 = vmatpush.msrb.mxu3 %v1740_v63 }
 0x1a1   : > { %1804 = vmatpush.msrb.mxu1 %v1737_v13  ;;  %v1894_v13 = vld [vmem:[#allocation6 + $0x10c0] sm:$0xff] }
 0x1a2   : > { %1850 = vmatpush.msrb.mxu3 %v1738_v14  ;;  %v1932_v14 = vld [vmem:[#allocation6 + $0x11f0] sm:$0xff] }
 0x1a3   : > { %1805 = vmatpush.msrb.mxu1 %v1735_v5 }
 0x1a4   : > { %1851 = vmatpush.msrb.mxu3 %v1736_v18 }
 0x1b0   : > { %v8322_v2 = vpop.f32.mrf.mxu0 }
 0x1b6   : > { %v8324_v15 = vpop.f32.mrf.mxu2 }
 0x1b7   : > { %v8326_v17 = vpop.f32.mrf.mxu1 }
 0x1b8   : > { %v1080_v20 = vadd.f32 %v8326_v17, %v8322_v2  ;;  %v1508_v2 = vld [vmem:[#allocation2 + $0x30] sm:$0x80] }
 0x1ba   : > { %v1136_v25 = vadd.f32 %v1132_v22, %v1080_v20  ;;  %v1930_v20 = vld [vmem:[#allocation6 + $0x11e0] sm:$0xff] }
 0x1bd   : > { %v8330_v33 = vpop.f32.mrf.mxu3 }
 0x1be   : > { %v1126_v27 = vadd.f32 %v8330_v33, %v8324_v15 }
 0x1c0   : > { %v8328_v21 = vpop.f32.mrf.mxu0  ;;  %v1137_v40 = vadd.f32 %v1133_v26, %v1126_v27  ;;  %v1929_v27 = vld [vmem:[#allocation6 + $0x11d8] sm:$0xff] }
 0x1c6   : > { %v8332_v37 = vpop.f32.mrf.mxu2 }
 0x1c7   : > { %v8334_v39 = vpop.f32.mrf.mxu1 }
 0x1c8   : > { %v8336_v44 = vpop.f32.mrf.mxu0  ;;  %v1083_v35 = vadd.f32 %v8334_v39, %v8328_v21 }
 0x1ca   : > { %v1138_v45 = vadd.f32 %v1132_v22, %v1083_v35  ;;  %v1893_v22 = vld [vmem:[#allocation6 + $0x10b8] sm:$0xff] }
 0x1cb   : > { %v1889_v35 = vld [vmem:[#allocation6 + $0x1098] sm:$0xff] }
 0x1cd   : > { %v8338_v54 = vpop.f32.mrf.mxu3 }
 0x1ce   : > { %v1270_v60 = vpop.f32.mrf.mxu2  ;;  %v1129_v39 = vadd.f32 %v8338_v54, %v8332_v37  ;;  %v1588_v37 = vrot.slane %v1509_v56, 7  ;;  %v1881_v56 = vld [vmem:[#allocation6 + $0x1058] sm:$0xff] }
 0x1cf   : > { %v1247_v59 = vpop.f32.mrf.mxu1 }
 0x1d0   : > { %v1227_v11 = vpop.f32.mrf.mxu0  ;;  %v1248_v23 = vadd.f32 %v1247_v59, %v8336_v44  ;;  %v1585_v44 = vrot.slane %v1508_v2, 7  ;;  %v1139_v54 = vadd.f32 %v1133_v26, %v1129_v39  ;;  %v1886_v2 = vld [vmem:[#allocation6 + $0x1080] sm:$0xff] }
 0x1d2   : > { %v1299_v32 = vadd.f32 %v1248_v23, %v1136_v25  ;;  %v1931_v23 = vld [vmem:[#allocation6 + $0x11e8] sm:$0xff]  ;;  %v1928_v25 = vld [vmem:[#allocation6 + $0x11d0] sm:$0xff] }
 0x1d5   : > { %v1293_v12 = vpop.f32.mrf.mxu3 }
 0x1d6   : > { %v1273_v19 = vpop.f32.mrf.mxu2  ;;  %v1294_v36 = vadd.f32 %v1293_v12, %v1270_v60 }
 0x1d7   : > { %v1250_v16 = vpop.f32.mrf.mxu1 }
 0x1d8   : > { %v1411_v29 = vpop.f32.mrf.mxu0  ;;  %v1251_v41 = vadd.f32 %v1250_v16, %v1227_v11  ;;  %v1300_v46 = vadd.f32 %v1294_v36, %v1137_v40  ;;  %v1933_v16 = vld [vmem:[#allocation6 + $0x11f8] sm:$0xff]  ;;  %v1927_v36 = vld [vmem:[#allocation6 + $0x11c8] sm:$0xff] }
 0x1da   : > { %v1301_v50 = vadd.f32 %v1251_v41, %v1138_v45  ;;  %v1887_v41 = vld [vmem:[#allocation6 + $0x1088] sm:$0xff]  ;;  %v1922_v45 = vld [vmem:[#allocation6 + $0x11a0] sm:$0xff] }
 0x1dd   : > { %v1296_v30 = vpop.f32.mrf.mxu3 }
 0x1de   : > { %v1457_v17 = vpop.f32.mrf.mxu2  ;;  %v1297_v58 = vadd.f32 %v1296_v30, %v1273_v19  ;;  %v1892_v19 = vld [vmem:[#allocation6 + $0x10b0] sm:$0xff]  ;;  %v1890_v30 = vld [vmem:[#allocation6 + $0x10a0] sm:$0xff] }
 0x1df   : > { %v1434_v24 = vpop.f32.mrf.mxu1 }
 0x1e0   : > { %v1435_v34 = vadd.f32 %v1434_v24, %v1411_v29  ;;  %v1414_v33 = vpop.f32.mrf.mxu0  ;;  %v1302_v62 = vadd.f32 %v1297_v58, %v1139_v54  ;;  %v1891_v24 = vld [vmem:[#allocation6 + $0x10a8] sm:$0xff]  ;;  %v1878_v58 = vld [vmem:[#allocation6 + $0x1040] sm:$0xff]  ;;  %v1877_v54 = vld [vmem:[#allocation6 + $0x1038] sm:$0xff] }
 0x1e2   : > { %v1486_v38 = vadd.f32 %v1435_v34, %v1299_v32  ;;  %v1888_v32 = vld [vmem:[#allocation6 + $0x1090] sm:$0xff]  ;;  %v1926_v34 = vld [vmem:[#allocation6 + $0x11c0] sm:$0xff] }
 0x1e4   : > { %vm1490_vm2 = vcmp.gt.f32.partialorder %v1486_v38, 0.0  ;;  %v1494_v42 = vmul.f32 0.2, %v1486_v38 }
 0x1e5   : > { %v1480_v43 = vpop.f32.mrf.mxu3 }
 0x1e6   : > { %v8347_v48 = vsel %vm1490_vm2, %v1486_v38, %v1494_v42  ;;  %v1481_v15 = vadd.f32 %v1480_v43, %v1457_v17  ;;  %v1460_v8 = vpop.f32.mrf.mxu2  ;;  %v1924_v17 = vld [vmem:[#allocation6 + $0x11b0] sm:$0xff]  ;;  %v1925_v42 = vld [vmem:[#allocation6 + $0x11b8] sm:$0xff] }
 0x1e7   : > { %1502 = vst [vmem:[#allocation2 + $0x18] sm:$0xff] %v8347_v48  ;;  %v1437_v10 = vpop.f32.mrf.mxu1  ;;  %v1586_v21 = vrot.slane %v8347_v48, 7 }
 0x1e8   : > { %v1487_v51 = vadd.f32 %v1481_v15, %v1300_v46  ;;  %v1438_v52 = vadd.f32 %v1437_v10, %v1414_v33  ;;  %v1885_v46 = vld [vmem:[#allocation6 + $0x1078] sm:$0xff]  ;;  %v1923_v15 = vld [vmem:[#allocation6 + $0x11a8] sm:$0xff]  ;;  %v1882_v33 = vld [vmem:[#allocation6 + $0x1060] sm:$0xff] }
 0x1e9   : > { %v1587_v57 = vsel %vm475_vm0, %v1585_v44, %v1586_v21  ;;  %v1884_v44 = vld [vmem:[#allocation6 + $0x1070] sm:$0xff] }
 0x1ea   : > { %vm1491_vm3 = vcmp.gt.f32.partialorder %v1487_v51, 0.0  ;;  %v1495_v59 = vmul.f32 0.2, %v1487_v51  ;;  %v1488_v60 = vadd.f32 %v1438_v52, %v1301_v50  ;;  %1615 = vmatmul.f32.vlgmr.msra.gmra.mxu0 %v1587_v57  ;;  %1661 = vmatmul.f32.vlgmr.msra.gmra.mxu2 %v1587_v57  ;;  %v1920_v10 = vld [vmem:[#allocation6 + $0x1190] sm:$0xff]  ;;  %v1883_v50 = vld [vmem:[#allocation6 + $0x1068] sm:$0xff] }
 0x1eb   : > { %1954 = vmatpush.msra.mxu0 %v1900_v53  ;;  %2000 = vmatpush.msra.mxu2 %v1901_v55  ;;  %v1918_v53 = vld [vmem:[#allocation6 + $0x1180] sm:$0xff]  ;;  %v1919_v57 = vld [vmem:[#allocation6 + $0x1188] sm:$0xff] }
 0x1ec   : > { %v8356_v1 = vsel %vm1491_vm3, %v1487_v51, %v1495_v59  ;;  %vm1492_vm4 = vcmp.gt.f32.partialorder %v1488_v60, 0.0  ;;  %v1496_v3 = vmul.f32 0.2, %v1488_v60  ;;  %v1921_v51 = vld [vmem:[#allocation6 + $0x1198] sm:$0xff]  ;;  %v1916_v59 = vld [vmem:[#allocation6 + $0x1170] sm:$0xff] }
 0x1ed   : > { %1503 = vst [vmem:[#allocation2 + $0x10] sm:$0xff] %v8356_v1  ;;  %v1483_v9 = vpop.f32.mrf.mxu3  ;;  %1955 = vmatpush.msra.mxu0 %v1898_v61  ;;  %2001 = vmatpush.msra.mxu2 %v1899_v0  ;;  %v1589_v11 = vrot.slane %v8356_v1, 7  ;;  %v1917_v61 = vld [vmem:[#allocation6 + $0x1178] sm:$0xff]  ;;  %v1876_v0 = vld [vmem:[#allocation6 + $0x1030] sm:$0xff] }
 0x1ee   : > { %v8360_v63 = vsel %vm1492_vm4, %v1488_v60, %v1496_v3  ;;  %v1484_v12 = vadd.f32 %v1483_v9, %v1460_v8  ;;  %v1879_v60 = vld [vmem:[#allocation6 + $0x1048] sm:$0xff]  ;;  %v1913_v8 = vld [vmem:[#allocation6 + $0x1158] sm:$0xff]  ;;  %v1872_v9 = vld [vmem:[#allocation6 + $0x1010] sm:$0xff] }
 0x1ef   : > { %1504 = vst [vmem:[#allocation2 + $0x8] sm:$0xff] %v8360_v63  ;;  %1956 = vmatpush.msra.mxu0 %v1896_v49  ;;  %2002 = vmatpush.msra.mxu2 %v1897_v7  ;;  %v1590_v5 = vsel %vm475_vm0, %v1588_v37, %v1589_v11  ;;  %v1914_v37 = vld [vmem:[#allocation6 + $0x1160] sm:$0xff]  ;;  %v1915_v3 = vld [vmem:[#allocation6 + $0x1168] sm:$0xff]  ;;  %v1912_v7 = vld [vmem:[#allocation6 + $0x1150] sm:$0xff] }
 0x1f0   : > { %v1489_v18 = vadd.f32 %v1484_v12, %v1302_v62  ;;  %1638 = vmatmul.f32.vlgmr.msra.gmra.mxu1 %v1590_v5  ;;  %1684 = vmatmul.f32.vlgmr.msra.gmra.mxu3 %v1590_v5  ;;  %v1874_v49 = vld [vmem:[#allocation6 + $0x1020] sm:$0xff]  ;;  %v1873_v62 = vld [vmem:[#allocation6 + $0x1018] sm:$0xff]  ;;  %v1911_v12 = vld [vmem:[#allocation6 + $0x1148] sm:$0xff] }
 0x1f1   : > { %1957 = vmatpush.msra.mxu0 %v1894_v13  ;;  %1977 = vmatpush.msra.mxu1 %v1932_v14  ;;  %v1863_v13 = vld [vmem:[#allocation2 + $0x18] sm:$0xfe]  ;;  %v1870_v14 = vld [vmem:[#allocation6 + $0x1000] sm:$0xff]  ;;  %v1908_v5 = vld [vmem:[#allocation6 + $0x1130] sm:$0xff] }
 0x1f2   : > { %vm1493_vm5 = vcmp.gt.f32.partialorder %v1489_v18, 0.0  ;;  %v1497_v29 = vmul.f32 0.2, %v1489_v18  ;;  %2003 = vmatpush.msra.mxu2 %v1895_v6  ;;  %2023 = vmatpush.msra.mxu3 %v1933_v16  ;;  %v1909_v6 = vld [vmem:[#allocation6 + $0x1138] sm:$0xff]  ;;  %v1940_v16 = vrot.slane %v1863_v13, 1 }
 0x1f3   : > { %1958 = vmatpush.msra.mxu0 %v1892_v19  ;;  %1978 = vmatpush.msra.mxu1 %v1930_v20  ;;  %v1906_v19 = vld [vmem:[#allocation6 + $0x1120] sm:$0xff]  ;;  %v1907_v20 = vld [vmem:[#allocation6 + $0x1128] sm:$0xff] }
 0x1f4   : > { %v8366_v26 = vsel %vm1493_vm5, %v1489_v18, %v1497_v29  ;;  %2004 = vmatpush.msra.mxu2 %v1893_v22  ;;  %2024 = vmatpush.msra.mxu3 %v1931_v23  ;;  %v1941_v18 = vrot.slane %v8360_v63, 1  ;;  %v1904_v22 = vld [vmem:[#allocation6 + $0x1110] sm:$0xff]  ;;  %v1905_v23 = vld [vmem:[#allocation6 + $0x1118] sm:$0xff] }
 0x1f5   : > { %1505 = vst [vmem:[#allocation2 + $0x20] sm:$0xff] %v8366_v26  ;;  %1959 = vmatpush.msra.mxu0 %v1890_v30  ;;  %1979 = vmatpush.msra.mxu1 %v1928_v25  ;;  %v1864_v29 = vld [vmem:[#allocation2 + $0x10] sm:$0xfe]  ;;  %v1903_v25 = vld [vmem:[#allocation6 + $0x1108] sm:$0xff] }
 0x1f6   : > { %v1512_v38 = vld [vmem:[#allocation2 + $0x8] sm:$0x7f]  ;;  %2005 = vmatpush.msra.mxu2 %v1891_v24  ;;  %2025 = vmatpush.msra.mxu3 %v1929_v27  ;;  %v1942_v30 = vsel %vm831_vm1, %v1940_v16, %v1941_v18  ;;  %v1943_v27 = vrot.slane %v1864_v29, 1 }
 0x1f7   : > { %v1591_v40 = vrot.slane %v1512_v38, 7  ;;  %1960 = vmatpush.msra.mxu0 %v1888_v32  ;;  %1980 = vmatpush.msra.mxu1 %v1926_v34  ;;  %v1867_v24 = vld [vmem:[#allocation2 + $0x28] sm:$0x1]  ;;  %v1944_v32 = vrot.slane %v8366_v26, 1 }
 0x1f8   : > { %2006 = vmatpush.msra.mxu2 %v1889_v35  ;;  %2026 = vmatpush.msra.mxu3 %v1927_v36  ;;  %v1946_v34 = vrot.slane %v1867_v24, 1  ;;  %v1868_v36 = vld [vmem:[#allocation2 + $0x38] sm:$0x1] }
 0x1f9   : > { %v1592_v43 = vsel %vm475_vm0, %v1586_v21, %v1591_v40  ;;  %1961 = vmatpush.msra.mxu0 %v1886_v2  ;;  %1981 = vmatpush.msra.mxu1 %v1924_v17  ;;  %v1880_v21 = vld [vmem:[#allocation6 + $0x1050] sm:$0xff]  ;;  %v1945_v35 = vsel %vm831_vm1, %v1943_v27, %v1944_v32  ;;  %v1948_v2 = vrot.slane %v1868_v36, 1 }
 0x1fa   : > { %1618 = vmatmul.f32.gmra.mxu0 %v1592_v43  ;;  %1664 = vmatmul.f32.gmra.mxu2 %v1592_v43  ;;  %v1947_v38 = vsel %vm831_vm1, %v1941_v18, %v1946_v34 }
 0x1fb   : > { %2007 = vmatpush.msra.mxu2 %v1887_v41  ;;  %2027 = vmatpush.msra.mxu3 %v1925_v42  ;;  %v1949_v17 = vsel %vm831_vm1, %v1944_v32, %v1948_v2 }
 0x1fc   : > { %v1513_v39 = vld [vmem:[#allocation2 + $0x20] sm:$0x7f]  ;;  %1962 = vmatpush.msra.mxu0 %v1884_v44  ;;  %1982 = vmatpush.msra.mxu1 %v1922_v45 }
 0x1fd   : > { %v1593_v52 = vrot.slane %v1513_v39, 7  ;;  %2008 = vmatpush.msra.mxu2 %v1885_v46  ;;  %2028 = vmatpush.msra.mxu3 %v1923_v15 }
 0x1fe   : > { %1963 = vmatpush.msra.mxu0 %v1882_v33  ;;  %1983 = vmatpush.msra.mxu1 %v1920_v10 }
 0x1ff   : > { %v1594_v55 = vsel %vm475_vm0, %v1589_v11, %v1593_v52  ;;  %2009 = vmatpush.msra.mxu2 %v1883_v50  ;;  %2029 = vmatpush.msra.mxu3 %v1921_v51  ;;  %v1910_v11 = vld [vmem:[#allocation6 + $0x1140] sm:$0xff] }
 0x200   : > { %1641 = vmatmul.f32.gmra.mxu1 %v1594_v55  ;;  %1687 = vmatmul.f32.gmra.mxu3 %v1594_v55  ;;  %v1507_v55 = vld [vmem:[#allocation8 + $0x4] sm:$0x3] }
 0x201   : > { %1964 = vmatpush.msra.mxu0 %v1880_v21  ;;  %1984 = vmatpush.msra.mxu1 %v1918_v53 }
 0x202   : > { %1783 = vmatmul.f32.vlgmr.msrb.gmra.mxu0 %v8347_v48  ;;  %1829 = vmatmul.f32.vlgmr.msrb.gmra.mxu2 %v8347_v48  ;;  %v1875_v48 = vld [vmem:[#allocation6 + $0x1028] sm:$0xff] }
 0x203   : > { %2010 = vmatpush.msra.mxu2 %v1881_v56  ;;  %2030 = vmatpush.msra.mxu3 %v1919_v57 }
 0x204   : > { %1965 = vmatpush.msra.mxu0 %v1878_v58  ;;  %1985 = vmatpush.msra.mxu1 %v1916_v59  ;;  %v1692_v58 = vperm.slane %v1507_v55, 0 }
 0x205   : > { %2011 = vmatpush.msra.mxu2 %v1879_v60  ;;  %2031 = vmatpush.msra.mxu3 %v1917_v61 }
 0x206   : > { %1966 = vmatpush.msra.mxu0 %v1876_v0  ;;  %1986 = vmatpush.msra.mxu1 %v1914_v37 }
 0x207   : > { %2012 = vmatpush.msra.mxu2 %v1877_v54  ;;  %2032 = vmatpush.msra.mxu3 %v1915_v3 }
 0x208   : > { %1806 = vmatmul.f32.vlgmr.msrb.gmra.mxu1 %v8356_v1  ;;  %1852 = vmatmul.f32.vlgmr.msrb.gmra.mxu3 %v8356_v1  ;;  %v1871_v1 = vld [vmem:[#allocation6 + $0x1008] sm:$0xff] }
 0x209   : > { %1967 = vmatpush.msra.mxu0 %v1874_v49  ;;  %1987 = vmatpush.msra.mxu1 %v1912_v7 }
 0x20a   : > { %1786 = vmatmul.f32.gmra.mxu0 %v8360_v63  ;;  %1832 = vmatmul.f32.gmra.mxu2 %v8360_v63  ;;  %v1902_v63 = vld [vmem:[#allocation6 + $0x1100] sm:$0xff] }
 0x20b   : > { %2013 = vmatpush.msra.mxu2 %v1875_v48  ;;  %2033 = vmatpush.msra.mxu3 %v1913_v8  ;;  %v1693_v48 = vperm.slane %v1507_v55, 1  ;;  %v8023_v55 = vmov 0  }
 0x20c   : > { %1968 = vmatpush.msra.mxu0 %v1872_v9  ;;  %1988 = vmatpush.msra.mxu1 %v1910_v11 }
 0x20d   : > { %2014 = vmatpush.msra.mxu2 %v1873_v62  ;;  %2034 = vmatpush.msra.mxu3 %v1911_v12 }
 0x20e   : > { %1969 = vmatpush.msra.mxu0 %v1870_v14  ;;  %1989 = vmatpush.msra.mxu1 %v1908_v5 }
 0x20f   : > { %2015 = vmatpush.msra.mxu2 %v1871_v1  ;;  %2035 = vmatpush.msra.mxu3 %v1909_v6 }
 0x210   : > { %1809 = vmatmul.f32.gmra.mxu1 %v8366_v26  ;;  %1855 = vmatmul.f32.gmra.mxu3 %v8366_v26 }
 0x211   : > { %1990 = vmatpush.msra.mxu1 %v1906_v19  ;;  %2036 = vmatpush.msra.mxu3 %v1907_v20 }
 0x212   : > { %1970 = vmatmul.f32.vlgmr.msra.gmra.mxu0 %v1942_v30  ;;  %2016 = vmatmul.f32.vlgmr.msra.gmra.mxu2 %v1942_v30 }
 0x213   : > { %1991 = vmatpush.msra.mxu1 %v1904_v22  ;;  %2037 = vmatpush.msra.mxu3 %v1905_v23 }
 0x214   : > { %7728 = vset.pattern.permute.xlu2 %v8023_v55  ;;  %7729 = vset.pattern.permute.xlu0 %v8023_v55 }
 0x215   : > { %1992 = vmatpush.msra.mxu1 %v1902_v63  ;;  %2038 = vmatpush.msra.mxu3 %v1903_v25 }
 0x216   : > { %7730 = vset.pattern.permute.xlu1 %v8023_v55  ;;  %v2184_v55 = vld [vmem:[#allocation6 + $0x1290] sm:$0xff] }
 0x218   : > { %1993 = vmatmul.f32.vlgmr.msra.gmra.mxu1 %v1945_v35  ;;  %2039 = vmatmul.f32.vlgmr.msra.gmra.mxu3 %v1945_v35 }
 0x21a   : > { %1973 = vmatmul.f32.gmra.mxu0 %v1947_v38  ;;  %2019 = vmatmul.f32.gmra.mxu2 %v1947_v38 }
 0x220   : > { %1996 = vmatmul.f32.gmra.mxu1 %v1949_v17  ;;  %2042 = vmatmul.f32.gmra.mxu3 %v1949_v17 }
 0x267   : > { %v1616_v40 = vpop.f32.mrf.mxu0 }
 0x26d   : > { %v1639_v41 = vpop.f32.mrf.mxu1  ;;  %v1662_v26 = vpop.f32.mrf.mxu2 }
 0x26e   : > { %v1640_v57 = vadd.f32 %v1639_v41, %v1616_v40 }
 0x270   : > { %v1696_v54 = vadd.f32 %v1692_v58, %v1640_v57 }
 0x273   : > { %v1685_v43 = vpop.f32.mrf.mxu3 }
 0x274   : > { %v1686_v7 = vadd.f32 %v1685_v43, %v1662_v26 }
 0x276   : > { %v1697_v16 = vadd.f32 %v1693_v48, %v1686_v7 }
 0x277   : > { %v1619_v42 = vpop.f32.mrf.mxu0 }
 0x27d   : > { %v1642_v44 = vpop.f32.mrf.mxu1  ;;  %v1665_v45 = vpop.f32.mrf.mxu2 }
 0x27e   : > { %v1643_v59 = vadd.f32 %v1642_v44, %v1619_v42 }
 0x27f   : > { %v1784_v46 = vpop.f32.mrf.mxu0 }
 0x280   : > { %v1698_v3 = vadd.f32 %v1692_v58, %v1643_v59 }
 0x283   : > { %v1688_v15 = vpop.f32.mrf.mxu3 }
 0x284   : > { %v1689_v11 = vadd.f32 %v1688_v15, %v1665_v45 }
 0x285   : > { %v1807_v33 = vpop.f32.mrf.mxu1  ;;  %v1830_v10 = vpop.f32.mrf.mxu2 }
 0x286   : > { %v1808_v61 = vadd.f32 %v1807_v33, %v1784_v46  ;;  %v1699_v18 = vadd.f32 %v1693_v48, %v1689_v11 }
 0x287   : > { %v1787_v39 = vpop.f32.mrf.mxu0 }
 0x288   : > { %v1859_v62 = vadd.f32 %v1808_v61, %v1696_v54 }
 0x28b   : > { %v1853_v50 = vpop.f32.mrf.mxu3 }
 0x28c   : > { %v1854_v14 = vadd.f32 %v1853_v50, %v1830_v10 }
 0x28d   : > { %v1810_v51 = vpop.f32.mrf.mxu1  ;;  %v1833_v52 = vpop.f32.mrf.mxu2 }
 0x28e   : > { %v1811_v0 = vadd.f32 %v1810_v51, %v1787_v39  ;;  %v1860_v29 = vadd.f32 %v1854_v14, %v1697_v16  ;;  %v2081_v51 = vld [vmem:[#allocation9] sm:$0xf] }
 0x28f   : > { %v1971_v21 = vpop.f32.mrf.mxu0 }
 0x290   : > { %v1861_v12 = vadd.f32 %v1811_v0, %v1698_v3 }
 0x293   : > { %v1856_v53 = vpop.f32.mrf.mxu3 }
 0x294   : > { %v1857_v5 = vadd.f32 %v1856_v53, %v1833_v52 }
 0x295   : > { %v1994_v56 = vpop.f32.mrf.mxu1  ;;  %v2017_v60 = vpop.f32.mrf.mxu2 }
 0x296   : > { %v1995_v49 = vadd.f32 %v1994_v56, %v1971_v21  ;;  %v1862_v30 = vadd.f32 %v1857_v5, %v1699_v18  ;;  %v2088_v56 = vld [vmem:[%s9063_s4] sm:$0xf] }
 0x297   : > { %v1974_v8 = vpop.f32.mrf.mxu0 }
 0x298   : > { %v8389_v1 = vadd.f32 %v1995_v49, %v1859_v62 }
 0x29b   : > { %v2040_v37 = vpop.f32.mrf.mxu3 }
 0x29c   : > { %v2041_v19 = vadd.f32 %v2040_v37, %v2017_v60  ;;  %v2091_v60 = vld [vmem:[#allocation11] sm:$0xf] }
 0x29d   : > { %v1997_v9 = vpop.f32.mrf.mxu1  ;;  %v2020_v22 = vpop.f32.mrf.mxu2 }
 0x29e   : > { %v1998_v13 = vadd.f32 %v1997_v9, %v1974_v8  ;;  %v8395_v24 = vadd.f32 %v2041_v19, %v1860_v29  ;;  %v2105_v8 = vld [vmem:[#allocation12] sm:$0x1] }
 0x2a0   : > { %v8391_v6 = vadd.f32 %v1998_v13, %v1861_v12 }
 0x2a2   : > { %v2050_v20 = vadd.f32 %v8391_v6, %v8389_v1 }
 0x2a3   : > { %v2043_v23 = vpop.f32.mrf.mxu3 }
 0x2a4   : > { %v2051_v63 = vrot.slane %v2050_v20, 4  ;;  %v2044_v25 = vadd.f32 %v2043_v23, %v2020_v22 }
 0x2a6   : > { %v8397_v27 = vadd.f32 %v2044_v25, %v1862_v30  ;;  %v2052_v32 = vadd.f32 %v2051_v63, %v2050_v20 }
 0x2a8   : > { %v2057_v34 = vadd.f32 %v8397_v27, %v8395_v24  ;;  %v2053_v35 = vrot.slane %v2052_v32, 2 }
 0x2aa   : > { %v2058_v36 = vrot.slane %v2057_v34, 4  ;;  %v2054_v38 = vadd.f32 %v2053_v35, %v2052_v32  ;;  %v2196_v32 = vld [vmem:[#allocation6 + $0x12f0] sm:$0xff]  ;;  %v2197_v35 = vld [vmem:[#allocation6 + $0x12f8] sm:$0xff] }
 0x2ab   : > { %2250 = vmatpush.msrb.mxu0 %v2196_v32  ;;  %2296 = vmatpush.msrb.mxu2 %v2197_v35  ;;  %v2203_v32 = vld [vmem:[#allocation6 + $0x1328] sm:$0xff]  ;;  %v2200_v35 = vld [vmem:[#allocation6 + $0x1310] sm:$0xff] }
 0x2ac   : > { %v2059_v2 = vadd.f32 %v2058_v36, %v2057_v34  ;;  %v2055_v40 = vrot.slane %v2054_v38, 1  ;;  %v2228_v34 = vld [vmem:[#allocation6 + $0x13f0] sm:$0xff]  ;;  %v2229_v36 = vld [vmem:[#allocation6 + $0x13f8] sm:$0xff] }
 0x2ad   : > { %2273 = vmatpush.msrb.mxu1 %v2228_v34  ;;  %2319 = vmatpush.msrb.mxu3 %v2229_v36  ;;  %v2168_v34 = vld [vmem:[#allocation6 + $0x1210] sm:$0xff]  ;;  %v2169_v36 = vld [vmem:[#allocation6 + $0x1218] sm:$0xff] }
 0x2ae   : > { %v2060_v17 = vrot.slane %v2059_v2, 2  ;;  %v2056_v42 = vadd.f32 %v2055_v40, %v2054_v38  ;;  %v2194_v38 = vld [vmem:[#allocation6 + $0x12e0] sm:$0xff]  ;;  %v2227_v40 = vld [vmem:[#allocation6 + $0x13e8] sm:$0xff] }
 0x2af   : > { %2251 = vmatpush.msrb.mxu0 %v2194_v38  ;;  %2320 = vmatpush.msrb.mxu3 %v2227_v40  ;;  %v2201_v38 = vld [vmem:[#allocation6 + $0x1318] sm:$0xff]  ;;  %v2167_v40 = vld [vmem:[#allocation6 + $0x1208] sm:$0xff] }
 0x2b0   : > { %v2061_v41 = vadd.f32 %v2060_v17, %v2059_v2  ;;  %v2226_v2 = vld [vmem:[#allocation6 + $0x13e0] sm:$0xff]  ;;  %v2195_v17 = vld [vmem:[#allocation6 + $0x12e8] sm:$0xff] }
 0x2b1   : > { %2274 = vmatpush.msrb.mxu1 %v2226_v2  ;;  %2297 = vmatpush.msrb.mxu2 %v2195_v17  ;;  %v2166_v2 = vld [vmem:[#allocation6 + $0x1200] sm:$0xff] }
 0x2b2   : > { %v2062_v26 = vrot.slane %v2061_v41, 1  ;;  %v2198_v17 = vld [vmem:[#allocation6 + $0x1300] sm:$0xff] }
 0x2b4   : > { %v2063_v43 = vadd.f32 %v2062_v26, %v2061_v41  ;;  %v2192_v41 = vld [vmem:[#allocation6 + $0x12d0] sm:$0xff] }
 0x2b5   : > { %v2224_v26 = vld [vmem:[#allocation6 + $0x13d0] sm:$0xff]  ;;  %2252 = vmatpush.msrb.mxu0 %v2192_v41 }
 0x2b6   : > { %v2064_v44 = vadd.f32 %v2063_v43, %v2056_v42  ;;  %v2193_v42 = vld [vmem:[#allocation6 + $0x12d8] sm:$0xff]  ;;  %2275 = vmatpush.msrb.mxu1 %v2224_v26  ;;  %v2199_v26 = vld [vmem:[#allocation6 + $0x1308] sm:$0xff] }
 0x2b7   : > { %v2225_v43 = vld [vmem:[#allocation6 + $0x13d8] sm:$0xff]  ;;  %2298 = vmatpush.msrb.mxu2 %v2193_v42  ;;  %v2384_v42 = vld [vmem:[#allocation6 + $0x14f0] sm:$0xff] }
 0x2b8   : > { %2066 = vrot.lane.b32.xlu0 %v2064_v44, %s8020_s9  ;;  %2321 = vmatpush.msrb.mxu3 %v2225_v43 }
 0x32a   : > { %v2067_v45 = vpop.permute.xlu0 %2066 }
 0x32b   : > { %v2069_v46 = vadd.f32 %v2067_v45, %v2064_v44  ;;  %v2190_v44 = vld [vmem:[#allocation6 + $0x12c0] sm:$0xff] }
 0x32c   : > { %v2222_v45 = vld [vmem:[#allocation6 + $0x13c0] sm:$0xff]  ;;  %2253 = vmatpush.msrb.mxu0 %v2190_v44  ;;  %v2416_v44 = vld [vmem:[#allocation6 + $0x15f0] sm:$0xff] }
 0x32d   : > { %2071 = vrot.lane.b32.xlu0 %v2069_v46, %s8021_s18  ;;  %2276 = vmatpush.msrb.mxu1 %v2222_v45  ;;  %v2385_v45 = vld [vmem:[#allocation6 + $0x14f8] sm:$0xff] }
 0x39f   : > { %v2072_v15 = vpop.permute.xlu0 %2071 }
 0x3a0   : > { %v2074_v33 = vadd.f32 %v2072_v15, %v2069_v46  ;;  %v2191_v46 = vld [vmem:[#allocation6 + $0x12c8] sm:$0xff] }
 0x3a1   : > { %v2223_v15 = vld [vmem:[#allocation6 + $0x13c8] sm:$0xff]  ;;  %2299 = vmatpush.msrb.mxu2 %v2191_v46  ;;  %v2417_v46 = vld [vmem:[#allocation6 + $0x15f8] sm:$0xff] }
 0x3a2   : > { %2076 = vrot.lane.b32.xlu1 %v2074_v33, %s8022_s19  ;;  %2322 = vmatpush.msrb.mxu3 %v2223_v15  ;;  %v2382_v15 = vld [vmem:[#allocation6 + $0x14e0] sm:$0xff] }
 0x414   : > { %v2077_v10 = vpop.permute.xlu1 %2076 }
 0x415   : > { %v2079_v39 = vadd.f32 %v2077_v10, %v2074_v33  ;;  %v2188_v33 = vld [vmem:[#allocation6 + $0x12b0] sm:$0xff] }
 0x416   : > { %v2220_v10 = vld [vmem:[#allocation6 + $0x13b0] sm:$0xff]  ;;  %2254 = vmatpush.msrb.mxu0 %v2188_v33  ;;  %v2414_v33 = vld [vmem:[#allocation6 + $0x15e0] sm:$0xff] }
 0x417   : > { %v2080_v50 = vmul.f32 0.00390625, %v2079_v39  ;;  %v2189_v39 = vld [vmem:[#allocation6 + $0x12b8] sm:$0xff]  ;;  %2277 = vmatpush.msrb.mxu1 %v2220_v10  ;;  %v2383_v10 = vld [vmem:[#allocation6 + $0x14e8] sm:$0xff] }
 0x418   : > { %2300 = vmatpush.msrb.mxu2 %v2189_v39  ;;  %v2415_v39 = vld [vmem:[#allocation6 + $0x15e8] sm:$0xff] }
 0x419   : > { %v2082_v52 = vperm.slane %v2080_v50, 0  ;;  %v2221_v50 = vld [vmem:[#allocation6 + $0x13b8] sm:$0xff] }
 0x41a   : > { %2323 = vmatpush.msrb.mxu3 %v2221_v50  ;;  %v2380_v50 = vld [vmem:[#allocation6 + $0x14d0] sm:$0xff] }
 0x41b   : > { %v2083_v21 = vmul.f32 %v2082_v52, %v2081_v51  ;;  %v2186_v51 = vld [vmem:[#allocation6 + $0x12a0] sm:$0xff] }
 0x41c   : > { %v2218_v52 = vld [vmem:[#allocation6 + $0x13a0] sm:$0xff]  ;;  %2255 = vmatpush.msrb.mxu0 %v2186_v51  ;;  %v2381_v51 = vld [vmem:[#allocation6 + $0x14d8] sm:$0xff] }
 0x41d   : > { %v2085_v53 = vsel %vm2084_vm6, %v2083_v21, 0.0  ;;  %v2187_v21 = vld [vmem:[#allocation6 + $0x12a8] sm:$0xff]  ;;  %2278 = vmatpush.msrb.mxu1 %v2218_v52  ;;  %v2413_v52 = vld [vmem:[#allocation6 + $0x15d8] sm:$0xff] }
 0x41e   : > { %2086 = vadd.xlane.f32.xlu1 %v2085_v53  ;;  %v2219_v53 = vld [vmem:[#allocation6 + $0x13a8] sm:$0xff]  ;;  %2301 = vmatpush.msrb.mxu2 %v2187_v21  ;;  %v2378_v21 = vld [vmem:[#allocation6 + $0x14c0] sm:$0xff] }
 0x41f   : > { %2324 = vmatpush.msrb.mxu3 %v2219_v53  ;;  %2256 = vmatpush.msrb.mxu0 %v2184_v55  ;;  %v2410_v53 = vld [vmem:[#allocation6 + $0x15c0] sm:$0xff]  ;;  %v2379_v55 = vld [vmem:[#allocation6 + $0x14c8] sm:$0xff] }
 0x491   : > { %v2087_v57 = vpop.xlane.xlu1 %2086 }
 0x492   : > { %v2089_v58 = vadd.f32 %v2088_v56, %v2087_v57  ;;  %v2216_v56 = vld [vmem:[#allocation6 + $0x1390] sm:$0xff]  ;;  %v2185_v57 = vld [vmem:[#allocation6 + $0x1298] sm:$0xff] }
 0x493   : > { %2279 = vmatpush.msrb.mxu1 %v2216_v56  ;;  %2302 = vmatpush.msrb.mxu2 %v2185_v57  ;;  %v2411_v56 = vld [vmem:[#allocation6 + $0x15c8] sm:$0xff]  ;;  %v2376_v57 = vld [vmem:[#allocation6 + $0x14b0] sm:$0xff] }
 0x494   : > { %v2090_v59 = vmax.f32 %v2089_v58, 0.0  ;;  %v2217_v58 = vld [vmem:[#allocation6 + $0x1398] sm:$0xff] }
 0x495   : > { %2325 = vmatpush.msrb.mxu3 %v2217_v58  ;;  %v2408_v58 = vld [vmem:[#allocation6 + $0x15b0] sm:$0xff] }
 0x496   : > { %2094 = vperm.xlu2 %7728, %v2090_v59   ;;  %v2182_v59 = vld [vmem:[#allocation6 + $0x1280] sm:$0xff] }
 0x497   : > { %2257 = vmatpush.msrb.mxu0 %v2182_v59  ;;  %v2377_v59 = vld [vmem:[#allocation6 + $0x14b8] sm:$0xff] }
 0x4f0   : > { %v2095_v61 = vpop.permute.xlu2 %2094 }
 0x4f1   : > { %v2097_v0 = vmul.f32 %v2095_v61, %v2091_v60  ;;  %v2214_v60 = vld [vmem:[#allocation6 + $0x1380] sm:$0xff]  ;;  %v2183_v61 = vld [vmem:[#allocation6 + $0x1288] sm:$0xff] }
 0x4f2   : > { %2280 = vmatpush.msrb.mxu1 %v2214_v60  ;;  %2303 = vmatpush.msrb.mxu2 %v2183_v61  ;;  %v2409_v60 = vld [vmem:[#allocation6 + $0x15b8] sm:$0xff]  ;;  %v2374_v61 = vld [vmem:[#allocation6 + $0x14a0] sm:$0xff] }
 0x4f3   : > { %v2098_v37 = vsel %vm2084_vm6, %v2097_v0, 0.0  ;;  %v2215_v0 = vld [vmem:[#allocation6 + $0x1388] sm:$0xff] }
 0x4f4   : > { %v2099_v54 = vrot.slane %v2098_v37, 4  ;;  %2326 = vmatpush.msrb.mxu3 %v2215_v0  ;;  %v2406_v0 = vld [vmem:[#allocation6 + $0x15a0] sm:$0xff] }
 0x4f6   : > { %v2100_v3 = vadd.f32 %v2099_v54, %v2098_v37  ;;  %v2180_v37 = vld [vmem:[#allocation6 + $0x1270] sm:$0xff] }
 0x4f7   : > { %v2212_v54 = vld [vmem:[#allocation6 + $0x1370] sm:$0xff]  ;;  %2258 = vmatpush.msrb.mxu0 %v2180_v37  ;;  %v2375_v37 = vld [vmem:[#allocation6 + $0x14a8] sm:$0xff] }
 0x4f8   : > { %v2101_v49 = vrot.slane %v2100_v3, 2  ;;  %2281 = vmatpush.msrb.mxu1 %v2212_v54  ;;  %v2407_v54 = vld [vmem:[#allocation6 + $0x15a8] sm:$0xff] }
 0x4fa   : > { %v2102_v7 = vadd.f32 %v2101_v49, %v2100_v3  ;;  %v2181_v3 = vld [vmem:[#allocation6 + $0x1278] sm:$0xff] }
 0x4fb   : > { %v2213_v49 = vld [vmem:[#allocation6 + $0x1378] sm:$0xff]  ;;  %2304 = vmatpush.msrb.mxu2 %v2181_v3  ;;  %v2372_v3 = vld [vmem:[#allocation6 + $0x1490] sm:$0xff] }
 0x4fc   : > { %v2103_v48 = vrot.slane %v2102_v7, 1  ;;  %2327 = vmatpush.msrb.mxu3 %v2213_v49  ;;  %v2404_v49 = vld [vmem:[#allocation6 + $0x1590] sm:$0xff] }
 0x4fe   : > { %v2104_v9 = vadd.f32 %v2103_v48, %v2102_v7  ;;  %v2178_v7 = vld [vmem:[#allocation6 + $0x1260] sm:$0xff] }
 0x4ff   : > { %v2210_v48 = vld [vmem:[#allocation6 + $0x1360] sm:$0xff]  ;;  %2259 = vmatpush.msrb.mxu0 %v2178_v7  ;;  %v2373_v7 = vld [vmem:[#allocation6 + $0x1498] sm:$0xff] }
 0x500   : > { %v2106_v11 = vadd.f32 %v2105_v8, %v2104_v9  ;;  %v2179_v8 = vld [vmem:[#allocation6 + $0x1268] sm:$0xff]  ;;  %2282 = vmatpush.msrb.mxu1 %v2210_v48  ;;  %v2405_v48 = vld [vmem:[#allocation6 + $0x1598] sm:$0xff] }
 0x501   : > { %v2211_v9 = vld [vmem:[#allocation6 + $0x1368] sm:$0xff]  ;;  %2305 = vmatpush.msrb.mxu2 %v2179_v8  ;;  %v2370_v8 = vld [vmem:[#allocation6 + $0x1480] sm:$0xff] }
 0x502   : > { %v7602_v62 = vmul.f32 -1.442695, %v2106_v11  ;;  %v2176_v11 = vld [vmem:[#allocation6 + $0x1250] sm:$0xff]  ;;  %2328 = vmatpush.msrb.mxu3 %v2211_v9  ;;  %v2402_v9 = vld [vmem:[#allocation6 + $0x1580] sm:$0xff] }
 0x503   : > { %2260 = vmatpush.msrb.mxu0 %v2176_v11  ;;  %v2371_v11 = vld [vmem:[#allocation6 + $0x1488] sm:$0xff] }
 0x504   : > { %7731 = vpow2.f32 %v7602_v62  ;;  %v2208_v62 = vld [vmem:[#allocation6 + $0x1350] sm:$0xff] }
 0x505   : > { %2283 = vmatpush.msrb.mxu1 %v2208_v62  ;;  %v2403_v62 = vld [vmem:[#allocation6 + $0x1588] sm:$0xff] }
 0x50a   : > { %v7732_v12 = vpop.eup %7731 }
 0x50b   : > { %v2110_v13 = vadd.f32 1.0, %v7732_v12  ;;  %v2177_v12 = vld [vmem:[#allocation6 + $0x1258] sm:$0xff] }
 0x50c   : > { %2306 = vmatpush.msrb.mxu2 %v2177_v12  ;;  %v2368_v12 = vld [vmem:[#allocation6 + $0x1470] sm:$0xff] }
 0x50d   : > { %7733 = vrcp.f32 %v2110_v13  ;;  %v2122_v18 = vand.u32 2147483648, %v2110_v13  ;;  %v2120_v20 = vand.u32 2147483647, %v2110_v13  ;;  %vm2116_vm8 = vweird.f32 %v2110_v13 }
 0x50f   : > { %v2123_v23 = vor.u32 1.1754944e-38, %v2122_v18  ;;  %vm2121_vm10 = vcmp.eq.f32.partialorder %v2120_v20, 8.507059e+37  ;;  %v2207_v18 = vld [vmem:[#allocation6 + $0x1348] sm:$0xff]  ;;  %v2204_v20 = vld [vmem:[#allocation6 + $0x1330] sm:$0xff] }
 0x513   : > { %v7734_v14 = vpop.eup %7733 }
 0x514   : > { %v2112_v5 = vmul.f32 %v7734_v14, %v2110_v13  ;;  %vm2117_vm7 = vweird.f32 %v7734_v14  ;;  %v2209_v13 = vld [vmem:[#allocation6 + $0x1358] sm:$0xff] }
 0x515   : > { %vm2118_vm9 = vmor %vm2116_vm8, %vm2117_vm7  ;;  %2329 = vmatpush.msrb.mxu3 %v2209_v13  ;;  %v2400_v13 = vld [vmem:[#allocation6 + $0x1570] sm:$0xff] }
 0x516   : > { %v2113_v16 = vsub.f32 1.0, %v2112_v5  ;;  %v2206_v5 = vld [vmem:[#allocation6 + $0x1340] sm:$0xff] }
 0x517   : > { %2284 = vmatpush.msrb.mxu1 %v2206_v5  ;;  %2330 = vmatpush.msrb.mxu3 %v2207_v18  ;;  %v2401_v5 = vld [vmem:[#allocation6 + $0x1578] sm:$0xff]  ;;  %v2398_v18 = vld [vmem:[#allocation6 + $0x1560] sm:$0xff] }
 0x518   : > { %v2114_v19 = vmul.f32 %v7734_v14, %v2113_v16  ;;  %v2175_v16 = vld [vmem:[#allocation6 + $0x1248] sm:$0xff] }
 0x519   : > { %2307 = vmatpush.msrb.mxu2 %v2175_v16  ;;  %2285 = vmatpush.msrb.mxu1 %v2204_v20  ;;  %v2366_v16 = vld [vmem:[#allocation6 + $0x1460] sm:$0xff]  ;;  %v2399_v20 = vld [vmem:[#allocation6 + $0x1568] sm:$0xff] }
 0x51a   : > { %v2115_v22 = vadd.f32 %v7734_v14, %v2114_v19  ;;  %v2172_v19 = vld [vmem:[#allocation6 + $0x1230] sm:$0xff] }
 0x51c   : > { %v2119_v29 = vsel %vm2118_vm9, %v7734_v14, %v2115_v22  ;;  %v2174_v14 = vld [vmem:[#allocation6 + $0x1240] sm:$0xff]  ;;  %v2173_v22 = vld [vmem:[#allocation6 + $0x1238] sm:$0xff] }
 0x51d   : > { %v2124_v30 = vsel %vm2121_vm10, %v2123_v23, %v2119_v29  ;;  %2261 = vmatpush.msrb.mxu0 %v2174_v14  ;;  %v2205_v23 = vld [vmem:[#allocation6 + $0x1338] sm:$0xff]  ;;  %v2170_v29 = vld [vmem:[#allocation6 + $0x1220] sm:$0xff]  ;;  %2308 = vmatpush.msrb.mxu2 %v2173_v22  ;;  %v2364_v22 = vld [vmem:[#allocation6 + $0x1450] sm:$0xff] }
 0x51e   : > { %2127 = vrot.lane.b32.xlu2 %v2124_v30, %s8024_s13  ;;  %2331 = vmatpush.msrb.mxu3 %v2205_v23  ;;  %v2369_v14 = vld [vmem:[#allocation6 + $0x1478] sm:$0xff]  ;;  %v2396_v23 = vld [vmem:[#allocation6 + $0x1550] sm:$0xff] }
 0x51f   : > { %2262 = vmatpush.msrb.mxu0 %v2172_v19  ;;  %v2367_v19 = vld [vmem:[#allocation6 + $0x1468] sm:$0xff] }
 0x520   : > { %2332 = vmatpush.msrb.mxu3 %v2203_v32  ;;  %v2394_v32 = vld [vmem:[#allocation6 + $0x1540] sm:$0xff] }
 0x521   : > { %2263 = vmatpush.msrb.mxu0 %v2170_v29  ;;  %v2365_v29 = vld [vmem:[#allocation6 + $0x1458] sm:$0xff] }
 0x522   : > { %2333 = vmatpush.msrb.mxu3 %v2201_v38  ;;  %v2392_v38 = vld [vmem:[#allocation6 + $0x1530] sm:$0xff] }
 0x523   : > { %2264 = vmatpush.msrb.mxu0 %v2168_v34  ;;  %v2363_v34 = vld [vmem:[#allocation6 + $0x1448] sm:$0xff] }
 0x524   : > { %2334 = vmatpush.msrb.mxu3 %v2199_v26  ;;  %v2359_v26 = vld [vmem:[#allocation6 + $0x1428] sm:$0xff] }
 0x525   : > { %2265 = vmatpush.msrb.mxu0 %v2166_v2  ;;  %v2361_v2 = vld [vmem:[#allocation6 + $0x1438] sm:$0xff] }
 0x526   : > { %2487 = vmatpush.msra.mxu3 %v2417_v46  ;;  %v2357_v46 = vld [vmem:[#allocation6 + $0x1418] sm:$0xff] }
 0x527   : > { %2418 = vmatpush.msra.mxu0 %v2384_v42  ;;  %v2391_v42 = vld [vmem:[#allocation6 + $0x1528] sm:$0xff] }
 0x528   : > { %2488 = vmatpush.msra.mxu3 %v2415_v39  ;;  %v2355_v39 = vld [vmem:[#allocation6 + $0x1408] sm:$0xff] }
 0x529   : > { %2419 = vmatpush.msra.mxu0 %v2382_v15  ;;  %v2389_v15 = vld [vmem:[#allocation6 + $0x1518] sm:$0xff] }
 0x52a   : > { %2489 = vmatpush.msra.mxu3 %v2413_v52 }
 0x52b   : > { %2420 = vmatpush.msra.mxu0 %v2380_v50  ;;  %v2387_v50 = vld [vmem:[#allocation6 + $0x1508] sm:$0xff] }
 0x52c   : > { %2490 = vmatpush.msra.mxu3 %v2411_v56 }
 0x52d   : > { %2421 = vmatpush.msra.mxu0 %v2378_v21  ;;  %v2159_v21 = vld [vmem:[#allocation2 + $0x30] sm:$0x80] }
 0x52e   : > { %2491 = vmatpush.msra.mxu3 %v2409_v60 }
 0x52f   : > { %2422 = vmatpush.msra.mxu0 %v2376_v57 }
 0x530   : > { %2492 = vmatpush.msra.mxu3 %v2407_v54  ;;  %v2551_v54 = vld [vmem:[#allocation6 + $0x16f0] sm:$0xff] }
 0x531   : > { %2423 = vmatpush.msra.mxu0 %v2374_v61 }
 0x532   : > { %2493 = vmatpush.msra.mxu3 %v2405_v48  ;;  %v2549_v48 = vld [vmem:[#allocation6 + $0x16e0] sm:$0xff] }
 0x533   : > { %2424 = vmatpush.msra.mxu0 %v2372_v3  ;;  %v2583_v3 = vld [vmem:[#allocation6 + $0x17f0] sm:$0xff] }
 0x534   : > { %2494 = vmatpush.msra.mxu3 %v2403_v62  ;;  %v2547_v62 = vld [vmem:[#allocation6 + $0x16d0] sm:$0xff] }
 0x535   : > { %2425 = vmatpush.msra.mxu0 %v2370_v8  ;;  %v2581_v8 = vld [vmem:[#allocation6 + $0x17e0] sm:$0xff] }
 0x536   : > { %2495 = vmatpush.msra.mxu3 %v2401_v5  ;;  %v2545_v5 = vld [vmem:[#allocation6 + $0x16c0] sm:$0xff] }
 0x537   : > { %2426 = vmatpush.msra.mxu0 %v2368_v12  ;;  %v2579_v12 = vld [vmem:[#allocation6 + $0x17d0] sm:$0xff] }
 0x538   : > { %2496 = vmatpush.msra.mxu3 %v2399_v20 }
 0x539   : > { %2427 = vmatpush.msra.mxu0 %v2366_v16  ;;  %v2577_v16 = vld [vmem:[#allocation6 + $0x17c0] sm:$0xff] }
 0x53b   : > { %2428 = vmatpush.msra.mxu0 %v2364_v22 }
 0x578   : > { %v2128_v63 = vpop.permute.xlu2 %2127 }
 0x579   : > { %v8411_v25 = vsel %vm2130_vm11, %v2124_v30, %v2128_v63  ;;  %v2202_v30 = vld [vmem:[#allocation6 + $0x1320] sm:$0xff]  ;;  %v2171_v63 = vld [vmem:[#allocation6 + $0x1228] sm:$0xff] }
 0x57a   : > { %2133 = vrot.lane.b32.xlu0 %v8411_v25, %s8025_s29  ;;  %2286 = vmatpush.msrb.mxu1 %v2202_v30  ;;  %v2397_v30 = vld [vmem:[#allocation6 + $0x1558] sm:$0xff] }
 0x57b   : > { %2309 = vmatpush.msrb.mxu2 %v2171_v63  ;;  %2497 = vmatpush.msra.mxu3 %v2397_v30  ;;  %v2362_v63 = vld [vmem:[#allocation6 + $0x1440] sm:$0xff] }
 0x57c   : > { %2287 = vmatpush.msrb.mxu1 %v2200_v35  ;;  %2429 = vmatpush.msra.mxu0 %v2362_v63  ;;  %v2395_v35 = vld [vmem:[#allocation6 + $0x1548] sm:$0xff]  ;;  %v2543_v63 = vld [vmem:[#allocation6 + $0x16b0] sm:$0xff] }
 0x57d   : > { %2310 = vmatpush.msrb.mxu2 %v2169_v36  ;;  %2498 = vmatpush.msra.mxu3 %v2395_v35  ;;  %v2360_v36 = vld [vmem:[#allocation6 + $0x1430] sm:$0xff]  ;;  %v2544_v35 = vld [vmem:[#allocation6 + $0x16b8] sm:$0xff] }
 0x57e   : > { %2288 = vmatpush.msrb.mxu1 %v2198_v17  ;;  %2430 = vmatpush.msra.mxu0 %v2360_v36  ;;  %v2393_v17 = vld [vmem:[#allocation6 + $0x1538] sm:$0xff] }
 0x57f   : > { %2311 = vmatpush.msrb.mxu2 %v2167_v40  ;;  %2499 = vmatpush.msra.mxu3 %v2393_v17  ;;  %v2358_v40 = vld [vmem:[#allocation6 + $0x1420] sm:$0xff]  ;;  %v2576_v36 = vld [vmem:[#allocation6 + $0x17b8] sm:$0xff]  ;;  %v2542_v17 = vld [vmem:[#allocation6 + $0x16a8] sm:$0xff] }
 0x580   : > { %2441 = vmatpush.msra.mxu1 %v2416_v44  ;;  %2431 = vmatpush.msra.mxu0 %v2358_v40  ;;  %v2356_v44 = vld [vmem:[#allocation6 + $0x1410] sm:$0xff]  ;;  %v2574_v40 = vld [vmem:[#allocation6 + $0x17a8] sm:$0xff] }
 0x581   : > { %2464 = vmatpush.msra.mxu2 %v2385_v45  ;;  %2500 = vmatpush.msra.mxu3 %v2391_v42  ;;  %v2388_v45 = vld [vmem:[#allocation6 + $0x1510] sm:$0xff]  ;;  %v2540_v42 = vld [vmem:[#allocation6 + $0x1698] sm:$0xff] }
 0x582   : > { %2442 = vmatpush.msra.mxu1 %v2414_v33  ;;  %2432 = vmatpush.msra.mxu0 %v2356_v44  ;;  %v2354_v33 = vld [vmem:[#allocation6 + $0x1400] sm:$0xff]  ;;  %v2572_v44 = vld [vmem:[#allocation6 + $0x1798] sm:$0xff] }
 0x583   : > { %2465 = vmatpush.msra.mxu2 %v2383_v10  ;;  %v2386_v10 = vld [vmem:[#allocation6 + $0x1500] sm:$0xff]  ;;  %2501 = vmatpush.msra.mxu3 %v2389_v15  ;;  %v2538_v15 = vld [vmem:[#allocation6 + $0x1688] sm:$0xff] }
 0x584   : > { %2433 = vmatpush.msra.mxu0 %v2354_v33  ;;  %v2570_v33 = vld [vmem:[#allocation6 + $0x1788] sm:$0xff] }
 0x585   : > { %2466 = vmatpush.msra.mxu2 %v2381_v51  ;;  %2502 = vmatpush.msra.mxu3 %v2387_v50  ;;  %v2536_v50 = vld [vmem:[#allocation6 + $0x1678] sm:$0xff] }
 0x587   : > { %2467 = vmatpush.msra.mxu2 %v2379_v55 }
 0x589   : > { %2468 = vmatpush.msra.mxu2 %v2377_v59  ;;  %v2236_v59 = vrot.slane %v2159_v21, 7  ;;  %v2534_v21 = vld [vmem:[#allocation6 + $0x1668] sm:$0xff] }
 0x58b   : > { %2469 = vmatpush.msra.mxu2 %v2375_v37 }
 0x58d   : > { %2470 = vmatpush.msra.mxu2 %v2373_v7  ;;  %v2584_v7 = vld [vmem:[#allocation6 + $0x17f8] sm:$0xff] }
 0x58f   : > { %2471 = vmatpush.msra.mxu2 %v2371_v11  ;;  %v2582_v11 = vld [vmem:[#allocation6 + $0x17e8] sm:$0xff] }
 0x591   : > { %2472 = vmatpush.msra.mxu2 %v2369_v14  ;;  %v2580_v14 = vld [vmem:[#allocation6 + $0x17d8] sm:$0xff] }
 0x593   : > { %2473 = vmatpush.msra.mxu2 %v2367_v19  ;;  %v2578_v19 = vld [vmem:[#allocation6 + $0x17c8] sm:$0xff] }
 0x595   : > { %2474 = vmatpush.msra.mxu2 %v2365_v29 }
 0x597   : > { %2475 = vmatpush.msra.mxu2 %v2363_v34 }
 0x599   : > { %2476 = vmatpush.msra.mxu2 %v2361_v2  ;;  %v2573_v2 = vld [vmem:[#allocation6 + $0x17a0] sm:$0xff] }
 0x59b   : > { %2477 = vmatpush.msra.mxu2 %v2359_v26  ;;  %v2571_v26 = vld [vmem:[#allocation6 + $0x1790] sm:$0xff] }
 0x59d   : > { %2478 = vmatpush.msra.mxu2 %v2357_v46  ;;  %v2569_v46 = vld [vmem:[#allocation6 + $0x1780] sm:$0xff] }
 0x59f   : > { %2479 = vmatpush.msra.mxu2 %v2355_v39  ;;  %v2567_v39 = vld [vmem:[#allocation6 + $0x1770] sm:$0xff] }
 0x5ec   : > { %v2134_v41 = vpop.permute.xlu0 %2133 }
 0x5ed   : > { %v8417_v43 = vsel %vm2136_vm12, %v8411_v25, %v2134_v41  ;;  %v2412_v25 = vld [vmem:[#allocation6 + $0x15d0] sm:$0xff]  ;;  %v2390_v41 = vld [vmem:[#allocation6 + $0x1520] sm:$0xff] }
 0x5ee   : > { %2139 = vrot.lane.b32.xlu2 %v8417_v43, %s8020_s9  ;;  %2443 = vmatpush.msra.mxu1 %v2412_v25 }
 0x5f0   : > { %2444 = vmatpush.msra.mxu1 %v2410_v53  ;;  %v2160_v53 = vld [vmem:[#allocation2] sm:$0x80] }
 0x5f2   : > { %2445 = vmatpush.msra.mxu1 %v2408_v58 }
 0x5f4   : > { %2446 = vmatpush.msra.mxu1 %v2406_v0  ;;  %v2239_v0 = vrot.slane %v2160_v53, 7  ;;  %v2566_v53 = vld [vmem:[#allocation6 + $0x1768] sm:$0xff] }
 0x5f6   : > { %2447 = vmatpush.msra.mxu1 %v2404_v49  ;;  %v2552_v49 = vld [vmem:[#allocation6 + $0x16f8] sm:$0xff] }
 0x5f8   : > { %2448 = vmatpush.msra.mxu1 %v2402_v9  ;;  %v2550_v9 = vld [vmem:[#allocation6 + $0x16e8] sm:$0xff] }
 0x5fa   : > { %2449 = vmatpush.msra.mxu1 %v2400_v13  ;;  %v2548_v13 = vld [vmem:[#allocation6 + $0x16d8] sm:$0xff] }
 0x5fc   : > { %2450 = vmatpush.msra.mxu1 %v2398_v18  ;;  %v2546_v18 = vld [vmem:[#allocation6 + $0x16c8] sm:$0xff] }
 0x5fe   : > { %2451 = vmatpush.msra.mxu1 %v2396_v23 }
 0x600   : > { %2452 = vmatpush.msra.mxu1 %v2394_v32  ;;  %v2575_v32 = vld [vmem:[#allocation6 + $0x17b0] sm:$0xff] }
 0x602   : > { %2453 = vmatpush.msra.mxu1 %v2392_v38  ;;  %v2541_v38 = vld [vmem:[#allocation6 + $0x16a0] sm:$0xff] }
 0x604   : > { %2454 = vmatpush.msra.mxu1 %v2390_v41  ;;  %v2539_v41 = vld [vmem:[#allocation6 + $0x1690] sm:$0xff] }
 0x606   : > { %2455 = vmatpush.msra.mxu1 %v2388_v45  ;;  %v2537_v45 = vld [vmem:[#allocation6 + $0x1680] sm:$0xff] }
 0x608   : > { %2456 = vmatpush.msra.mxu1 %v2386_v10  ;;  %v2535_v10 = vld [vmem:[#allocation6 + $0x1670] sm:$0xff] }
 0x648   : > { %v2140_v25 = vpop.permute.xlu2 %2139 }
 0x649   : > { %v2143_v51 = vsel %vm2142_vm13, %v8417_v43, %v2140_v25  ;;  %v2568_v25 = vld [vmem:[#allocation6 + $0x1778] sm:$0xff] }
 0x64a   : > { %v2144_v52 = vperm.slane %v2143_v51, 0  ;;  %v2533_v51 = vld [vmem:[#allocation6 + $0x1660] sm:$0xff] }
 0x64c   : > { %v2145_v55 = vmul.f32 %v2144_v52, %v8389_v1  ;;  %v2146_v56 = vmul.f32 %v2144_v52, %v8395_v24  ;;  %v2147_v57 = vmul.f32 %v2144_v52, %v8391_v6  ;;  %v2148_v58 = vmul.f32 %v2144_v52, %v8397_v27  ;;  %v2565_v52 = vld [vmem:[#allocation6 + $0x1760] sm:$0xff] }
 0x64e   : > { %v8428_v60 = vadd.f32 %v2145_v55, %v8280_v4  ;;  %v8431_v61 = vadd.f32 %v2146_v56, %v8289_v28  ;;  %v8434_v43 = vadd.f32 %v2147_v57, %v8291_v31  ;;  %v8437_v37 = vadd.f32 %v2148_v58, %v8299_v47  ;;  %v2531_v55 = vld [vmem:[#allocation6 + $0x1650] sm:$0xff]  ;;  %v2532_v57 = vld [vmem:[#allocation6 + $0x1658] sm:$0xff] }
 0x64f   : > { %v2563_v56 = vld [vmem:[#allocation6 + $0x1750] sm:$0xff]  ;;  %v2564_v58 = vld [vmem:[#allocation6 + $0x1758] sm:$0xff] }
 0x650   : > { %2153 = vst [vmem:[#allocation2 + $0x18] sm:$0xff] %v8428_v60  ;;  %v2237_v1 = vrot.slane %v8428_v60, 7  ;;  %v2240_v6 = vrot.slane %v8431_v61, 7 }
 0x651   : > { %2154 = vst [vmem:[#allocation2 + $0x10] sm:$0xff] %v8431_v61 }
 0x652   : > { %2155 = vst [vmem:[#allocation2 + $0x8] sm:$0xff] %v8434_v43  ;;  %v2238_v24 = vsel %vm475_vm0, %v2236_v59, %v2237_v1  ;;  %v2241_v27 = vsel %vm475_vm0, %v2239_v0, %v2240_v6  ;;  %v2529_v59 = vld [vmem:[#allocation6 + $0x1640] sm:$0xff] }
 0x653   : > { %2156 = vst [vmem:[#allocation2 + $0x20] sm:$0xff] %v8437_v37  ;;  %2266 = vmatmul.f32.vlgmr.msrb.gmra.mxu0 %v2238_v24  ;;  %2289 = vmatmul.f32.vlgmr.msrb.gmra.mxu1 %v2241_v27  ;;  %v2561_v0 = vld [vmem:[#allocation6 + $0x1740] sm:$0xff] }
 0x654   : > { %2312 = vmatmul.f32.vlgmr.msrb.gmra.mxu2 %v2238_v24  ;;  %2335 = vmatmul.f32.vlgmr.msrb.gmra.mxu3 %v2241_v27  ;;  %v2527_v24 = vld [vmem:[#allocation6 + $0x1630] sm:$0xff] }
 0x655   : > { %2605 = vmatpush.msrb.mxu0 %v2551_v54  ;;  %2628 = vmatpush.msrb.mxu1 %v2583_v3  ;;  %v2559_v27 = vld [vmem:[#allocation6 + $0x1730] sm:$0xff]  ;;  %v2528_v54 = vld [vmem:[#allocation6 + $0x1638] sm:$0xff] }
 0x656   : > { %2651 = vmatpush.msrb.mxu2 %v2552_v49  ;;  %2674 = vmatpush.msrb.mxu3 %v2584_v7  ;;  %v2560_v3 = vld [vmem:[#allocation6 + $0x1738] sm:$0xff]  ;;  %v2525_v49 = vld [vmem:[#allocation6 + $0x1620] sm:$0xff] }
 0x657   : > { %2606 = vmatpush.msrb.mxu0 %v2549_v48  ;;  %2629 = vmatpush.msrb.mxu1 %v2581_v8  ;;  %v2557_v7 = vld [vmem:[#allocation6 + $0x1720] sm:$0xff]  ;;  %v2526_v48 = vld [vmem:[#allocation6 + $0x1628] sm:$0xff] }
 0x658   : > { %2652 = vmatpush.msrb.mxu2 %v2550_v9  ;;  %2675 = vmatpush.msrb.mxu3 %v2582_v11  ;;  %v2558_v8 = vld [vmem:[#allocation6 + $0x1728] sm:$0xff]  ;;  %v2514_v9 = vld [vmem:[#allocation2 + $0x18] sm:$0xfe]  ;;  %v2515_v11 = vld [vmem:[#allocation2 + $0x10] sm:$0xfe] }
 0x659   : > { %2607 = vmatpush.msrb.mxu0 %v2547_v62  ;;  %2630 = vmatpush.msrb.mxu1 %v2579_v12  ;;  %v2163_v20 = vld [vmem:[#allocation2 + $0x8] sm:$0x7f]  ;;  %v2523_v62 = vld [vmem:[#allocation6 + $0x1610] sm:$0xff] }
 0x65a   : > { %2653 = vmatpush.msrb.mxu2 %v2548_v13  ;;  %2676 = vmatpush.msrb.mxu3 %v2580_v14  ;;  %v2242_v22 = vrot.slane %v2163_v20, 7  ;;  %v2164_v23 = vld [vmem:[#allocation2 + $0x20] sm:$0x7f]  ;;  %v2555_v12 = vld [vmem:[#allocation6 + $0x1710] sm:$0xff]  ;;  %v2524_v13 = vld [vmem:[#allocation6 + $0x1618] sm:$0xff] }
 0x65b   : > { %2608 = vmatpush.msrb.mxu0 %v2545_v5  ;;  %2631 = vmatpush.msrb.mxu1 %v2577_v16  ;;  %v2244_v29 = vrot.slane %v2164_v23, 7  ;;  %v2556_v14 = vld [vmem:[#allocation6 + $0x1718] sm:$0xff]  ;;  %v2521_v5 = vld [vmem:[#allocation6 + $0x1600] sm:$0xff]  ;;  %v2522_v20 = vld [vmem:[#allocation6 + $0x1608] sm:$0xff]  ;;  %v2592_v23 = vrot.slane %v8434_v43, 1 }
 0x65c   : > { %2654 = vmatpush.msrb.mxu2 %v2546_v18  ;;  %2677 = vmatpush.msrb.mxu3 %v2578_v19  ;;  %v2243_v30 = vsel %vm475_vm0, %v2237_v1, %v2242_v22  ;;  %v2530_v1 = vld [vmem:[#allocation6 + $0x1648] sm:$0xff]  ;;  %v2553_v16 = vld [vmem:[#allocation6 + $0x1700] sm:$0xff]  ;;  %v2591_v18 = vrot.slane %v2514_v9, 1  ;;  %v2594_v19 = vrot.slane %v2515_v11, 1  ;;  %v2736_v9 = vld [vmem:[#allocation6 + $0x1850] sm:$0xff] }
 0x65d   : > { %2269 = vmatmul.f32.gmra.mxu0 %v2243_v30  ;;  %v2245_v34 = vsel %vm475_vm0, %v2240_v6, %v2244_v29  ;;  %2315 = vmatmul.f32.gmra.mxu2 %v2243_v30  ;;  %v2562_v6 = vld [vmem:[#allocation6 + $0x1748] sm:$0xff]  ;;  %v2595_v29 = vrot.slane %v8437_v37, 1  ;;  %v2774_v11 = vld [vmem:[#allocation6 + $0x1980] sm:$0xff] }
 0x65e   : > { %2292 = vmatmul.f32.gmra.mxu1 %v2245_v34  ;;  %2338 = vmatmul.f32.gmra.mxu3 %v2245_v34  ;;  %v2554_v22 = vld [vmem:[#allocation6 + $0x1708] sm:$0xff]  ;;  %v2593_v30 = vsel %vm831_vm1, %v2591_v18, %v2592_v23  ;;  %v2756_v34 = vld [vmem:[#allocation6 + $0x18f0] sm:$0xff] }
 0x65f   : > { %2609 = vmatpush.msrb.mxu0 %v2543_v63  ;;  %2632 = vmatpush.msrb.mxu1 %v2575_v32  ;;  %v2596_v63 = vsel %vm831_vm1, %v2594_v19, %v2595_v29  ;;  %v2518_v32 = vld [vmem:[#allocation2 + $0x28] sm:$0x1]  ;;  %v2732_v18 = vld [vmem:[#allocation6 + $0x1830] sm:$0xff]  ;;  %v2770_v19 = vld [vmem:[#allocation6 + $0x1960] sm:$0xff] }
 0x660   : > { %2655 = vmatpush.msrb.mxu2 %v2544_v35  ;;  %2678 = vmatpush.msrb.mxu3 %v2576_v36  ;;  %v2757_v35 = vld [vmem:[#allocation6 + $0x18f8] sm:$0xff] }
 0x661   : > { %2610 = vmatpush.msrb.mxu0 %v2541_v38  ;;  %2633 = vmatpush.msrb.mxu1 %v2573_v2  ;;  %v2519_v36 = vld [vmem:[#allocation2 + $0x38] sm:$0x1]  ;;  %v2788_v38 = vld [vmem:[#allocation6 + $0x19f0] sm:$0xff] }
 0x662   : > { %2656 = vmatpush.msrb.mxu2 %v2542_v17  ;;  %2679 = vmatpush.msrb.mxu3 %v2574_v40  ;;  %v2789_v2 = vld [vmem:[#allocation6 + $0x19f8] sm:$0xff]  ;;  %v2754_v17 = vld [vmem:[#allocation6 + $0x18e0] sm:$0xff]  ;;  %v2755_v40 = vld [vmem:[#allocation6 + $0x18e8] sm:$0xff] }
 0x663   : > { %2611 = vmatpush.msrb.mxu0 %v2539_v41  ;;  %2634 = vmatpush.msrb.mxu1 %v2571_v26  ;;  %v2786_v41 = vld [vmem:[#allocation6 + $0x19e0] sm:$0xff]  ;;  %v2787_v26 = vld [vmem:[#allocation6 + $0x19e8] sm:$0xff] }
 0x664   : > { %2657 = vmatpush.msrb.mxu2 %v2540_v42  ;;  %2680 = vmatpush.msrb.mxu3 %v2572_v44  ;;  %v2597_v42 = vrot.slane %v2518_v32, 1  ;;  %v2599_v44 = vrot.slane %v2519_v36, 1  ;;  %v2728_v32 = vld [vmem:[#allocation6 + $0x1810] sm:$0xff]  ;;  %v2767_v36 = vld [vmem:[#allocation6 + $0x1948] sm:$0xff] }
 0x665   : > { %2612 = vmatpush.msrb.mxu0 %v2537_v45  ;;  %2635 = vmatpush.msrb.mxu1 %v2569_v46  ;;  %v2752_v45 = vld [vmem:[#allocation6 + $0x18d0] sm:$0xff]  ;;  %v2753_v46 = vld [vmem:[#allocation6 + $0x18d8] sm:$0xff] }
 0x666   : > { %2658 = vmatpush.msrb.mxu2 %v2538_v15  ;;  %2681 = vmatpush.msrb.mxu3 %v2570_v33  ;;  %v2598_v15 = vsel %vm831_vm1, %v2592_v23, %v2597_v42  ;;  %v2600_v33 = vsel %vm831_vm1, %v2595_v29, %v2599_v44  ;;  %v2730_v23 = vld [vmem:[#allocation6 + $0x1820] sm:$0xff]  ;;  %v2768_v29 = vld [vmem:[#allocation6 + $0x1950] sm:$0xff]  ;;  %v2763_v44 = vld [vmem:[#allocation6 + $0x1928] sm:$0xff] }
 0x667   : > { %2434 = vmatmul.f32.vlgmr.msra.gmra.mxu0 %v8428_v60  ;;  %2457 = vmatmul.f32.vlgmr.msra.gmra.mxu1 %v8431_v61  ;;  %v2762_v42 = vld [vmem:[#allocation6 + $0x1920] sm:$0xff] }
 0x668   : > { %2480 = vmatmul.f32.vlgmr.msra.gmra.mxu2 %v8428_v60  ;;  %2503 = vmatmul.f32.vlgmr.msra.gmra.mxu3 %v8431_v61 }
 0x669   : > { %2613 = vmatpush.msrb.mxu0 %v2535_v10  ;;  %2636 = vmatpush.msrb.mxu1 %v2567_v39  ;;  %v2750_v10 = vld [vmem:[#allocation6 + $0x18c0] sm:$0xff]  ;;  %v2751_v39 = vld [vmem:[#allocation6 + $0x18c8] sm:$0xff] }
 0x66a   : > { %2659 = vmatpush.msrb.mxu2 %v2536_v50  ;;  %2682 = vmatpush.msrb.mxu3 %v2568_v25  ;;  %v2748_v50 = vld [vmem:[#allocation6 + $0x18b0] sm:$0xff]  ;;  %v2749_v25 = vld [vmem:[#allocation6 + $0x18b8] sm:$0xff] }
 0x66b   : > { %2614 = vmatpush.msrb.mxu0 %v2533_v51  ;;  %2637 = vmatpush.msrb.mxu1 %v2565_v52  ;;  %v2746_v51 = vld [vmem:[#allocation6 + $0x18a0] sm:$0xff]  ;;  %v2784_v52 = vld [vmem:[#allocation6 + $0x19d0] sm:$0xff] }
 0x66c   : > { %2660 = vmatpush.msrb.mxu2 %v2534_v21  ;;  %2683 = vmatpush.msrb.mxu3 %v2566_v53  ;;  %v2747_v21 = vld [vmem:[#allocation6 + $0x18a8] sm:$0xff]  ;;  %v2785_v53 = vld [vmem:[#allocation6 + $0x19d8] sm:$0xff] }
 0x66d   : > { %2615 = vmatpush.msrb.mxu0 %v2531_v55  ;;  %2638 = vmatpush.msrb.mxu1 %v2563_v56  ;;  %v2744_v55 = vld [vmem:[#allocation6 + $0x1890] sm:$0xff]  ;;  %v2782_v56 = vld [vmem:[#allocation6 + $0x19c0] sm:$0xff] }
 0x66e   : > { %2661 = vmatpush.msrb.mxu2 %v2532_v57  ;;  %2684 = vmatpush.msrb.mxu3 %v2564_v58  ;;  %v2745_v57 = vld [vmem:[#allocation6 + $0x1898] sm:$0xff]  ;;  %v2783_v58 = vld [vmem:[#allocation6 + $0x19c8] sm:$0xff] }
 0x66f   : > { %2616 = vmatpush.msrb.mxu0 %v2529_v59  ;;  %2639 = vmatpush.msrb.mxu1 %v2561_v0  ;;  %v2742_v59 = vld [vmem:[#allocation6 + $0x1880] sm:$0xff]  ;;  %v2780_v0 = vld [vmem:[#allocation6 + $0x19b0] sm:$0xff] }
 0x670   : > { %2662 = vmatpush.msrb.mxu2 %v2530_v1  ;;  %2685 = vmatpush.msrb.mxu3 %v2562_v6  ;;  %v2743_v1 = vld [vmem:[#allocation6 + $0x1888] sm:$0xff]  ;;  %v2781_v6 = vld [vmem:[#allocation6 + $0x19b8] sm:$0xff] }
 0x671   : > { %2437 = vmatmul.f32.gmra.mxu0 %v8434_v43  ;;  %2460 = vmatmul.f32.gmra.mxu1 %v8437_v37 }
 0x672   : > { %2483 = vmatmul.f32.gmra.mxu2 %v8434_v43  ;;  %2506 = vmatmul.f32.gmra.mxu3 %v8437_v37 }
 0x673   : > { %2617 = vmatpush.msrb.mxu0 %v2527_v24  ;;  %2640 = vmatpush.msrb.mxu1 %v2559_v27  ;;  %v2740_v24 = vld [vmem:[#allocation6 + $0x1870] sm:$0xff]  ;;  %v2778_v27 = vld [vmem:[#allocation6 + $0x19a0] sm:$0xff] }
 0x674   : > { %2663 = vmatpush.msrb.mxu2 %v2528_v54  ;;  %2686 = vmatpush.msrb.mxu3 %v2560_v3  ;;  %v2741_v54 = vld [vmem:[#allocation6 + $0x1878] sm:$0xff]  ;;  %v2779_v3 = vld [vmem:[#allocation6 + $0x19a8] sm:$0xff] }
 0x675   : > { %2618 = vmatpush.msrb.mxu0 %v2525_v49  ;;  %2641 = vmatpush.msrb.mxu1 %v2557_v7  ;;  %v2738_v49 = vld [vmem:[#allocation6 + $0x1860] sm:$0xff]  ;;  %v2776_v7 = vld [vmem:[#allocation6 + $0x1990] sm:$0xff] }
 0x676   : > { %2664 = vmatpush.msrb.mxu2 %v2526_v48  ;;  %2687 = vmatpush.msrb.mxu3 %v2558_v8  ;;  %v2739_v48 = vld [vmem:[#allocation6 + $0x1868] sm:$0xff]  ;;  %v2777_v8 = vld [vmem:[#allocation6 + $0x1998] sm:$0xff] }
 0x677   : > { %2619 = vmatpush.msrb.mxu0 %v2523_v62  ;;  %2642 = vmatpush.msrb.mxu1 %v2555_v12  ;;  %v2737_v62 = vld [vmem:[#allocation6 + $0x1858] sm:$0xff]  ;;  %v2775_v12 = vld [vmem:[#allocation6 + $0x1988] sm:$0xff] }
 0x678   : > { %2665 = vmatpush.msrb.mxu2 %v2524_v13  ;;  %2688 = vmatpush.msrb.mxu3 %v2556_v14  ;;  %v2734_v13 = vld [vmem:[#allocation6 + $0x1840] sm:$0xff]  ;;  %v2772_v14 = vld [vmem:[#allocation6 + $0x1970] sm:$0xff] }
 0x679   : > { %2620 = vmatpush.msrb.mxu0 %v2521_v5  ;;  %2643 = vmatpush.msrb.mxu1 %v2553_v16  ;;  %v2735_v5 = vld [vmem:[#allocation6 + $0x1848] sm:$0xff]  ;;  %v2773_v16 = vld [vmem:[#allocation6 + $0x1978] sm:$0xff] }
 0x67a   : > { %2666 = vmatpush.msrb.mxu2 %v2522_v20  ;;  %2689 = vmatpush.msrb.mxu3 %v2554_v22  ;;  %v2733_v20 = vld [vmem:[#allocation6 + $0x1838] sm:$0xff]  ;;  %v2771_v22 = vld [vmem:[#allocation6 + $0x1968] sm:$0xff] }
 0x67b   : > { %2621 = vmatmul.f32.vlgmr.msrb.gmra.mxu0 %v2593_v30  ;;  %2644 = vmatmul.f32.vlgmr.msrb.gmra.mxu1 %v2596_v63 }
 0x67c   : > { %2667 = vmatmul.f32.vlgmr.msrb.gmra.mxu2 %v2593_v30  ;;  %2690 = vmatmul.f32.vlgmr.msrb.gmra.mxu3 %v2596_v63  ;;  %v2731_v30 = vld [vmem:[#allocation6 + $0x1828] sm:$0xff]  ;;  %v2769_v63 = vld [vmem:[#allocation6 + $0x1958] sm:$0xff] }
 0x67d   : > { %2810 = vmatpush.msra.mxu0 %v2756_v34  ;;  %2856 = vmatpush.msra.mxu2 %v2757_v35  ;;  %v2766_v34 = vld [vmem:[#allocation6 + $0x1940] sm:$0xff]  ;;  %v2729_v35 = vld [vmem:[#allocation6 + $0x1818] sm:$0xff] }
 0x67e   : > { %2833 = vmatpush.msra.mxu1 %v2788_v38  ;;  %2879 = vmatpush.msra.mxu3 %v2789_v2  ;;  %v2726_v38 = vld [vmem:[#allocation6 + $0x1800] sm:$0xff]  ;;  %v2764_v2 = vld [vmem:[#allocation6 + $0x1930] sm:$0xff] }
 0x67f   : > { %2811 = vmatpush.msra.mxu0 %v2754_v17  ;;  %2857 = vmatpush.msra.mxu2 %v2755_v40  ;;  %v2727_v17 = vld [vmem:[#allocation6 + $0x1808] sm:$0xff]  ;;  %v2765_v40 = vld [vmem:[#allocation6 + $0x1938] sm:$0xff] }
 0x680   : > { %2834 = vmatpush.msra.mxu1 %v2786_v41  ;;  %2880 = vmatpush.msra.mxu3 %v2787_v26  ;;  %v2944_v41 = vld [vmem:[#allocation6 + $0x1af0] sm:$0xff]  ;;  %v2945_v26 = vld [vmem:[#allocation6 + $0x1af8] sm:$0xff] }
 0x681   : > { %2812 = vmatpush.msra.mxu0 %v2752_v45  ;;  %2858 = vmatpush.msra.mxu2 %v2753_v46  ;;  %v2942_v45 = vld [vmem:[#allocation6 + $0x1ae0] sm:$0xff]  ;;  %v2943_v46 = vld [vmem:[#allocation6 + $0x1ae8] sm:$0xff] }
 0x682   : > { %2835 = vmatpush.msra.mxu1 %v2784_v52  ;;  %2881 = vmatpush.msra.mxu3 %v2785_v53  ;;  %v2759_v52 = vld [vmem:[#allocation6 + $0x1908] sm:$0xff]  ;;  %v2976_v53 = vld [vmem:[#allocation6 + $0x1bf0] sm:$0xff] }
 0x683   : > { %2624 = vmatmul.f32.gmra.mxu0 %v2598_v15  ;;  %2647 = vmatmul.f32.gmra.mxu1 %v2600_v33 }
 0x684   : > { %2670 = vmatmul.f32.gmra.mxu2 %v2598_v15  ;;  %2693 = vmatmul.f32.gmra.mxu3 %v2600_v33  ;;  %v2760_v33 = vld [vmem:[#allocation6 + $0x1910] sm:$0xff] }
 0x685   : > { %2813 = vmatpush.msra.mxu0 %v2750_v10  ;;  %2859 = vmatpush.msra.mxu2 %v2751_v39  ;;  %v2761_v10 = vld [vmem:[#allocation6 + $0x1918] sm:$0xff] }
 0x686   : > { %2836 = vmatpush.msra.mxu1 %v2782_v56  ;;  %2882 = vmatpush.msra.mxu3 %v2783_v58  ;;  %v2977_v56 = vld [vmem:[#allocation6 + $0x1bf8] sm:$0xff]  ;;  %v2974_v58 = vld [vmem:[#allocation6 + $0x1be0] sm:$0xff] }
 0x687   : > { %2814 = vmatpush.msra.mxu0 %v2748_v50  ;;  %2860 = vmatpush.msra.mxu2 %v2749_v25  ;;  %v2940_v50 = vld [vmem:[#allocation6 + $0x1ad0] sm:$0xff]  ;;  %v2941_v25 = vld [vmem:[#allocation6 + $0x1ad8] sm:$0xff] }
 0x688   : > { %2837 = vmatpush.msra.mxu1 %v2780_v0  ;;  %2883 = vmatpush.msra.mxu3 %v2781_v6  ;;  %v2975_v0 = vld [vmem:[#allocation6 + $0x1be8] sm:$0xff] }
 0x689   : > { %2815 = vmatpush.msra.mxu0 %v2746_v51  ;;  %2861 = vmatpush.msra.mxu2 %v2747_v21  ;;  %v2758_v51 = vld [vmem:[#allocation6 + $0x1900] sm:$0xff] }
 0x68a   : > { %2838 = vmatpush.msra.mxu1 %v2778_v27  ;;  %2884 = vmatpush.msra.mxu3 %v2779_v3  ;;  %v2938_v21 = vld [vmem:[#allocation6 + $0x1ac0] sm:$0xff]  ;;  %v2972_v27 = vld [vmem:[#allocation6 + $0x1bd0] sm:$0xff]  ;;  %v2973_v3 = vld [vmem:[#allocation6 + $0x1bd8] sm:$0xff] }
 0x68b   : > { %2816 = vmatpush.msra.mxu0 %v2744_v55  ;;  %2862 = vmatpush.msra.mxu2 %v2745_v57  ;;  %v2939_v55 = vld [vmem:[#allocation6 + $0x1ac8] sm:$0xff]  ;;  %v2936_v57 = vld [vmem:[#allocation6 + $0x1ab0] sm:$0xff] }
 0x68c   : > { %2839 = vmatpush.msra.mxu1 %v2776_v7  ;;  %2885 = vmatpush.msra.mxu3 %v2777_v8  ;;  %v2970_v7 = vld [vmem:[#allocation6 + $0x1bc0] sm:$0xff] }
 0x68d   : > { %2817 = vmatpush.msra.mxu0 %v2742_v59  ;;  %2863 = vmatpush.msra.mxu2 %v2743_v1  ;;  %v2937_v59 = vld [vmem:[#allocation6 + $0x1ab8] sm:$0xff] }
 0x68e   : > { %2840 = vmatpush.msra.mxu1 %v2774_v11  ;;  %2886 = vmatpush.msra.mxu3 %v2775_v12  ;;  %v2968_v12 = vld [vmem:[#allocation6 + $0x1bb0] sm:$0xff] }
 0x68f   : > { %2818 = vmatpush.msra.mxu0 %v2740_v24  ;;  %2864 = vmatpush.msra.mxu2 %v2741_v54  ;;  %v2934_v24 = vld [vmem:[#allocation6 + $0x1aa0] sm:$0xff]  ;;  %v2935_v54 = vld [vmem:[#allocation6 + $0x1aa8] sm:$0xff] }
 0x690   : > { %2841 = vmatpush.msra.mxu1 %v2772_v14  ;;  %2887 = vmatpush.msra.mxu3 %v2773_v16  ;;  %v2969_v14 = vld [vmem:[#allocation6 + $0x1bb8] sm:$0xff]  ;;  %v2966_v16 = vld [vmem:[#allocation6 + $0x1ba0] sm:$0xff] }
 0x691   : > { %2819 = vmatpush.msra.mxu0 %v2738_v49  ;;  %2865 = vmatpush.msra.mxu2 %v2739_v48  ;;  %v2932_v49 = vld [vmem:[#allocation6 + $0x1a90] sm:$0xff]  ;;  %v2933_v48 = vld [vmem:[#allocation6 + $0x1a98] sm:$0xff] }
 0x692   : > { %2842 = vmatpush.msra.mxu1 %v2770_v19  ;;  %2888 = vmatpush.msra.mxu3 %v2771_v22  ;;  %v2967_v19 = vld [vmem:[#allocation6 + $0x1ba8] sm:$0xff]  ;;  %v2964_v22 = vld [vmem:[#allocation6 + $0x1b90] sm:$0xff] }
 0x693   : > { %2820 = vmatpush.msra.mxu0 %v2736_v9  ;;  %2866 = vmatpush.msra.mxu2 %v2737_v62  ;;  %v2971_v9 = vld [vmem:[#allocation6 + $0x1bc8] sm:$0xff]  ;;  %v2930_v62 = vld [vmem:[#allocation6 + $0x1a80] sm:$0xff] }
 0x694   : > { %2843 = vmatpush.msra.mxu1 %v2768_v29  ;;  %2889 = vmatpush.msra.mxu3 %v2769_v63  ;;  %v2965_v29 = vld [vmem:[#allocation6 + $0x1b98] sm:$0xff] }
 0x695   : > { %2821 = vmatpush.msra.mxu0 %v2734_v13  ;;  %2867 = vmatpush.msra.mxu2 %v2735_v5  ;;  %v2931_v13 = vld [vmem:[#allocation6 + $0x1a88] sm:$0xff]  ;;  %v2928_v5 = vld [vmem:[#allocation6 + $0x1a70] sm:$0xff] }
 0x696   : > { %2844 = vmatpush.msra.mxu1 %v2766_v34  ;;  %2890 = vmatpush.msra.mxu3 %v2767_v36  ;;  %v2962_v34 = vld [vmem:[#allocation6 + $0x1b80] sm:$0xff]  ;;  %v2963_v36 = vld [vmem:[#allocation6 + $0x1b88] sm:$0xff] }
 0x697   : > { %2822 = vmatpush.msra.mxu0 %v2732_v18  ;;  %2868 = vmatpush.msra.mxu2 %v2733_v20  ;;  %v2929_v18 = vld [vmem:[#allocation6 + $0x1a78] sm:$0xff]  ;;  %v2926_v20 = vld [vmem:[#allocation6 + $0x1a60] sm:$0xff] }
 0x698   : > { %2845 = vmatpush.msra.mxu1 %v2764_v2  ;;  %2891 = vmatpush.msra.mxu3 %v2765_v40  ;;  %v2960_v2 = vld [vmem:[#allocation6 + $0x1b70] sm:$0xff] }
 0x699   : > { %2823 = vmatpush.msra.mxu0 %v2730_v23  ;;  %2869 = vmatpush.msra.mxu2 %v2731_v30  ;;  %v2927_v23 = vld [vmem:[#allocation6 + $0x1a68] sm:$0xff] }
 0x69a   : > { %2846 = vmatpush.msra.mxu1 %v2762_v42  ;;  %2892 = vmatpush.msra.mxu3 %v2763_v44  ;;  %v2920_v42 = vld [vmem:[#allocation6 + $0x1a30] sm:$0xff]  ;;  %v2958_v44 = vld [vmem:[#allocation6 + $0x1b60] sm:$0xff] }
 0x69b   : > { %2824 = vmatpush.msra.mxu0 %v2728_v32  ;;  %2870 = vmatpush.msra.mxu2 %v2729_v35  ;;  %v2924_v32 = vld [vmem:[#allocation6 + $0x1a50] sm:$0xff]  ;;  %v2925_v35 = vld [vmem:[#allocation6 + $0x1a58] sm:$0xff] }
 0x69c   : > { %2847 = vmatpush.msra.mxu1 %v2760_v33  ;;  %2893 = vmatpush.msra.mxu3 %v2761_v10  ;;  %v2918_v33 = vld [vmem:[#allocation6 + $0x1a20] sm:$0xff]  ;;  %v2956_v10 = vld [vmem:[#allocation6 + $0x1b50] sm:$0xff] }
 0x69d   : > { %2825 = vmatpush.msra.mxu0 %v2726_v38  ;;  %2871 = vmatpush.msra.mxu2 %v2727_v17  ;;  %v2922_v38 = vld [vmem:[#allocation6 + $0x1a40] sm:$0xff]  ;;  %v2923_v17 = vld [vmem:[#allocation6 + $0x1a48] sm:$0xff] }
 0x69e   : > { %2848 = vmatpush.msra.mxu1 %v2758_v51  ;;  %2894 = vmatpush.msra.mxu3 %v2759_v52  ;;  %v2916_v51 = vld [vmem:[#allocation6 + $0x1a10] sm:$0xff]  ;;  %v2954_v52 = vld [vmem:[#allocation6 + $0x1b40] sm:$0xff] }
 0x69f   : > { %2978 = vmatpush.msrb.mxu0 %v2944_v41  ;;  %3024 = vmatpush.msrb.mxu2 %v2945_v26  ;;  %v2961_v26 = vld [vmem:[#allocation6 + $0x1b78] sm:$0xff] }
 0x6a0   : > { %3001 = vmatpush.msrb.mxu1 %v2976_v53  ;;  %3047 = vmatpush.msrb.mxu3 %v2977_v56  ;;  %v2955_v53 = vld [vmem:[#allocation6 + $0x1b48] sm:$0xff] }
 0x6a1   : > { %2979 = vmatpush.msrb.mxu0 %v2942_v45  ;;  %3025 = vmatpush.msrb.mxu2 %v2943_v46  ;;  %v2921_v45 = vld [vmem:[#allocation6 + $0x1a38] sm:$0xff]  ;;  %v2959_v46 = vld [vmem:[#allocation6 + $0x1b68] sm:$0xff] }
 0x6a2   : > { %3002 = vmatpush.msrb.mxu1 %v2974_v58  ;;  %3048 = vmatpush.msrb.mxu3 %v2975_v0  ;;  %v2952_v58 = vld [vmem:[#allocation6 + $0x1b30] sm:$0xff]  ;;  %v2953_v0 = vld [vmem:[#allocation6 + $0x1b38] sm:$0xff] }
 0x6a3   : > { %2980 = vmatpush.msrb.mxu0 %v2940_v50  ;;  %3026 = vmatpush.msrb.mxu2 %v2941_v25  ;;  %v2919_v50 = vld [vmem:[#allocation6 + $0x1a28] sm:$0xff]  ;;  %v2957_v25 = vld [vmem:[#allocation6 + $0x1b58] sm:$0xff] }
 0x6a4   : > { %3003 = vmatpush.msrb.mxu1 %v2972_v27  ;;  %3049 = vmatpush.msrb.mxu3 %v2973_v3  ;;  %v2951_v27 = vld [vmem:[#allocation6 + $0x1b28] sm:$0xff] }
 0x6a5   : > { %2981 = vmatpush.msrb.mxu0 %v2938_v21  ;;  %3027 = vmatpush.msrb.mxu2 %v2939_v55  ;;  %v2917_v21 = vld [vmem:[#allocation6 + $0x1a18] sm:$0xff] }
 0x6a6   : > { %3004 = vmatpush.msrb.mxu1 %v2970_v7  ;;  %3050 = vmatpush.msrb.mxu3 %v2971_v9  ;;  %v2949_v7 = vld [vmem:[#allocation6 + $0x1b18] sm:$0xff]  ;;  %v2946_v9 = vld [vmem:[#allocation6 + $0x1b00] sm:$0xff] }
 0x6a7   : > { %2982 = vmatpush.msrb.mxu0 %v2936_v57  ;;  %3028 = vmatpush.msrb.mxu2 %v2937_v59  ;;  %v2914_v57 = vld [vmem:[#allocation6 + $0x1a00] sm:$0xff]  ;;  %v2915_v59 = vld [vmem:[#allocation6 + $0x1a08] sm:$0xff] }
 0x6a8   : > { %3005 = vmatpush.msrb.mxu1 %v2968_v12  ;;  %3051 = vmatpush.msrb.mxu3 %v2969_v14 }
 0x6a9   : > { %2983 = vmatpush.msrb.mxu0 %v2934_v24  ;;  %3029 = vmatpush.msrb.mxu2 %v2935_v54  ;;  %v2950_v24 = vld [vmem:[#allocation6 + $0x1b20] sm:$0xff] }
 0x6aa   : > { %3006 = vmatpush.msrb.mxu1 %v2966_v16  ;;  %3052 = vmatpush.msrb.mxu3 %v2967_v19 }
 0x6ab   : > { %2984 = vmatpush.msrb.mxu0 %v2932_v49  ;;  %3030 = vmatpush.msrb.mxu2 %v2933_v48  ;;  %v2948_v49 = vld [vmem:[#allocation6 + $0x1b10] sm:$0xff]  ;;  %v2158_v48 = vld [vmem:[#allocation8 + $0x6] sm:$0x3] }
 0x6ac   : > { %3007 = vmatpush.msrb.mxu1 %v2964_v22  ;;  %3053 = vmatpush.msrb.mxu3 %v2965_v29 }
 0x6ad   : > { %2985 = vmatpush.msrb.mxu0 %v2930_v62  ;;  %3031 = vmatpush.msrb.mxu2 %v2931_v13  ;;  %v2947_v62 = vld [vmem:[#allocation6 + $0x1b08] sm:$0xff]  ;;  %v2343_v13 = vperm.slane %v2158_v48, 0 }
 0x6ae   : > { %3008 = vmatpush.msrb.mxu1 %v2962_v34  ;;  %3054 = vmatpush.msrb.mxu3 %v2963_v36  ;;  %v2719_v36 = vld [vmem:[#allocation2 + $0x30] sm:$0x80] }
 0x6af   : > { %2986 = vmatpush.msrb.mxu0 %v2928_v5  ;;  %3032 = vmatpush.msrb.mxu2 %v2929_v18 }
 0x6b0   : > { %3009 = vmatpush.msrb.mxu1 %v2960_v2  ;;  %3055 = vmatpush.msrb.mxu3 %v2961_v26 }
 0x6b1   : > { %2987 = vmatpush.msrb.mxu0 %v2926_v20  ;;  %3033 = vmatpush.msrb.mxu2 %v2927_v23 }
 0x6b2   : > { %3010 = vmatpush.msrb.mxu1 %v2958_v44  ;;  %3056 = vmatpush.msrb.mxu3 %v2959_v46 }
 0x6b3   : > { %2988 = vmatpush.msrb.mxu0 %v2924_v32  ;;  %3034 = vmatpush.msrb.mxu2 %v2925_v35  ;;  %v2344_v32 = vperm.slane %v2158_v48, 1 }
 0x6b4   : > { %3011 = vmatpush.msrb.mxu1 %v2956_v10  ;;  %3057 = vmatpush.msrb.mxu3 %v2957_v25  ;;  %v3112_v10 = vld [vmem:[#allocation6 + $0x1cf8] sm:$0xff] }
 0x6b5   : > { %2989 = vmatpush.msrb.mxu0 %v2922_v38  ;;  %3035 = vmatpush.msrb.mxu2 %v2923_v17  ;;  %v2796_v17 = vrot.slane %v2719_v36, 7  ;;  %v3099_v36 = vld [vmem:[#allocation6 + $0x1c90] sm:$0xff] }
 0x6b6   : > { %3012 = vmatpush.msrb.mxu1 %v2954_v52  ;;  %3058 = vmatpush.msrb.mxu3 %v2955_v53  ;;  %v2720_v52 = vld [vmem:[#allocation2] sm:$0x80] }
 0x6b7   : > { %2990 = vmatpush.msrb.mxu0 %v2920_v42  ;;  %3036 = vmatpush.msrb.mxu2 %v2921_v45  ;;  %v3109_v53 = vld [vmem:[#allocation6 + $0x1ce0] sm:$0xff] }
 0x6b8   : > { %3013 = vmatpush.msrb.mxu1 %v2952_v58  ;;  %3059 = vmatpush.msrb.mxu3 %v2953_v0 }
 0x6b9   : > { %2991 = vmatpush.msrb.mxu0 %v2918_v33  ;;  %3037 = vmatpush.msrb.mxu2 %v2919_v50  ;;  %v3111_v33 = vld [vmem:[#allocation6 + $0x1cf0] sm:$0xff] }
 0x6ba   : > { %3014 = vmatpush.msrb.mxu1 %v2950_v24  ;;  %3060 = vmatpush.msrb.mxu3 %v2951_v27 }
 0x6bb   : > { %2992 = vmatpush.msrb.mxu0 %v2916_v51  ;;  %3038 = vmatpush.msrb.mxu2 %v2917_v21 }
 0x6bc   : > { %3015 = vmatpush.msrb.mxu1 %v2948_v49  ;;  %3061 = vmatpush.msrb.mxu3 %v2949_v7 }
 0x6bd   : > { %2993 = vmatpush.msrb.mxu0 %v2914_v57  ;;  %3039 = vmatpush.msrb.mxu2 %v2915_v59  ;;  %v3107_v59 = vld [vmem:[#allocation6 + $0x1cd0] sm:$0xff] }
 0x6be   : > { %3016 = vmatpush.msrb.mxu1 %v2946_v9  ;;  %3062 = vmatpush.msrb.mxu3 %v2947_v62  ;;  %v3105_v9 = vld [vmem:[#allocation6 + $0x1cc0] sm:$0xff]  ;;  %v3143_v62 = vld [vmem:[#allocation6 + $0x1df0] sm:$0xff] }
 0x6d0   : > { %v8463_v15 = vpop.f32.mrf.mxu0  ;;  %v8465_v39 = vpop.f32.mrf.mxu1 }
 0x6d1   : > { %v2291_v12 = vadd.f32 %v8465_v39, %v8463_v15 }
 0x6d3   : > { %v2347_v18 = vadd.f32 %v2343_v13, %v2291_v12 }
 0x6d7   : > { %v8467_v1 = vpop.f32.mrf.mxu2  ;;  %v8469_v6 = vpop.f32.mrf.mxu3 }
 0x6d8   : > { %v2337_v29 = vadd.f32 %v8469_v6, %v8467_v1 }
 0x6da   : > { %v8471_v8 = vpop.f32.mrf.mxu0  ;;  %v2348_v2 = vadd.f32 %v2344_v32, %v2337_v29  ;;  %v3139_v29 = vld [vmem:[#allocation6 + $0x1dd0] sm:$0xff] }
 0x6db   : > { %v8473_v11 = vpop.f32.mrf.mxu1 }
 0x6dc   : > { %v2294_v34 = vadd.f32 %v8473_v11, %v8471_v8 }
 0x6e0   : > { %v8475_v30 = vpop.f32.mrf.mxu2 }
 0x6e1   : > { %v8477_v63 = vpop.f32.mrf.mxu3 }
 0x6e2   : > { %v2340_v50 = vadd.f32 %v8477_v63, %v8475_v30  ;;  %v3108_v30 = vld [vmem:[#allocation6 + $0x1cd8] sm:$0xff]  ;;  %v2799_v63 = vrot.slane %v2720_v52, 7 }
 0x6e4   : > { %v2435_v40 = vpop.f32.mrf.mxu0  ;;  %v2458_v41 = vpop.f32.mrf.mxu1  ;;  %v2350_v0 = vadd.f32 %v2344_v32, %v2340_v50  ;;  %v3102_v32 = vld [vmem:[#allocation6 + $0x1ca8] sm:$0xff] }
 0x6e5   : > { %v2459_v14 = vadd.f32 %v2458_v41, %v2435_v40  ;;  %v2349_v40 = vadd.f32 %v2343_v13, %v2294_v34  ;;  %v3106_v13 = vld [vmem:[#allocation6 + $0x1cc8] sm:$0xff]  ;;  %v3140_v34 = vld [vmem:[#allocation6 + $0x1dd8] sm:$0xff] }
 0x6e7   : > { %v2510_v22 = vadd.f32 %v2459_v14, %v2347_v18  ;;  %v3144_v14 = vld [vmem:[#allocation6 + $0x1df8] sm:$0xff]  ;;  %v3141_v18 = vld [vmem:[#allocation6 + $0x1de0] sm:$0xff] }
 0x6eb   : > { %v2481_v55 = vpop.f32.mrf.mxu2  ;;  %v2504_v56 = vpop.f32.mrf.mxu3 }
 0x6ec   : > { %v2505_v15 = vadd.f32 %v2504_v56, %v2481_v55  ;;  %v3110_v55 = vld [vmem:[#allocation6 + $0x1ce8] sm:$0xff] }
 0x6ee   : > { %v2438_v54 = vpop.f32.mrf.mxu0  ;;  %v2461_v3 = vpop.f32.mrf.mxu1  ;;  %v2511_v44 = vadd.f32 %v2505_v15, %v2348_v2  ;;  %v3137_v15 = vld [vmem:[#allocation6 + $0x1dc0] sm:$0xff]  ;;  %v3138_v2 = vld [vmem:[#allocation6 + $0x1dc8] sm:$0xff] }
 0x6ef   : > { %v2462_v39 = vadd.f32 %v2461_v3, %v2438_v54 }
 0x6f1   : > { %v2512_v11 = vadd.f32 %v2462_v39, %v2349_v40  ;;  %v3097_v40 = vld [vmem:[#allocation6 + $0x1c80] sm:$0xff] }
 0x6f5   : > { %v2484_v5 = vpop.f32.mrf.mxu2  ;;  %v2507_v16 = vpop.f32.mrf.mxu3 }
 0x6f6   : > { %v2508_v56 = vadd.f32 %v2507_v16, %v2484_v5  ;;  %v3103_v16 = vld [vmem:[#allocation6 + $0x1cb0] sm:$0xff] }
 0x6f8   : > { %v2622_v19 = vpop.f32.mrf.mxu0  ;;  %v2645_v20 = vpop.f32.mrf.mxu1  ;;  %v2513_v7 = vadd.f32 %v2508_v56, %v2350_v0  ;;  %v3130_v56 = vld [vmem:[#allocation6 + $0x1d88] sm:$0xff]  ;;  %v3125_v0 = vld [vmem:[#allocation6 + $0x1d60] sm:$0xff] }
 0x6f9   : > { %v2646_v23 = vadd.f32 %v2645_v20, %v2622_v19  ;;  %v3104_v19 = vld [vmem:[#allocation6 + $0x1cb8] sm:$0xff]  ;;  %v3142_v20 = vld [vmem:[#allocation6 + $0x1de8] sm:$0xff] }
 0x6fb   : > { %v2697_v35 = vadd.f32 %v2646_v23, %v2510_v22  ;;  %v3101_v23 = vld [vmem:[#allocation6 + $0x1ca0] sm:$0xff] }
 0x6fd   : > { %vm2701_vm14 = vcmp.gt.f32.partialorder %v2697_v35, 0.0  ;;  %v2705_v38 = vmul.f32 0.2, %v2697_v35 }
 0x6ff   : > { %v8485_v41 = vsel %vm2701_vm14, %v2697_v35, %v2705_v38  ;;  %v2668_v26 = vpop.f32.mrf.mxu2  ;;  %v2691_v42 = vpop.f32.mrf.mxu3  ;;  %v3100_v38 = vld [vmem:[#allocation6 + $0x1c98] sm:$0xff] }
 0x700   : > { %2713 = vst [vmem:[#allocation2 + $0x18] sm:$0xff] %v8485_v41  ;;  %v2692_v1 = vadd.f32 %v2691_v42, %v2668_v26  ;;  %v2625_v6 = vpop.f32.mrf.mxu0  ;;  %v2648_v45 = vpop.f32.mrf.mxu1  ;;  %v2797_v8 = vrot.slane %v8485_v41, 7  ;;  %v3135_v26 = vld [vmem:[#allocation6 + $0x1db0] sm:$0xff] }
 0x701   : > { %v2649_v46 = vadd.f32 %v2648_v45, %v2625_v6  ;;  %v3095_v6 = vld [vmem:[#allocation6 + $0x1c70] sm:$0xff]  ;;  %v3133_v45 = vld [vmem:[#allocation6 + $0x1da0] sm:$0xff] }
 0x702   : > { %v2698_v25 = vadd.f32 %v2692_v1, %v2511_v44  ;;  %v2798_v51 = vsel %vm475_vm0, %v2796_v17, %v2797_v8  ;;  %v3098_v44 = vld [vmem:[#allocation6 + $0x1c88] sm:$0xff]  ;;  %v3136_v1 = vld [vmem:[#allocation6 + $0x1db8] sm:$0xff] }
 0x703   : > { %v2699_v21 = vadd.f32 %v2649_v46, %v2512_v11  ;;  %2826 = vmatmul.f32.vlgmr.msra.gmra.mxu0 %v2798_v51  ;;  %2872 = vmatmul.f32.vlgmr.msra.gmra.mxu2 %v2798_v51  ;;  %v3096_v11 = vld [vmem:[#allocation6 + $0x1c78] sm:$0xff]  ;;  %v3134_v46 = vld [vmem:[#allocation6 + $0x1da8] sm:$0xff] }
 0x704   : > { %vm2702_vm15 = vcmp.gt.f32.partialorder %v2698_v25, 0.0  ;;  %v2706_v57 = vmul.f32 0.2, %v2698_v25  ;;  %3165 = vmatpush.msra.mxu0 %v3111_v33  ;;  %3211 = vmatpush.msra.mxu2 %v3112_v10  ;;  %v3093_v33 = vld [vmem:[#allocation6 + $0x1c60] sm:$0xff]  ;;  %v3131_v10 = vld [vmem:[#allocation6 + $0x1d90] sm:$0xff] }
 0x705   : > { %vm2703_vm2 = vcmp.gt.f32.partialorder %v2699_v21, 0.0  ;;  %v2707_v58 = vmul.f32 0.2, %v2699_v21 }
 0x706   : > { %v8494_v24 = vsel %vm2702_vm15, %v2698_v25, %v2706_v57  ;;  %3166 = vmatpush.msra.mxu0 %v3109_v53  ;;  %3212 = vmatpush.msra.mxu2 %v3110_v55  ;;  %v3132_v25 = vld [vmem:[#allocation6 + $0x1d98] sm:$0xff]  ;;  %v3129_v53 = vld [vmem:[#allocation6 + $0x1d80] sm:$0xff] }
 0x707   : > { %2714 = vst [vmem:[#allocation2 + $0x10] sm:$0xff] %v8494_v24  ;;  %v8497_v27 = vsel %vm2703_vm2, %v2699_v21, %v2707_v58  ;;  %v2671_v54 = vpop.f32.mrf.mxu2  ;;  %v2694_v3 = vpop.f32.mrf.mxu3  ;;  %v2800_v49 = vrot.slane %v8494_v24, 7  ;;  %v3091_v21 = vld [vmem:[#allocation6 + $0x1c50] sm:$0xff]  ;;  %v3092_v55 = vld [vmem:[#allocation6 + $0x1c58] sm:$0xff]  ;;  %v3089_v57 = vld [vmem:[#allocation6 + $0x1c40] sm:$0xff] }
 0x708   : > { %2715 = vst [vmem:[#allocation2 + $0x8] sm:$0xff] %v8497_v27  ;;  %v2695_v48 = vadd.f32 %v2694_v3, %v2671_v54  ;;  %3167 = vmatpush.msra.mxu0 %v3107_v59  ;;  %3213 = vmatpush.msra.mxu2 %v3108_v30  ;;  %v3127_v58 = vld [vmem:[#allocation6 + $0x1d70] sm:$0xff]  ;;  %v3090_v59 = vld [vmem:[#allocation6 + $0x1c48] sm:$0xff]  ;;  %v3128_v30 = vld [vmem:[#allocation6 + $0x1d78] sm:$0xff] }
 0x709   : > { %v2801_v12 = vsel %vm475_vm0, %v2799_v63, %v2800_v49  ;;  %v3087_v63 = vld [vmem:[#allocation6 + $0x1c30] sm:$0xff]  ;;  %v3088_v54 = vld [vmem:[#allocation6 + $0x1c38] sm:$0xff]  ;;  %v3126_v3 = vld [vmem:[#allocation6 + $0x1d68] sm:$0xff] }
 0x70a   : > { %v2700_v5 = vadd.f32 %v2695_v48, %v2513_v7  ;;  %2849 = vmatmul.f32.vlgmr.msra.gmra.mxu1 %v2801_v12  ;;  %2895 = vmatmul.f32.vlgmr.msra.gmra.mxu3 %v2801_v12  ;;  %v3086_v7 = vld [vmem:[#allocation6 + $0x1c28] sm:$0xff]  ;;  %v3124_v48 = vld [vmem:[#allocation6 + $0x1d58] sm:$0xff] }
 0x70b   : > { %3168 = vmatpush.msra.mxu0 %v3105_v9  ;;  %3188 = vmatpush.msra.mxu1 %v3143_v62  ;;  %v3083_v9 = vld [vmem:[#allocation6 + $0x1c10] sm:$0xff]  ;;  %v3121_v62 = vld [vmem:[#allocation6 + $0x1d40] sm:$0xff]  ;;  %v3074_v12 = vld [vmem:[#allocation2 + $0x18] sm:$0xfe] }
 0x70c   : > { %vm2704_vm3 = vcmp.gt.f32.partialorder %v2700_v5, 0.0  ;;  %v2708_v22 = vmul.f32 0.2, %v2700_v5  ;;  %3214 = vmatpush.msra.mxu2 %v3106_v13  ;;  %3234 = vmatpush.msra.mxu3 %v3144_v14  ;;  %v3084_v13 = vld [vmem:[#allocation6 + $0x1c18] sm:$0xff]  ;;  %v3122_v14 = vld [vmem:[#allocation6 + $0x1d48] sm:$0xff] }
 0x70d   : > { %3169 = vmatpush.msra.mxu0 %v3103_v16  ;;  %3189 = vmatpush.msra.mxu1 %v3141_v18  ;;  %v3119_v16 = vld [vmem:[#allocation6 + $0x1d30] sm:$0xff]  ;;  %v3120_v18 = vld [vmem:[#allocation6 + $0x1d38] sm:$0xff] }
 0x70e   : > { %v8504_v35 = vsel %vm2704_vm3, %v2700_v5, %v2708_v22  ;;  %3215 = vmatpush.msra.mxu2 %v3104_v19  ;;  %3235 = vmatpush.msra.mxu3 %v3142_v20  ;;  %v3081_v5 = vld [vmem:[#allocation6 + $0x1c00] sm:$0xff]  ;;  %v3151_v19 = vrot.slane %v3074_v12, 1  ;;  %v3152_v20 = vrot.slane %v8497_v27, 1 }
 0x70f   : > { %2716 = vst [vmem:[#allocation2 + $0x20] sm:$0xff] %v8504_v35  ;;  %v2723_v39 = vld [vmem:[#allocation2 + $0x8] sm:$0x7f]  ;;  %3170 = vmatpush.msra.mxu0 %v3101_v23  ;;  %3190 = vmatpush.msra.mxu1 %v3139_v29  ;;  %v3117_v22 = vld [vmem:[#allocation6 + $0x1d20] sm:$0xff] }
 0x710   : > { %v2802_v17 = vrot.slane %v2723_v39, 7  ;;  %3216 = vmatpush.msra.mxu2 %v3102_v32  ;;  %3236 = vmatpush.msra.mxu3 %v3140_v34  ;;  %v3118_v23 = vld [vmem:[#allocation6 + $0x1d28] sm:$0xff]  ;;  %v3153_v29 = vsel %vm831_vm1, %v3151_v19, %v3152_v20  ;;  %v3075_v32 = vld [vmem:[#allocation2 + $0x10] sm:$0xfe] }
 0x711   : > { %3171 = vmatpush.msra.mxu0 %v3099_v36  ;;  %3191 = vmatpush.msra.mxu1 %v3137_v15  ;;  %v3115_v34 = vld [vmem:[#allocation6 + $0x1d10] sm:$0xff]  ;;  %v3116_v36 = vld [vmem:[#allocation6 + $0x1d18] sm:$0xff]  ;;  %v3113_v15 = vld [vmem:[#allocation6 + $0x1d00] sm:$0xff] }
 0x712   : > { %v2803_v42 = vsel %vm475_vm0, %v2797_v8, %v2802_v17  ;;  %3217 = vmatpush.msra.mxu2 %v3100_v38  ;;  %3237 = vmatpush.msra.mxu3 %v3138_v2  ;;  %v3094_v8 = vld [vmem:[#allocation6 + $0x1c68] sm:$0xff]  ;;  %v3154_v38 = vrot.slane %v3075_v32, 1  ;;  %v3155_v2 = vrot.slane %v8504_v35, 1 }
 0x713   : > { %2829 = vmatmul.f32.gmra.mxu0 %v2803_v42  ;;  %2875 = vmatmul.f32.gmra.mxu2 %v2803_v42  ;;  %v3114_v39 = vld [vmem:[#allocation6 + $0x1d08] sm:$0xff]  ;;  %v3079_v42 = vld [vmem:[#allocation2 + $0x38] sm:$0x1] }
 0x714   : > { %3172 = vmatpush.msra.mxu0 %v3097_v40  ;;  %3192 = vmatpush.msra.mxu1 %v3135_v26  ;;  %v3156_v40 = vsel %vm831_vm1, %v3154_v38, %v3155_v2 }
 0x715   : > { %3218 = vmatpush.msra.mxu2 %v3098_v44  ;;  %3238 = vmatpush.msra.mxu3 %v3136_v1  ;;  %v3159_v44 = vrot.slane %v3079_v42, 1 }
 0x716   : > { %v2724_v50 = vld [vmem:[#allocation2 + $0x20] sm:$0x7f]  ;;  %3173 = vmatpush.msra.mxu0 %v3095_v6  ;;  %3193 = vmatpush.msra.mxu1 %v3133_v45 }
 0x717   : > { %v2804_v51 = vrot.slane %v2724_v50, 7  ;;  %3219 = vmatpush.msra.mxu2 %v3096_v11  ;;  %3239 = vmatpush.msra.mxu3 %v3134_v46  ;;  %v3160_v1 = vsel %vm831_vm1, %v3155_v2, %v3159_v44 }
 0x718   : > { %3174 = vmatpush.msra.mxu0 %v3093_v33  ;;  %3194 = vmatpush.msra.mxu1 %v3131_v10 }
 0x719   : > { %v2805_v52 = vsel %vm475_vm0, %v2800_v49, %v2804_v51  ;;  %3220 = vmatpush.msra.mxu2 %v3094_v8  ;;  %3240 = vmatpush.msra.mxu3 %v3132_v25  ;;  %v3123_v49 = vld [vmem:[#allocation6 + $0x1d50] sm:$0xff] }
 0x71a   : > { %2852 = vmatmul.f32.gmra.mxu1 %v2805_v52  ;;  %2898 = vmatmul.f32.gmra.mxu3 %v2805_v52 }
 0x71b   : > { %2994 = vmatmul.f32.vlgmr.msrb.gmra.mxu0 %v8485_v41  ;;  %3040 = vmatmul.f32.vlgmr.msrb.gmra.mxu2 %v8485_v41  ;;  %v3085_v41 = vld [vmem:[#allocation6 + $0x1c20] sm:$0xff] }
 0x71c   : > { %3175 = vmatpush.msra.mxu0 %v3091_v21  ;;  %3195 = vmatpush.msra.mxu1 %v3129_v53 }
 0x71d   : > { %3221 = vmatpush.msra.mxu2 %v3092_v55  ;;  %3241 = vmatpush.msra.mxu3 %v3130_v56 }
 0x71e   : > { %3176 = vmatpush.msra.mxu0 %v3089_v57  ;;  %3196 = vmatpush.msra.mxu1 %v3127_v58  ;;  %v2718_v58 = vld [vmem:[#allocation8 + $0x8] sm:$0x3] }
 0x71f   : > { %3222 = vmatpush.msra.mxu2 %v3090_v59  ;;  %3242 = vmatpush.msra.mxu3 %v3128_v30  ;;  %v2904_v12 = vperm.slane %v2718_v58, 1 }
 0x720   : > { %3177 = vmatpush.msra.mxu0 %v3087_v63  ;;  %3197 = vmatpush.msra.mxu1 %v3125_v0  ;;  %v2903_v63 = vperm.slane %v2718_v58, 0  ;;  %v3293_v58 = vld [vmem:[#allocation9 + $0x4] sm:$0xf] }
 0x721   : > { %3223 = vmatpush.msra.mxu2 %v3088_v54  ;;  %3243 = vmatpush.msra.mxu3 %v3126_v3 }
 0x722   : > { %3017 = vmatmul.f32.vlgmr.msrb.gmra.mxu1 %v8494_v24  ;;  %3063 = vmatmul.f32.vlgmr.msrb.gmra.mxu3 %v8494_v24  ;;  %v3082_v24 = vld [vmem:[#allocation6 + $0x1c08] sm:$0xff] }
 0x723   : > { %2997 = vmatmul.f32.gmra.mxu0 %v8497_v27  ;;  %3043 = vmatmul.f32.gmra.mxu2 %v8497_v27  ;;  %v3078_v27 = vld [vmem:[#allocation2 + $0x28] sm:$0x1] }
 0x724   : > { %3178 = vmatpush.msra.mxu0 %v3085_v41  ;;  %3198 = vmatpush.msra.mxu1 %v3123_v49  ;;  %v3157_v17 = vrot.slane %v3078_v27, 1 }
 0x725   : > { %3224 = vmatpush.msra.mxu2 %v3086_v7  ;;  %3244 = vmatpush.msra.mxu3 %v3124_v48 }
 0x726   : > { %3179 = vmatpush.msra.mxu0 %v3083_v9  ;;  %3199 = vmatpush.msra.mxu1 %v3121_v62  ;;  %v3158_v26 = vsel %vm831_vm1, %v3152_v20, %v3157_v17 }
 0x727   : > { %3225 = vmatpush.msra.mxu2 %v3084_v13  ;;  %3245 = vmatpush.msra.mxu3 %v3122_v14 }
 0x728   : > { %3180 = vmatpush.msra.mxu0 %v3081_v5  ;;  %3200 = vmatpush.msra.mxu1 %v3119_v16 }
 0x729   : > { %3226 = vmatpush.msra.mxu2 %v3082_v24  ;;  %3246 = vmatpush.msra.mxu3 %v3120_v18 }
 0x72a   : > { %3020 = vmatmul.f32.gmra.mxu1 %v8504_v35  ;;  %3066 = vmatmul.f32.gmra.mxu3 %v8504_v35 }
 0x72b   : > { %3181 = vmatmul.f32.vlgmr.msra.gmra.mxu0 %v3153_v29  ;;  %3227 = vmatmul.f32.vlgmr.msra.gmra.mxu2 %v3153_v29 }
 0x72c   : > { %3201 = vmatpush.msra.mxu1 %v3117_v22  ;;  %3247 = vmatpush.msra.mxu3 %v3118_v23 }
 0x72e   : > { %3202 = vmatpush.msra.mxu1 %v3115_v34  ;;  %3248 = vmatpush.msra.mxu3 %v3116_v36 }
 0x730   : > { %3203 = vmatpush.msra.mxu1 %v3113_v15  ;;  %3249 = vmatpush.msra.mxu3 %v3114_v39 }
 0x732   : > { %3204 = vmatmul.f32.vlgmr.msra.gmra.mxu1 %v3156_v40  ;;  %3250 = vmatmul.f32.vlgmr.msra.gmra.mxu3 %v3156_v40 }
 0x733   : > { %3184 = vmatmul.f32.gmra.mxu0 %v3158_v26  ;;  %3230 = vmatmul.f32.gmra.mxu2 %v3158_v26 }
 0x73a   : > { %3207 = vmatmul.f32.gmra.mxu1 %v3160_v1  ;;  %3253 = vmatmul.f32.gmra.mxu3 %v3160_v1 }
 0x780   : > { %v2827_v35 = vpop.f32.mrf.mxu0 }
 0x786   : > { %v2873_v6 = vpop.f32.mrf.mxu2 }
 0x787   : > { %v2850_v45 = vpop.f32.mrf.mxu1 }
 0x788   : > { %v2851_v30 = vadd.f32 %v2850_v45, %v2827_v35 }
 0x78a   : > { %v2907_v7 = vadd.f32 %v2903_v63, %v2851_v30 }
 0x78d   : > { %v2896_v46 = vpop.f32.mrf.mxu3 }
 0x78e   : > { %v2897_v62 = vadd.f32 %v2896_v46, %v2873_v6 }
 0x790   : > { %v2830_v11 = vpop.f32.mrf.mxu0  ;;  %v2908_v29 = vadd.f32 %v2904_v12, %v2897_v62 }
 0x796   : > { %v2876_v33 = vpop.f32.mrf.mxu2 }
 0x797   : > { %v2853_v10 = vpop.f32.mrf.mxu1 }
 0x798   : > { %v2995_v50 = vpop.f32.mrf.mxu0  ;;  %v2854_v0 = vadd.f32 %v2853_v10, %v2830_v11 }
 0x79a   : > { %v2909_v48 = vadd.f32 %v2903_v63, %v2854_v0  ;;  %v7603_v0 = vld [vmem:[%s9063_s4 + $0x4] sm:$0xf] }
 0x79d   : > { %v2899_v8 = vpop.f32.mrf.mxu3 }
 0x79e   : > { %v3041_v51 = vpop.f32.mrf.mxu2  ;;  %v2900_v5 = vadd.f32 %v2899_v8, %v2876_v33 }
 0x79f   : > { %v3018_v25 = vpop.f32.mrf.mxu1 }
 0x7a0   : > { %v2998_v52 = vpop.f32.mrf.mxu0  ;;  %v3019_v3 = vadd.f32 %v3018_v25, %v2995_v50  ;;  %v2910_v32 = vadd.f32 %v2904_v12, %v2900_v5 }
 0x7a2   : > { %v3070_v16 = vadd.f32 %v3019_v3, %v2907_v7 }
 0x7a5   : > { %v3064_v21 = vpop.f32.mrf.mxu3 }
 0x7a6   : > { %v3044_v55 = vpop.f32.mrf.mxu2  ;;  %v3065_v19 = vadd.f32 %v3064_v21, %v3041_v51 }
 0x7a7   : > { %v3021_v53 = vpop.f32.mrf.mxu1 }
 0x7a8   : > { %v3182_v56 = vpop.f32.mrf.mxu0  ;;  %v3022_v41 = vadd.f32 %v3021_v53, %v2998_v52  ;;  %v3071_v39 = vadd.f32 %v3065_v19, %v2908_v29 }
 0x7aa   : > { %v3072_v24 = vadd.f32 %v3022_v41, %v2909_v48 }
 0x7ad   : > { %v3067_v57 = vpop.f32.mrf.mxu3 }
 0x7ae   : > { %v3228_v54 = vpop.f32.mrf.mxu2  ;;  %v3068_v20 = vadd.f32 %v3067_v57, %v3044_v55 }
 0x7af   : > { %v3205_v59 = vpop.f32.mrf.mxu1 }
 0x7b0   : > { %v3206_v9 = vadd.f32 %v3205_v59, %v3182_v56  ;;  %v3185_v13 = vpop.f32.mrf.mxu0  ;;  %v3073_v38 = vadd.f32 %v3068_v20, %v2910_v32 }
 0x7b2   : > { %v8527_v22 = vadd.f32 %v3206_v9, %v3070_v16  ;;  %v3319_v16 = vld [vmem:[#allocation12 + $0x1] sm:$0x1] }
 0x7b5   : > { %v3251_v49 = vpop.f32.mrf.mxu3 }
 0x7b6   : > { %v3252_v34 = vadd.f32 %v3251_v49, %v3228_v54  ;;  %v3231_v27 = vpop.f32.mrf.mxu2  ;;  %v3304_v49 = vld [vmem:[#allocation11 + $0x4] sm:$0xf] }
 0x7b7   : > { %v3208_v14 = vpop.f32.mrf.mxu1 }
 0x7b8   : > { %v3209_v18 = vadd.f32 %v3208_v14, %v3185_v13  ;;  %v8533_v40 = vadd.f32 %v3252_v34, %v3071_v39 }
 0x7ba   : > { %v8529_v23 = vadd.f32 %v3209_v18, %v3072_v24 }
 0x7bc   : > { %v3261_v36 = vadd.f32 %v8529_v23, %v8527_v22 }
 0x7bd   : > { %v3254_v15 = vpop.f32.mrf.mxu3 }
 0x7be   : > { %v3262_v2 = vrot.slane %v3261_v36, 4  ;;  %v3255_v17 = vadd.f32 %v3254_v15, %v3231_v27 }
 0x7c0   : > { %v3263_v26 = vadd.f32 %v3262_v2, %v3261_v36  ;;  %v8535_v42 = vadd.f32 %v3255_v17, %v3073_v38 }
 0x7c2   : > { %v3264_v44 = vrot.slane %v3263_v26, 2  ;;  %v3268_v1 = vadd.f32 %v8535_v42, %v8533_v40 }
 0x7c4   : > { %v3269_v35 = vrot.slane %v3268_v1, 4  ;;  %v3265_v45 = vadd.f32 %v3264_v44, %v3263_v26 }
 0x7c6   : > { %v3270_v6 = vadd.f32 %v3269_v35, %v3268_v1  ;;  %v3266_v46 = vrot.slane %v3265_v45, 1  ;;  %v3407_v35 = vld [vmem:[#allocation6 + $0x1ef0] sm:$0xff] }
 0x7c7   : > { %3461 = vmatpush.msrb.mxu0 %v3407_v35  ;;  %v3416_v35 = vld [vmem:[#allocation6 + $0x1f38] sm:$0xff] }
 0x7c8   : > { %v3271_v11 = vrot.slane %v3270_v6, 2  ;;  %v3267_v50 = vadd.f32 %v3266_v46, %v3265_v45  ;;  %v3408_v45 = vld [vmem:[#allocation6 + $0x1ef8] sm:$0xff]  ;;  %v3405_v46 = vld [vmem:[#allocation6 + $0x1ee0] sm:$0xff] }
 0x7c9   : > { %3507 = vmatpush.msrb.mxu2 %v3408_v45  ;;  %3462 = vmatpush.msrb.mxu0 %v3405_v46  ;;  %v3413_v45 = vld [vmem:[#allocation6 + $0x1f20] sm:$0xff]  ;;  %v3414_v46 = vld [vmem:[#allocation6 + $0x1f28] sm:$0xff] }
 0x7ca   : > { %v3272_v33 = vadd.f32 %v3271_v11, %v3270_v6  ;;  %v3439_v6 = vld [vmem:[#allocation6 + $0x1ff0] sm:$0xff]  ;;  %v3440_v11 = vld [vmem:[#allocation6 + $0x1ff8] sm:$0xff] }
 0x7cb   : > { %3484 = vmatpush.msrb.mxu1 %v3439_v6  ;;  %3530 = vmatpush.msrb.mxu3 %v3440_v11  ;;  %v3381_v6 = vld [vmem:[#allocation6 + $0x1e20] sm:$0xff]  ;;  %v3382_v11 = vld [vmem:[#allocation6 + $0x1e28] sm:$0xff] }
 0x7cc   : > { %v3273_v10 = vrot.slane %v3272_v33, 1 }
 0x7ce   : > { %v3274_v8 = vadd.f32 %v3273_v10, %v3272_v33  ;;  %v3437_v33 = vld [vmem:[#allocation6 + $0x1fe0] sm:$0xff]  ;;  %v3406_v10 = vld [vmem:[#allocation6 + $0x1ee8] sm:$0xff] }
 0x7cf   : > { %3485 = vmatpush.msrb.mxu1 %v3437_v33  ;;  %3508 = vmatpush.msrb.mxu2 %v3406_v10  ;;  %v3379_v33 = vld [vmem:[#allocation6 + $0x1e10] sm:$0xff] }
 0x7d0   : > { %v3275_v25 = vadd.f32 %v3274_v8, %v3267_v50  ;;  %v3438_v50 = vld [vmem:[#allocation6 + $0x1fe8] sm:$0xff]  ;;  %v3403_v8 = vld [vmem:[#allocation6 + $0x1ed0] sm:$0xff] }
 0x7d1   : > { %3531 = vmatpush.msrb.mxu3 %v3438_v50  ;;  %3463 = vmatpush.msrb.mxu0 %v3403_v8  ;;  %v3411_v10 = vld [vmem:[#allocation6 + $0x1f10] sm:$0xff]  ;;  %v3380_v50 = vld [vmem:[#allocation6 + $0x1e18] sm:$0xff] }
 0x7d2   : > { %3277 = vrot.lane.b32.xlu0 %v3275_v25, %s8020_s9  ;;  %v3412_v8 = vld [vmem:[#allocation6 + $0x1f18] sm:$0xff] }
 0x844   : > { %v3278_v51 = vpop.permute.xlu0 %3277 }
 0x845   : > { %v3280_v52 = vadd.f32 %v3278_v51, %v3275_v25  ;;  %v3435_v25 = vld [vmem:[#allocation6 + $0x1fd0] sm:$0xff]  ;;  %v3404_v51 = vld [vmem:[#allocation6 + $0x1ed8] sm:$0xff] }
 0x846   : > { %3486 = vmatpush.msrb.mxu1 %v3435_v25  ;;  %3509 = vmatpush.msrb.mxu2 %v3404_v51  ;;  %v3377_v25 = vld [vmem:[#allocation6 + $0x1e00] sm:$0xff] }
 0x847   : > { %3282 = vrot.lane.b32.xlu2 %v3280_v52, %s8021_s18  ;;  %v3409_v51 = vld [vmem:[#allocation6 + $0x1f00] sm:$0xff] }
 0x8a1   : > { %v3283_v21 = vpop.permute.xlu2 %3282 }
 0x8a2   : > { %v3285_v53 = vadd.f32 %v3283_v21, %v3280_v52  ;;  %v3436_v52 = vld [vmem:[#allocation6 + $0x1fd8] sm:$0xff]  ;;  %v3401_v21 = vld [vmem:[#allocation6 + $0x1ec0] sm:$0xff] }
 0x8a3   : > { %3532 = vmatpush.msrb.mxu3 %v3436_v52  ;;  %3464 = vmatpush.msrb.mxu0 %v3401_v21  ;;  %v3378_v52 = vld [vmem:[#allocation6 + $0x1e08] sm:$0xff] }
 0x8a4   : > { %3287 = vrot.lane.b32.xlu0 %v3285_v53, %s8022_s19 }
 0x916   : > { %v3288_v55 = vpop.permute.xlu0 %3287 }
 0x917   : > { %v3290_v56 = vadd.f32 %v3288_v55, %v3285_v53  ;;  %v3433_v53 = vld [vmem:[#allocation6 + $0x1fc0] sm:$0xff]  ;;  %v3402_v55 = vld [vmem:[#allocation6 + $0x1ec8] sm:$0xff] }
 0x918   : > { %3487 = vmatpush.msrb.mxu1 %v3433_v53  ;;  %3510 = vmatpush.msrb.mxu2 %v3402_v55  ;;  %v3410_v53 = vld [vmem:[#allocation6 + $0x1f08] sm:$0xff]  ;;  %v3595_v55 = vld [vmem:[#allocation6 + $0x20f0] sm:$0xff] }
 0x919   : > { %v3291_v57 = vmul.f32 0.00390625, %v3290_v56  ;;  %v3434_v56 = vld [vmem:[#allocation6 + $0x1fc8] sm:$0xff] }
 0x91a   : > { %3533 = vmatpush.msrb.mxu3 %v3434_v56 }
 0x91b   : > { %v3294_v59 = vperm.slane %v3291_v57, 0  ;;  %v3399_v57 = vld [vmem:[#allocation6 + $0x1eb0] sm:$0xff] }
 0x91c   : > { %3465 = vmatpush.msrb.mxu0 %v3399_v57  ;;  %v3627_v57 = vld [vmem:[#allocation6 + $0x21f0] sm:$0xff] }
 0x91d   : > { %v3295_v30 = vmul.f32 %v3294_v59, %v3293_v58  ;;  %v3431_v58 = vld [vmem:[#allocation6 + $0x1fb0] sm:$0xff]  ;;  %v3400_v59 = vld [vmem:[#allocation6 + $0x1eb8] sm:$0xff] }
 0x91e   : > { %3488 = vmatpush.msrb.mxu1 %v3431_v58  ;;  %3511 = vmatpush.msrb.mxu2 %v3400_v59  ;;  %v3596_v58 = vld [vmem:[#allocation6 + $0x20f8] sm:$0xff] }
 0x91f   : > { %v3296_v63 = vsel %vm2084_vm6, %v3295_v30, 0.0  ;;  %v3432_v30 = vld [vmem:[#allocation6 + $0x1fb8] sm:$0xff] }
 0x920   : > { %3297 = vadd.xlane.f32.xlu2 %v3296_v63  ;;  %v3397_v63 = vld [vmem:[#allocation6 + $0x1ea0] sm:$0xff]  ;;  %3534 = vmatpush.msrb.mxu3 %v3432_v30  ;;  %v3628_v59 = vld [vmem:[#allocation6 + $0x21f8] sm:$0xff] }
 0x921   : > { %3466 = vmatpush.msrb.mxu0 %v3397_v63  ;;  %v3593_v30 = vld [vmem:[#allocation6 + $0x20e0] sm:$0xff] }
 0x922   : > { %v3625_v63 = vld [vmem:[#allocation6 + $0x21e0] sm:$0xff] }
 0x993   : > { %v3298_v54 = vpop.xlane.xlu2 %3297 }
 0x994   : > { %v3301_v3 = vadd.f32 %v7603_v0, %v3298_v54  ;;  %v3429_v0 = vld [vmem:[#allocation6 + $0x1fa0] sm:$0xff]  ;;  %v3398_v54 = vld [vmem:[#allocation6 + $0x1ea8] sm:$0xff] }
 0x995   : > { %3489 = vmatpush.msrb.mxu1 %v3429_v0  ;;  %3512 = vmatpush.msrb.mxu2 %v3398_v54  ;;  %v3594_v0 = vld [vmem:[#allocation6 + $0x20e8] sm:$0xff] }
 0x996   : > { %v3302_v41 = vmax.f32 %v3301_v3, 0.0  ;;  %v3430_v3 = vld [vmem:[#allocation6 + $0x1fa8] sm:$0xff] }
 0x997   : > { %3535 = vmatpush.msrb.mxu3 %v3430_v3  ;;  %v3626_v54 = vld [vmem:[#allocation6 + $0x21e8] sm:$0xff]  ;;  %v3591_v3 = vld [vmem:[#allocation6 + $0x20d0] sm:$0xff] }
 0x998   : > { %3307 = vperm.xlu0 %7729, %v3302_v41   ;;  %v3395_v41 = vld [vmem:[#allocation6 + $0x1e90] sm:$0xff] }
 0x999   : > { %3467 = vmatpush.msrb.mxu0 %v3395_v41  ;;  %v3592_v41 = vld [vmem:[#allocation6 + $0x20d8] sm:$0xff] }
 0xa0a   : > { %v3308_v7 = vpop.permute.xlu0 %3307 }
 0xa0b   : > { %v3310_v48 = vmul.f32 %v3308_v7, %v3304_v49  ;;  %v3427_v49 = vld [vmem:[#allocation6 + $0x1f90] sm:$0xff]  ;;  %v3396_v7 = vld [vmem:[#allocation6 + $0x1e98] sm:$0xff] }
 0xa0c   : > { %3490 = vmatpush.msrb.mxu1 %v3427_v49  ;;  %3513 = vmatpush.msrb.mxu2 %v3396_v7  ;;  %v3624_v49 = vld [vmem:[#allocation6 + $0x21d8] sm:$0xff]  ;;  %v3589_v7 = vld [vmem:[#allocation6 + $0x20c0] sm:$0xff] }
 0xa0d   : > { %v3311_v9 = vsel %vm2084_vm6, %v3310_v48, 0.0  ;;  %v3428_v48 = vld [vmem:[#allocation6 + $0x1f98] sm:$0xff] }
 0xa0e   : > { %v3312_v62 = vrot.slane %v3311_v9, 4  ;;  %3536 = vmatpush.msrb.mxu3 %v3428_v48  ;;  %v3621_v48 = vld [vmem:[#allocation6 + $0x21c0] sm:$0xff] }
 0xa10   : > { %v3313_v12 = vadd.f32 %v3312_v62, %v3311_v9  ;;  %v3393_v9 = vld [vmem:[#allocation6 + $0x1e80] sm:$0xff] }
 0xa11   : > { %v3425_v62 = vld [vmem:[#allocation6 + $0x1f80] sm:$0xff]  ;;  %3468 = vmatpush.msrb.mxu0 %v3393_v9  ;;  %v3590_v9 = vld [vmem:[#allocation6 + $0x20c8] sm:$0xff] }
 0xa12   : > { %v3314_v13 = vrot.slane %v3313_v12, 2  ;;  %3491 = vmatpush.msrb.mxu1 %v3425_v62  ;;  %v3622_v62 = vld [vmem:[#allocation6 + $0x21c8] sm:$0xff] }
 0xa14   : > { %v3315_v14 = vadd.f32 %v3314_v13, %v3313_v12  ;;  %v3394_v12 = vld [vmem:[#allocation6 + $0x1e88] sm:$0xff] }
 0xa15   : > { %v3426_v13 = vld [vmem:[#allocation6 + $0x1f88] sm:$0xff]  ;;  %3514 = vmatpush.msrb.mxu2 %v3394_v12  ;;  %v3587_v12 = vld [vmem:[#allocation6 + $0x20b0] sm:$0xff] }
 0xa16   : > { %v3316_v5 = vrot.slane %v3315_v14, 1  ;;  %3537 = vmatpush.msrb.mxu3 %v3426_v13  ;;  %v3619_v13 = vld [vmem:[#allocation6 + $0x21b0] sm:$0xff] }
 0xa18   : > { %v3317_v24 = vadd.f32 %v3316_v5, %v3315_v14  ;;  %v3391_v14 = vld [vmem:[#allocation6 + $0x1e70] sm:$0xff] }
 0xa19   : > { %v3423_v5 = vld [vmem:[#allocation6 + $0x1f70] sm:$0xff]  ;;  %3469 = vmatpush.msrb.mxu0 %v3391_v14  ;;  %v3588_v14 = vld [vmem:[#allocation6 + $0x20b8] sm:$0xff] }
 0xa1a   : > { %v3320_v18 = vadd.f32 %v3319_v16, %v3317_v24  ;;  %v3392_v16 = vld [vmem:[#allocation6 + $0x1e78] sm:$0xff]  ;;  %3492 = vmatpush.msrb.mxu1 %v3423_v5 }
 0xa1b   : > { %v3424_v24 = vld [vmem:[#allocation6 + $0x1f78] sm:$0xff]  ;;  %3515 = vmatpush.msrb.mxu2 %v3392_v16  ;;  %v3585_v16 = vld [vmem:[#allocation6 + $0x20a0] sm:$0xff] }
 0xa1c   : > { %v7604_v19 = vmul.f32 -1.442695, %v3320_v18  ;;  %v3389_v18 = vld [vmem:[#allocation6 + $0x1e60] sm:$0xff]  ;;  %3538 = vmatpush.msrb.mxu3 %v3424_v24  ;;  %v3620_v5 = vld [vmem:[#allocation6 + $0x21b8] sm:$0xff] }
 0xa1d   : > { %3470 = vmatpush.msrb.mxu0 %v3389_v18  ;;  %v3617_v24 = vld [vmem:[#allocation6 + $0x21a0] sm:$0xff]  ;;  %v3586_v18 = vld [vmem:[#allocation6 + $0x20a8] sm:$0xff] }
 0xa1e   : > { %7735 = vpow2.f32 %v7604_v19  ;;  %v3421_v19 = vld [vmem:[#allocation6 + $0x1f60] sm:$0xff] }
 0xa1f   : > { %3493 = vmatpush.msrb.mxu1 %v3421_v19  ;;  %v3618_v19 = vld [vmem:[#allocation6 + $0x21a8] sm:$0xff] }
 0xa24   : > { %v7736_v20 = vpop.eup %7735 }
 0xa25   : > { %v3324_v29 = vadd.f32 1.0, %v7736_v20  ;;  %v3390_v20 = vld [vmem:[#allocation6 + $0x1e68] sm:$0xff] }
 0xa26   : > { %3516 = vmatpush.msrb.mxu2 %v3390_v20  ;;  %v3583_v20 = vld [vmem:[#allocation6 + $0x2090] sm:$0xff] }
 0xa27   : > { %7737 = vrcp.f32 %v3324_v29  ;;  %v3336_v27 = vand.u32 2147483648, %v3324_v29  ;;  %v3334_v39 = vand.u32 2147483647, %v3324_v29  ;;  %vm3330_vm5 = vweird.f32 %v3324_v29 }
 0xa29   : > { %v3337_v2 = vor.u32 1.1754944e-38, %v3336_v27  ;;  %vm3335_vm8 = vcmp.eq.f32.partialorder %v3334_v39, 8.507059e+37  ;;  %v3420_v27 = vld [vmem:[#allocation6 + $0x1f58] sm:$0xff]  ;;  %v3417_v39 = vld [vmem:[#allocation6 + $0x1f40] sm:$0xff] }
 0xa2d   : > { %v7738_v32 = vpop.eup %7737 }
 0xa2e   : > { %v3326_v34 = vmul.f32 %v7738_v32, %v3324_v29  ;;  %vm3331_vm4 = vweird.f32 %v7738_v32  ;;  %v3422_v29 = vld [vmem:[#allocation6 + $0x1f68] sm:$0xff] }
 0xa2f   : > { %vm3332_vm7 = vmor %vm3330_vm5, %vm3331_vm4  ;;  %3539 = vmatpush.msrb.mxu3 %v3422_v29  ;;  %v3615_v29 = vld [vmem:[#allocation6 + $0x2190] sm:$0xff] }
 0xa30   : > { %v3327_v36 = vsub.f32 1.0, %v3326_v34  ;;  %v3419_v34 = vld [vmem:[#allocation6 + $0x1f50] sm:$0xff] }
 0xa31   : > { %3494 = vmatpush.msrb.mxu1 %v3419_v34  ;;  %3540 = vmatpush.msrb.mxu3 %v3420_v27  ;;  %v3616_v34 = vld [vmem:[#allocation6 + $0x2198] sm:$0xff]  ;;  %v3613_v27 = vld [vmem:[#allocation6 + $0x2180] sm:$0xff] }
 0xa32   : > { %v3328_v15 = vmul.f32 %v7738_v32, %v3327_v36  ;;  %v3388_v36 = vld [vmem:[#allocation6 + $0x1e58] sm:$0xff] }
 0xa33   : > { %3517 = vmatpush.msrb.mxu2 %v3388_v36  ;;  %3495 = vmatpush.msrb.mxu1 %v3417_v39  ;;  %v3581_v36 = vld [vmem:[#allocation6 + $0x2080] sm:$0xff]  ;;  %v3614_v39 = vld [vmem:[#allocation6 + $0x2188] sm:$0xff] }
 0xa34   : > { %v3329_v38 = vadd.f32 %v7738_v32, %v3328_v15  ;;  %v3385_v15 = vld [vmem:[#allocation6 + $0x1e40] sm:$0xff] }
 0xa36   : > { %v3333_v17 = vsel %vm3332_vm7, %v7738_v32, %v3329_v38  ;;  %v3387_v32 = vld [vmem:[#allocation6 + $0x1e50] sm:$0xff]  ;;  %v3386_v38 = vld [vmem:[#allocation6 + $0x1e48] sm:$0xff] }
 0xa37   : > { %v3338_v26 = vsel %vm3335_vm8, %v3337_v2, %v3333_v17  ;;  %3471 = vmatpush.msrb.mxu0 %v3387_v32  ;;  %v3418_v2 = vld [vmem:[#allocation6 + $0x1f48] sm:$0xff]  ;;  %v3383_v17 = vld [vmem:[#allocation6 + $0x1e30] sm:$0xff]  ;;  %3518 = vmatpush.msrb.mxu2 %v3386_v38  ;;  %v3584_v32 = vld [vmem:[#allocation6 + $0x2098] sm:$0xff] }
 0xa38   : > { %3341 = vrot.lane.b32.xlu1 %v3338_v26, %s8024_s13  ;;  %3541 = vmatpush.msrb.mxu3 %v3418_v2  ;;  %v3579_v38 = vld [vmem:[#allocation6 + $0x2070] sm:$0xff] }
 0xa39   : > { %3472 = vmatpush.msrb.mxu0 %v3385_v15  ;;  %v3582_v15 = vld [vmem:[#allocation6 + $0x2088] sm:$0xff]  ;;  %v3611_v2 = vld [vmem:[#allocation6 + $0x2170] sm:$0xff] }
 0xa3a   : > { %3542 = vmatpush.msrb.mxu3 %v3416_v35  ;;  %v3609_v35 = vld [vmem:[#allocation6 + $0x2160] sm:$0xff] }
 0xa3b   : > { %3473 = vmatpush.msrb.mxu0 %v3383_v17  ;;  %v3580_v17 = vld [vmem:[#allocation6 + $0x2078] sm:$0xff] }
 0xa3c   : > { %3543 = vmatpush.msrb.mxu3 %v3414_v46  ;;  %v3607_v46 = vld [vmem:[#allocation6 + $0x2150] sm:$0xff] }
 0xa3d   : > { %3474 = vmatpush.msrb.mxu0 %v3381_v6  ;;  %v3578_v6 = vld [vmem:[#allocation6 + $0x2068] sm:$0xff] }
 0xa3e   : > { %3544 = vmatpush.msrb.mxu3 %v3412_v8  ;;  %v3605_v8 = vld [vmem:[#allocation6 + $0x2140] sm:$0xff] }
 0xa3f   : > { %3475 = vmatpush.msrb.mxu0 %v3379_v33  ;;  %v3576_v33 = vld [vmem:[#allocation6 + $0x2058] sm:$0xff] }
 0xa40   : > { %3545 = vmatpush.msrb.mxu3 %v3410_v53  ;;  %v3572_v53 = vld [vmem:[#allocation6 + $0x2038] sm:$0xff] }
 0xa41   : > { %3476 = vmatpush.msrb.mxu0 %v3377_v25  ;;  %v3574_v25 = vld [vmem:[#allocation6 + $0x2048] sm:$0xff] }
 0xa42   : > { %3698 = vmatpush.msra.mxu3 %v3628_v59  ;;  %v3570_v59 = vld [vmem:[#allocation6 + $0x2028] sm:$0xff] }
 0xa43   : > { %3629 = vmatpush.msra.mxu0 %v3595_v55  ;;  %v3604_v55 = vld [vmem:[#allocation6 + $0x2138] sm:$0xff] }
 0xa44   : > { %3699 = vmatpush.msra.mxu3 %v3626_v54  ;;  %v3568_v54 = vld [vmem:[#allocation6 + $0x2018] sm:$0xff] }
 0xa45   : > { %3630 = vmatpush.msra.mxu0 %v3593_v30  ;;  %v3602_v30 = vld [vmem:[#allocation6 + $0x2128] sm:$0xff] }
 0xa46   : > { %3700 = vmatpush.msra.mxu3 %v3624_v49  ;;  %v3566_v49 = vld [vmem:[#allocation6 + $0x2008] sm:$0xff] }
 0xa47   : > { %3631 = vmatpush.msra.mxu0 %v3591_v3  ;;  %v3600_v3 = vld [vmem:[#allocation6 + $0x2118] sm:$0xff] }
 0xa48   : > { %3701 = vmatpush.msra.mxu3 %v3622_v62 }
 0xa49   : > { %3632 = vmatpush.msra.mxu0 %v3589_v7  ;;  %v3598_v7 = vld [vmem:[#allocation6 + $0x2108] sm:$0xff] }
 0xa4a   : > { %3702 = vmatpush.msra.mxu3 %v3620_v5 }
 0xa4b   : > { %3633 = vmatpush.msra.mxu0 %v3587_v12  ;;  %v3370_v12 = vld [vmem:[#allocation2 + $0x30] sm:$0x80] }
 0xa4c   : > { %3703 = vmatpush.msra.mxu3 %v3618_v19 }
 0xa4d   : > { %3634 = vmatpush.msra.mxu0 %v3585_v16 }
 0xa4e   : > { %3704 = vmatpush.msra.mxu3 %v3616_v34  ;;  %v3760_v34 = vld [vmem:[#allocation6 + $0x22e0] sm:$0xff] }
 0xa4f   : > { %3635 = vmatpush.msra.mxu0 %v3583_v20 }
 0xa50   : > { %3705 = vmatpush.msra.mxu3 %v3614_v39  ;;  %v3758_v39 = vld [vmem:[#allocation6 + $0x22d0] sm:$0xff] }
 0xa51   : > { %3636 = vmatpush.msra.mxu0 %v3581_v36  ;;  %v3792_v36 = vld [vmem:[#allocation6 + $0x23e0] sm:$0xff] }
 0xa53   : > { %3637 = vmatpush.msra.mxu0 %v3579_v38  ;;  %v3790_v38 = vld [vmem:[#allocation6 + $0x23d0] sm:$0xff] }
 0xaaa   : > { %v3342_v44 = vpop.permute.xlu1 %3341 }
 0xaab   : > { %v8549_v1 = vsel %vm2130_vm11, %v3338_v26, %v3342_v44  ;;  %v3415_v26 = vld [vmem:[#allocation6 + $0x1f30] sm:$0xff]  ;;  %v3384_v44 = vld [vmem:[#allocation6 + $0x1e38] sm:$0xff] }
 0xaac   : > { %3346 = vrot.lane.b32.xlu0 %v8549_v1, %s8025_s29  ;;  %3496 = vmatpush.msrb.mxu1 %v3415_v26  ;;  %v3612_v26 = vld [vmem:[#allocation6 + $0x2178] sm:$0xff] }
 0xaad   : > { %3519 = vmatpush.msrb.mxu2 %v3384_v44  ;;  %3706 = vmatpush.msra.mxu3 %v3612_v26  ;;  %v3577_v44 = vld [vmem:[#allocation6 + $0x2060] sm:$0xff] }
 0xaae   : > { %3497 = vmatpush.msrb.mxu1 %v3413_v45  ;;  %3638 = vmatpush.msra.mxu0 %v3577_v44  ;;  %v3610_v45 = vld [vmem:[#allocation6 + $0x2168] sm:$0xff]  ;;  %v3756_v44 = vld [vmem:[#allocation6 + $0x22c0] sm:$0xff] }
 0xaaf   : > { %3520 = vmatpush.msrb.mxu2 %v3382_v11  ;;  %3707 = vmatpush.msra.mxu3 %v3610_v45  ;;  %v3575_v11 = vld [vmem:[#allocation6 + $0x2050] sm:$0xff] }
 0xab0   : > { %3498 = vmatpush.msrb.mxu1 %v3411_v10  ;;  %3639 = vmatpush.msra.mxu0 %v3575_v11  ;;  %v3608_v10 = vld [vmem:[#allocation6 + $0x2158] sm:$0xff]  ;;  %v3757_v11 = vld [vmem:[#allocation6 + $0x22c8] sm:$0xff] }
 0xab1   : > { %3521 = vmatpush.msrb.mxu2 %v3380_v50  ;;  %3708 = vmatpush.msra.mxu3 %v3608_v10  ;;  %v3573_v50 = vld [vmem:[#allocation6 + $0x2040] sm:$0xff] }
 0xab2   : > { %3499 = vmatpush.msrb.mxu1 %v3409_v51  ;;  %3640 = vmatpush.msra.mxu0 %v3573_v50  ;;  %v3606_v51 = vld [vmem:[#allocation6 + $0x2148] sm:$0xff] }
 0xab3   : > { %3522 = vmatpush.msrb.mxu2 %v3378_v52  ;;  %3709 = vmatpush.msra.mxu3 %v3606_v51  ;;  %v3571_v52 = vld [vmem:[#allocation6 + $0x2030] sm:$0xff]  ;;  %v3755_v51 = vld [vmem:[#allocation6 + $0x22b8] sm:$0xff] }
 0xab4   : > { %3652 = vmatpush.msra.mxu1 %v3627_v57  ;;  %3641 = vmatpush.msra.mxu0 %v3571_v52  ;;  %v3569_v57 = vld [vmem:[#allocation6 + $0x2020] sm:$0xff]  ;;  %v3787_v52 = vld [vmem:[#allocation6 + $0x23b8] sm:$0xff] }
 0xab5   : > { %3675 = vmatpush.msra.mxu2 %v3596_v58  ;;  %3710 = vmatpush.msra.mxu3 %v3604_v55  ;;  %v3601_v58 = vld [vmem:[#allocation6 + $0x2120] sm:$0xff]  ;;  %v3753_v55 = vld [vmem:[#allocation6 + $0x22a8] sm:$0xff] }
 0xab6   : > { %3653 = vmatpush.msra.mxu1 %v3625_v63  ;;  %3642 = vmatpush.msra.mxu0 %v3569_v57  ;;  %v3567_v63 = vld [vmem:[#allocation6 + $0x2010] sm:$0xff]  ;;  %v3785_v57 = vld [vmem:[#allocation6 + $0x23a8] sm:$0xff] }
 0xab7   : > { %3676 = vmatpush.msra.mxu2 %v3594_v0  ;;  %3711 = vmatpush.msra.mxu3 %v3602_v30  ;;  %v3599_v0 = vld [vmem:[#allocation6 + $0x2110] sm:$0xff]  ;;  %v3751_v30 = vld [vmem:[#allocation6 + $0x2298] sm:$0xff] }
 0xab8   : > { %3643 = vmatpush.msra.mxu0 %v3567_v63  ;;  %v3783_v63 = vld [vmem:[#allocation6 + $0x2398] sm:$0xff] }
 0xab9   : > { %3677 = vmatpush.msra.mxu2 %v3592_v41  ;;  %v3597_v41 = vld [vmem:[#allocation6 + $0x2100] sm:$0xff]  ;;  %3712 = vmatpush.msra.mxu3 %v3600_v3  ;;  %v3749_v3 = vld [vmem:[#allocation6 + $0x2288] sm:$0xff] }
 0xabb   : > { %3678 = vmatpush.msra.mxu2 %v3590_v9  ;;  %3713 = vmatpush.msra.mxu3 %v3598_v7  ;;  %v3747_v7 = vld [vmem:[#allocation6 + $0x2278] sm:$0xff] }
 0xabd   : > { %3679 = vmatpush.msra.mxu2 %v3588_v14 }
 0xabf   : > { %3680 = vmatpush.msra.mxu2 %v3586_v18  ;;  %v3447_v18 = vrot.slane %v3370_v12, 7  ;;  %v3745_v12 = vld [vmem:[#allocation6 + $0x2268] sm:$0xff] }
 0xac1   : > { %3681 = vmatpush.msra.mxu2 %v3584_v32 }
 0xac3   : > { %3682 = vmatpush.msra.mxu2 %v3582_v15  ;;  %v3793_v15 = vld [vmem:[#allocation6 + $0x23e8] sm:$0xff] }
 0xac5   : > { %3683 = vmatpush.msra.mxu2 %v3580_v17  ;;  %v3791_v17 = vld [vmem:[#allocation6 + $0x23d8] sm:$0xff] }
 0xac7   : > { %3684 = vmatpush.msra.mxu2 %v3578_v6 }
 0xac9   : > { %3685 = vmatpush.msra.mxu2 %v3576_v33 }
 0xacb   : > { %3686 = vmatpush.msra.mxu2 %v3574_v25  ;;  %v3786_v25 = vld [vmem:[#allocation6 + $0x23b0] sm:$0xff] }
 0xacd   : > { %3687 = vmatpush.msra.mxu2 %v3572_v53  ;;  %v3784_v53 = vld [vmem:[#allocation6 + $0x23a0] sm:$0xff] }
 0xacf   : > { %3688 = vmatpush.msra.mxu2 %v3570_v59  ;;  %v3782_v59 = vld [vmem:[#allocation6 + $0x2390] sm:$0xff] }
 0xad1   : > { %3689 = vmatpush.msra.mxu2 %v3568_v54  ;;  %v3780_v54 = vld [vmem:[#allocation6 + $0x2380] sm:$0xff] }
 0xad3   : > { %3690 = vmatpush.msra.mxu2 %v3566_v49  ;;  %v3778_v49 = vld [vmem:[#allocation6 + $0x2370] sm:$0xff] }
 0xb1e   : > { %v3347_v21 = vpop.permute.xlu0 %3346 }
 0xb1f   : > { %v8555_v56 = vsel %vm2136_vm12, %v8549_v1, %v3347_v21  ;;  %v3623_v1 = vld [vmem:[#allocation6 + $0x21d0] sm:$0xff] }
 0xb20   : > { %3351 = vrot.lane.b32.xlu0 %v8555_v56, %s8020_s9  ;;  %3654 = vmatpush.msra.mxu1 %v3623_v1  ;;  %v3603_v21 = vld [vmem:[#allocation6 + $0x2130] sm:$0xff]  ;;  %v3565_v1 = vld [vmem:[#allocation6 + $0x2000] sm:$0xff] }
 0xb21   : > { %3644 = vmatpush.msra.mxu0 %v3565_v1  ;;  %v3781_v1 = vld [vmem:[#allocation6 + $0x2388] sm:$0xff] }
 0xb22   : > { %3655 = vmatpush.msra.mxu1 %v3621_v48 }
 0xb24   : > { %3656 = vmatpush.msra.mxu1 %v3619_v13  ;;  %v3371_v13 = vld [vmem:[#allocation2] sm:$0x80] }
 0xb25   : > { %v3450_v19 = vrot.slane %v3371_v13, 7  ;;  %v3777_v13 = vld [vmem:[#allocation6 + $0x2368] sm:$0xff] }
 0xb26   : > { %3657 = vmatpush.msra.mxu1 %v3617_v24 }
 0xb28   : > { %3658 = vmatpush.msra.mxu1 %v3615_v29 }
 0xb2a   : > { %3659 = vmatpush.msra.mxu1 %v3613_v27  ;;  %v3761_v27 = vld [vmem:[#allocation6 + $0x22e8] sm:$0xff] }
 0xb2c   : > { %3660 = vmatpush.msra.mxu1 %v3611_v2  ;;  %v3759_v2 = vld [vmem:[#allocation6 + $0x22d8] sm:$0xff] }
 0xb2e   : > { %3661 = vmatpush.msra.mxu1 %v3609_v35  ;;  %v3788_v35 = vld [vmem:[#allocation6 + $0x23c0] sm:$0xff] }
 0xb30   : > { %3662 = vmatpush.msra.mxu1 %v3607_v46  ;;  %v3789_v46 = vld [vmem:[#allocation6 + $0x23c8] sm:$0xff] }
 0xb32   : > { %3663 = vmatpush.msra.mxu1 %v3605_v8  ;;  %v3754_v8 = vld [vmem:[#allocation6 + $0x22b0] sm:$0xff] }
 0xb34   : > { %3664 = vmatpush.msra.mxu1 %v3603_v21  ;;  %v3752_v21 = vld [vmem:[#allocation6 + $0x22a0] sm:$0xff] }
 0xb36   : > { %3665 = vmatpush.msra.mxu1 %v3601_v58  ;;  %v3750_v58 = vld [vmem:[#allocation6 + $0x2290] sm:$0xff] }
 0xb38   : > { %3666 = vmatpush.msra.mxu1 %v3599_v0  ;;  %v3748_v0 = vld [vmem:[#allocation6 + $0x2280] sm:$0xff] }
 0xb3a   : > { %3667 = vmatpush.msra.mxu1 %v3597_v41  ;;  %v3746_v41 = vld [vmem:[#allocation6 + $0x2270] sm:$0xff] }
 0xb92   : > { %v3352_v48 = vpop.permute.xlu0 %3351 }
 0xb93   : > { %v3354_v9 = vsel %vm2142_vm13, %v8555_v56, %v3352_v48  ;;  %v3779_v48 = vld [vmem:[#allocation6 + $0x2378] sm:$0xff] }
 0xb94   : > { %v3355_v62 = vperm.slane %v3354_v9, 0  ;;  %v3744_v9 = vld [vmem:[#allocation6 + $0x2260] sm:$0xff] }
 0xb96   : > { %v3356_v14 = vmul.f32 %v3355_v62, %v8527_v22  ;;  %v3357_v5 = vmul.f32 %v3355_v62, %v8533_v40  ;;  %v3358_v16 = vmul.f32 %v3355_v62, %v8529_v23  ;;  %v3359_v24 = vmul.f32 %v3355_v62, %v8535_v42  ;;  %v3762_v40 = vld [vmem:[#allocation6 + $0x22f0] sm:$0xff]  ;;  %v3795_v42 = vld [vmem:[#allocation6 + $0x23f8] sm:$0xff]  ;;  %v3776_v62 = vld [vmem:[#allocation6 + $0x2360] sm:$0xff] }
 0xb98   : > { %v8566_v20 = vadd.f32 %v3356_v14, %v8428_v60  ;;  %v8569_v29 = vadd.f32 %v3357_v5, %v8431_v61  ;;  %v8572_v56 = vadd.f32 %v3358_v16, %v8434_v43  ;;  %v8575_v32 = vadd.f32 %v3359_v24, %v8437_v37  ;;  %v3794_v43 = vld [vmem:[#allocation6 + $0x23f0] sm:$0xff]  ;;  %v3763_v37 = vld [vmem:[#allocation6 + $0x22f8] sm:$0xff] }
 0xb99   : > { %v3742_v14 = vld [vmem:[#allocation6 + $0x2250] sm:$0xff]  ;;  %v3743_v16 = vld [vmem:[#allocation6 + $0x2258] sm:$0xff] }
 0xb9a   : > { %3366 = vst [vmem:[#allocation2 + $0x8] sm:$0xff] %v8572_v56  ;;  %v3448_v22 = vrot.slane %v8566_v20, 7  ;;  %v3451_v23 = vrot.slane %v8569_v29, 7  ;;  %v3774_v5 = vld [vmem:[#allocation6 + $0x2350] sm:$0xff]  ;;  %v3775_v24 = vld [vmem:[#allocation6 + $0x2358] sm:$0xff] }
 0xb9b   : > { %3367 = vst [vmem:[#allocation2 + $0x20] sm:$0xff] %v8575_v32 }
 0xb9c   : > { %3364 = vst [vmem:[#allocation2 + $0x18] sm:$0xff] %v8566_v20  ;;  %v3449_v60 = vsel %vm475_vm0, %v3447_v18, %v3448_v22  ;;  %v3452_v61 = vsel %vm475_vm0, %v3450_v19, %v3451_v23  ;;  %v3740_v18 = vld [vmem:[#allocation6 + $0x2240] sm:$0xff] }
 0xb9d   : > { %3365 = vst [vmem:[#allocation2 + $0x10] sm:$0xff] %v8569_v29  ;;  %3477 = vmatmul.f32.vlgmr.msrb.gmra.mxu0 %v3449_v60  ;;  %3500 = vmatmul.f32.vlgmr.msrb.gmra.mxu1 %v3452_v61  ;;  %v3772_v19 = vld [vmem:[#allocation6 + $0x2340] sm:$0xff] }
 0xb9e   : > { %3523 = vmatmul.f32.vlgmr.msrb.gmra.mxu2 %v3449_v60  ;;  %3546 = vmatmul.f32.vlgmr.msrb.gmra.mxu3 %v3452_v61  ;;  %v3739_v60 = vld [vmem:[#allocation6 + $0x2238] sm:$0xff] }
 0xb9f   : > { %3816 = vmatpush.msrb.mxu0 %v3762_v40  ;;  %3839 = vmatpush.msrb.mxu1 %v3794_v43  ;;  %v3771_v61 = vld [vmem:[#allocation6 + $0x2338] sm:$0xff]  ;;  %v3736_v40 = vld [vmem:[#allocation6 + $0x2220] sm:$0xff] }
 0xba0   : > { %3862 = vmatpush.msrb.mxu2 %v3763_v37  ;;  %3885 = vmatpush.msrb.mxu3 %v3795_v42  ;;  %v3768_v43 = vld [vmem:[#allocation6 + $0x2320] sm:$0xff]  ;;  %v3737_v37 = vld [vmem:[#allocation6 + $0x2228] sm:$0xff] }
 0xba1   : > { %3817 = vmatpush.msrb.mxu0 %v3760_v34  ;;  %3840 = vmatpush.msrb.mxu1 %v3792_v36  ;;  %v3374_v26 = vld [vmem:[#allocation2 + $0x8] sm:$0x7f] }
 0xba2   : > { %3863 = vmatpush.msrb.mxu2 %v3761_v27  ;;  %3886 = vmatpush.msrb.mxu3 %v3793_v15  ;;  %v3453_v6 = vrot.slane %v3374_v26, 7  ;;  %v3375_v45 = vld [vmem:[#allocation2 + $0x20] sm:$0x7f]  ;;  %v3769_v42 = vld [vmem:[#allocation6 + $0x2328] sm:$0xff]  ;;  %v3734_v27 = vld [vmem:[#allocation6 + $0x2210] sm:$0xff] }
 0xba3   : > { %3818 = vmatpush.msrb.mxu0 %v3758_v39  ;;  %3841 = vmatpush.msrb.mxu1 %v3790_v38  ;;  %v3455_v33 = vrot.slane %v3375_v45, 7  ;;  %v3725_v34 = vld [vmem:[#allocation2 + $0x18] sm:$0xfe]  ;;  %v3766_v15 = vld [vmem:[#allocation6 + $0x2310] sm:$0xff]  ;;  %v3803_v45 = vrot.slane %v8572_v56, 1 }
 0xba4   : > { %3864 = vmatpush.msrb.mxu2 %v3759_v2  ;;  %3887 = vmatpush.msrb.mxu3 %v3791_v17  ;;  %v3454_v10 = vsel %vm475_vm0, %v3448_v22, %v3453_v6  ;;  %v3738_v22 = vld [vmem:[#allocation6 + $0x2230] sm:$0xff]  ;;  %v3735_v39 = vld [vmem:[#allocation6 + $0x2218] sm:$0xff]  ;;  %v3732_v2 = vld [vmem:[#allocation6 + $0x2200] sm:$0xff]  ;;  %v3802_v26 = vrot.slane %v3725_v34, 1 }
 0xba5   : > { %3819 = vmatpush.msrb.mxu0 %v3756_v44  ;;  %3842 = vmatpush.msrb.mxu1 %v3788_v35  ;;  %v3456_v50 = vsel %vm475_vm0, %v3451_v23, %v3455_v33  ;;  %v3770_v23 = vld [vmem:[#allocation6 + $0x2330] sm:$0xff]  ;;  %v3767_v38 = vld [vmem:[#allocation6 + $0x2318] sm:$0xff]  ;;  %v3764_v17 = vld [vmem:[#allocation6 + $0x2300] sm:$0xff] }
 0xba6   : > { %3865 = vmatpush.msrb.mxu2 %v3757_v11  ;;  %3888 = vmatpush.msrb.mxu3 %v3789_v46  ;;  %v3726_v36 = vld [vmem:[#allocation2 + $0x10] sm:$0xfe]  ;;  %v3733_v35 = vld [vmem:[#allocation6 + $0x2208] sm:$0xff]  ;;  %v3806_v11 = vrot.slane %v8575_v32, 1  ;;  %v3804_v46 = vsel %vm831_vm1, %v3802_v26, %v3803_v45  ;;  %v3937_v34 = vld [vmem:[#allocation6 + $0x2440] sm:$0xff] }
 0xba7   : > { %3480 = vmatmul.f32.gmra.mxu0 %v3454_v10  ;;  %3503 = vmatmul.f32.gmra.mxu1 %v3456_v50  ;;  %v3805_v44 = vrot.slane %v3726_v36, 1  ;;  %v3765_v6 = vld [vmem:[#allocation6 + $0x2308] sm:$0xff]  ;;  %v3975_v36 = vld [vmem:[#allocation6 + $0x2570] sm:$0xff]  ;;  %v3933_v26 = vld [vmem:[#allocation6 + $0x2420] sm:$0xff] }
 0xba8   : > { %3526 = vmatmul.f32.gmra.mxu2 %v3454_v10  ;;  %3549 = vmatmul.f32.gmra.mxu3 %v3456_v50  ;;  %v3729_v10 = vld [vmem:[#allocation2 + $0x28] sm:$0x1]  ;;  %v3959_v50 = vld [vmem:[#allocation6 + $0x24f0] sm:$0xff] }
 0xba9   : > { %3820 = vmatpush.msrb.mxu0 %v3754_v8  ;;  %3843 = vmatpush.msrb.mxu1 %v3786_v25  ;;  %v3807_v33 = vsel %vm831_vm1, %v3805_v44, %v3806_v11  ;;  %v3960_v8 = vld [vmem:[#allocation6 + $0x24f8] sm:$0xff]  ;;  %v3971_v44 = vld [vmem:[#allocation6 + $0x2550] sm:$0xff] }
 0xbaa   : > { %3866 = vmatpush.msrb.mxu2 %v3755_v51  ;;  %3889 = vmatpush.msrb.mxu3 %v3787_v52  ;;  %v3730_v25 = vld [vmem:[#allocation2 + $0x38] sm:$0x1]  ;;  %v3991_v51 = vld [vmem:[#allocation6 + $0x25f0] sm:$0xff] }
 0xbab   : > { %3821 = vmatpush.msrb.mxu0 %v3752_v21  ;;  %3844 = vmatpush.msrb.mxu1 %v3784_v53  ;;  %v3992_v52 = vld [vmem:[#allocation6 + $0x25f8] sm:$0xff]  ;;  %v3989_v21 = vld [vmem:[#allocation6 + $0x25e0] sm:$0xff]  ;;  %v3990_v53 = vld [vmem:[#allocation6 + $0x25e8] sm:$0xff] }
 0xbac   : > { %3867 = vmatpush.msrb.mxu2 %v3753_v55  ;;  %3890 = vmatpush.msrb.mxu3 %v3785_v57  ;;  %v3808_v55 = vrot.slane %v3729_v10, 1  ;;  %v3810_v57 = vrot.slane %v3730_v25, 1  ;;  %v3929_v10 = vld [vmem:[#allocation6 + $0x2400] sm:$0xff]  ;;  %v3968_v25 = vld [vmem:[#allocation6 + $0x2538] sm:$0xff] }
 0xbad   : > { %3822 = vmatpush.msrb.mxu0 %v3750_v58  ;;  %3845 = vmatpush.msrb.mxu1 %v3782_v59  ;;  %v3955_v58 = vld [vmem:[#allocation6 + $0x24d0] sm:$0xff]  ;;  %v3956_v59 = vld [vmem:[#allocation6 + $0x24d8] sm:$0xff] }
 0xbae   : > { %3868 = vmatpush.msrb.mxu2 %v3751_v30  ;;  %3891 = vmatpush.msrb.mxu3 %v3783_v63  ;;  %v3987_v30 = vld [vmem:[#allocation6 + $0x25d0] sm:$0xff]  ;;  %v3988_v63 = vld [vmem:[#allocation6 + $0x25d8] sm:$0xff] }
 0xbaf   : > { %3823 = vmatpush.msrb.mxu0 %v3748_v0  ;;  %3846 = vmatpush.msrb.mxu1 %v3780_v54  ;;  %v3809_v0 = vsel %vm831_vm1, %v3803_v45, %v3808_v55  ;;  %v3811_v54 = vsel %vm831_vm1, %v3806_v11, %v3810_v57  ;;  %v3931_v45 = vld [vmem:[#allocation6 + $0x2410] sm:$0xff]  ;;  %v3969_v11 = vld [vmem:[#allocation6 + $0x2540] sm:$0xff]  ;;  %v3964_v57 = vld [vmem:[#allocation6 + $0x2518] sm:$0xff] }
 0xbb0   : > { %3869 = vmatpush.msrb.mxu2 %v3749_v3  ;;  %3892 = vmatpush.msrb.mxu3 %v3781_v1  ;;  %v3953_v3 = vld [vmem:[#allocation6 + $0x24c0] sm:$0xff]  ;;  %v3954_v1 = vld [vmem:[#allocation6 + $0x24c8] sm:$0xff]  ;;  %v3963_v55 = vld [vmem:[#allocation6 + $0x2510] sm:$0xff] }
 0xbb1   : > { %3645 = vmatmul.f32.vlgmr.msra.gmra.mxu0 %v8566_v20  ;;  %3668 = vmatmul.f32.vlgmr.msra.gmra.mxu1 %v8569_v29 }
 0xbb2   : > { %3691 = vmatmul.f32.vlgmr.msra.gmra.mxu2 %v8566_v20  ;;  %3714 = vmatmul.f32.vlgmr.msra.gmra.mxu3 %v8569_v29  ;;  %v3741_v20 = vld [vmem:[#allocation6 + $0x2248] sm:$0xff] }
 0xbb3   : > { %3824 = vmatpush.msrb.mxu0 %v3746_v41  ;;  %3847 = vmatpush.msrb.mxu1 %v3778_v49  ;;  %v3773_v29 = vld [vmem:[#allocation6 + $0x2348] sm:$0xff]  ;;  %v3951_v41 = vld [vmem:[#allocation6 + $0x24b0] sm:$0xff]  ;;  %v3952_v49 = vld [vmem:[#allocation6 + $0x24b8] sm:$0xff] }
 0xbb4   : > { %3870 = vmatpush.msrb.mxu2 %v3747_v7  ;;  %3893 = vmatpush.msrb.mxu3 %v3779_v48  ;;  %v3949_v7 = vld [vmem:[#allocation6 + $0x24a0] sm:$0xff]  ;;  %v3950_v48 = vld [vmem:[#allocation6 + $0x24a8] sm:$0xff] }
 0xbb5   : > { %3825 = vmatpush.msrb.mxu0 %v3744_v9  ;;  %3848 = vmatpush.msrb.mxu1 %v3776_v62  ;;  %v3947_v9 = vld [vmem:[#allocation6 + $0x2490] sm:$0xff]  ;;  %v3985_v62 = vld [vmem:[#allocation6 + $0x25c0] sm:$0xff] }
 0xbb6   : > { %3871 = vmatpush.msrb.mxu2 %v3745_v12  ;;  %3894 = vmatpush.msrb.mxu3 %v3777_v13  ;;  %v3948_v12 = vld [vmem:[#allocation6 + $0x2498] sm:$0xff]  ;;  %v3986_v13 = vld [vmem:[#allocation6 + $0x25c8] sm:$0xff] }
 0xbb7   : > { %3826 = vmatpush.msrb.mxu0 %v3742_v14  ;;  %3849 = vmatpush.msrb.mxu1 %v3774_v5  ;;  %v3945_v14 = vld [vmem:[#allocation6 + $0x2480] sm:$0xff]  ;;  %v3983_v5 = vld [vmem:[#allocation6 + $0x25b0] sm:$0xff] }
 0xbb8   : > { %3872 = vmatpush.msrb.mxu2 %v3743_v16  ;;  %3895 = vmatpush.msrb.mxu3 %v3775_v24  ;;  %v3946_v16 = vld [vmem:[#allocation6 + $0x2488] sm:$0xff]  ;;  %v3984_v24 = vld [vmem:[#allocation6 + $0x25b8] sm:$0xff] }
 0xbb9   : > { %3827 = vmatpush.msrb.mxu0 %v3740_v18  ;;  %3850 = vmatpush.msrb.mxu1 %v3772_v19  ;;  %v3943_v18 = vld [vmem:[#allocation6 + $0x2470] sm:$0xff]  ;;  %v3981_v19 = vld [vmem:[#allocation6 + $0x25a0] sm:$0xff] }
 0xbba   : > { %3873 = vmatpush.msrb.mxu2 %v3741_v20  ;;  %3896 = vmatpush.msrb.mxu3 %v3773_v29  ;;  %v3944_v20 = vld [vmem:[#allocation6 + $0x2478] sm:$0xff]  ;;  %v3982_v29 = vld [vmem:[#allocation6 + $0x25a8] sm:$0xff] }
 0xbbb   : > { %3648 = vmatmul.f32.gmra.mxu0 %v8572_v56  ;;  %3671 = vmatmul.f32.gmra.mxu1 %v8575_v32 }
 0xbbc   : > { %3694 = vmatmul.f32.gmra.mxu2 %v8572_v56  ;;  %3717 = vmatmul.f32.gmra.mxu3 %v8575_v32  ;;  %v3957_v56 = vld [vmem:[#allocation6 + $0x24e0] sm:$0xff]  ;;  %v3958_v32 = vld [vmem:[#allocation6 + $0x24e8] sm:$0xff] }
 0xbbd   : > { %3828 = vmatpush.msrb.mxu0 %v3738_v22  ;;  %3851 = vmatpush.msrb.mxu1 %v3770_v23  ;;  %v3941_v22 = vld [vmem:[#allocation6 + $0x2460] sm:$0xff]  ;;  %v3979_v23 = vld [vmem:[#allocation6 + $0x2590] sm:$0xff] }
 0xbbe   : > { %3874 = vmatpush.msrb.mxu2 %v3739_v60  ;;  %3897 = vmatpush.msrb.mxu3 %v3771_v61  ;;  %v3942_v60 = vld [vmem:[#allocation6 + $0x2468] sm:$0xff]  ;;  %v3980_v61 = vld [vmem:[#allocation6 + $0x2598] sm:$0xff] }
 0xbbf   : > { %3829 = vmatpush.msrb.mxu0 %v3736_v40  ;;  %3852 = vmatpush.msrb.mxu1 %v3768_v43  ;;  %v3939_v40 = vld [vmem:[#allocation6 + $0x2450] sm:$0xff]  ;;  %v3977_v43 = vld [vmem:[#allocation6 + $0x2580] sm:$0xff] }
 0xbc0   : > { %3875 = vmatpush.msrb.mxu2 %v3737_v37  ;;  %3898 = vmatpush.msrb.mxu3 %v3769_v42  ;;  %v3940_v37 = vld [vmem:[#allocation6 + $0x2458] sm:$0xff]  ;;  %v3978_v42 = vld [vmem:[#allocation6 + $0x2588] sm:$0xff] }
 0xbc1   : > { %3830 = vmatpush.msrb.mxu0 %v3734_v27  ;;  %3853 = vmatpush.msrb.mxu1 %v3766_v15  ;;  %v3938_v27 = vld [vmem:[#allocation6 + $0x2448] sm:$0xff]  ;;  %v3976_v15 = vld [vmem:[#allocation6 + $0x2578] sm:$0xff] }
 0xbc2   : > { %3876 = vmatpush.msrb.mxu2 %v3735_v39  ;;  %3899 = vmatpush.msrb.mxu3 %v3767_v38  ;;  %v3935_v39 = vld [vmem:[#allocation6 + $0x2430] sm:$0xff]  ;;  %v3973_v38 = vld [vmem:[#allocation6 + $0x2560] sm:$0xff] }
 0xbc3   : > { %3831 = vmatpush.msrb.mxu0 %v3732_v2  ;;  %3854 = vmatpush.msrb.mxu1 %v3764_v17  ;;  %v3936_v2 = vld [vmem:[#allocation6 + $0x2438] sm:$0xff]  ;;  %v3974_v17 = vld [vmem:[#allocation6 + $0x2568] sm:$0xff] }
 0xbc4   : > { %3877 = vmatpush.msrb.mxu2 %v3733_v35  ;;  %3900 = vmatpush.msrb.mxu3 %v3765_v6  ;;  %v3934_v35 = vld [vmem:[#allocation6 + $0x2428] sm:$0xff]  ;;  %v3972_v6 = vld [vmem:[#allocation6 + $0x2558] sm:$0xff] }
 0xbc5   : > { %3832 = vmatmul.f32.vlgmr.msrb.gmra.mxu0 %v3804_v46  ;;  %3855 = vmatmul.f32.vlgmr.msrb.gmra.mxu1 %v3807_v33 }
 0xbc6   : > { %3878 = vmatmul.f32.vlgmr.msrb.gmra.mxu2 %v3804_v46  ;;  %3901 = vmatmul.f32.vlgmr.msrb.gmra.mxu3 %v3807_v33  ;;  %v3932_v46 = vld [vmem:[#allocation6 + $0x2418] sm:$0xff]  ;;  %v3970_v33 = vld [vmem:[#allocation6 + $0x2548] sm:$0xff] }
 0xbc7   : > { %4013 = vmatpush.msra.mxu0 %v3959_v50  ;;  %4059 = vmatpush.msra.mxu2 %v3960_v8  ;;  %v3967_v50 = vld [vmem:[#allocation6 + $0x2530] sm:$0xff]  ;;  %v3930_v8 = vld [vmem:[#allocation6 + $0x2408] sm:$0xff] }
 0xbc8   : > { %4036 = vmatpush.msra.mxu1 %v3991_v51  ;;  %4082 = vmatpush.msra.mxu3 %v3992_v52  ;;  %v4147_v51 = vld [vmem:[#allocation6 + $0x26f0] sm:$0xff]  ;;  %v4148_v52 = vld [vmem:[#allocation6 + $0x26f8] sm:$0xff] }
 0xbc9   : > { %4014 = vmatpush.msra.mxu0 %v3957_v56  ;;  %4060 = vmatpush.msra.mxu2 %v3958_v32  ;;  %v3965_v56 = vld [vmem:[#allocation6 + $0x2520] sm:$0xff]  ;;  %v3966_v32 = vld [vmem:[#allocation6 + $0x2528] sm:$0xff] }
 0xbca   : > { %4037 = vmatpush.msra.mxu1 %v3989_v21  ;;  %4083 = vmatpush.msra.mxu3 %v3990_v53  ;;  %v4145_v21 = vld [vmem:[#allocation6 + $0x26e0] sm:$0xff]  ;;  %v4146_v53 = vld [vmem:[#allocation6 + $0x26e8] sm:$0xff] }
 0xbcb   : > { %4015 = vmatpush.msra.mxu0 %v3955_v58  ;;  %4061 = vmatpush.msra.mxu2 %v3956_v59 }
 0xbcc   : > { %4038 = vmatpush.msra.mxu1 %v3987_v30  ;;  %4084 = vmatpush.msra.mxu3 %v3988_v63  ;;  %v4143_v30 = vld [vmem:[#allocation6 + $0x26d0] sm:$0xff]  ;;  %v4144_v63 = vld [vmem:[#allocation6 + $0x26d8] sm:$0xff] }
 0xbcd   : > { %3835 = vmatmul.f32.gmra.mxu0 %v3809_v0  ;;  %3858 = vmatmul.f32.gmra.mxu1 %v3811_v54 }
 0xbce   : > { %3881 = vmatmul.f32.gmra.mxu2 %v3809_v0  ;;  %3904 = vmatmul.f32.gmra.mxu3 %v3811_v54  ;;  %v3961_v0 = vld [vmem:[#allocation6 + $0x2500] sm:$0xff]  ;;  %v3962_v54 = vld [vmem:[#allocation6 + $0x2508] sm:$0xff] }
 0xbcf   : > { %4016 = vmatpush.msra.mxu0 %v3953_v3  ;;  %4062 = vmatpush.msra.mxu2 %v3954_v1  ;;  %v4141_v3 = vld [vmem:[#allocation6 + $0x26c0] sm:$0xff]  ;;  %v4179_v1 = vld [vmem:[#allocation6 + $0x27f0] sm:$0xff] }
 0xbd0   : > { %4039 = vmatpush.msra.mxu1 %v3985_v62  ;;  %4085 = vmatpush.msra.mxu3 %v3986_v13  ;;  %v4178_v62 = vld [vmem:[#allocation6 + $0x27e8] sm:$0xff]  ;;  %v4175_v13 = vld [vmem:[#allocation6 + $0x27d0] sm:$0xff] }
 0xbd1   : > { %4017 = vmatpush.msra.mxu0 %v3951_v41  ;;  %4063 = vmatpush.msra.mxu2 %v3952_v49  ;;  %v4142_v41 = vld [vmem:[#allocation6 + $0x26c8] sm:$0xff]  ;;  %v4180_v49 = vld [vmem:[#allocation6 + $0x27f8] sm:$0xff] }
 0xbd2   : > { %4040 = vmatpush.msra.mxu1 %v3983_v5  ;;  %4086 = vmatpush.msra.mxu3 %v3984_v24  ;;  %v4176_v24 = vld [vmem:[#allocation6 + $0x27d8] sm:$0xff] }
 0xbd3   : > { %4018 = vmatpush.msra.mxu0 %v3949_v7  ;;  %4064 = vmatpush.msra.mxu2 %v3950_v48  ;;  %v4139_v7 = vld [vmem:[#allocation6 + $0x26b0] sm:$0xff]  ;;  %v4177_v48 = vld [vmem:[#allocation6 + $0x27e0] sm:$0xff] }
 0xbd4   : > { %4041 = vmatpush.msra.mxu1 %v3981_v19  ;;  %4087 = vmatpush.msra.mxu3 %v3982_v29  ;;  %v4173_v19 = vld [vmem:[#allocation6 + $0x27c0] sm:$0xff]  ;;  %v4174_v29 = vld [vmem:[#allocation6 + $0x27c8] sm:$0xff] }
 0xbd5   : > { %4019 = vmatpush.msra.mxu0 %v3947_v9  ;;  %4065 = vmatpush.msra.mxu2 %v3948_v12  ;;  %v4140_v9 = vld [vmem:[#allocation6 + $0x26b8] sm:$0xff]  ;;  %v4137_v12 = vld [vmem:[#allocation6 + $0x26a0] sm:$0xff] }
 0xbd6   : > { %4042 = vmatpush.msra.mxu1 %v3979_v23  ;;  %4088 = vmatpush.msra.mxu3 %v3980_v61  ;;  %v4171_v61 = vld [vmem:[#allocation6 + $0x27b0] sm:$0xff] }
 0xbd7   : > { %4020 = vmatpush.msra.mxu0 %v3945_v14  ;;  %4066 = vmatpush.msra.mxu2 %v3946_v16  ;;  %v4138_v14 = vld [vmem:[#allocation6 + $0x26a8] sm:$0xff] }
 0xbd8   : > { %4043 = vmatpush.msra.mxu1 %v3977_v43  ;;  %4089 = vmatpush.msra.mxu3 %v3978_v42  ;;  %v4172_v43 = vld [vmem:[#allocation6 + $0x27b8] sm:$0xff]  ;;  %v4169_v42 = vld [vmem:[#allocation6 + $0x27a0] sm:$0xff] }
 0xbd9   : > { %4021 = vmatpush.msra.mxu0 %v3943_v18  ;;  %4067 = vmatpush.msra.mxu2 %v3944_v20  ;;  %v4135_v18 = vld [vmem:[#allocation6 + $0x2690] sm:$0xff]  ;;  %v4136_v20 = vld [vmem:[#allocation6 + $0x2698] sm:$0xff] }
 0xbda   : > { %4044 = vmatpush.msra.mxu1 %v3975_v36  ;;  %4090 = vmatpush.msra.mxu3 %v3976_v15  ;;  %v4170_v36 = vld [vmem:[#allocation6 + $0x27a8] sm:$0xff]  ;;  %v4167_v15 = vld [vmem:[#allocation6 + $0x2790] sm:$0xff] }
 0xbdb   : > { %4022 = vmatpush.msra.mxu0 %v3941_v22  ;;  %4068 = vmatpush.msra.mxu2 %v3942_v60  ;;  %v4133_v60 = vld [vmem:[#allocation6 + $0x2680] sm:$0xff] }
 0xbdc   : > { %4045 = vmatpush.msra.mxu1 %v3973_v38  ;;  %4091 = vmatpush.msra.mxu3 %v3974_v17  ;;  %v4168_v38 = vld [vmem:[#allocation6 + $0x2798] sm:$0xff]  ;;  %v4165_v17 = vld [vmem:[#allocation6 + $0x2780] sm:$0xff] }
 0xbdd   : > { %4023 = vmatpush.msra.mxu0 %v3939_v40  ;;  %4069 = vmatpush.msra.mxu2 %v3940_v37  ;;  %v4134_v40 = vld [vmem:[#allocation6 + $0x2688] sm:$0xff]  ;;  %v4131_v37 = vld [vmem:[#allocation6 + $0x2670] sm:$0xff] }
 0xbde   : > { %4046 = vmatpush.msra.mxu1 %v3971_v44  ;;  %4092 = vmatpush.msra.mxu3 %v3972_v6  ;;  %v4166_v6 = vld [vmem:[#allocation6 + $0x2788] sm:$0xff] }
 0xbdf   : > { %4024 = vmatpush.msra.mxu0 %v3937_v34  ;;  %4070 = vmatpush.msra.mxu2 %v3938_v27  ;;  %v4132_v34 = vld [vmem:[#allocation6 + $0x2678] sm:$0xff]  ;;  %v4129_v27 = vld [vmem:[#allocation6 + $0x2660] sm:$0xff] }
 0xbe0   : > { %4047 = vmatpush.msra.mxu1 %v3969_v11  ;;  %4093 = vmatpush.msra.mxu3 %v3970_v33  ;;  %v4163_v11 = vld [vmem:[#allocation6 + $0x2770] sm:$0xff]  ;;  %v4164_v33 = vld [vmem:[#allocation6 + $0x2778] sm:$0xff] }
 0xbe1   : > { %4025 = vmatpush.msra.mxu0 %v3935_v39  ;;  %4071 = vmatpush.msra.mxu2 %v3936_v2  ;;  %v4130_v39 = vld [vmem:[#allocation6 + $0x2668] sm:$0xff]  ;;  %v4127_v2 = vld [vmem:[#allocation6 + $0x2650] sm:$0xff] }
 0xbe2   : > { %4048 = vmatpush.msra.mxu1 %v3967_v50  ;;  %4094 = vmatpush.msra.mxu3 %v3968_v25  ;;  %v4161_v25 = vld [vmem:[#allocation6 + $0x2760] sm:$0xff] }
 0xbe3   : > { %4026 = vmatpush.msra.mxu0 %v3933_v26  ;;  %4072 = vmatpush.msra.mxu2 %v3934_v35  ;;  %v4128_v26 = vld [vmem:[#allocation6 + $0x2658] sm:$0xff] }
 0xbe4   : > { %4049 = vmatpush.msra.mxu1 %v3965_v56  ;;  %4095 = vmatpush.msra.mxu3 %v3966_v32  ;;  %v4121_v56 = vld [vmem:[#allocation6 + $0x2620] sm:$0xff]  ;;  %v4159_v32 = vld [vmem:[#allocation6 + $0x2750] sm:$0xff] }
 0xbe5   : > { %4027 = vmatpush.msra.mxu0 %v3931_v45  ;;  %4073 = vmatpush.msra.mxu2 %v3932_v46  ;;  %v4125_v45 = vld [vmem:[#allocation6 + $0x2640] sm:$0xff]  ;;  %v4126_v46 = vld [vmem:[#allocation6 + $0x2648] sm:$0xff] }
 0xbe6   : > { %4050 = vmatpush.msra.mxu1 %v3963_v55  ;;  %4096 = vmatpush.msra.mxu3 %v3964_v57  ;;  %v4119_v55 = vld [vmem:[#allocation6 + $0x2610] sm:$0xff]  ;;  %v4157_v57 = vld [vmem:[#allocation6 + $0x2740] sm:$0xff] }
 0xbe7   : > { %4028 = vmatpush.msra.mxu0 %v3929_v10  ;;  %4074 = vmatpush.msra.mxu2 %v3930_v8  ;;  %v4123_v8 = vld [vmem:[#allocation6 + $0x2630] sm:$0xff] }
 0xbe8   : > { %4051 = vmatpush.msra.mxu1 %v3961_v0  ;;  %4097 = vmatpush.msra.mxu3 %v3962_v54  ;;  %v4117_v0 = vld [vmem:[#allocation6 + $0x2600] sm:$0xff]  ;;  %v4155_v54 = vld [vmem:[#allocation6 + $0x2730] sm:$0xff] }
 0xbe9   : > { %4181 = vmatpush.msrb.mxu0 %v4147_v51  ;;  %4227 = vmatpush.msrb.mxu2 %v4148_v52  ;;  %v4124_v51 = vld [vmem:[#allocation6 + $0x2638] sm:$0xff]  ;;  %v4162_v52 = vld [vmem:[#allocation6 + $0x2768] sm:$0xff] }
 0xbea   : > { %4204 = vmatpush.msrb.mxu1 %v4179_v1  ;;  %4250 = vmatpush.msrb.mxu3 %v4180_v49  ;;  %v4156_v49 = vld [vmem:[#allocation6 + $0x2738] sm:$0xff] }
 0xbeb   : > { %4182 = vmatpush.msrb.mxu0 %v4145_v21  ;;  %4228 = vmatpush.msrb.mxu2 %v4146_v53  ;;  %v4122_v21 = vld [vmem:[#allocation6 + $0x2628] sm:$0xff]  ;;  %v4160_v53 = vld [vmem:[#allocation6 + $0x2758] sm:$0xff] }
 0xbec   : > { %4205 = vmatpush.msrb.mxu1 %v4177_v48  ;;  %4251 = vmatpush.msrb.mxu3 %v4178_v62  ;;  %v4154_v48 = vld [vmem:[#allocation6 + $0x2728] sm:$0xff] }
 0xbed   : > { %4183 = vmatpush.msrb.mxu0 %v4143_v30  ;;  %4229 = vmatpush.msrb.mxu2 %v4144_v63  ;;  %v4120_v30 = vld [vmem:[#allocation6 + $0x2618] sm:$0xff]  ;;  %v4158_v63 = vld [vmem:[#allocation6 + $0x2748] sm:$0xff] }
 0xbee   : > { %4206 = vmatpush.msrb.mxu1 %v4175_v13  ;;  %4252 = vmatpush.msrb.mxu3 %v4176_v24  ;;  %v4152_v13 = vld [vmem:[#allocation6 + $0x2718] sm:$0xff]  ;;  %v4150_v24 = vld [vmem:[#allocation6 + $0x2708] sm:$0xff] }
 0xbef   : > { %4184 = vmatpush.msrb.mxu0 %v4141_v3  ;;  %4230 = vmatpush.msrb.mxu2 %v4142_v41  ;;  %v4118_v3 = vld [vmem:[#allocation6 + $0x2608] sm:$0xff] }
 0xbf0   : > { %4207 = vmatpush.msrb.mxu1 %v4173_v19  ;;  %4253 = vmatpush.msrb.mxu3 %v4174_v29 }
 0xbf1   : > { %4185 = vmatpush.msrb.mxu0 %v4139_v7  ;;  %4231 = vmatpush.msrb.mxu2 %v4140_v9  ;;  %v4153_v7 = vld [vmem:[#allocation6 + $0x2720] sm:$0xff] }
 0xbf2   : > { %4208 = vmatpush.msrb.mxu1 %v4171_v61  ;;  %4254 = vmatpush.msrb.mxu3 %v4172_v43 }
 0xbf3   : > { %4186 = vmatpush.msrb.mxu0 %v4137_v12  ;;  %4232 = vmatpush.msrb.mxu2 %v4138_v14  ;;  %v4151_v12 = vld [vmem:[#allocation6 + $0x2710] sm:$0xff]  ;;  %v4149_v14 = vld [vmem:[#allocation6 + $0x2700] sm:$0xff] }
 0xbf4   : > { %4209 = vmatpush.msrb.mxu1 %v4169_v42  ;;  %4255 = vmatpush.msrb.mxu3 %v4170_v36 }
 0xbf5   : > { %4187 = vmatpush.msrb.mxu0 %v4135_v18  ;;  %4233 = vmatpush.msrb.mxu2 %v4136_v20  ;;  %v3369_v18 = vld [vmem:[#allocation8 + $0xa] sm:$0x3] }
 0xbf6   : > { %4210 = vmatpush.msrb.mxu1 %v4167_v15  ;;  %4256 = vmatpush.msrb.mxu3 %v4168_v38  ;;  %v3554_v20 = vperm.slane %v3369_v18, 0  ;;  %v3922_v15 = vld [vmem:[#allocation2 + $0x30] sm:$0x80] }
 0xbf7   : > { %4188 = vmatpush.msrb.mxu0 %v4133_v60  ;;  %4234 = vmatpush.msrb.mxu2 %v4134_v40 }
 0xbf8   : > { %4211 = vmatpush.msrb.mxu1 %v4165_v17  ;;  %4257 = vmatpush.msrb.mxu3 %v4166_v6  ;;  %v3999_v17 = vrot.slane %v3922_v15, 7  ;;  %v4300_v15 = vld [vmem:[#allocation6 + $0x2880] sm:$0xff] }
 0xbf9   : > { %4189 = vmatpush.msrb.mxu0 %v4131_v37  ;;  %4235 = vmatpush.msrb.mxu2 %v4132_v34 }
 0xbfa   : > { %4212 = vmatpush.msrb.mxu1 %v4163_v11  ;;  %4258 = vmatpush.msrb.mxu3 %v4164_v33 }
 0xbfb   : > { %4190 = vmatpush.msrb.mxu0 %v4129_v27  ;;  %4236 = vmatpush.msrb.mxu2 %v4130_v39  ;;  %v3555_v27 = vperm.slane %v3369_v18, 1  ;;  %v4307_v18 = vld [vmem:[#allocation6 + $0x28b8] sm:$0xff] }
 0xbfc   : > { %4213 = vmatpush.msrb.mxu1 %v4161_v25  ;;  %4259 = vmatpush.msrb.mxu3 %v4162_v52 }
 0xbfd   : > { %4191 = vmatpush.msrb.mxu0 %v4127_v2  ;;  %4237 = vmatpush.msrb.mxu2 %v4128_v26 }
 0xbfe   : > { %4214 = vmatpush.msrb.mxu1 %v4159_v32  ;;  %4260 = vmatpush.msrb.mxu3 %v4160_v53  ;;  %v4312_v32 = vld [vmem:[#allocation6 + $0x28e0] sm:$0xff] }
 0xbff   : > { %4192 = vmatpush.msrb.mxu0 %v4125_v45  ;;  %4238 = vmatpush.msrb.mxu2 %v4126_v46 }
 0xc00   : > { %4215 = vmatpush.msrb.mxu1 %v4157_v57  ;;  %4261 = vmatpush.msrb.mxu3 %v4158_v63  ;;  %v4311_v63 = vld [vmem:[#allocation6 + $0x28d8] sm:$0xff] }
 0xc01   : > { %4193 = vmatpush.msrb.mxu0 %v4123_v8  ;;  %4239 = vmatpush.msrb.mxu2 %v4124_v51  ;;  %v3923_v51 = vld [vmem:[#allocation2] sm:$0x80] }
 0xc02   : > { %4216 = vmatpush.msrb.mxu1 %v4155_v54  ;;  %4262 = vmatpush.msrb.mxu3 %v4156_v49  ;;  %v4346_v49 = vld [vmem:[#allocation6 + $0x29f0] sm:$0xff] }
 0xc03   : > { %4194 = vmatpush.msrb.mxu0 %v4121_v56  ;;  %4240 = vmatpush.msrb.mxu2 %v4122_v21  ;;  %v4313_v21 = vld [vmem:[#allocation6 + $0x28e8] sm:$0xff] }
 0xc04   : > { %4217 = vmatpush.msrb.mxu1 %v4153_v7  ;;  %4263 = vmatpush.msrb.mxu3 %v4154_v48 }
 0xc05   : > { %4195 = vmatpush.msrb.mxu0 %v4119_v55  ;;  %4241 = vmatpush.msrb.mxu2 %v4120_v30  ;;  %v4310_v30 = vld [vmem:[#allocation6 + $0x28d0] sm:$0xff] }
 0xc06   : > { %4218 = vmatpush.msrb.mxu1 %v4151_v12  ;;  %4264 = vmatpush.msrb.mxu3 %v4152_v13  ;;  %v4347_v12 = vld [vmem:[#allocation6 + $0x29f8] sm:$0xff]  ;;  %v4306_v13 = vld [vmem:[#allocation6 + $0x28b0] sm:$0xff] }
 0xc07   : > { %4196 = vmatpush.msrb.mxu0 %v4117_v0  ;;  %4242 = vmatpush.msrb.mxu2 %v4118_v3  ;;  %v4002_v0 = vrot.slane %v3923_v51, 7  ;;  %v4292_v51 = vld [vmem:[#allocation6 + $0x2840] sm:$0xff] }
 0xc08   : > { %4219 = vmatpush.msrb.mxu1 %v4149_v14  ;;  %4265 = vmatpush.msrb.mxu3 %v4150_v24  ;;  %v4344_v14 = vld [vmem:[#allocation6 + $0x29e0] sm:$0xff] }
 0xc1a   : > { %v8601_v58 = vpop.f32.mrf.mxu0  ;;  %v8603_v59 = vpop.f32.mrf.mxu1 }
 0xc1b   : > { %v3502_v19 = vadd.f32 %v8603_v59, %v8601_v58 }
 0xc1d   : > { %v3558_v40 = vadd.f32 %v3554_v20, %v3502_v19  ;;  %v4345_v19 = vld [vmem:[#allocation6 + $0x29e8] sm:$0xff] }
 0xc21   : > { %v8605_v5 = vpop.f32.mrf.mxu2  ;;  %v8607_v16 = vpop.f32.mrf.mxu3 }
 0xc22   : > { %v3548_v36 = vadd.f32 %v8607_v16, %v8605_v5 }
 0xc24   : > { %v8609_v22 = vpop.f32.mrf.mxu0  ;;  %v8611_v23 = vpop.f32.mrf.mxu1  ;;  %v3559_v26 = vadd.f32 %v3555_v27, %v3548_v36  ;;  %v4341_v36 = vld [vmem:[#allocation6 + $0x29c8] sm:$0xff] }
 0xc25   : > { %v3505_v39 = vadd.f32 %v8611_v23, %v8609_v22  ;;  %v4314_v22 = vld [vmem:[#allocation6 + $0x28f0] sm:$0xff]  ;;  %v4315_v23 = vld [vmem:[#allocation6 + $0x28f8] sm:$0xff] }
 0xc27   : > { %v3560_v6 = vadd.f32 %v3554_v20, %v3505_v39  ;;  %v4304_v20 = vld [vmem:[#allocation6 + $0x28a0] sm:$0xff]  ;;  %v4338_v39 = vld [vmem:[#allocation6 + $0x29b0] sm:$0xff] }
 0xc2b   : > { %v8613_v44 = vpop.f32.mrf.mxu2  ;;  %v8615_v35 = vpop.f32.mrf.mxu3 }
 0xc2c   : > { %v3551_v52 = vadd.f32 %v8615_v35, %v8613_v44 }
 0xc2e   : > { %v3646_v10 = vpop.f32.mrf.mxu0  ;;  %v3669_v50 = vpop.f32.mrf.mxu1  ;;  %v3561_v44 = vadd.f32 %v3555_v27, %v3551_v52  ;;  %v4330_v52 = vld [vmem:[#allocation6 + $0x2970] sm:$0xff] }
 0xc2f   : > { %v3670_v29 = vadd.f32 %v3669_v50, %v3646_v10 }
 0xc31   : > { %v3721_v42 = vadd.f32 %v3670_v29, %v3558_v40  ;;  %v4342_v29 = vld [vmem:[#allocation6 + $0x29d0] sm:$0xff]  ;;  %v4343_v40 = vld [vmem:[#allocation6 + $0x29d8] sm:$0xff] }
 0xc35   : > { %v3692_v1 = vpop.f32.mrf.mxu2  ;;  %v3715_v41 = vpop.f32.mrf.mxu3 }
 0xc36   : > { %v3716_v2 = vadd.f32 %v3715_v41, %v3692_v1  ;;  %v4308_v41 = vld [vmem:[#allocation6 + $0x28c0] sm:$0xff] }
 0xc38   : > { %v3649_v9 = vpop.f32.mrf.mxu0  ;;  %v3672_v62 = vpop.f32.mrf.mxu1  ;;  %v3722_v16 = vadd.f32 %v3716_v2, %v3559_v26  ;;  %v4301_v2 = vld [vmem:[#allocation6 + $0x2888] sm:$0xff]  ;;  %v4336_v26 = vld [vmem:[#allocation6 + $0x29a0] sm:$0xff] }
 0xc39   : > { %v3673_v58 = vadd.f32 %v3672_v62, %v3649_v9  ;;  %v4309_v62 = vld [vmem:[#allocation6 + $0x28c8] sm:$0xff] }
 0xc3b   : > { %v3723_v50 = vadd.f32 %v3673_v58, %v3560_v6  ;;  %v4339_v58 = vld [vmem:[#allocation6 + $0x29b8] sm:$0xff] }
 0xc3c   : > { %v4299_v6 = vld [vmem:[#allocation6 + $0x2878] sm:$0xff] }
 0xc3f   : > { %v3695_v60 = vpop.f32.mrf.mxu2  ;;  %v3718_v61 = vpop.f32.mrf.mxu3 }
 0xc40   : > { %v3719_v55 = vadd.f32 %v3718_v61, %v3695_v60  ;;  %v4305_v61 = vld [vmem:[#allocation6 + $0x28a8] sm:$0xff] }
 0xc42   : > { %v3833_v43 = vpop.f32.mrf.mxu0  ;;  %v3856_v37 = vpop.f32.mrf.mxu1  ;;  %v3724_v7 = vadd.f32 %v3719_v55, %v3561_v44  ;;  %v4291_v55 = vld [vmem:[#allocation6 + $0x2838] sm:$0xff]  ;;  %v4289_v44 = vld [vmem:[#allocation6 + $0x2828] sm:$0xff] }
 0xc43   : > { %v3857_v34 = vadd.f32 %v3856_v37, %v3833_v43  ;;  %v4302_v43 = vld [vmem:[#allocation6 + $0x2890] sm:$0xff]  ;;  %v4340_v37 = vld [vmem:[#allocation6 + $0x29c0] sm:$0xff] }
 0xc45   : > { %v3908_v38 = vadd.f32 %v3857_v34, %v3721_v42  ;;  %v4303_v34 = vld [vmem:[#allocation6 + $0x2898] sm:$0xff] }
 0xc47   : > { %v8624_v59 = vadd.f32 %v3908_v38, %v8280_v4 }
 0xc49   : > { %3916 = vst [vmem:[#allocation2 + $0x18] sm:$0xff] %v8624_v59  ;;  %v3879_v45 = vpop.f32.mrf.mxu2  ;;  %v3902_v11 = vpop.f32.mrf.mxu3  ;;  %v4000_v5 = vrot.slane %v8624_v59, 7 }
 0xc4a   : > { %v3903_v46 = vadd.f32 %v3902_v11, %v3879_v45  ;;  %v3836_v33 = vpop.f32.mrf.mxu0  ;;  %v3859_v10 = vpop.f32.mrf.mxu1  ;;  %v4337_v45 = vld [vmem:[#allocation6 + $0x29a8] sm:$0xff]  ;;  %v4296_v11 = vld [vmem:[#allocation6 + $0x2860] sm:$0xff] }
 0xc4b   : > { %v3860_v8 = vadd.f32 %v3859_v10, %v3836_v33  ;;  %v4001_v25 = vsel %vm475_vm0, %v3999_v17, %v4000_v5  ;;  %v4298_v17 = vld [vmem:[#allocation6 + $0x2870] sm:$0xff]  ;;  %v4335_v33 = vld [vmem:[#allocation6 + $0x2998] sm:$0xff] }
 0xc4c   : > { %v3909_v56 = vadd.f32 %v3903_v46, %v3722_v16  ;;  %4029 = vmatmul.f32.vlgmr.msra.gmra.mxu0 %v4001_v25  ;;  %4075 = vmatmul.f32.vlgmr.msra.gmra.mxu2 %v4001_v25  ;;  %v4334_v16 = vld [vmem:[#allocation6 + $0x2990] sm:$0xff]  ;;  %v4333_v25 = vld [vmem:[#allocation6 + $0x2988] sm:$0xff] }
 0xc4d   : > { %v3910_v53 = vadd.f32 %v3860_v8, %v3723_v50  ;;  %4368 = vmatpush.msra.mxu0 %v4314_v22  ;;  %4414 = vmatpush.msra.mxu2 %v4315_v23  ;;  %v4294_v23 = vld [vmem:[#allocation6 + $0x2850] sm:$0xff]  ;;  %v4332_v50 = vld [vmem:[#allocation6 + $0x2980] sm:$0xff]  ;;  %v4295_v8 = vld [vmem:[#allocation6 + $0x2858] sm:$0xff] }
 0xc4e   : > { %v8634_v57 = vadd.f32 %v3909_v56, %v8289_v28  ;;  %v4293_v56 = vld [vmem:[#allocation6 + $0x2848] sm:$0xff] }
 0xc4f   : > { %v8637_v54 = vadd.f32 %v3910_v53, %v8291_v31  ;;  %4369 = vmatpush.msra.mxu0 %v4312_v32  ;;  %4415 = vmatpush.msra.mxu2 %v4313_v21  ;;  %v4331_v32 = vld [vmem:[#allocation6 + $0x2978] sm:$0xff]  ;;  %v4290_v21 = vld [vmem:[#allocation6 + $0x2830] sm:$0xff]  ;;  %v4328_v53 = vld [vmem:[#allocation6 + $0x2960] sm:$0xff] }
 0xc50   : > { %3917 = vst [vmem:[#allocation2 + $0x10] sm:$0xff] %v8634_v57  ;;  %v4003_v35 = vrot.slane %v8634_v57, 7 }
 0xc51   : > { %3918 = vst [vmem:[#allocation2 + $0x8] sm:$0xff] %v8637_v54  ;;  %v3882_v3 = vpop.f32.mrf.mxu2  ;;  %v3905_v1 = vpop.f32.mrf.mxu3  ;;  %4370 = vmatpush.msra.mxu0 %v4310_v30  ;;  %4416 = vmatpush.msra.mxu2 %v4311_v63  ;;  %v4329_v30 = vld [vmem:[#allocation6 + $0x2968] sm:$0xff]  ;;  %v4288_v63 = vld [vmem:[#allocation6 + $0x2820] sm:$0xff] }
 0xc52   : > { %v3906_v48 = vadd.f32 %v3905_v1, %v3882_v3  ;;  %v4004_v9 = vsel %vm475_vm0, %v4002_v0, %v4003_v35  ;;  %v4326_v0 = vld [vmem:[#allocation6 + $0x2950] sm:$0xff]  ;;  %v4324_v1 = vld [vmem:[#allocation6 + $0x2940] sm:$0xff] }
 0xc53   : > { %4052 = vmatmul.f32.vlgmr.msra.gmra.mxu1 %v4004_v9  ;;  %4098 = vmatmul.f32.vlgmr.msra.gmra.mxu3 %v4004_v9  ;;  %v4286_v3 = vld [vmem:[#allocation6 + $0x2810] sm:$0xff] }
 0xc54   : > { %v3911_v24 = vadd.f32 %v3906_v48, %v3724_v7  ;;  %4371 = vmatpush.msra.mxu0 %v4308_v41  ;;  %4391 = vmatpush.msra.mxu1 %v4346_v49  ;;  %v4277_v41 = vld [vmem:[#allocation2 + $0x18] sm:$0xfe]  ;;  %v4325_v7 = vld [vmem:[#allocation6 + $0x2948] sm:$0xff]  ;;  %v4284_v48 = vld [vmem:[#allocation6 + $0x2800] sm:$0xff] }
 0xc55   : > { %4417 = vmatpush.msra.mxu2 %v4309_v62  ;;  %4437 = vmatpush.msra.mxu3 %v4347_v12  ;;  %v4287_v49 = vld [vmem:[#allocation6 + $0x2818] sm:$0xff]  ;;  %v4322_v9 = vld [vmem:[#allocation6 + $0x2930] sm:$0xff]  ;;  %v4285_v62 = vld [vmem:[#allocation6 + $0x2808] sm:$0xff] }
 0xc56   : > { %v8646_v60 = vadd.f32 %v3911_v24, %v8299_v47  ;;  %4372 = vmatpush.msra.mxu0 %v4306_v13  ;;  %4392 = vmatpush.msra.mxu1 %v4344_v14  ;;  %v4323_v12 = vld [vmem:[#allocation6 + $0x2938] sm:$0xff]  ;;  %v4354_v13 = vrot.slane %v4277_v41, 1  ;;  %v4355_v14 = vrot.slane %v8637_v54, 1  ;;  %v4320_v24 = vld [vmem:[#allocation6 + $0x2920] sm:$0xff] }
 0xc57   : > { %4418 = vmatpush.msra.mxu2 %v4307_v18  ;;  %4438 = vmatpush.msra.mxu3 %v4345_v19  ;;  %v4321_v18 = vld [vmem:[#allocation6 + $0x2928] sm:$0xff]  ;;  %v4501_v41 = vld [vmem:[#allocation6 + $0x2a60] sm:$0xff] }
 0xc58   : > { %3919 = vst [vmem:[#allocation2 + $0x20] sm:$0xff] %v8646_v60  ;;  %v3926_v42 = vld [vmem:[#allocation2 + $0x8] sm:$0x7f]  ;;  %4373 = vmatpush.msra.mxu0 %v4304_v20  ;;  %4393 = vmatpush.msra.mxu1 %v4342_v29  ;;  %v4356_v19 = vsel %vm831_vm1, %v4354_v13, %v4355_v14  ;;  %v4278_v20 = vld [vmem:[#allocation2 + $0x10] sm:$0xfe] }
 0xc59   : > { %v4005_v27 = vrot.slane %v3926_v42, 7  ;;  %4419 = vmatpush.msra.mxu2 %v4305_v61  ;;  %4439 = vmatpush.msra.mxu3 %v4343_v40  ;;  %v4519_v29 = vld [vmem:[#allocation6 + $0x2af0] sm:$0xff]  ;;  %v4520_v61 = vld [vmem:[#allocation6 + $0x2af8] sm:$0xff]  ;;  %v4517_v42 = vld [vmem:[#allocation6 + $0x2ae0] sm:$0xff] }
 0xc5a   : > { %4374 = vmatpush.msra.mxu0 %v4302_v43  ;;  %4394 = vmatpush.msra.mxu1 %v4340_v37  ;;  %v4318_v40 = vld [vmem:[#allocation6 + $0x2910] sm:$0xff]  ;;  %v4319_v43 = vld [vmem:[#allocation6 + $0x2918] sm:$0xff]  ;;  %v4281_v37 = vld [vmem:[#allocation2 + $0x28] sm:$0x1] }
 0xc5b   : > { %v4006_v38 = vsel %vm475_vm0, %v4000_v5, %v4005_v27  ;;  %4420 = vmatpush.msra.mxu2 %v4303_v34  ;;  %4440 = vmatpush.msra.mxu3 %v4341_v36  ;;  %v4297_v5 = vld [vmem:[#allocation6 + $0x2868] sm:$0xff]  ;;  %v4316_v36 = vld [vmem:[#allocation6 + $0x2900] sm:$0xff] }
 0xc5c   : > { %4032 = vmatmul.f32.gmra.mxu0 %v4006_v38  ;;  %4078 = vmatmul.f32.gmra.mxu2 %v4006_v38  ;;  %v4518_v34 = vld [vmem:[#allocation6 + $0x2ae8] sm:$0xff]  ;;  %v4360_v38 = vrot.slane %v4281_v37, 1  ;;  %v4531_v37 = vld [vmem:[#allocation6 + $0x2b50] sm:$0xff] }
 0xc5d   : > { %4375 = vmatpush.msra.mxu0 %v4300_v15  ;;  %4395 = vmatpush.msra.mxu1 %v4338_v39  ;;  %v4317_v27 = vld [vmem:[#allocation6 + $0x2908] sm:$0xff]  ;;  %v4357_v15 = vrot.slane %v4278_v20, 1  ;;  %v4358_v39 = vrot.slane %v8646_v60, 1  ;;  %v4495_v20 = vld [vmem:[#allocation6 + $0x2a30] sm:$0xff] }
 0xc5e   : > { %4421 = vmatpush.msra.mxu2 %v4301_v2  ;;  %4441 = vmatpush.msra.mxu3 %v4339_v58  ;;  %v4361_v58 = vsel %vm831_vm1, %v4355_v14, %v4360_v38  ;;  %v4538_v13 = vld [vmem:[#allocation6 + $0x2b88] sm:$0xff]  ;;  %v4497_v14 = vld [vmem:[#allocation6 + $0x2a40] sm:$0xff] }
 0xc5f   : > { %v3927_v46 = vld [vmem:[#allocation2 + $0x20] sm:$0x7f]  ;;  %4376 = vmatpush.msra.mxu0 %v4298_v17  ;;  %4396 = vmatpush.msra.mxu1 %v4336_v26  ;;  %v4359_v2 = vsel %vm831_vm1, %v4357_v15, %v4358_v39  ;;  %v4282_v17 = vld [vmem:[#allocation2 + $0x38] sm:$0x1] }
 0xc60   : > { %v4007_v10 = vrot.slane %v3927_v46, 7  ;;  %4422 = vmatpush.msra.mxu2 %v4299_v6  ;;  %4442 = vmatpush.msra.mxu3 %v4337_v45  ;;  %v4362_v26 = vrot.slane %v4282_v17, 1  ;;  %v4515_v45 = vld [vmem:[#allocation6 + $0x2ad0] sm:$0xff]  ;;  %v4492_v15 = vld [vmem:[#allocation6 + $0x2a18] sm:$0xff]  ;;  %v4489_v38 = vld [vmem:[#allocation6 + $0x2a00] sm:$0xff] }
 0xc61   : > { %4377 = vmatpush.msra.mxu0 %v4296_v11  ;;  %4397 = vmatpush.msra.mxu1 %v4334_v16  ;;  %v4516_v11 = vld [vmem:[#allocation6 + $0x2ad8] sm:$0xff]  ;;  %v4513_v16 = vld [vmem:[#allocation6 + $0x2ac0] sm:$0xff]  ;;  %v4551_v46 = vld [vmem:[#allocation6 + $0x2bf0] sm:$0xff] }
 0xc62   : > { %v4008_v22 = vsel %vm475_vm0, %v4003_v35, %v4007_v10  ;;  %4423 = vmatpush.msra.mxu2 %v4297_v5  ;;  %4443 = vmatpush.msra.mxu3 %v4335_v33  ;;  %v4327_v35 = vld [vmem:[#allocation6 + $0x2958] sm:$0xff]  ;;  %v4363_v6 = vsel %vm831_vm1, %v4358_v39, %v4362_v26  ;;  %v4514_v5 = vld [vmem:[#allocation6 + $0x2ac8] sm:$0xff]  ;;  %v4511_v10 = vld [vmem:[#allocation6 + $0x2ab0] sm:$0xff] }
 0xc63   : > { %4055 = vmatmul.f32.gmra.mxu1 %v4008_v22  ;;  %4101 = vmatmul.f32.gmra.mxu3 %v4008_v22  ;;  %v4552_v33 = vld [vmem:[#allocation6 + $0x2bf8] sm:$0xff]  ;;  %v4549_v22 = vld [vmem:[#allocation6 + $0x2be0] sm:$0xff]  ;;  %v4530_v39 = vld [vmem:[#allocation6 + $0x2b48] sm:$0xff] }
 0xc64   : > { %4197 = vmatmul.f32.vlgmr.msrb.gmra.mxu0 %v8624_v59  ;;  %4243 = vmatmul.f32.vlgmr.msrb.gmra.mxu2 %v8624_v59  ;;  %v4528_v17 = vld [vmem:[#allocation6 + $0x2b38] sm:$0xff]  ;;  %v4707_v26 = vld [vmem:[#allocation6 + $0x2cf0] sm:$0xff] }
 0xc65   : > { %4378 = vmatpush.msra.mxu0 %v4294_v23  ;;  %4398 = vmatpush.msra.mxu1 %v4332_v50  ;;  %v4512_v23 = vld [vmem:[#allocation6 + $0x2ab8] sm:$0xff]  ;;  %v4550_v50 = vld [vmem:[#allocation6 + $0x2be8] sm:$0xff] }
 0xc66   : > { %4424 = vmatpush.msra.mxu2 %v4295_v8  ;;  %4444 = vmatpush.msra.mxu3 %v4333_v25  ;;  %v4509_v8 = vld [vmem:[#allocation6 + $0x2aa0] sm:$0xff]  ;;  %v4547_v25 = vld [vmem:[#allocation6 + $0x2bd0] sm:$0xff] }
 0xc67   : > { %4379 = vmatpush.msra.mxu0 %v4292_v51  ;;  %4399 = vmatpush.msra.mxu1 %v4330_v52  ;;  %v4510_v51 = vld [vmem:[#allocation6 + $0x2aa8] sm:$0xff]  ;;  %v4548_v52 = vld [vmem:[#allocation6 + $0x2bd8] sm:$0xff] }
 0xc68   : > { %4425 = vmatpush.msra.mxu2 %v4293_v56  ;;  %4445 = vmatpush.msra.mxu3 %v4331_v32  ;;  %v4507_v56 = vld [vmem:[#allocation6 + $0x2a90] sm:$0xff]  ;;  %v4545_v32 = vld [vmem:[#allocation6 + $0x2bc0] sm:$0xff] }
 0xc69   : > { %4380 = vmatpush.msra.mxu0 %v4290_v21  ;;  %4400 = vmatpush.msra.mxu1 %v4328_v53  ;;  %v4508_v21 = vld [vmem:[#allocation6 + $0x2a98] sm:$0xff]  ;;  %v4546_v53 = vld [vmem:[#allocation6 + $0x2bc8] sm:$0xff] }
 0xc6a   : > { %4426 = vmatpush.msra.mxu2 %v4291_v55  ;;  %4446 = vmatpush.msra.mxu3 %v4329_v30  ;;  %v4505_v55 = vld [vmem:[#allocation6 + $0x2a80] sm:$0xff]  ;;  %v4543_v30 = vld [vmem:[#allocation6 + $0x2bb0] sm:$0xff] }
 0xc6b   : > { %4220 = vmatmul.f32.vlgmr.msrb.gmra.mxu1 %v8634_v57  ;;  %4266 = vmatmul.f32.vlgmr.msrb.gmra.mxu3 %v8634_v57 }
 0xc6c   : > { %4200 = vmatmul.f32.gmra.mxu0 %v8637_v54  ;;  %4246 = vmatmul.f32.gmra.mxu2 %v8637_v54 }
 0xc6d   : > { %4381 = vmatpush.msra.mxu0 %v4288_v63  ;;  %4401 = vmatpush.msra.mxu1 %v4326_v0  ;;  %v4506_v63 = vld [vmem:[#allocation6 + $0x2a88] sm:$0xff]  ;;  %v4544_v0 = vld [vmem:[#allocation6 + $0x2bb8] sm:$0xff] }
 0xc6e   : > { %4427 = vmatpush.msra.mxu2 %v4289_v44  ;;  %4447 = vmatpush.msra.mxu3 %v4327_v35  ;;  %v4503_v44 = vld [vmem:[#allocation6 + $0x2a70] sm:$0xff]  ;;  %v4541_v35 = vld [vmem:[#allocation6 + $0x2ba0] sm:$0xff] }
 0xc6f   : > { %4382 = vmatpush.msra.mxu0 %v4286_v3  ;;  %4402 = vmatpush.msra.mxu1 %v4324_v1  ;;  %v4504_v3 = vld [vmem:[#allocation6 + $0x2a78] sm:$0xff]  ;;  %v4542_v1 = vld [vmem:[#allocation6 + $0x2ba8] sm:$0xff] }
 0xc70   : > { %4428 = vmatpush.msra.mxu2 %v4287_v49  ;;  %4448 = vmatpush.msra.mxu3 %v4325_v7  ;;  %v4539_v49 = vld [vmem:[#allocation6 + $0x2b90] sm:$0xff]  ;;  %v4502_v7 = vld [vmem:[#allocation6 + $0x2a68] sm:$0xff] }
 0xc71   : > { %4383 = vmatpush.msra.mxu0 %v4284_v48  ;;  %4403 = vmatpush.msra.mxu1 %v4322_v9  ;;  %v4540_v48 = vld [vmem:[#allocation6 + $0x2b98] sm:$0xff]  ;;  %v4499_v9 = vld [vmem:[#allocation6 + $0x2a50] sm:$0xff] }
 0xc72   : > { %4429 = vmatpush.msra.mxu2 %v4285_v62  ;;  %4449 = vmatpush.msra.mxu3 %v4323_v12  ;;  %v4537_v62 = vld [vmem:[#allocation6 + $0x2b80] sm:$0xff]  ;;  %v4500_v12 = vld [vmem:[#allocation6 + $0x2a58] sm:$0xff] }
 0xc73   : > { %4223 = vmatmul.f32.gmra.mxu1 %v8646_v60  ;;  %4269 = vmatmul.f32.gmra.mxu3 %v8646_v60 }
 0xc74   : > { %4384 = vmatmul.f32.vlgmr.msra.gmra.mxu0 %v4356_v19  ;;  %4430 = vmatmul.f32.vlgmr.msra.gmra.mxu2 %v4356_v19  ;;  %v4536_v19 = vld [vmem:[#allocation6 + $0x2b78] sm:$0xff] }
 0xc75   : > { %4404 = vmatpush.msra.mxu1 %v4320_v24  ;;  %4450 = vmatpush.msra.mxu3 %v4321_v18  ;;  %v4535_v24 = vld [vmem:[#allocation6 + $0x2b70] sm:$0xff]  ;;  %v4498_v18 = vld [vmem:[#allocation6 + $0x2a48] sm:$0xff] }
 0xc76   : > { %4573 = vmatpush.msrb.mxu0 %v4519_v29  ;;  %4619 = vmatpush.msrb.mxu2 %v4520_v61  ;;  %v4533_v29 = vld [vmem:[#allocation6 + $0x2b60] sm:$0xff]  ;;  %v4496_v61 = vld [vmem:[#allocation6 + $0x2a38] sm:$0xff] }
 0xc77   : > { %4405 = vmatpush.msra.mxu1 %v4318_v40  ;;  %4451 = vmatpush.msra.mxu3 %v4319_v43  ;;  %v4534_v40 = vld [vmem:[#allocation6 + $0x2b68] sm:$0xff]  ;;  %v4493_v43 = vld [vmem:[#allocation6 + $0x2a20] sm:$0xff] }
 0xc78   : > { %4574 = vmatpush.msrb.mxu0 %v4517_v42  ;;  %4620 = vmatpush.msrb.mxu2 %v4518_v34  ;;  %v4494_v42 = vld [vmem:[#allocation6 + $0x2a28] sm:$0xff]  ;;  %v4532_v34 = vld [vmem:[#allocation6 + $0x2b58] sm:$0xff] }
 0xc79   : > { %4406 = vmatpush.msra.mxu1 %v4316_v36  ;;  %4452 = vmatpush.msra.mxu3 %v4317_v27  ;;  %v4491_v36 = vld [vmem:[#allocation6 + $0x2a10] sm:$0xff]  ;;  %v4529_v27 = vld [vmem:[#allocation6 + $0x2b40] sm:$0xff] }
 0xc7a   : > { %4575 = vmatpush.msrb.mxu0 %v4515_v45  ;;  %4621 = vmatpush.msrb.mxu2 %v4516_v11  ;;  %v4525_v45 = vld [vmem:[#allocation6 + $0x2b20] sm:$0xff]  ;;  %v4526_v11 = vld [vmem:[#allocation6 + $0x2b28] sm:$0xff] }
 0xc7b   : > { %4407 = vmatmul.f32.vlgmr.msra.gmra.mxu1 %v4359_v2  ;;  %4453 = vmatmul.f32.vlgmr.msra.gmra.mxu3 %v4359_v2  ;;  %v4527_v2 = vld [vmem:[#allocation6 + $0x2b30] sm:$0xff] }
 0xc7c   : > { %4387 = vmatmul.f32.gmra.mxu0 %v4361_v58  ;;  %4433 = vmatmul.f32.gmra.mxu2 %v4361_v58  ;;  %v4490_v58 = vld [vmem:[#allocation6 + $0x2a08] sm:$0xff] }
 0xc7d   : > { %4596 = vmatpush.msrb.mxu1 %v4551_v46  ;;  %4642 = vmatpush.msrb.mxu3 %v4552_v33  ;;  %v4706_v46 = vld [vmem:[#allocation6 + $0x2ce8] sm:$0xff]  ;;  %v4524_v33 = vld [vmem:[#allocation6 + $0x2b18] sm:$0xff] }
 0xc7e   : > { %4576 = vmatpush.msrb.mxu0 %v4513_v16  ;;  %4622 = vmatpush.msrb.mxu2 %v4514_v5  ;;  %v4705_v16 = vld [vmem:[#allocation6 + $0x2ce0] sm:$0xff]  ;;  %v4523_v5 = vld [vmem:[#allocation6 + $0x2b10] sm:$0xff] }
 0xc7f   : > { %4597 = vmatpush.msrb.mxu1 %v4549_v22  ;;  %4643 = vmatpush.msrb.mxu3 %v4550_v50  ;;  %v4704_v22 = vld [vmem:[#allocation6 + $0x2cd8] sm:$0xff]  ;;  %v4521_v50 = vld [vmem:[#allocation6 + $0x2b00] sm:$0xff] }
 0xc80   : > { %4577 = vmatpush.msrb.mxu0 %v4511_v10  ;;  %4623 = vmatpush.msrb.mxu2 %v4512_v23  ;;  %v4703_v10 = vld [vmem:[#allocation6 + $0x2cd0] sm:$0xff] }
 0xc81   : > { %4598 = vmatpush.msrb.mxu1 %v4547_v25  ;;  %4644 = vmatpush.msrb.mxu3 %v4548_v52  ;;  %v4701_v25 = vld [vmem:[#allocation6 + $0x2cc0] sm:$0xff]  ;;  %v4702_v52 = vld [vmem:[#allocation6 + $0x2cc8] sm:$0xff] }
 0xc82   : > { %4578 = vmatpush.msrb.mxu0 %v4509_v8  ;;  %4624 = vmatpush.msrb.mxu2 %v4510_v51  ;;  %v4522_v8 = vld [vmem:[#allocation6 + $0x2b08] sm:$0xff]  ;;  %v4739_v51 = vld [vmem:[#allocation6 + $0x2df0] sm:$0xff] }
 0xc83   : > { %4410 = vmatmul.f32.gmra.mxu1 %v4363_v6  ;;  %4456 = vmatmul.f32.gmra.mxu3 %v4363_v6  ;;  %v4708_v6 = vld [vmem:[#allocation6 + $0x2cf8] sm:$0xff] }
 0xc84   : > { %4579 = vmatpush.msrb.mxu0 %v4507_v56  ;;  %4599 = vmatpush.msrb.mxu1 %v4545_v32  ;;  %v4740_v56 = vld [vmem:[#allocation6 + $0x2df8] sm:$0xff]  ;;  %v4699_v32 = vld [vmem:[#allocation6 + $0x2cb0] sm:$0xff] }
 0xc85   : > { %4625 = vmatpush.msrb.mxu2 %v4508_v21  ;;  %4645 = vmatpush.msrb.mxu3 %v4546_v53  ;;  %v4737_v21 = vld [vmem:[#allocation6 + $0x2de0] sm:$0xff]  ;;  %v4700_v53 = vld [vmem:[#allocation6 + $0x2cb8] sm:$0xff] }
 0xc86   : > { %4580 = vmatpush.msrb.mxu0 %v4505_v55  ;;  %4600 = vmatpush.msrb.mxu1 %v4543_v30  ;;  %v4738_v55 = vld [vmem:[#allocation6 + $0x2de8] sm:$0xff]  ;;  %v4697_v30 = vld [vmem:[#allocation6 + $0x2ca0] sm:$0xff] }
 0xc87   : > { %4626 = vmatpush.msrb.mxu2 %v4506_v63  ;;  %4646 = vmatpush.msrb.mxu3 %v4544_v0  ;;  %v4735_v63 = vld [vmem:[#allocation6 + $0x2dd0] sm:$0xff]  ;;  %v4698_v0 = vld [vmem:[#allocation6 + $0x2ca8] sm:$0xff] }
 0xc88   : > { %4581 = vmatpush.msrb.mxu0 %v4503_v44  ;;  %4601 = vmatpush.msrb.mxu1 %v4541_v35  ;;  %v4736_v35 = vld [vmem:[#allocation6 + $0x2dd8] sm:$0xff] }
 0xc89   : > { %4627 = vmatpush.msrb.mxu2 %v4504_v3  ;;  %4647 = vmatpush.msrb.mxu3 %v4542_v1  ;;  %v4695_v1 = vld [vmem:[#allocation6 + $0x2c90] sm:$0xff] }
 0xc8a   : > { %4582 = vmatpush.msrb.mxu0 %v4501_v41  ;;  %4602 = vmatpush.msrb.mxu1 %v4539_v49  ;;  %v4733_v41 = vld [vmem:[#allocation6 + $0x2dc0] sm:$0xff]  ;;  %v4696_v49 = vld [vmem:[#allocation6 + $0x2c98] sm:$0xff] }
 0xc8b   : > { %4628 = vmatpush.msrb.mxu2 %v4502_v7  ;;  %4648 = vmatpush.msrb.mxu3 %v4540_v48  ;;  %v4734_v48 = vld [vmem:[#allocation6 + $0x2dc8] sm:$0xff] }
 0xc8c   : > { %4583 = vmatpush.msrb.mxu0 %v4499_v9  ;;  %4603 = vmatpush.msrb.mxu1 %v4537_v62  ;;  %v4693_v9 = vld [vmem:[#allocation6 + $0x2c80] sm:$0xff]  ;;  %v4731_v62 = vld [vmem:[#allocation6 + $0x2db0] sm:$0xff] }
 0xc8d   : > { %4629 = vmatpush.msrb.mxu2 %v4500_v12  ;;  %4649 = vmatpush.msrb.mxu3 %v4538_v13  ;;  %v4694_v12 = vld [vmem:[#allocation6 + $0x2c88] sm:$0xff]  ;;  %v4732_v13 = vld [vmem:[#allocation6 + $0x2db8] sm:$0xff] }
 0xc8e   : > { %4584 = vmatpush.msrb.mxu0 %v4497_v14  ;;  %4604 = vmatpush.msrb.mxu1 %v4535_v24  ;;  %v4691_v14 = vld [vmem:[#allocation6 + $0x2c70] sm:$0xff]  ;;  %v4729_v24 = vld [vmem:[#allocation6 + $0x2da0] sm:$0xff] }
 0xc8f   : > { %4630 = vmatpush.msrb.mxu2 %v4498_v18  ;;  %4650 = vmatpush.msrb.mxu3 %v4536_v19  ;;  %v4692_v18 = vld [vmem:[#allocation6 + $0x2c78] sm:$0xff]  ;;  %v4730_v19 = vld [vmem:[#allocation6 + $0x2da8] sm:$0xff] }
 0xc90   : > { %4585 = vmatpush.msrb.mxu0 %v4495_v20  ;;  %4605 = vmatpush.msrb.mxu1 %v4533_v29  ;;  %v4689_v29 = vld [vmem:[#allocation6 + $0x2c60] sm:$0xff] }
 0xc91   : > { %4631 = vmatpush.msrb.mxu2 %v4496_v61  ;;  %4651 = vmatpush.msrb.mxu3 %v4534_v40  ;;  %v4727_v61 = vld [vmem:[#allocation6 + $0x2d90] sm:$0xff]  ;;  %v4690_v40 = vld [vmem:[#allocation6 + $0x2c68] sm:$0xff] }
 0xc92   : > { %4586 = vmatpush.msrb.mxu0 %v4493_v43  ;;  %4606 = vmatpush.msrb.mxu1 %v4531_v37  ;;  %v4728_v37 = vld [vmem:[#allocation6 + $0x2d98] sm:$0xff] }
 0xc93   : > { %4632 = vmatpush.msrb.mxu2 %v4494_v42  ;;  %4652 = vmatpush.msrb.mxu3 %v4532_v34  ;;  %v4687_v34 = vld [vmem:[#allocation6 + $0x2c50] sm:$0xff] }
 0xc94   : > { %4587 = vmatpush.msrb.mxu0 %v4491_v36  ;;  %4607 = vmatpush.msrb.mxu1 %v4529_v27  ;;  %v4725_v36 = vld [vmem:[#allocation6 + $0x2d80] sm:$0xff]  ;;  %v4688_v27 = vld [vmem:[#allocation6 + $0x2c58] sm:$0xff] }
 0xc95   : > { %4633 = vmatpush.msrb.mxu2 %v4492_v15  ;;  %4653 = vmatpush.msrb.mxu3 %v4530_v39  ;;  %v4726_v15 = vld [vmem:[#allocation6 + $0x2d88] sm:$0xff] }
 0xc96   : > { %4588 = vmatpush.msrb.mxu0 %v4489_v38  ;;  %4608 = vmatpush.msrb.mxu1 %v4527_v2  ;;  %v4685_v38 = vld [vmem:[#allocation6 + $0x2c40] sm:$0xff]  ;;  %v4723_v2 = vld [vmem:[#allocation6 + $0x2d70] sm:$0xff] }
 0xc97   : > { %4634 = vmatpush.msrb.mxu2 %v4490_v58  ;;  %4654 = vmatpush.msrb.mxu3 %v4528_v17  ;;  %v4686_v58 = vld [vmem:[#allocation6 + $0x2c48] sm:$0xff]  ;;  %v4724_v17 = vld [vmem:[#allocation6 + $0x2d78] sm:$0xff] }
 0xc98   : > { %4741 = vmatpush.msra.mxu0 %v4707_v26  ;;  %4609 = vmatpush.msrb.mxu1 %v4525_v45  ;;  %v4683_v26 = vld [vmem:[#allocation6 + $0x2c30] sm:$0xff]  ;;  %v4684_v45 = vld [vmem:[#allocation6 + $0x2c38] sm:$0xff] }
 0xc99   : > { %4787 = vmatpush.msra.mxu2 %v4708_v6  ;;  %4655 = vmatpush.msrb.mxu3 %v4526_v11  ;;  %v4721_v6 = vld [vmem:[#allocation6 + $0x2d60] sm:$0xff]  ;;  %v4722_v11 = vld [vmem:[#allocation6 + $0x2d68] sm:$0xff] }
 0xc9a   : > { %4742 = vmatpush.msra.mxu0 %v4705_v16  ;;  %4610 = vmatpush.msrb.mxu1 %v4523_v5  ;;  %v4719_v5 = vld [vmem:[#allocation6 + $0x2d50] sm:$0xff] }
 0xc9b   : > { %4788 = vmatpush.msra.mxu2 %v4706_v46  ;;  %4656 = vmatpush.msrb.mxu3 %v4524_v33  ;;  %v4681_v46 = vld [vmem:[#allocation6 + $0x2c20] sm:$0xff]  ;;  %v4682_v33 = vld [vmem:[#allocation6 + $0x2c28] sm:$0xff] }
 0xc9c   : > { %4743 = vmatpush.msra.mxu0 %v4703_v10  ;;  %4611 = vmatpush.msrb.mxu1 %v4521_v50  ;;  %v4720_v10 = vld [vmem:[#allocation6 + $0x2d58] sm:$0xff] }
 0xc9d   : > { %4789 = vmatpush.msra.mxu2 %v4704_v22  ;;  %4657 = vmatpush.msrb.mxu3 %v4522_v8  ;;  %v4679_v8 = vld [vmem:[#allocation6 + $0x2c10] sm:$0xff] }
 0xc9e   : > { %4744 = vmatpush.msra.mxu0 %v4701_v25  ;;  %4764 = vmatpush.msra.mxu1 %v4739_v51  ;;  %v4717_v25 = vld [vmem:[#allocation6 + $0x2d40] sm:$0xff]  ;;  %v4680_v51 = vld [vmem:[#allocation6 + $0x2c18] sm:$0xff] }
 0xc9f   : > { %4790 = vmatpush.msra.mxu2 %v4702_v52  ;;  %4810 = vmatpush.msra.mxu3 %v4740_v56  ;;  %v4718_v52 = vld [vmem:[#allocation6 + $0x2d48] sm:$0xff]  ;;  %v4677_v56 = vld [vmem:[#allocation6 + $0x2c00] sm:$0xff] }
 0xca0   : > { %4745 = vmatpush.msra.mxu0 %v4699_v32  ;;  %4765 = vmatpush.msra.mxu1 %v4737_v21  ;;  %v4715_v32 = vld [vmem:[#allocation6 + $0x2d30] sm:$0xff]  ;;  %v4678_v21 = vld [vmem:[#allocation6 + $0x2c08] sm:$0xff] }
 0xca1   : > { %4791 = vmatpush.msra.mxu2 %v4700_v53  ;;  %4811 = vmatpush.msra.mxu3 %v4738_v55  ;;  %v4716_v53 = vld [vmem:[#allocation6 + $0x2d38] sm:$0xff] }
 0xca2   : > { %4746 = vmatpush.msra.mxu0 %v4697_v30  ;;  %4766 = vmatpush.msra.mxu1 %v4735_v63  ;;  %v4713_v30 = vld [vmem:[#allocation6 + $0x2d20] sm:$0xff]  ;;  %v4714_v63 = vld [vmem:[#allocation6 + $0x2d28] sm:$0xff] }
 0xca3   : > { %4792 = vmatpush.msra.mxu2 %v4698_v0  ;;  %4812 = vmatpush.msra.mxu3 %v4736_v35  ;;  %v4711_v35 = vld [vmem:[#allocation6 + $0x2d10] sm:$0xff] }
 0xca4   : > { %4747 = vmatpush.msra.mxu0 %v4695_v1  ;;  %4767 = vmatpush.msra.mxu1 %v4733_v41  ;;  %v4712_v1 = vld [vmem:[#allocation6 + $0x2d18] sm:$0xff]  ;;  %v4709_v41 = vld [vmem:[#allocation6 + $0x2d00] sm:$0xff] }
 0xca5   : > { %4793 = vmatpush.msra.mxu2 %v4696_v49  ;;  %4813 = vmatpush.msra.mxu3 %v4734_v48  ;;  %v3921_v49 = vld [vmem:[#allocation8 + $0xc] sm:$0x3] }
 0xca6   : > { %4748 = vmatpush.msra.mxu0 %v4693_v9  ;;  %4768 = vmatpush.msra.mxu1 %v4731_v62  ;;  %v4710_v9 = vld [vmem:[#allocation6 + $0x2d08] sm:$0xff] }
 0xca7   : > { %4794 = vmatpush.msra.mxu2 %v4694_v12  ;;  %4814 = vmatpush.msra.mxu3 %v4732_v13  ;;  %v4106_v13 = vperm.slane %v3921_v49, 0 }
 0xca8   : > { %4749 = vmatpush.msra.mxu0 %v4691_v14  ;;  %4769 = vmatpush.msra.mxu1 %v4729_v24 }
 0xca9   : > { %4795 = vmatpush.msra.mxu2 %v4692_v18  ;;  %4815 = vmatpush.msra.mxu3 %v4730_v19 }
 0xcaa   : > { %4750 = vmatpush.msra.mxu0 %v4689_v29  ;;  %4770 = vmatpush.msra.mxu1 %v4727_v61 }
 0xcab   : > { %4796 = vmatpush.msra.mxu2 %v4690_v40  ;;  %4816 = vmatpush.msra.mxu3 %v4728_v37  ;;  %v4107_v40 = vperm.slane %v3921_v49, 1 }
 0xcac   : > { %4751 = vmatpush.msra.mxu0 %v4687_v34  ;;  %4771 = vmatpush.msra.mxu1 %v4725_v36 }
 0xcad   : > { %4797 = vmatpush.msra.mxu2 %v4688_v27  ;;  %4817 = vmatpush.msra.mxu3 %v4726_v15 }
 0xcae   : > { %4752 = vmatpush.msra.mxu0 %v4685_v38  ;;  %4772 = vmatpush.msra.mxu1 %v4723_v2 }
 0xcaf   : > { %4798 = vmatpush.msra.mxu2 %v4686_v58  ;;  %4818 = vmatpush.msra.mxu3 %v4724_v17 }
 0xcb0   : > { %4753 = vmatpush.msra.mxu0 %v4683_v26  ;;  %4773 = vmatpush.msra.mxu1 %v4721_v6 }
 0xcb1   : > { %4799 = vmatpush.msra.mxu2 %v4684_v45  ;;  %4819 = vmatpush.msra.mxu3 %v4722_v11 }
 0xcb2   : > { %4754 = vmatpush.msra.mxu0 %v4681_v46  ;;  %4774 = vmatpush.msra.mxu1 %v4719_v5 }
 0xcb3   : > { %4800 = vmatpush.msra.mxu2 %v4682_v33  ;;  %4820 = vmatpush.msra.mxu3 %v4720_v10  ;;  %v4874_v10 = vld [vmem:[#allocation6 + $0x2ef0] sm:$0xff] }
 0xcb4   : > { %4755 = vmatpush.msra.mxu0 %v4679_v8  ;;  %4775 = vmatpush.msra.mxu1 %v4717_v25 }
 0xcb5   : > { %4801 = vmatpush.msra.mxu2 %v4680_v51  ;;  %4821 = vmatpush.msra.mxu3 %v4718_v52 }
 0xcb6   : > { %4756 = vmatpush.msra.mxu0 %v4677_v56  ;;  %4776 = vmatpush.msra.mxu1 %v4715_v32  ;;  %v4872_v56 = vld [vmem:[#allocation6 + $0x2ee0] sm:$0xff]  ;;  %v4873_v32 = vld [vmem:[#allocation6 + $0x2ee8] sm:$0xff] }
 0xcb7   : > { %4802 = vmatpush.msra.mxu2 %v4678_v21  ;;  %4822 = vmatpush.msra.mxu3 %v4716_v53 }
 0xcb8   : > { %4777 = vmatpush.msra.mxu1 %v4713_v30  ;;  %v4871_v30 = vld [vmem:[#allocation6 + $0x2ed8] sm:$0xff] }
 0xcb9   : > { %4823 = vmatpush.msra.mxu3 %v4714_v63 }
 0xcba   : > { %4778 = vmatpush.msra.mxu1 %v4711_v35 }
 0xcbb   : > { %4824 = vmatpush.msra.mxu3 %v4712_v1 }
 0xcbc   : > { %4779 = vmatpush.msra.mxu1 %v4709_v41 }
 0xcbd   : > { %4825 = vmatpush.msra.mxu3 %v4710_v9  ;;  %v4906_v9 = vld [vmem:[#allocation6 + $0x2ff0] sm:$0xff] }
 0xcc9   : > { %v8669_v23 = vpop.f32.mrf.mxu0 }
 0xccf   : > { %v8671_v44 = vpop.f32.mrf.mxu2 }
 0xcd0   : > { %v8673_v3 = vpop.f32.mrf.mxu1 }
 0xcd1   : > { %v4054_v12 = vadd.f32 %v8673_v3, %v8669_v23  ;;  %v4482_v23 = vld [vmem:[#allocation2 + $0x30] sm:$0x80] }
 0xcd2   : > { %v4559_v17 = vrot.slane %v4482_v23, 7  ;;  %v4900_v23 = vld [vmem:[#allocation6 + $0x2fc0] sm:$0xff] }
 0xcd3   : > { %v4110_v19 = vadd.f32 %v4106_v13, %v4054_v12  ;;  %v4869_v12 = vld [vmem:[#allocation6 + $0x2ec8] sm:$0xff] }
 0xcd6   : > { %v8677_v20 = vpop.f32.mrf.mxu3 }
 0xcd7   : > { %v4100_v61 = vadd.f32 %v8677_v20, %v8671_v44 }
 0xcd9   : > { %v8675_v7 = vpop.f32.mrf.mxu0  ;;  %v4111_v38 = vadd.f32 %v4107_v40, %v4100_v61 }
 0xcdf   : > { %v8679_v43 = vpop.f32.mrf.mxu2 }
 0xce0   : > { %v8681_v42 = vpop.f32.mrf.mxu1 }
 0xce1   : > { %v8683_v39 = vpop.f32.mrf.mxu0  ;;  %v4057_v36 = vadd.f32 %v8681_v42, %v8675_v7 }
 0xce3   : > { %v4112_v26 = vadd.f32 %v4106_v13, %v4057_v36  ;;  %v4907_v13 = vld [vmem:[#allocation6 + $0x2ff8] sm:$0xff] }
 0xce4   : > { %v4903_v36 = vld [vmem:[#allocation6 + $0x2fd8] sm:$0xff] }
 0xce6   : > { %v8685_v16 = vpop.f32.mrf.mxu3 }
 0xce7   : > { %v4244_v50 = vpop.f32.mrf.mxu2  ;;  %v4103_v42 = vadd.f32 %v8685_v16, %v8679_v43 }
 0xce8   : > { %v4221_v22 = vpop.f32.mrf.mxu1 }
 0xce9   : > { %v4201_v55 = vpop.f32.mrf.mxu0  ;;  %v4222_v14 = vadd.f32 %v4221_v22, %v8683_v39  ;;  %v4875_v22 = vld [vmem:[#allocation6 + $0x2ef8] sm:$0xff]  ;;  %v4113_v16 = vadd.f32 %v4107_v40, %v4103_v42  ;;  %v4864_v40 = vld [vmem:[#allocation6 + $0x2ea0] sm:$0xff] }
 0xcea   : > { %v4859_v42 = vld [vmem:[#allocation6 + $0x2e78] sm:$0xff] }
 0xceb   : > { %v4273_v37 = vadd.f32 %v4222_v14, %v4110_v19  ;;  %v4867_v19 = vld [vmem:[#allocation6 + $0x2eb8] sm:$0xff] }
 0xcee   : > { %v4267_v0 = vpop.f32.mrf.mxu3 }
 0xcef   : > { %v4247_v62 = vpop.f32.mrf.mxu2  ;;  %v4268_v27 = vadd.f32 %v4267_v0, %v4244_v50  ;;  %v4483_v50 = vld [vmem:[#allocation2] sm:$0x80] }
 0xcf0   : > { %v4224_v48 = vpop.f32.mrf.mxu1  ;;  %v4562_v43 = vrot.slane %v4483_v50, 7  ;;  %v4895_v50 = vld [vmem:[#allocation6 + $0x2f98] sm:$0xff] }
 0xcf1   : > { %v4385_v24 = vpop.f32.mrf.mxu0  ;;  %v4225_v2 = vadd.f32 %v4224_v48, %v4201_v55  ;;  %v4274_v6 = vadd.f32 %v4268_v27, %v4111_v38  ;;  %v4870_v55 = vld [vmem:[#allocation6 + $0x2ed0] sm:$0xff]  ;;  %v4868_v48 = vld [vmem:[#allocation6 + $0x2ec0] sm:$0xff]  ;;  %v4901_v38 = vld [vmem:[#allocation6 + $0x2fc8] sm:$0xff] }
 0xcf3   : > { %v4275_v46 = vadd.f32 %v4225_v2, %v4112_v26  ;;  %v4861_v26 = vld [vmem:[#allocation6 + $0x2e88] sm:$0xff] }
 0xcf6   : > { %v4270_v18 = vpop.f32.mrf.mxu3 }
 0xcf7   : > { %v4431_v3 = vpop.f32.mrf.mxu2  ;;  %v4271_v25 = vadd.f32 %v4270_v18, %v4247_v62  ;;  %v4904_v18 = vld [vmem:[#allocation6 + $0x2fe0] sm:$0xff] }
 0xcf8   : > { %v4408_v29 = vpop.f32.mrf.mxu1 }
 0xcf9   : > { %v4409_v34 = vadd.f32 %v4408_v29, %v4385_v24  ;;  %v4388_v20 = vpop.f32.mrf.mxu0  ;;  %v4276_v1 = vadd.f32 %v4271_v25, %v4113_v16  ;;  %v4866_v24 = vld [vmem:[#allocation6 + $0x2eb0] sm:$0xff]  ;;  %v4905_v29 = vld [vmem:[#allocation6 + $0x2fe8] sm:$0xff]  ;;  %v4892_v25 = vld [vmem:[#allocation6 + $0x2f80] sm:$0xff] }
 0xcfa   : > { %v4853_v16 = vld [vmem:[#allocation6 + $0x2e48] sm:$0xff] }
 0xcfb   : > { %v4460_v15 = vadd.f32 %v4409_v34, %v4273_v37  ;;  %v4902_v37 = vld [vmem:[#allocation6 + $0x2fd0] sm:$0xff]  ;;  %v4865_v34 = vld [vmem:[#allocation6 + $0x2ea8] sm:$0xff] }
 0xcfd   : > { %vm4464_vm9 = vcmp.gt.f32.partialorder %v4460_v15, 0.0  ;;  %v4468_v39 = vmul.f32 0.2, %v4460_v15 }
 0xcfe   : > { %v4454_v58 = vpop.f32.mrf.mxu3 }
 0xcff   : > { %v8694_v45 = vsel %vm4464_vm9, %v4460_v15, %v4468_v39  ;;  %v4455_v44 = vadd.f32 %v4454_v58, %v4431_v3  ;;  %v4434_v63 = vpop.f32.mrf.mxu2  ;;  %v4862_v15 = vld [vmem:[#allocation6 + $0x2e90] sm:$0xff]  ;;  %v4863_v3 = vld [vmem:[#allocation6 + $0x2e98] sm:$0xff]  ;;  %v4860_v39 = vld [vmem:[#allocation6 + $0x2e80] sm:$0xff] }
 0xd00   : > { %4476 = vst [vmem:[#allocation2 + $0x18] sm:$0xff] %v8694_v45  ;;  %v4411_v11 = vpop.f32.mrf.mxu1  ;;  %v4560_v7 = vrot.slane %v8694_v45, 7  ;;  %v4898_v58 = vld [vmem:[#allocation6 + $0x2fb0] sm:$0xff] }
 0xd01   : > { %v4461_v5 = vadd.f32 %v4455_v44, %v4274_v6  ;;  %v4412_v33 = vadd.f32 %v4411_v11, %v4388_v20  ;;  %v4899_v6 = vld [vmem:[#allocation6 + $0x2fb8] sm:$0xff]  ;;  %v4858_v20 = vld [vmem:[#allocation6 + $0x2e70] sm:$0xff]  ;;  %v4896_v11 = vld [vmem:[#allocation6 + $0x2fa0] sm:$0xff] }
 0xd02   : > { %v4561_v8 = vsel %vm475_vm0, %v4559_v17, %v4560_v7 }
 0xd03   : > { %vm4465_vm10 = vcmp.gt.f32.partialorder %v4461_v5, 0.0  ;;  %v4469_v51 = vmul.f32 0.2, %v4461_v5  ;;  %v4462_v52 = vadd.f32 %v4412_v33, %v4275_v46  ;;  %4589 = vmatmul.f32.vlgmr.msrb.gmra.mxu0 %v4561_v8  ;;  %4635 = vmatmul.f32.vlgmr.msrb.gmra.mxu2 %v4561_v8  ;;  %v4897_v46 = vld [vmem:[#allocation6 + $0x2fa8] sm:$0xff]  ;;  %v4894_v33 = vld [vmem:[#allocation6 + $0x2f90] sm:$0xff] }
 0xd04   : > { %4928 = vmatpush.msrb.mxu0 %v4874_v10  ;;  %4974 = vmatpush.msrb.mxu2 %v4875_v22  ;;  %v4857_v22 = vld [vmem:[#allocation6 + $0x2e68] sm:$0xff] }
 0xd05   : > { %v8703_v21 = vsel %vm4465_vm10, %v4461_v5, %v4469_v51  ;;  %vm4466_vm14 = vcmp.gt.f32.partialorder %v4462_v52, 0.0  ;;  %v4470_v53 = vmul.f32 0.2, %v4462_v52  ;;  %v4856_v5 = vld [vmem:[#allocation6 + $0x2e60] sm:$0xff] }
 0xd06   : > { %4477 = vst [vmem:[#allocation2 + $0x10] sm:$0xff] %v8703_v21  ;;  %v4457_v0 = vpop.f32.mrf.mxu3  ;;  %4929 = vmatpush.msrb.mxu0 %v4872_v56  ;;  %4975 = vmatpush.msrb.mxu2 %v4873_v32  ;;  %v4563_v35 = vrot.slane %v8703_v21, 7  ;;  %v4893_v56 = vld [vmem:[#allocation6 + $0x2f88] sm:$0xff]  ;;  %v4852_v32 = vld [vmem:[#allocation6 + $0x2e40] sm:$0xff] }
 0xd07   : > { %v8707_v41 = vsel %vm4466_vm14, %v4462_v52, %v4470_v53  ;;  %v4458_v49 = vadd.f32 %v4457_v0, %v4434_v63  ;;  %v4855_v52 = vld [vmem:[#allocation6 + $0x2e58] sm:$0xff]  ;;  %v4889_v0 = vld [vmem:[#allocation6 + $0x2f68] sm:$0xff] }
 0xd08   : > { %4478 = vst [vmem:[#allocation2 + $0x8] sm:$0xff] %v8707_v41  ;;  %4930 = vmatpush.msrb.mxu0 %v4870_v55  ;;  %4976 = vmatpush.msrb.mxu2 %v4871_v30  ;;  %v4564_v62 = vsel %vm475_vm0, %v4562_v43, %v4563_v35  ;;  %v4890_v43 = vld [vmem:[#allocation6 + $0x2f70] sm:$0xff]  ;;  %v4891_v53 = vld [vmem:[#allocation6 + $0x2f78] sm:$0xff]  ;;  %v4888_v30 = vld [vmem:[#allocation6 + $0x2f60] sm:$0xff] }
 0xd09   : > { %v4463_v14 = vadd.f32 %v4458_v49, %v4276_v1  ;;  %4612 = vmatmul.f32.vlgmr.msrb.gmra.mxu1 %v4564_v62  ;;  %4658 = vmatmul.f32.vlgmr.msrb.gmra.mxu3 %v4564_v62  ;;  %v4850_v55 = vld [vmem:[#allocation6 + $0x2e30] sm:$0xff]  ;;  %v4851_v63 = vld [vmem:[#allocation6 + $0x2e38] sm:$0xff] }
 0xd0a   : > { %4931 = vmatpush.msrb.mxu0 %v4868_v48  ;;  %4951 = vmatpush.msrb.mxu1 %v4906_v9  ;;  %v4886_v1 = vld [vmem:[#allocation6 + $0x2f50] sm:$0xff]  ;;  %v4887_v49 = vld [vmem:[#allocation6 + $0x2f58] sm:$0xff]  ;;  %v4884_v9 = vld [vmem:[#allocation6 + $0x2f40] sm:$0xff] }
 0xd0b   : > { %vm4467_vm15 = vcmp.gt.f32.partialorder %v4463_v14, 0.0  ;;  %v4471_v61 = vmul.f32 0.2, %v4463_v14  ;;  %4977 = vmatpush.msrb.mxu2 %v4869_v12  ;;  %4997 = vmatpush.msrb.mxu3 %v4907_v13  ;;  %v4846_v48 = vld [vmem:[#allocation6 + $0x2e10] sm:$0xff]  ;;  %v4847_v62 = vld [vmem:[#allocation6 + $0x2e18] sm:$0xff]  ;;  %v4885_v12 = vld [vmem:[#allocation6 + $0x2f48] sm:$0xff] }
 0xd0c   : > { %4932 = vmatpush.msrb.mxu0 %v4866_v24  ;;  %4952 = vmatpush.msrb.mxu1 %v4904_v18  ;;  %v4837_v13 = vld [vmem:[#allocation2 + $0x18] sm:$0xfe]  ;;  %v4882_v24 = vld [vmem:[#allocation6 + $0x2f30] sm:$0xff] }
 0xd0d   : > { %v8713_v27 = vsel %vm4467_vm15, %v4463_v14, %v4471_v61  ;;  %4978 = vmatpush.msrb.mxu2 %v4867_v19  ;;  %4998 = vmatpush.msrb.mxu3 %v4905_v29  ;;  %v4844_v14 = vld [vmem:[#allocation6 + $0x2e00] sm:$0xff]  ;;  %v4883_v18 = vld [vmem:[#allocation6 + $0x2f38] sm:$0xff]  ;;  %v4914_v19 = vrot.slane %v4837_v13, 1  ;;  %v4915_v29 = vrot.slane %v8707_v41, 1 }
 0xd0e   : > { %4479 = vst [vmem:[#allocation2 + $0x20] sm:$0xff] %v8713_v27  ;;  %4933 = vmatpush.msrb.mxu0 %v4864_v40  ;;  %4953 = vmatpush.msrb.mxu1 %v4902_v37  ;;  %v4880_v61 = vld [vmem:[#allocation6 + $0x2f20] sm:$0xff]  ;;  %v4881_v40 = vld [vmem:[#allocation6 + $0x2f28] sm:$0xff]  ;;  %v4878_v37 = vld [vmem:[#allocation6 + $0x2f10] sm:$0xff] }
 0xd0f   : > { %v4486_v2 = vld [vmem:[#allocation2 + $0x8] sm:$0x7f]  ;;  %4979 = vmatpush.msrb.mxu2 %v4865_v34  ;;  %4999 = vmatpush.msrb.mxu3 %v4903_v36  ;;  %v4879_v34 = vld [vmem:[#allocation6 + $0x2f18] sm:$0xff]  ;;  %v4838_v36 = vld [vmem:[#allocation2 + $0x10] sm:$0xfe] }
 0xd10   : > { %v4565_v17 = vrot.slane %v4486_v2, 7  ;;  %4934 = vmatpush.msrb.mxu0 %v4862_v15  ;;  %4954 = vmatpush.msrb.mxu1 %v4900_v23  ;;  %v4916_v15 = vsel %vm831_vm1, %v4914_v19, %v4915_v29  ;;  %v4877_v23 = vld [vmem:[#allocation6 + $0x2f08] sm:$0xff]  ;;  %v4918_v2 = vrot.slane %v8713_v27, 1 }
 0xd11   : > { %4980 = vmatpush.msrb.mxu2 %v4863_v3  ;;  %5000 = vmatpush.msrb.mxu3 %v4901_v38  ;;  %v4841_v3 = vld [vmem:[#allocation2 + $0x28] sm:$0x1]  ;;  %v4917_v38 = vrot.slane %v4838_v36, 1 }
 0xd12   : > { %v4566_v44 = vsel %vm475_vm0, %v4560_v7, %v4565_v17  ;;  %4935 = vmatpush.msrb.mxu0 %v4860_v39  ;;  %4955 = vmatpush.msrb.mxu1 %v4898_v58  ;;  %v4854_v7 = vld [vmem:[#allocation6 + $0x2e50] sm:$0xff]  ;;  %v4920_v39 = vrot.slane %v4841_v3, 1  ;;  %v4842_v17 = vld [vmem:[#allocation2 + $0x38] sm:$0x1] }
 0xd13   : > { %4592 = vmatmul.f32.gmra.mxu0 %v4566_v44  ;;  %4638 = vmatmul.f32.gmra.mxu2 %v4566_v44  ;;  %v4919_v58 = vsel %vm831_vm1, %v4917_v38, %v4918_v2 }
 0xd14   : > { %4981 = vmatpush.msrb.mxu2 %v4861_v26  ;;  %5001 = vmatpush.msrb.mxu3 %v4899_v6  ;;  %v4921_v26 = vsel %vm831_vm1, %v4915_v29, %v4920_v39  ;;  %v4922_v6 = vrot.slane %v4842_v17, 1 }
 0xd15   : > { %v4487_v10 = vld [vmem:[#allocation2 + $0x20] sm:$0x7f]  ;;  %4936 = vmatpush.msrb.mxu0 %v4858_v20  ;;  %4956 = vmatpush.msrb.mxu1 %v4896_v11 }
 0xd16   : > { %v4567_v8 = vrot.slane %v4487_v10, 7  ;;  %4982 = vmatpush.msrb.mxu2 %v4859_v42  ;;  %5002 = vmatpush.msrb.mxu3 %v4897_v46  ;;  %v4923_v44 = vsel %vm831_vm1, %v4918_v2, %v4922_v6 }
 0xd17   : > { %4937 = vmatpush.msrb.mxu0 %v4856_v5  ;;  %4957 = vmatpush.msrb.mxu1 %v4894_v33 }
 0xd18   : > { %v4568_v51 = vsel %vm475_vm0, %v4563_v35, %v4567_v8  ;;  %4983 = vmatpush.msrb.mxu2 %v4857_v22  ;;  %5003 = vmatpush.msrb.mxu3 %v4895_v50  ;;  %v4848_v35 = vld [vmem:[#allocation6 + $0x2e20] sm:$0xff] }
 0xd19   : > { %4615 = vmatmul.f32.gmra.mxu1 %v4568_v51  ;;  %4661 = vmatmul.f32.gmra.mxu3 %v4568_v51 }
 0xd1a   : > { %4938 = vmatpush.msrb.mxu0 %v4854_v7  ;;  %4958 = vmatpush.msrb.mxu1 %v4892_v25 }
 0xd1b   : > { %4757 = vmatmul.f32.vlgmr.msra.gmra.mxu0 %v8694_v45  ;;  %4803 = vmatmul.f32.vlgmr.msra.gmra.mxu2 %v8694_v45  ;;  %v4849_v45 = vld [vmem:[#allocation6 + $0x2e28] sm:$0xff] }
 0xd1c   : > { %4984 = vmatpush.msrb.mxu2 %v4855_v52  ;;  %5004 = vmatpush.msrb.mxu3 %v4893_v56 }
 0xd1d   : > { %4939 = vmatpush.msrb.mxu0 %v4852_v32  ;;  %4959 = vmatpush.msrb.mxu1 %v4890_v43  ;;  %v4481_v43 = vld [vmem:[#allocation8 + $0xe] sm:$0x3] }
 0xd1e   : > { %4985 = vmatpush.msrb.mxu2 %v4853_v16  ;;  %5005 = vmatpush.msrb.mxu3 %v4891_v53 }
 0xd1f   : > { %4940 = vmatpush.msrb.mxu0 %v4850_v55  ;;  %4960 = vmatpush.msrb.mxu1 %v4888_v30  ;;  %v4666_v55 = vperm.slane %v4481_v43, 0 }
 0xd20   : > { %4986 = vmatpush.msrb.mxu2 %v4851_v63  ;;  %5006 = vmatpush.msrb.mxu3 %v4889_v0 }
 0xd21   : > { %4780 = vmatmul.f32.vlgmr.msra.gmra.mxu1 %v8703_v21  ;;  %4826 = vmatmul.f32.vlgmr.msra.gmra.mxu3 %v8703_v21  ;;  %v4845_v21 = vld [vmem:[#allocation6 + $0x2e08] sm:$0xff] }
 0xd22   : > { %4941 = vmatpush.msrb.mxu0 %v4848_v35  ;;  %4961 = vmatpush.msrb.mxu1 %v4886_v1 }
 0xd23   : > { %4760 = vmatmul.f32.gmra.mxu0 %v8707_v41  ;;  %4806 = vmatmul.f32.gmra.mxu2 %v8707_v41  ;;  %v4876_v41 = vld [vmem:[#allocation6 + $0x2f00] sm:$0xff] }
 0xd24   : > { %4987 = vmatpush.msrb.mxu2 %v4849_v45  ;;  %5007 = vmatpush.msrb.mxu3 %v4887_v49 }
 0xd25   : > { %4942 = vmatpush.msrb.mxu0 %v4846_v48  ;;  %4962 = vmatpush.msrb.mxu1 %v4884_v9 }
 0xd26   : > { %4988 = vmatpush.msrb.mxu2 %v4847_v62  ;;  %5008 = vmatpush.msrb.mxu3 %v4885_v12  ;;  %v4667_v62 = vperm.slane %v4481_v43, 1  ;;  %v5056_v43 = vld [vmem:[#allocation9 + $0x8] sm:$0xf] }
 0xd27   : > { %4943 = vmatpush.msrb.mxu0 %v4844_v14  ;;  %4963 = vmatpush.msrb.mxu1 %v4882_v24 }
 0xd28   : > { %4989 = vmatpush.msrb.mxu2 %v4845_v21  ;;  %5009 = vmatpush.msrb.mxu3 %v4883_v18 }
 0xd29   : > { %4783 = vmatmul.f32.gmra.mxu1 %v8713_v27  ;;  %4829 = vmatmul.f32.gmra.mxu3 %v8713_v27 }
 0xd2a   : > { %4964 = vmatpush.msrb.mxu1 %v4880_v61  ;;  %5010 = vmatpush.msrb.mxu3 %v4881_v40 }
 0xd2b   : > { %4944 = vmatmul.f32.vlgmr.msrb.gmra.mxu0 %v4916_v15  ;;  %4990 = vmatmul.f32.vlgmr.msrb.gmra.mxu2 %v4916_v15 }
 0xd2c   : > { %4965 = vmatpush.msrb.mxu1 %v4878_v37  ;;  %5011 = vmatpush.msrb.mxu3 %v4879_v34 }
 0xd2e   : > { %4966 = vmatpush.msrb.mxu1 %v4876_v41  ;;  %5012 = vmatpush.msrb.mxu3 %v4877_v23 }
 0xd31   : > { %4967 = vmatmul.f32.vlgmr.msrb.gmra.mxu1 %v4919_v58  ;;  %5013 = vmatmul.f32.vlgmr.msrb.gmra.mxu3 %v4919_v58 }
 0xd33   : > { %4947 = vmatmul.f32.gmra.mxu0 %v4921_v26  ;;  %4993 = vmatmul.f32.gmra.mxu2 %v4921_v26 }
 0xd39   : > { %4970 = vmatmul.f32.gmra.mxu1 %v4923_v44  ;;  %5016 = vmatmul.f32.gmra.mxu3 %v4923_v44 }
 0xd80   : > { %v4590_v20 = vpop.f32.mrf.mxu0 }
 0xd86   : > { %v4613_v11 = vpop.f32.mrf.mxu1  ;;  %v4636_v27 = vpop.f32.mrf.mxu2 }
 0xd87   : > { %v4614_v53 = vadd.f32 %v4613_v11, %v4590_v20 }
 0xd89   : > { %v4670_v45 = vadd.f32 %v4666_v55, %v4614_v53 }
 0xd8c   : > { %v4659_v46 = vpop.f32.mrf.mxu3 }
 0xd8d   : > { %v4660_v9 = vadd.f32 %v4659_v46, %v4636_v27 }
 0xd8f   : > { %v4671_v37 = vadd.f32 %v4667_v62, %v4660_v9 }
 0xd90   : > { %v4593_v42 = vpop.f32.mrf.mxu0 }
 0xd96   : > { %v4616_v5 = vpop.f32.mrf.mxu1  ;;  %v4639_v33 = vpop.f32.mrf.mxu2 }
 0xd97   : > { %v4617_v30 = vadd.f32 %v4616_v5, %v4593_v42 }
 0xd98   : > { %v4758_v10 = vpop.f32.mrf.mxu0 }
 0xd99   : > { %v4672_v49 = vadd.f32 %v4666_v55, %v4617_v30  ;;  %v7605_v30 = vld [vmem:[%s9063_s4 + $0x8] sm:$0xf] }
 0xd9c   : > { %v4662_v22 = vpop.f32.mrf.mxu3 }
 0xd9d   : > { %v4663_v14 = vadd.f32 %v4662_v22, %v4639_v33 }
 0xd9e   : > { %v4781_v50 = vpop.f32.mrf.mxu1  ;;  %v4804_v8 = vpop.f32.mrf.mxu2 }
 0xd9f   : > { %v4782_v0 = vadd.f32 %v4781_v50, %v4758_v10  ;;  %v4673_v34 = vadd.f32 %v4667_v62, %v4663_v14 }
 0xda0   : > { %v4761_v7 = vpop.f32.mrf.mxu0 }
 0xda1   : > { %v4833_v24 = vadd.f32 %v4782_v0, %v4670_v45 }
 0xda4   : > { %v4827_v25 = vpop.f32.mrf.mxu3 }
 0xda5   : > { %v4828_v19 = vadd.f32 %v4827_v25, %v4804_v8 }
 0xda6   : > { %v4784_v51 = vpop.f32.mrf.mxu1  ;;  %v4807_v52 = vpop.f32.mrf.mxu2 }
 0xda7   : > { %v4785_v35 = vadd.f32 %v4784_v51, %v4761_v7  ;;  %v4834_v3 = vadd.f32 %v4828_v19, %v4671_v37 }
 0xda8   : > { %v4945_v56 = vpop.f32.mrf.mxu0 }
 0xda9   : > { %v4835_v21 = vadd.f32 %v4785_v35, %v4672_v49 }
 0xdac   : > { %v4830_v32 = vpop.f32.mrf.mxu3 }
 0xdad   : > { %v4831_v29 = vadd.f32 %v4830_v32, %v4807_v52 }
 0xdae   : > { %v4968_v16 = vpop.f32.mrf.mxu1  ;;  %v4991_v63 = vpop.f32.mrf.mxu2 }
 0xdaf   : > { %v4969_v48 = vadd.f32 %v4968_v16, %v4945_v56  ;;  %v4836_v38 = vadd.f32 %v4831_v29, %v4673_v34 }
 0xdb0   : > { %v4948_v12 = vpop.f32.mrf.mxu0 }
 0xdb1   : > { %v8736_v61 = vadd.f32 %v4969_v48, %v4833_v24  ;;  %v5082_v24 = vld [vmem:[#allocation12 + $0x2] sm:$0x1] }
 0xdb4   : > { %v5014_v1 = vpop.f32.mrf.mxu3 }
 0xdb5   : > { %v5015_v36 = vadd.f32 %v5014_v1, %v4991_v63  ;;  %v5067_v1 = vld [vmem:[#allocation11 + $0x8] sm:$0xf] }
 0xdb6   : > { %v4971_v13 = vpop.f32.mrf.mxu1  ;;  %v4994_v41 = vpop.f32.mrf.mxu2 }
 0xdb7   : > { %v4972_v18 = vadd.f32 %v4971_v13, %v4948_v12  ;;  %v8742_v58 = vadd.f32 %v5015_v36, %v4834_v3 }
 0xdb9   : > { %v8738_v40 = vadd.f32 %v4972_v18, %v4835_v21 }
 0xdbb   : > { %v5024_v15 = vadd.f32 %v8738_v40, %v8736_v61 }
 0xdbc   : > { %v5017_v23 = vpop.f32.mrf.mxu3 }
 0xdbd   : > { %v5025_v2 = vrot.slane %v5024_v15, 4  ;;  %v5018_v39 = vadd.f32 %v5017_v23, %v4994_v41 }
 0xdbf   : > { %v5026_v17 = vadd.f32 %v5025_v2, %v5024_v15  ;;  %v8744_v26 = vadd.f32 %v5018_v39, %v4836_v38 }
 0xdc1   : > { %v5027_v6 = vrot.slane %v5026_v17, 2  ;;  %v5031_v44 = vadd.f32 %v8744_v26, %v8742_v58 }
 0xdc3   : > { %v5032_v20 = vrot.slane %v5031_v44, 4  ;;  %v5028_v27 = vadd.f32 %v5027_v6, %v5026_v17 }
 0xdc5   : > { %v5033_v11 = vadd.f32 %v5032_v20, %v5031_v44  ;;  %v5029_v46 = vrot.slane %v5028_v27, 1  ;;  %v5170_v20 = vld [vmem:[#allocation6 + $0x30f0] sm:$0xff] }
 0xdc6   : > { %5224 = vmatpush.msra.mxu0 %v5170_v20  ;;  %v5179_v20 = vld [vmem:[#allocation6 + $0x3138] sm:$0xff] }
 0xdc7   : > { %v5034_v42 = vrot.slane %v5033_v11, 2  ;;  %v5030_v10 = vadd.f32 %v5029_v46, %v5028_v27  ;;  %v5171_v27 = vld [vmem:[#allocation6 + $0x30f8] sm:$0xff]  ;;  %v5168_v46 = vld [vmem:[#allocation6 + $0x30e0] sm:$0xff] }
 0xdc8   : > { %5270 = vmatpush.msra.mxu2 %v5171_v27  ;;  %5225 = vmatpush.msra.mxu0 %v5168_v46  ;;  %v5176_v27 = vld [vmem:[#allocation6 + $0x3120] sm:$0xff]  ;;  %v5177_v46 = vld [vmem:[#allocation6 + $0x3128] sm:$0xff] }
 0xdc9   : > { %v5035_v5 = vadd.f32 %v5034_v42, %v5033_v11  ;;  %v5202_v11 = vld [vmem:[#allocation6 + $0x31f0] sm:$0xff]  ;;  %v5203_v42 = vld [vmem:[#allocation6 + $0x31f8] sm:$0xff] }
 0xdca   : > { %5247 = vmatpush.msra.mxu1 %v5202_v11  ;;  %5293 = vmatpush.msra.mxu3 %v5203_v42  ;;  %v5144_v11 = vld [vmem:[#allocation6 + $0x3020] sm:$0xff]  ;;  %v5145_v42 = vld [vmem:[#allocation6 + $0x3028] sm:$0xff] }
 0xdcb   : > { %v5036_v33 = vrot.slane %v5035_v5, 1 }
 0xdcd   : > { %v5037_v22 = vadd.f32 %v5036_v33, %v5035_v5  ;;  %v5200_v5 = vld [vmem:[#allocation6 + $0x31e0] sm:$0xff]  ;;  %v5169_v33 = vld [vmem:[#allocation6 + $0x30e8] sm:$0xff] }
 0xdce   : > { %5248 = vmatpush.msra.mxu1 %v5200_v5  ;;  %5271 = vmatpush.msra.mxu2 %v5169_v33  ;;  %v5142_v5 = vld [vmem:[#allocation6 + $0x3010] sm:$0xff] }
 0xdcf   : > { %v5038_v50 = vadd.f32 %v5037_v22, %v5030_v10  ;;  %v5201_v10 = vld [vmem:[#allocation6 + $0x31e8] sm:$0xff]  ;;  %v5166_v22 = vld [vmem:[#allocation6 + $0x30d0] sm:$0xff] }
 0xdd0   : > { %5294 = vmatpush.msra.mxu3 %v5201_v10  ;;  %5226 = vmatpush.msra.mxu0 %v5166_v22  ;;  %v5174_v33 = vld [vmem:[#allocation6 + $0x3110] sm:$0xff]  ;;  %v5143_v10 = vld [vmem:[#allocation6 + $0x3018] sm:$0xff] }
 0xdd1   : > { %5040 = vrot.lane.b32.xlu0 %v5038_v50, %s8020_s9  ;;  %v5175_v22 = vld [vmem:[#allocation6 + $0x3118] sm:$0xff] }
 0xe43   : > { %v5041_v8 = vpop.permute.xlu0 %5040 }
 0xe44   : > { %v5043_v7 = vadd.f32 %v5041_v8, %v5038_v50  ;;  %v5198_v50 = vld [vmem:[#allocation6 + $0x31d0] sm:$0xff]  ;;  %v5167_v8 = vld [vmem:[#allocation6 + $0x30d8] sm:$0xff] }
 0xe45   : > { %5249 = vmatpush.msra.mxu1 %v5198_v50  ;;  %5272 = vmatpush.msra.mxu2 %v5167_v8  ;;  %v5140_v50 = vld [vmem:[#allocation6 + $0x3000] sm:$0xff] }
 0xe46   : > { %5045 = vrot.lane.b32.xlu2 %v5043_v7, %s8021_s18  ;;  %v5172_v8 = vld [vmem:[#allocation6 + $0x3100] sm:$0xff] }
 0xea0   : > { %v5046_v25 = vpop.permute.xlu2 %5045 }
 0xea1   : > { %v5048_v51 = vadd.f32 %v5046_v25, %v5043_v7  ;;  %v5199_v7 = vld [vmem:[#allocation6 + $0x31d8] sm:$0xff]  ;;  %v5164_v25 = vld [vmem:[#allocation6 + $0x30c0] sm:$0xff] }
 0xea2   : > { %5295 = vmatpush.msra.mxu3 %v5199_v7  ;;  %5227 = vmatpush.msra.mxu0 %v5164_v25  ;;  %v5141_v7 = vld [vmem:[#allocation6 + $0x3008] sm:$0xff] }
 0xea3   : > { %5050 = vrot.lane.b32.xlu1 %v5048_v51, %s8022_s19 }
 0xf15   : > { %v5051_v52 = vpop.permute.xlu1 %5050 }
 0xf16   : > { %v5053_v56 = vadd.f32 %v5051_v52, %v5048_v51  ;;  %v5196_v51 = vld [vmem:[#allocation6 + $0x31c0] sm:$0xff]  ;;  %v5165_v52 = vld [vmem:[#allocation6 + $0x30c8] sm:$0xff] }
 0xf17   : > { %5250 = vmatpush.msra.mxu1 %v5196_v51  ;;  %5273 = vmatpush.msra.mxu2 %v5165_v52  ;;  %v5173_v51 = vld [vmem:[#allocation6 + $0x3108] sm:$0xff]  ;;  %v5358_v52 = vld [vmem:[#allocation6 + $0x32f0] sm:$0xff] }
 0xf18   : > { %v5054_v32 = vmul.f32 0.00390625, %v5053_v56  ;;  %v5197_v56 = vld [vmem:[#allocation6 + $0x31c8] sm:$0xff] }
 0xf19   : > { %5296 = vmatpush.msra.mxu3 %v5197_v56 }
 0xf1a   : > { %v5057_v16 = vperm.slane %v5054_v32, 0  ;;  %v5162_v32 = vld [vmem:[#allocation6 + $0x30b0] sm:$0xff] }
 0xf1b   : > { %5228 = vmatpush.msra.mxu0 %v5162_v32  ;;  %v5390_v32 = vld [vmem:[#allocation6 + $0x33f0] sm:$0xff] }
 0xf1c   : > { %v5058_v53 = vmul.f32 %v5057_v16, %v5056_v43  ;;  %v5194_v43 = vld [vmem:[#allocation6 + $0x31b0] sm:$0xff]  ;;  %v5163_v16 = vld [vmem:[#allocation6 + $0x30b8] sm:$0xff] }
 0xf1d   : > { %5251 = vmatpush.msra.mxu1 %v5194_v43  ;;  %5274 = vmatpush.msra.mxu2 %v5163_v16  ;;  %v5359_v43 = vld [vmem:[#allocation6 + $0x32f8] sm:$0xff] }
 0xf1e   : > { %v5059_v55 = vsel %vm2084_vm6, %v5058_v53, 0.0  ;;  %v5195_v53 = vld [vmem:[#allocation6 + $0x31b8] sm:$0xff] }
 0xf1f   : > { %5060 = vadd.xlane.f32.xlu0 %v5059_v55  ;;  %v5160_v55 = vld [vmem:[#allocation6 + $0x30a0] sm:$0xff]  ;;  %5297 = vmatpush.msra.mxu3 %v5195_v53  ;;  %v5391_v16 = vld [vmem:[#allocation6 + $0x33f8] sm:$0xff] }
 0xf20   : > { %5229 = vmatpush.msra.mxu0 %v5160_v55  ;;  %v5356_v53 = vld [vmem:[#allocation6 + $0x32e0] sm:$0xff] }
 0xf21   : > { %v5388_v55 = vld [vmem:[#allocation6 + $0x33e0] sm:$0xff] }
 0xf92   : > { %v5061_v63 = vpop.xlane.xlu0 %5060 }
 0xf93   : > { %v5064_v0 = vadd.f32 %v7605_v30, %v5061_v63  ;;  %v5192_v30 = vld [vmem:[#allocation6 + $0x31a0] sm:$0xff]  ;;  %v5161_v63 = vld [vmem:[#allocation6 + $0x30a8] sm:$0xff] }
 0xf94   : > { %5252 = vmatpush.msra.mxu1 %v5192_v30  ;;  %5275 = vmatpush.msra.mxu2 %v5161_v63  ;;  %v5357_v30 = vld [vmem:[#allocation6 + $0x32e8] sm:$0xff] }
 0xf95   : > { %v5065_v35 = vmax.f32 %v5064_v0, 0.0  ;;  %v5193_v0 = vld [vmem:[#allocation6 + $0x31a8] sm:$0xff] }
 0xf96   : > { %5298 = vmatpush.msra.mxu3 %v5193_v0  ;;  %v5389_v63 = vld [vmem:[#allocation6 + $0x33e8] sm:$0xff]  ;;  %v5354_v0 = vld [vmem:[#allocation6 + $0x32d0] sm:$0xff] }
 0xf97   : > { %5070 = vperm.xlu1 %7730, %v5065_v35   ;;  %v5158_v35 = vld [vmem:[#allocation6 + $0x3090] sm:$0xff] }
 0xf98   : > { %5230 = vmatpush.msra.mxu0 %v5158_v35  ;;  %v5355_v35 = vld [vmem:[#allocation6 + $0x32d8] sm:$0xff] }
0x1009   : > { %v5071_v45 = vpop.permute.xlu1 %5070 }
0x100a   : > { %v5073_v49 = vmul.f32 %v5071_v45, %v5067_v1  ;;  %v5190_v1 = vld [vmem:[#allocation6 + $0x3190] sm:$0xff]  ;;  %v5159_v45 = vld [vmem:[#allocation6 + $0x3098] sm:$0xff] }
0x100b   : > { %5253 = vmatpush.msra.mxu1 %v5190_v1  ;;  %5276 = vmatpush.msra.mxu2 %v5159_v45  ;;  %v5387_v1 = vld [vmem:[#allocation6 + $0x33d8] sm:$0xff]  ;;  %v5352_v45 = vld [vmem:[#allocation6 + $0x32c0] sm:$0xff] }
0x100c   : > { %v5074_v48 = vsel %vm2084_vm6, %v5073_v49, 0.0  ;;  %v5191_v49 = vld [vmem:[#allocation6 + $0x3198] sm:$0xff] }
0x100d   : > { %v5075_v9 = vrot.slane %v5074_v48, 4  ;;  %5299 = vmatpush.msra.mxu3 %v5191_v49  ;;  %v5384_v49 = vld [vmem:[#allocation6 + $0x33c0] sm:$0xff] }
0x100f   : > { %v5076_v62 = vadd.f32 %v5075_v9, %v5074_v48  ;;  %v5156_v48 = vld [vmem:[#allocation6 + $0x3080] sm:$0xff] }
0x1010   : > { %v5188_v9 = vld [vmem:[#allocation6 + $0x3180] sm:$0xff]  ;;  %5231 = vmatpush.msra.mxu0 %v5156_v48  ;;  %v5353_v48 = vld [vmem:[#allocation6 + $0x32c8] sm:$0xff] }
0x1011   : > { %v5077_v12 = vrot.slane %v5076_v62, 2  ;;  %5254 = vmatpush.msra.mxu1 %v5188_v9  ;;  %v5385_v9 = vld [vmem:[#allocation6 + $0x33c8] sm:$0xff] }
0x1013   : > { %v5078_v13 = vadd.f32 %v5077_v12, %v5076_v62  ;;  %v5157_v62 = vld [vmem:[#allocation6 + $0x3088] sm:$0xff] }
0x1014   : > { %v5189_v12 = vld [vmem:[#allocation6 + $0x3188] sm:$0xff]  ;;  %5277 = vmatpush.msra.mxu2 %v5157_v62  ;;  %v5350_v62 = vld [vmem:[#allocation6 + $0x32b0] sm:$0xff] }
0x1015   : > { %v5079_v14 = vrot.slane %v5078_v13, 1  ;;  %5300 = vmatpush.msra.mxu3 %v5189_v12  ;;  %v5382_v12 = vld [vmem:[#allocation6 + $0x33b0] sm:$0xff] }
0x1017   : > { %v5080_v21 = vadd.f32 %v5079_v14, %v5078_v13  ;;  %v5154_v13 = vld [vmem:[#allocation6 + $0x3070] sm:$0xff] }
0x1018   : > { %v5186_v14 = vld [vmem:[#allocation6 + $0x3170] sm:$0xff]  ;;  %5232 = vmatpush.msra.mxu0 %v5154_v13  ;;  %v5351_v13 = vld [vmem:[#allocation6 + $0x32b8] sm:$0xff] }
0x1019   : > { %v5083_v18 = vadd.f32 %v5082_v24, %v5080_v21  ;;  %v5155_v24 = vld [vmem:[#allocation6 + $0x3078] sm:$0xff]  ;;  %5255 = vmatpush.msra.mxu1 %v5186_v14 }
0x101a   : > { %v5187_v21 = vld [vmem:[#allocation6 + $0x3178] sm:$0xff]  ;;  %5278 = vmatpush.msra.mxu2 %v5155_v24  ;;  %v5348_v24 = vld [vmem:[#allocation6 + $0x32a0] sm:$0xff] }
0x101b   : > { %v7606_v19 = vmul.f32 -1.442695, %v5083_v18  ;;  %v5152_v18 = vld [vmem:[#allocation6 + $0x3060] sm:$0xff]  ;;  %5301 = vmatpush.msra.mxu3 %v5187_v21  ;;  %v5383_v14 = vld [vmem:[#allocation6 + $0x33b8] sm:$0xff] }
0x101c   : > { %5233 = vmatpush.msra.mxu0 %v5152_v18  ;;  %v5380_v21 = vld [vmem:[#allocation6 + $0x33a0] sm:$0xff]  ;;  %v5349_v18 = vld [vmem:[#allocation6 + $0x32a8] sm:$0xff] }
0x101d   : > { %7739 = vpow2.f32 %v7606_v19  ;;  %v5184_v19 = vld [vmem:[#allocation6 + $0x3160] sm:$0xff] }
0x101e   : > { %5256 = vmatpush.msra.mxu1 %v5184_v19  ;;  %v5381_v19 = vld [vmem:[#allocation6 + $0x33a8] sm:$0xff] }
0x1023   : > { %v7740_v29 = vpop.eup %7739 }
0x1024   : > { %v5087_v37 = vadd.f32 1.0, %v7740_v29  ;;  %v5153_v29 = vld [vmem:[#allocation6 + $0x3068] sm:$0xff] }
0x1025   : > { %5279 = vmatpush.msra.mxu2 %v5153_v29  ;;  %v5346_v29 = vld [vmem:[#allocation6 + $0x3290] sm:$0xff] }
0x1026   : > { %7741 = vrcp.f32 %v5087_v37  ;;  %v5099_v41 = vand.u32 2147483648, %v5087_v37  ;;  %v5097_v3 = vand.u32 2147483647, %v5087_v37  ;;  %vm5093_vm3 = vweird.f32 %v5087_v37 }
0x1028   : > { %v5100_v2 = vor.u32 1.1754944e-38, %v5099_v41  ;;  %vm5098_vm5 = vcmp.eq.f32.partialorder %v5097_v3, 8.507059e+37  ;;  %v5183_v41 = vld [vmem:[#allocation6 + $0x3158] sm:$0xff]  ;;  %v5180_v3 = vld [vmem:[#allocation6 + $0x3140] sm:$0xff] }
0x102c   : > { %v7742_v34 = vpop.eup %7741 }
0x102d   : > { %v5089_v36 = vmul.f32 %v7742_v34, %v5087_v37  ;;  %vm5094_vm2 = vweird.f32 %v7742_v34  ;;  %v5185_v37 = vld [vmem:[#allocation6 + $0x3168] sm:$0xff] }
0x102e   : > { %vm5095_vm4 = vmor %vm5093_vm3, %vm5094_vm2  ;;  %5302 = vmatpush.msra.mxu3 %v5185_v37  ;;  %v5378_v37 = vld [vmem:[#allocation6 + $0x3390] sm:$0xff] }
0x102f   : > { %v5090_v15 = vsub.f32 1.0, %v5089_v36  ;;  %v5182_v36 = vld [vmem:[#allocation6 + $0x3150] sm:$0xff] }
0x1030   : > { %5257 = vmatpush.msra.mxu1 %v5182_v36  ;;  %5303 = vmatpush.msra.mxu3 %v5183_v41  ;;  %v5379_v36 = vld [vmem:[#allocation6 + $0x3398] sm:$0xff]  ;;  %v5376_v41 = vld [vmem:[#allocation6 + $0x3380] sm:$0xff] }
0x1031   : > { %v5091_v23 = vmul.f32 %v7742_v34, %v5090_v15  ;;  %v5151_v15 = vld [vmem:[#allocation6 + $0x3058] sm:$0xff] }
0x1032   : > { %5280 = vmatpush.msra.mxu2 %v5151_v15  ;;  %5258 = vmatpush.msra.mxu1 %v5180_v3  ;;  %v5344_v15 = vld [vmem:[#allocation6 + $0x3280] sm:$0xff]  ;;  %v5377_v3 = vld [vmem:[#allocation6 + $0x3388] sm:$0xff] }
0x1033   : > { %v5092_v38 = vadd.f32 %v7742_v34, %v5091_v23  ;;  %v5148_v23 = vld [vmem:[#allocation6 + $0x3040] sm:$0xff] }
0x1035   : > { %v5096_v39 = vsel %vm5095_vm4, %v7742_v34, %v5092_v38  ;;  %v5150_v34 = vld [vmem:[#allocation6 + $0x3050] sm:$0xff]  ;;  %v5149_v38 = vld [vmem:[#allocation6 + $0x3048] sm:$0xff] }
0x1036   : > { %v5101_v17 = vsel %vm5098_vm5, %v5100_v2, %v5096_v39  ;;  %5234 = vmatpush.msra.mxu0 %v5150_v34  ;;  %v5181_v2 = vld [vmem:[#allocation6 + $0x3148] sm:$0xff]  ;;  %v5146_v39 = vld [vmem:[#allocation6 + $0x3030] sm:$0xff]  ;;  %5281 = vmatpush.msra.mxu2 %v5149_v38  ;;  %v5347_v34 = vld [vmem:[#allocation6 + $0x3298] sm:$0xff] }
0x1037   : > { %5104 = vrot.lane.b32.xlu1 %v5101_v17, %s8024_s13  ;;  %5304 = vmatpush.msra.mxu3 %v5181_v2  ;;  %v5342_v38 = vld [vmem:[#allocation6 + $0x3270] sm:$0xff] }
0x1038   : > { %5235 = vmatpush.msra.mxu0 %v5148_v23  ;;  %v5345_v23 = vld [vmem:[#allocation6 + $0x3288] sm:$0xff]  ;;  %v5374_v2 = vld [vmem:[#allocation6 + $0x3370] sm:$0xff] }
0x1039   : > { %5305 = vmatpush.msra.mxu3 %v5179_v20  ;;  %v5372_v20 = vld [vmem:[#allocation6 + $0x3360] sm:$0xff] }
0x103a   : > { %5236 = vmatpush.msra.mxu0 %v5146_v39  ;;  %v5343_v39 = vld [vmem:[#allocation6 + $0x3278] sm:$0xff] }
0x103b   : > { %5306 = vmatpush.msra.mxu3 %v5177_v46  ;;  %v5370_v46 = vld [vmem:[#allocation6 + $0x3350] sm:$0xff] }
0x103c   : > { %5237 = vmatpush.msra.mxu0 %v5144_v11  ;;  %v5341_v11 = vld [vmem:[#allocation6 + $0x3268] sm:$0xff] }
0x103d   : > { %5307 = vmatpush.msra.mxu3 %v5175_v22  ;;  %v5368_v22 = vld [vmem:[#allocation6 + $0x3340] sm:$0xff] }
0x103e   : > { %5238 = vmatpush.msra.mxu0 %v5142_v5  ;;  %v5339_v5 = vld [vmem:[#allocation6 + $0x3258] sm:$0xff] }
0x103f   : > { %5308 = vmatpush.msra.mxu3 %v5173_v51  ;;  %v5335_v51 = vld [vmem:[#allocation6 + $0x3238] sm:$0xff] }
0x1040   : > { %5239 = vmatpush.msra.mxu0 %v5140_v50  ;;  %v5337_v50 = vld [vmem:[#allocation6 + $0x3248] sm:$0xff] }
0x1041   : > { %5461 = vmatpush.msrb.mxu3 %v5391_v16  ;;  %v5333_v16 = vld [vmem:[#allocation6 + $0x3228] sm:$0xff] }
0x1042   : > { %5392 = vmatpush.msrb.mxu0 %v5358_v52  ;;  %v5367_v52 = vld [vmem:[#allocation6 + $0x3338] sm:$0xff] }
0x1043   : > { %5462 = vmatpush.msrb.mxu3 %v5389_v63  ;;  %v5331_v63 = vld [vmem:[#allocation6 + $0x3218] sm:$0xff] }
0x1044   : > { %5393 = vmatpush.msrb.mxu0 %v5356_v53  ;;  %v5365_v53 = vld [vmem:[#allocation6 + $0x3328] sm:$0xff] }
0x1045   : > { %5463 = vmatpush.msrb.mxu3 %v5387_v1  ;;  %v5329_v1 = vld [vmem:[#allocation6 + $0x3208] sm:$0xff] }
0x1046   : > { %5394 = vmatpush.msrb.mxu0 %v5354_v0  ;;  %v5363_v0 = vld [vmem:[#allocation6 + $0x3318] sm:$0xff] }
0x1047   : > { %5464 = vmatpush.msrb.mxu3 %v5385_v9 }
0x1048   : > { %5395 = vmatpush.msrb.mxu0 %v5352_v45  ;;  %v5361_v45 = vld [vmem:[#allocation6 + $0x3308] sm:$0xff] }
0x1049   : > { %5465 = vmatpush.msrb.mxu3 %v5383_v14 }
0x104a   : > { %5396 = vmatpush.msrb.mxu0 %v5350_v62  ;;  %v5133_v62 = vld [vmem:[#allocation2 + $0x30] sm:$0x80] }
0x104b   : > { %5466 = vmatpush.msrb.mxu3 %v5381_v19 }
0x104c   : > { %5397 = vmatpush.msrb.mxu0 %v5348_v24 }
0x104d   : > { %5467 = vmatpush.msrb.mxu3 %v5379_v36  ;;  %v5525_v36 = vld [vmem:[#allocation6 + $0x34f0] sm:$0xff] }
0x104e   : > { %5398 = vmatpush.msrb.mxu0 %v5346_v29 }
0x104f   : > { %5468 = vmatpush.msrb.mxu3 %v5377_v3  ;;  %v5523_v3 = vld [vmem:[#allocation6 + $0x34e0] sm:$0xff] }
0x1050   : > { %5399 = vmatpush.msrb.mxu0 %v5344_v15  ;;  %v5557_v15 = vld [vmem:[#allocation6 + $0x35f0] sm:$0xff] }
0x1052   : > { %5400 = vmatpush.msrb.mxu0 %v5342_v38  ;;  %v5555_v38 = vld [vmem:[#allocation6 + $0x35e0] sm:$0xff] }
0x10a9   : > { %v5105_v6 = vpop.permute.xlu1 %5104 }
0x10aa   : > { %v8758_v44 = vsel %vm2130_vm11, %v5101_v17, %v5105_v6  ;;  %v5178_v17 = vld [vmem:[#allocation6 + $0x3130] sm:$0xff]  ;;  %v5147_v6 = vld [vmem:[#allocation6 + $0x3038] sm:$0xff] }
0x10ab   : > { %5109 = vrot.lane.b32.xlu2 %v8758_v44, %s8025_s29  ;;  %5259 = vmatpush.msra.mxu1 %v5178_v17  ;;  %v5375_v17 = vld [vmem:[#allocation6 + $0x3378] sm:$0xff] }
0x10ac   : > { %5282 = vmatpush.msra.mxu2 %v5147_v6  ;;  %5469 = vmatpush.msrb.mxu3 %v5375_v17  ;;  %v5340_v6 = vld [vmem:[#allocation6 + $0x3260] sm:$0xff]  ;;  %v5521_v17 = vld [vmem:[#allocation6 + $0x34d0] sm:$0xff] }
0x10ad   : > { %5260 = vmatpush.msra.mxu1 %v5176_v27  ;;  %5401 = vmatpush.msrb.mxu0 %v5340_v6  ;;  %v5373_v27 = vld [vmem:[#allocation6 + $0x3368] sm:$0xff]  ;;  %v5553_v6 = vld [vmem:[#allocation6 + $0x35d0] sm:$0xff] }
0x10ae   : > { %5283 = vmatpush.msra.mxu2 %v5145_v42  ;;  %5470 = vmatpush.msrb.mxu3 %v5373_v27  ;;  %v5338_v42 = vld [vmem:[#allocation6 + $0x3250] sm:$0xff] }
0x10af   : > { %5261 = vmatpush.msra.mxu1 %v5174_v33  ;;  %5402 = vmatpush.msrb.mxu0 %v5338_v42  ;;  %v5371_v33 = vld [vmem:[#allocation6 + $0x3358] sm:$0xff]  ;;  %v5519_v42 = vld [vmem:[#allocation6 + $0x34c0] sm:$0xff] }
0x10b0   : > { %5284 = vmatpush.msra.mxu2 %v5143_v10  ;;  %5471 = vmatpush.msrb.mxu3 %v5371_v33  ;;  %v5336_v10 = vld [vmem:[#allocation6 + $0x3240] sm:$0xff] }
0x10b1   : > { %5262 = vmatpush.msra.mxu1 %v5172_v8  ;;  %5403 = vmatpush.msrb.mxu0 %v5336_v10  ;;  %v5369_v8 = vld [vmem:[#allocation6 + $0x3348] sm:$0xff] }
0x10b2   : > { %5285 = vmatpush.msra.mxu2 %v5141_v7  ;;  %5472 = vmatpush.msrb.mxu3 %v5369_v8  ;;  %v5334_v7 = vld [vmem:[#allocation6 + $0x3230] sm:$0xff]  ;;  %v5520_v10 = vld [vmem:[#allocation6 + $0x34c8] sm:$0xff] }
0x10b3   : > { %5415 = vmatpush.msrb.mxu1 %v5390_v32  ;;  %5404 = vmatpush.msrb.mxu0 %v5334_v7  ;;  %v5332_v32 = vld [vmem:[#allocation6 + $0x3220] sm:$0xff] }
0x10b4   : > { %5438 = vmatpush.msrb.mxu2 %v5359_v43  ;;  %5473 = vmatpush.msrb.mxu3 %v5367_v52  ;;  %v5364_v43 = vld [vmem:[#allocation6 + $0x3320] sm:$0xff]  ;;  %v5518_v52 = vld [vmem:[#allocation6 + $0x34b8] sm:$0xff] }
0x10b5   : > { %5416 = vmatpush.msrb.mxu1 %v5388_v55  ;;  %5405 = vmatpush.msrb.mxu0 %v5332_v32  ;;  %v5330_v55 = vld [vmem:[#allocation6 + $0x3210] sm:$0xff]  ;;  %v5550_v32 = vld [vmem:[#allocation6 + $0x35b8] sm:$0xff] }
0x10b6   : > { %5439 = vmatpush.msrb.mxu2 %v5357_v30  ;;  %5474 = vmatpush.msrb.mxu3 %v5365_v53  ;;  %v5362_v30 = vld [vmem:[#allocation6 + $0x3310] sm:$0xff]  ;;  %v5516_v53 = vld [vmem:[#allocation6 + $0x34a8] sm:$0xff] }
0x10b7   : > { %5406 = vmatpush.msrb.mxu0 %v5330_v55  ;;  %v5548_v55 = vld [vmem:[#allocation6 + $0x35a8] sm:$0xff] }
0x10b8   : > { %5440 = vmatpush.msrb.mxu2 %v5355_v35  ;;  %v5360_v35 = vld [vmem:[#allocation6 + $0x3300] sm:$0xff]  ;;  %5475 = vmatpush.msrb.mxu3 %v5363_v0  ;;  %v5514_v0 = vld [vmem:[#allocation6 + $0x3498] sm:$0xff] }
0x10ba   : > { %5441 = vmatpush.msrb.mxu2 %v5353_v48  ;;  %5476 = vmatpush.msrb.mxu3 %v5361_v45  ;;  %v5512_v45 = vld [vmem:[#allocation6 + $0x3488] sm:$0xff] }
0x10bc   : > { %5442 = vmatpush.msrb.mxu2 %v5351_v13 }
0x10be   : > { %5443 = vmatpush.msrb.mxu2 %v5349_v18  ;;  %v5210_v18 = vrot.slane %v5133_v62, 7  ;;  %v5510_v62 = vld [vmem:[#allocation6 + $0x3478] sm:$0xff] }
0x10c0   : > { %5444 = vmatpush.msrb.mxu2 %v5347_v34 }
0x10c2   : > { %5445 = vmatpush.msrb.mxu2 %v5345_v23  ;;  %v5558_v23 = vld [vmem:[#allocation6 + $0x35f8] sm:$0xff] }
0x10c4   : > { %5446 = vmatpush.msrb.mxu2 %v5343_v39  ;;  %v5556_v39 = vld [vmem:[#allocation6 + $0x35e8] sm:$0xff] }
0x10c6   : > { %5447 = vmatpush.msrb.mxu2 %v5341_v11  ;;  %v5554_v11 = vld [vmem:[#allocation6 + $0x35d8] sm:$0xff] }
0x10c8   : > { %5448 = vmatpush.msrb.mxu2 %v5339_v5 }
0x10ca   : > { %5449 = vmatpush.msrb.mxu2 %v5337_v50 }
0x10cc   : > { %5450 = vmatpush.msrb.mxu2 %v5335_v51  ;;  %v5549_v51 = vld [vmem:[#allocation6 + $0x35b0] sm:$0xff] }
0x10ce   : > { %5451 = vmatpush.msrb.mxu2 %v5333_v16  ;;  %v5547_v16 = vld [vmem:[#allocation6 + $0x35a0] sm:$0xff] }
0x10d0   : > { %5452 = vmatpush.msrb.mxu2 %v5331_v63  ;;  %v5545_v63 = vld [vmem:[#allocation6 + $0x3590] sm:$0xff] }
0x10d2   : > { %5453 = vmatpush.msrb.mxu2 %v5329_v1  ;;  %v5543_v1 = vld [vmem:[#allocation6 + $0x3580] sm:$0xff] }
0x1105   : > { %v5110_v25 = vpop.permute.xlu2 %5109 }
0x1106   : > { %v8764_v56 = vsel %vm2136_vm12, %v8758_v44, %v5110_v25  ;;  %v5386_v44 = vld [vmem:[#allocation6 + $0x33d0] sm:$0xff] }
0x1107   : > { %5114 = vrot.lane.b32.xlu1 %v8764_v56, %s8020_s9  ;;  %5417 = vmatpush.msrb.mxu1 %v5386_v44  ;;  %v5366_v25 = vld [vmem:[#allocation6 + $0x3330] sm:$0xff]  ;;  %v5328_v44 = vld [vmem:[#allocation6 + $0x3200] sm:$0xff] }
0x1108   : > { %5407 = vmatpush.msrb.mxu0 %v5328_v44  ;;  %v5546_v44 = vld [vmem:[#allocation6 + $0x3598] sm:$0xff] }
0x1109   : > { %5418 = vmatpush.msrb.mxu1 %v5384_v49 }
0x110b   : > { %5419 = vmatpush.msrb.mxu1 %v5382_v12  ;;  %v5134_v12 = vld [vmem:[#allocation2] sm:$0x80] }
0x110c   : > { %v5213_v19 = vrot.slane %v5134_v12, 7  ;;  %v5542_v12 = vld [vmem:[#allocation6 + $0x3578] sm:$0xff] }
0x110d   : > { %5420 = vmatpush.msrb.mxu1 %v5380_v21 }
0x110f   : > { %5421 = vmatpush.msrb.mxu1 %v5378_v37 }
0x1111   : > { %5422 = vmatpush.msrb.mxu1 %v5376_v41  ;;  %v5526_v41 = vld [vmem:[#allocation6 + $0x34f8] sm:$0xff] }
0x1113   : > { %5423 = vmatpush.msrb.mxu1 %v5374_v2  ;;  %v5524_v2 = vld [vmem:[#allocation6 + $0x34e8] sm:$0xff] }
0x1115   : > { %5424 = vmatpush.msrb.mxu1 %v5372_v20  ;;  %v5522_v20 = vld [vmem:[#allocation6 + $0x34d8] sm:$0xff] }
0x1117   : > { %5425 = vmatpush.msrb.mxu1 %v5370_v46  ;;  %v5551_v46 = vld [vmem:[#allocation6 + $0x35c0] sm:$0xff] }
0x1119   : > { %5426 = vmatpush.msrb.mxu1 %v5368_v22  ;;  %v5552_v22 = vld [vmem:[#allocation6 + $0x35c8] sm:$0xff] }
0x111b   : > { %5427 = vmatpush.msrb.mxu1 %v5366_v25  ;;  %v5517_v25 = vld [vmem:[#allocation6 + $0x34b0] sm:$0xff] }
0x111d   : > { %5428 = vmatpush.msrb.mxu1 %v5364_v43  ;;  %v5515_v43 = vld [vmem:[#allocation6 + $0x34a0] sm:$0xff] }
0x111f   : > { %5429 = vmatpush.msrb.mxu1 %v5362_v30  ;;  %v5513_v30 = vld [vmem:[#allocation6 + $0x3490] sm:$0xff] }
0x1121   : > { %5430 = vmatpush.msrb.mxu1 %v5360_v35  ;;  %v5511_v35 = vld [vmem:[#allocation6 + $0x3480] sm:$0xff] }
0x1179   : > { %v5115_v49 = vpop.permute.xlu1 %5114 }
0x117a   : > { %v5117_v48 = vsel %vm2142_vm13, %v8764_v56, %v5115_v49  ;;  %v5544_v49 = vld [vmem:[#allocation6 + $0x3588] sm:$0xff] }
0x117b   : > { %v5118_v9 = vperm.slane %v5117_v48, 0  ;;  %v5509_v48 = vld [vmem:[#allocation6 + $0x3470] sm:$0xff] }
0x117d   : > { %v5119_v13 = vmul.f32 %v5118_v9, %v8736_v61  ;;  %v5120_v14 = vmul.f32 %v5118_v9, %v8742_v58  ;;  %v5121_v24 = vmul.f32 %v5118_v9, %v8738_v40  ;;  %v5122_v21 = vmul.f32 %v5118_v9, %v8744_v26  ;;  %v5541_v9 = vld [vmem:[#allocation6 + $0x3570] sm:$0xff] }
0x117f   : > { %v8775_v29 = vadd.f32 %v5119_v13, %v8624_v59  ;;  %v8778_v37 = vadd.f32 %v5120_v14, %v8634_v57  ;;  %v8781_v56 = vadd.f32 %v5121_v24, %v8637_v54  ;;  %v8784_v34 = vadd.f32 %v5122_v21, %v8646_v60  ;;  %v5507_v13 = vld [vmem:[#allocation6 + $0x3460] sm:$0xff]  ;;  %v5508_v24 = vld [vmem:[#allocation6 + $0x3468] sm:$0xff] }
0x1180   : > { %v5539_v14 = vld [vmem:[#allocation6 + $0x3560] sm:$0xff]  ;;  %v5540_v21 = vld [vmem:[#allocation6 + $0x3568] sm:$0xff] }
0x1181   : > { %5129 = vst [vmem:[#allocation2 + $0x8] sm:$0xff] %v8781_v56  ;;  %v5211_v61 = vrot.slane %v8775_v29, 7  ;;  %v5214_v40 = vrot.slane %v8778_v37, 7 }
0x1182   : > { %5130 = vst [vmem:[#allocation2 + $0x20] sm:$0xff] %v8784_v34 }
0x1183   : > { %5127 = vst [vmem:[#allocation2 + $0x18] sm:$0xff] %v8775_v29  ;;  %v5212_v58 = vsel %vm475_vm0, %v5210_v18, %v5211_v61  ;;  %v5215_v26 = vsel %vm475_vm0, %v5213_v19, %v5214_v40  ;;  %v5505_v18 = vld [vmem:[#allocation6 + $0x3450] sm:$0xff] }
0x1184   : > { %5128 = vst [vmem:[#allocation2 + $0x10] sm:$0xff] %v8778_v37  ;;  %5240 = vmatmul.f32.vlgmr.msra.gmra.mxu0 %v5212_v58  ;;  %5263 = vmatmul.f32.vlgmr.msra.gmra.mxu1 %v5215_v26  ;;  %v5537_v19 = vld [vmem:[#allocation6 + $0x3550] sm:$0xff] }
0x1185   : > { %5286 = vmatmul.f32.vlgmr.msra.gmra.mxu2 %v5212_v58  ;;  %5309 = vmatmul.f32.vlgmr.msra.gmra.mxu3 %v5215_v26  ;;  %v5503_v58 = vld [vmem:[#allocation6 + $0x3440] sm:$0xff] }
0x1186   : > { %5579 = vmatpush.msra.mxu0 %v5525_v36  ;;  %5602 = vmatpush.msra.mxu1 %v5557_v15  ;;  %v5535_v26 = vld [vmem:[#allocation6 + $0x3540] sm:$0xff]  ;;  %v5504_v36 = vld [vmem:[#allocation6 + $0x3448] sm:$0xff] }
0x1187   : > { %5625 = vmatpush.msra.mxu2 %v5526_v41  ;;  %5648 = vmatpush.msra.mxu3 %v5558_v23  ;;  %v5536_v15 = vld [vmem:[#allocation6 + $0x3548] sm:$0xff]  ;;  %v5501_v41 = vld [vmem:[#allocation6 + $0x3430] sm:$0xff] }
0x1188   : > { %5580 = vmatpush.msra.mxu0 %v5523_v3  ;;  %5603 = vmatpush.msra.mxu1 %v5555_v38  ;;  %v5137_v27 = vld [vmem:[#allocation2 + $0x8] sm:$0x7f]  ;;  %v5533_v23 = vld [vmem:[#allocation6 + $0x3530] sm:$0xff]  ;;  %v5502_v3 = vld [vmem:[#allocation6 + $0x3438] sm:$0xff] }
0x1189   : > { %5626 = vmatpush.msra.mxu2 %v5524_v2  ;;  %5649 = vmatpush.msra.mxu3 %v5556_v39  ;;  %v5216_v5 = vrot.slane %v5137_v27, 7  ;;  %v5138_v33 = vld [vmem:[#allocation2 + $0x20] sm:$0x7f]  ;;  %v5534_v38 = vld [vmem:[#allocation6 + $0x3538] sm:$0xff]  ;;  %v5497_v27 = vld [vmem:[#allocation6 + $0x3410] sm:$0xff] }
0x118a   : > { %5581 = vmatpush.msra.mxu0 %v5521_v17  ;;  %5604 = vmatpush.msra.mxu1 %v5553_v6  ;;  %v5218_v50 = vrot.slane %v5138_v33, 7  ;;  %v5499_v2 = vld [vmem:[#allocation6 + $0x3420] sm:$0xff]  ;;  %v5500_v17 = vld [vmem:[#allocation6 + $0x3428] sm:$0xff] }
0x118b   : > { %5627 = vmatpush.msra.mxu2 %v5522_v20  ;;  %5650 = vmatpush.msra.mxu3 %v5554_v11  ;;  %v5217_v8 = vsel %vm475_vm0, %v5211_v61, %v5216_v5  ;;  %v5506_v61 = vld [vmem:[#allocation6 + $0x3458] sm:$0xff]  ;;  %v5531_v39 = vld [vmem:[#allocation6 + $0x3520] sm:$0xff]  ;;  %v5532_v6 = vld [vmem:[#allocation6 + $0x3528] sm:$0xff] }
0x118c   : > { %5582 = vmatpush.msra.mxu0 %v5519_v42  ;;  %5605 = vmatpush.msra.mxu1 %v5551_v46  ;;  %v5219_v7 = vsel %vm475_vm0, %v5214_v40, %v5218_v50  ;;  %v5538_v40 = vld [vmem:[#allocation6 + $0x3558] sm:$0xff]  ;;  %v5489_v11 = vld [vmem:[#allocation2 + $0x10] sm:$0xfe]  ;;  %v5495_v33 = vld [vmem:[#allocation6 + $0x3400] sm:$0xff] }
0x118d   : > { %5628 = vmatpush.msra.mxu2 %v5520_v10  ;;  %5651 = vmatpush.msra.mxu3 %v5552_v22  ;;  %v5488_v20 = vld [vmem:[#allocation2 + $0x18] sm:$0xfe]  ;;  %v5529_v42 = vld [vmem:[#allocation6 + $0x3510] sm:$0xff]  ;;  %v5527_v10 = vld [vmem:[#allocation6 + $0x3500] sm:$0xff]  ;;  %v5568_v50 = vrot.slane %v5489_v11, 1 }
0x118e   : > { %5243 = vmatmul.f32.gmra.mxu0 %v5217_v8  ;;  %5266 = vmatmul.f32.gmra.mxu1 %v5219_v7  ;;  %v5498_v46 = vld [vmem:[#allocation6 + $0x3418] sm:$0xff]  ;;  %v5565_v22 = vrot.slane %v5488_v20, 1  ;;  %v5712_v20 = vld [vmem:[#allocation6 + $0x3660] sm:$0xff]  ;;  %v5750_v11 = vld [vmem:[#allocation6 + $0x3790] sm:$0xff] }
0x118f   : > { %5289 = vmatmul.f32.gmra.mxu2 %v5217_v8  ;;  %5312 = vmatmul.f32.gmra.mxu3 %v5219_v7  ;;  %v5530_v5 = vld [vmem:[#allocation6 + $0x3518] sm:$0xff]  ;;  %v5496_v8 = vld [vmem:[#allocation6 + $0x3408] sm:$0xff] }
0x1190   : > { %5583 = vmatpush.msra.mxu0 %v5517_v25  ;;  %5606 = vmatpush.msra.mxu1 %v5549_v51  ;;  %v5528_v7 = vld [vmem:[#allocation6 + $0x3508] sm:$0xff]  ;;  %v5566_v25 = vrot.slane %v8781_v56, 1  ;;  %v5569_v51 = vrot.slane %v8784_v34, 1 }
0x1191   : > { %5629 = vmatpush.msra.mxu2 %v5518_v52  ;;  %5652 = vmatpush.msra.mxu3 %v5550_v32 }
0x1192   : > { %5584 = vmatpush.msra.mxu0 %v5515_v43  ;;  %5607 = vmatpush.msra.mxu1 %v5547_v16  ;;  %v5567_v52 = vsel %vm831_vm1, %v5565_v22, %v5566_v25  ;;  %v5570_v32 = vsel %vm831_vm1, %v5568_v50, %v5569_v51  ;;  %v5492_v43 = vld [vmem:[#allocation2 + $0x28] sm:$0x1]  ;;  %v5730_v16 = vld [vmem:[#allocation6 + $0x36f0] sm:$0xff]  ;;  %v5708_v22 = vld [vmem:[#allocation6 + $0x3640] sm:$0xff] }
0x1193   : > { %5630 = vmatpush.msra.mxu2 %v5516_v53  ;;  %5653 = vmatpush.msra.mxu3 %v5548_v55  ;;  %v5731_v53 = vld [vmem:[#allocation6 + $0x36f8] sm:$0xff]  ;;  %v5746_v50 = vld [vmem:[#allocation6 + $0x3770] sm:$0xff] }
0x1194   : > { %5585 = vmatpush.msra.mxu0 %v5513_v30  ;;  %5608 = vmatpush.msra.mxu1 %v5545_v63  ;;  %v5493_v55 = vld [vmem:[#allocation2 + $0x38] sm:$0x1]  ;;  %v5762_v30 = vld [vmem:[#allocation6 + $0x37f0] sm:$0xff] }
0x1195   : > { %5631 = vmatpush.msra.mxu2 %v5514_v0  ;;  %5654 = vmatpush.msra.mxu3 %v5546_v44  ;;  %v5763_v63 = vld [vmem:[#allocation6 + $0x37f8] sm:$0xff]  ;;  %v5728_v0 = vld [vmem:[#allocation6 + $0x36e0] sm:$0xff]  ;;  %v5729_v44 = vld [vmem:[#allocation6 + $0x36e8] sm:$0xff] }
0x1196   : > { %5586 = vmatpush.msra.mxu0 %v5511_v35  ;;  %5609 = vmatpush.msra.mxu1 %v5543_v1  ;;  %v5760_v35 = vld [vmem:[#allocation6 + $0x37e0] sm:$0xff]  ;;  %v5761_v1 = vld [vmem:[#allocation6 + $0x37e8] sm:$0xff] }
0x1197   : > { %5632 = vmatpush.msra.mxu2 %v5512_v45  ;;  %5655 = vmatpush.msra.mxu3 %v5544_v49  ;;  %v5571_v45 = vrot.slane %v5492_v43, 1  ;;  %v5573_v49 = vrot.slane %v5493_v55, 1  ;;  %v5704_v43 = vld [vmem:[#allocation6 + $0x3620] sm:$0xff]  ;;  %v5743_v55 = vld [vmem:[#allocation6 + $0x3758] sm:$0xff] }
0x1198   : > { %5408 = vmatmul.f32.vlgmr.msrb.gmra.mxu0 %v8775_v29  ;;  %5431 = vmatmul.f32.vlgmr.msrb.gmra.mxu1 %v8778_v37 }
0x1199   : > { %5454 = vmatmul.f32.vlgmr.msrb.gmra.mxu2 %v8775_v29  ;;  %5477 = vmatmul.f32.vlgmr.msrb.gmra.mxu3 %v8778_v37 }
0x119a   : > { %5587 = vmatpush.msra.mxu0 %v5509_v48  ;;  %5610 = vmatpush.msra.mxu1 %v5541_v9  ;;  %v5726_v48 = vld [vmem:[#allocation6 + $0x36d0] sm:$0xff]  ;;  %v5727_v9 = vld [vmem:[#allocation6 + $0x36d8] sm:$0xff] }
0x119b   : > { %5633 = vmatpush.msra.mxu2 %v5510_v62  ;;  %5656 = vmatpush.msra.mxu3 %v5542_v12  ;;  %v5572_v62 = vsel %vm831_vm1, %v5566_v25, %v5571_v45  ;;  %v5574_v12 = vsel %vm831_vm1, %v5569_v51, %v5573_v49  ;;  %v5706_v25 = vld [vmem:[#allocation6 + $0x3630] sm:$0xff]  ;;  %v5744_v51 = vld [vmem:[#allocation6 + $0x3760] sm:$0xff]  ;;  %v5701_v45 = vld [vmem:[#allocation6 + $0x3608] sm:$0xff] }
0x119c   : > { %5588 = vmatpush.msra.mxu0 %v5507_v13  ;;  %5611 = vmatpush.msra.mxu1 %v5539_v14  ;;  %v5724_v13 = vld [vmem:[#allocation6 + $0x36c0] sm:$0xff]  ;;  %v5725_v14 = vld [vmem:[#allocation6 + $0x36c8] sm:$0xff]  ;;  %v5739_v49 = vld [vmem:[#allocation6 + $0x3738] sm:$0xff] }
0x119d   : > { %5634 = vmatpush.msra.mxu2 %v5508_v24  ;;  %5657 = vmatpush.msra.mxu3 %v5540_v21  ;;  %v5722_v24 = vld [vmem:[#allocation6 + $0x36b0] sm:$0xff]  ;;  %v5723_v21 = vld [vmem:[#allocation6 + $0x36b8] sm:$0xff] }
0x119e   : > { %5589 = vmatpush.msra.mxu0 %v5505_v18  ;;  %5612 = vmatpush.msra.mxu1 %v5537_v19  ;;  %v5720_v18 = vld [vmem:[#allocation6 + $0x36a0] sm:$0xff]  ;;  %v5758_v19 = vld [vmem:[#allocation6 + $0x37d0] sm:$0xff] }
0x119f   : > { %5635 = vmatpush.msra.mxu2 %v5506_v61  ;;  %5658 = vmatpush.msra.mxu3 %v5538_v40  ;;  %v5721_v61 = vld [vmem:[#allocation6 + $0x36a8] sm:$0xff]  ;;  %v5759_v40 = vld [vmem:[#allocation6 + $0x37d8] sm:$0xff] }
0x11a0   : > { %5590 = vmatpush.msra.mxu0 %v5503_v58  ;;  %5613 = vmatpush.msra.mxu1 %v5535_v26  ;;  %v5718_v58 = vld [vmem:[#allocation6 + $0x3690] sm:$0xff]  ;;  %v5756_v26 = vld [vmem:[#allocation6 + $0x37c0] sm:$0xff] }
0x11a1   : > { %5636 = vmatpush.msra.mxu2 %v5504_v36  ;;  %5659 = vmatpush.msra.mxu3 %v5536_v15  ;;  %v5719_v36 = vld [vmem:[#allocation6 + $0x3698] sm:$0xff]  ;;  %v5757_v15 = vld [vmem:[#allocation6 + $0x37c8] sm:$0xff] }
0x11a2   : > { %5411 = vmatmul.f32.gmra.mxu0 %v8781_v56  ;;  %5434 = vmatmul.f32.gmra.mxu1 %v8784_v34 }
0x11a3   : > { %5457 = vmatmul.f32.gmra.mxu2 %v8781_v56  ;;  %5480 = vmatmul.f32.gmra.mxu3 %v8784_v34 }
0x11a4   : > { %5591 = vmatpush.msra.mxu0 %v5501_v41  ;;  %5614 = vmatpush.msra.mxu1 %v5533_v23  ;;  %v5716_v41 = vld [vmem:[#allocation6 + $0x3680] sm:$0xff]  ;;  %v5754_v23 = vld [vmem:[#allocation6 + $0x37b0] sm:$0xff] }
0x11a5   : > { %5637 = vmatpush.msra.mxu2 %v5502_v3  ;;  %5660 = vmatpush.msra.mxu3 %v5534_v38  ;;  %v5717_v3 = vld [vmem:[#allocation6 + $0x3688] sm:$0xff]  ;;  %v5755_v38 = vld [vmem:[#allocation6 + $0x37b8] sm:$0xff] }
0x11a6   : > { %5592 = vmatpush.msra.mxu0 %v5499_v2  ;;  %5615 = vmatpush.msra.mxu1 %v5531_v39  ;;  %v5714_v2 = vld [vmem:[#allocation6 + $0x3670] sm:$0xff]  ;;  %v5752_v39 = vld [vmem:[#allocation6 + $0x37a0] sm:$0xff] }
0x11a7   : > { %5638 = vmatpush.msra.mxu2 %v5500_v17  ;;  %5661 = vmatpush.msra.mxu3 %v5532_v6  ;;  %v5715_v17 = vld [vmem:[#allocation6 + $0x3678] sm:$0xff]  ;;  %v5753_v6 = vld [vmem:[#allocation6 + $0x37a8] sm:$0xff] }
0x11a8   : > { %5593 = vmatpush.msra.mxu0 %v5497_v27  ;;  %5616 = vmatpush.msra.mxu1 %v5529_v42  ;;  %v5713_v27 = vld [vmem:[#allocation6 + $0x3668] sm:$0xff]  ;;  %v5751_v42 = vld [vmem:[#allocation6 + $0x3798] sm:$0xff] }
0x11a9   : > { %5639 = vmatpush.msra.mxu2 %v5498_v46  ;;  %5662 = vmatpush.msra.mxu3 %v5530_v5  ;;  %v5710_v46 = vld [vmem:[#allocation6 + $0x3650] sm:$0xff]  ;;  %v5748_v5 = vld [vmem:[#allocation6 + $0x3780] sm:$0xff] }
0x11aa   : > { %5594 = vmatpush.msra.mxu0 %v5495_v33  ;;  %5617 = vmatpush.msra.mxu1 %v5527_v10  ;;  %v5711_v33 = vld [vmem:[#allocation6 + $0x3658] sm:$0xff]  ;;  %v5749_v10 = vld [vmem:[#allocation6 + $0x3788] sm:$0xff] }
0x11ab   : > { %5640 = vmatpush.msra.mxu2 %v5496_v8  ;;  %5663 = vmatpush.msra.mxu3 %v5528_v7  ;;  %v5709_v8 = vld [vmem:[#allocation6 + $0x3648] sm:$0xff]  ;;  %v5747_v7 = vld [vmem:[#allocation6 + $0x3778] sm:$0xff] }
0x11ac   : > { %5595 = vmatmul.f32.vlgmr.msra.gmra.mxu0 %v5567_v52  ;;  %5618 = vmatmul.f32.vlgmr.msra.gmra.mxu1 %v5570_v32 }
0x11ad   : > { %5641 = vmatmul.f32.vlgmr.msra.gmra.mxu2 %v5567_v52  ;;  %5664 = vmatmul.f32.vlgmr.msra.gmra.mxu3 %v5570_v32  ;;  %v5707_v52 = vld [vmem:[#allocation6 + $0x3638] sm:$0xff]  ;;  %v5745_v32 = vld [vmem:[#allocation6 + $0x3768] sm:$0xff] }
0x11ae   : > { %5784 = vmatpush.msrb.mxu0 %v5730_v16  ;;  %5830 = vmatpush.msrb.mxu2 %v5731_v53  ;;  %v5742_v16 = vld [vmem:[#allocation6 + $0x3750] sm:$0xff]  ;;  %v5705_v53 = vld [vmem:[#allocation6 + $0x3628] sm:$0xff] }
0x11af   : > { %5807 = vmatpush.msrb.mxu1 %v5762_v30  ;;  %5853 = vmatpush.msrb.mxu3 %v5763_v63  ;;  %v5702_v30 = vld [vmem:[#allocation6 + $0x3610] sm:$0xff]  ;;  %v5740_v63 = vld [vmem:[#allocation6 + $0x3740] sm:$0xff] }
0x11b0   : > { %5785 = vmatpush.msrb.mxu0 %v5728_v0  ;;  %5831 = vmatpush.msrb.mxu2 %v5729_v44  ;;  %v5703_v0 = vld [vmem:[#allocation6 + $0x3618] sm:$0xff]  ;;  %v5741_v44 = vld [vmem:[#allocation6 + $0x3748] sm:$0xff] }
0x11b1   : > { %5808 = vmatpush.msrb.mxu1 %v5760_v35  ;;  %5854 = vmatpush.msrb.mxu3 %v5761_v1  ;;  %v5700_v35 = vld [vmem:[#allocation6 + $0x3600] sm:$0xff]  ;;  %v5738_v1 = vld [vmem:[#allocation6 + $0x3730] sm:$0xff] }
0x11b2   : > { %5786 = vmatpush.msrb.mxu0 %v5726_v48  ;;  %5832 = vmatpush.msrb.mxu2 %v5727_v9  ;;  %v5918_v48 = vld [vmem:[#allocation6 + $0x38f0] sm:$0xff]  ;;  %v5919_v9 = vld [vmem:[#allocation6 + $0x38f8] sm:$0xff] }
0x11b3   : > { %5809 = vmatpush.msrb.mxu1 %v5758_v19  ;;  %5855 = vmatpush.msrb.mxu3 %v5759_v40  ;;  %v5735_v19 = vld [vmem:[#allocation6 + $0x3718] sm:$0xff] }
0x11b4   : > { %5598 = vmatmul.f32.gmra.mxu0 %v5572_v62  ;;  %5621 = vmatmul.f32.gmra.mxu1 %v5574_v12  ;;  %v5915_v40 = vld [vmem:[#allocation6 + $0x38d8] sm:$0xff] }
0x11b5   : > { %5644 = vmatmul.f32.gmra.mxu2 %v5572_v62  ;;  %5667 = vmatmul.f32.gmra.mxu3 %v5574_v12  ;;  %v5736_v62 = vld [vmem:[#allocation6 + $0x3720] sm:$0xff]  ;;  %v5737_v12 = vld [vmem:[#allocation6 + $0x3728] sm:$0xff] }
0x11b6   : > { %5787 = vmatpush.msrb.mxu0 %v5724_v13  ;;  %5833 = vmatpush.msrb.mxu2 %v5725_v14  ;;  %v5916_v13 = vld [vmem:[#allocation6 + $0x38e0] sm:$0xff]  ;;  %v5917_v14 = vld [vmem:[#allocation6 + $0x38e8] sm:$0xff] }
0x11b7   : > { %5810 = vmatpush.msrb.mxu1 %v5756_v26  ;;  %5856 = vmatpush.msrb.mxu3 %v5757_v15  ;;  %v5733_v26 = vld [vmem:[#allocation6 + $0x3708] sm:$0xff]  ;;  %v5950_v15 = vld [vmem:[#allocation6 + $0x39f0] sm:$0xff] }
0x11b8   : > { %5788 = vmatpush.msrb.mxu0 %v5722_v24  ;;  %5834 = vmatpush.msrb.mxu2 %v5723_v21 }
0x11b9   : > { %5811 = vmatpush.msrb.mxu1 %v5754_v23  ;;  %5857 = vmatpush.msrb.mxu3 %v5755_v38  ;;  %v5951_v23 = vld [vmem:[#allocation6 + $0x39f8] sm:$0xff]  ;;  %v5948_v38 = vld [vmem:[#allocation6 + $0x39e0] sm:$0xff] }
0x11ba   : > { %5789 = vmatpush.msrb.mxu0 %v5720_v18  ;;  %5835 = vmatpush.msrb.mxu2 %v5721_v61  ;;  %v5734_v18 = vld [vmem:[#allocation6 + $0x3710] sm:$0xff] }
0x11bb   : > { %5812 = vmatpush.msrb.mxu1 %v5752_v39  ;;  %5858 = vmatpush.msrb.mxu3 %v5753_v6  ;;  %v5914_v61 = vld [vmem:[#allocation6 + $0x38d0] sm:$0xff]  ;;  %v5949_v39 = vld [vmem:[#allocation6 + $0x39e8] sm:$0xff] }
0x11bc   : > { %5790 = vmatpush.msrb.mxu0 %v5718_v58  ;;  %5836 = vmatpush.msrb.mxu2 %v5719_v36  ;;  %v5732_v58 = vld [vmem:[#allocation6 + $0x3700] sm:$0xff] }
0x11bd   : > { %5813 = vmatpush.msrb.mxu1 %v5750_v11  ;;  %5859 = vmatpush.msrb.mxu3 %v5751_v42  ;;  %v5912_v36 = vld [vmem:[#allocation6 + $0x38c0] sm:$0xff]  ;;  %v5946_v11 = vld [vmem:[#allocation6 + $0x39d0] sm:$0xff]  ;;  %v5947_v42 = vld [vmem:[#allocation6 + $0x39d8] sm:$0xff] }
0x11be   : > { %5791 = vmatpush.msrb.mxu0 %v5716_v41  ;;  %5837 = vmatpush.msrb.mxu2 %v5717_v3  ;;  %v5913_v41 = vld [vmem:[#allocation6 + $0x38c8] sm:$0xff]  ;;  %v5910_v3 = vld [vmem:[#allocation6 + $0x38b0] sm:$0xff] }
0x11bf   : > { %5814 = vmatpush.msrb.mxu1 %v5748_v5  ;;  %5860 = vmatpush.msrb.mxu3 %v5749_v10  ;;  %v5944_v5 = vld [vmem:[#allocation6 + $0x39c0] sm:$0xff] }
0x11c0   : > { %5792 = vmatpush.msrb.mxu0 %v5714_v2  ;;  %5838 = vmatpush.msrb.mxu2 %v5715_v17  ;;  %v5911_v2 = vld [vmem:[#allocation6 + $0x38b8] sm:$0xff] }
0x11c1   : > { %5815 = vmatpush.msrb.mxu1 %v5746_v50  ;;  %5861 = vmatpush.msrb.mxu3 %v5747_v7  ;;  %v5945_v50 = vld [vmem:[#allocation6 + $0x39c8] sm:$0xff]  ;;  %v5942_v7 = vld [vmem:[#allocation6 + $0x39b0] sm:$0xff] }
0x11c2   : > { %5793 = vmatpush.msrb.mxu0 %v5712_v20  ;;  %5839 = vmatpush.msrb.mxu2 %v5713_v27  ;;  %v5908_v20 = vld [vmem:[#allocation6 + $0x38a0] sm:$0xff]  ;;  %v5909_v27 = vld [vmem:[#allocation6 + $0x38a8] sm:$0xff] }
0x11c3   : > { %5816 = vmatpush.msrb.mxu1 %v5744_v51  ;;  %5862 = vmatpush.msrb.mxu3 %v5745_v32  ;;  %v5943_v51 = vld [vmem:[#allocation6 + $0x39b8] sm:$0xff]  ;;  %v5940_v32 = vld [vmem:[#allocation6 + $0x39a0] sm:$0xff] }
0x11c4   : > { %5794 = vmatpush.msrb.mxu0 %v5710_v46  ;;  %5840 = vmatpush.msrb.mxu2 %v5711_v33  ;;  %v5906_v46 = vld [vmem:[#allocation6 + $0x3890] sm:$0xff]  ;;  %v5907_v33 = vld [vmem:[#allocation6 + $0x3898] sm:$0xff] }
0x11c5   : > { %5817 = vmatpush.msrb.mxu1 %v5742_v16  ;;  %5863 = vmatpush.msrb.mxu3 %v5743_v55  ;;  %v5941_v16 = vld [vmem:[#allocation6 + $0x39a8] sm:$0xff]  ;;  %v5938_v55 = vld [vmem:[#allocation6 + $0x3990] sm:$0xff] }
0x11c6   : > { %5795 = vmatpush.msrb.mxu0 %v5708_v22  ;;  %5841 = vmatpush.msrb.mxu2 %v5709_v8  ;;  %v5904_v8 = vld [vmem:[#allocation6 + $0x3880] sm:$0xff] }
0x11c7   : > { %5818 = vmatpush.msrb.mxu1 %v5740_v63  ;;  %5864 = vmatpush.msrb.mxu3 %v5741_v44  ;;  %v5939_v63 = vld [vmem:[#allocation6 + $0x3998] sm:$0xff] }
0x11c8   : > { %5796 = vmatpush.msrb.mxu0 %v5706_v25  ;;  %5842 = vmatpush.msrb.mxu2 %v5707_v52  ;;  %v5905_v25 = vld [vmem:[#allocation6 + $0x3888] sm:$0xff]  ;;  %v5902_v52 = vld [vmem:[#allocation6 + $0x3870] sm:$0xff] }
0x11c9   : > { %5819 = vmatpush.msrb.mxu1 %v5738_v1  ;;  %5865 = vmatpush.msrb.mxu3 %v5739_v49  ;;  %v5936_v1 = vld [vmem:[#allocation6 + $0x3980] sm:$0xff]  ;;  %v5937_v49 = vld [vmem:[#allocation6 + $0x3988] sm:$0xff] }
0x11ca   : > { %5797 = vmatpush.msrb.mxu0 %v5704_v43  ;;  %5843 = vmatpush.msrb.mxu2 %v5705_v53  ;;  %v5903_v43 = vld [vmem:[#allocation6 + $0x3878] sm:$0xff]  ;;  %v5900_v53 = vld [vmem:[#allocation6 + $0x3860] sm:$0xff] }
0x11cb   : > { %5820 = vmatpush.msrb.mxu1 %v5736_v62  ;;  %5866 = vmatpush.msrb.mxu3 %v5737_v12  ;;  %v5897_v62 = vld [vmem:[#allocation6 + $0x3848] sm:$0xff] }
0x11cc   : > { %5798 = vmatpush.msrb.mxu0 %v5702_v30  ;;  %5844 = vmatpush.msrb.mxu2 %v5703_v0  ;;  %v5901_v30 = vld [vmem:[#allocation6 + $0x3868] sm:$0xff] }
0x11cd   : > { %5821 = vmatpush.msrb.mxu1 %v5734_v18  ;;  %5867 = vmatpush.msrb.mxu3 %v5735_v19  ;;  %v5894_v18 = vld [vmem:[#allocation6 + $0x3830] sm:$0xff]  ;;  %v5932_v19 = vld [vmem:[#allocation6 + $0x3960] sm:$0xff] }
0x11ce   : > { %5799 = vmatpush.msrb.mxu0 %v5700_v35  ;;  %5845 = vmatpush.msrb.mxu2 %v5701_v45  ;;  %v5898_v35 = vld [vmem:[#allocation6 + $0x3850] sm:$0xff]  ;;  %v5899_v45 = vld [vmem:[#allocation6 + $0x3858] sm:$0xff] }
0x11cf   : > { %5822 = vmatpush.msrb.mxu1 %v5732_v58  ;;  %5868 = vmatpush.msrb.mxu3 %v5733_v26  ;;  %v5892_v58 = vld [vmem:[#allocation6 + $0x3820] sm:$0xff]  ;;  %v5930_v26 = vld [vmem:[#allocation6 + $0x3950] sm:$0xff] }
0x11d0   : > { %5952 = vmatpush.msra.mxu0 %v5918_v48  ;;  %5998 = vmatpush.msra.mxu2 %v5919_v9  ;;  %v5896_v48 = vld [vmem:[#allocation6 + $0x3840] sm:$0xff]  ;;  %v5934_v9 = vld [vmem:[#allocation6 + $0x3970] sm:$0xff] }
0x11d1   : > { %5975 = vmatpush.msra.mxu1 %v5950_v15  ;;  %6021 = vmatpush.msra.mxu3 %v5951_v23  ;;  %v5931_v15 = vld [vmem:[#allocation6 + $0x3958] sm:$0xff]  ;;  %v5928_v23 = vld [vmem:[#allocation6 + $0x3940] sm:$0xff] }
0x11d2   : > { %5953 = vmatpush.msra.mxu0 %v5916_v13  ;;  %5999 = vmatpush.msra.mxu2 %v5917_v14  ;;  %v5935_v14 = vld [vmem:[#allocation6 + $0x3978] sm:$0xff] }
0x11d3   : > { %5976 = vmatpush.msra.mxu1 %v5948_v38  ;;  %6022 = vmatpush.msra.mxu3 %v5949_v39  ;;  %v5929_v38 = vld [vmem:[#allocation6 + $0x3948] sm:$0xff] }
0x11d4   : > { %5954 = vmatpush.msra.mxu0 %v5914_v61  ;;  %6000 = vmatpush.msra.mxu2 %v5915_v40  ;;  %v5895_v61 = vld [vmem:[#allocation6 + $0x3838] sm:$0xff]  ;;  %v5933_v40 = vld [vmem:[#allocation6 + $0x3968] sm:$0xff] }
0x11d5   : > { %5977 = vmatpush.msra.mxu1 %v5946_v11  ;;  %6023 = vmatpush.msra.mxu3 %v5947_v42  ;;  %v5926_v11 = vld [vmem:[#allocation6 + $0x3930] sm:$0xff]  ;;  %v5927_v42 = vld [vmem:[#allocation6 + $0x3938] sm:$0xff] }
0x11d6   : > { %5955 = vmatpush.msra.mxu0 %v5912_v36  ;;  %6001 = vmatpush.msra.mxu2 %v5913_v41  ;;  %v5893_v36 = vld [vmem:[#allocation6 + $0x3828] sm:$0xff]  ;;  %v5890_v41 = vld [vmem:[#allocation6 + $0x3810] sm:$0xff] }
0x11d7   : > { %5978 = vmatpush.msra.mxu1 %v5944_v5  ;;  %6024 = vmatpush.msra.mxu3 %v5945_v50  ;;  %v5925_v5 = vld [vmem:[#allocation6 + $0x3928] sm:$0xff] }
0x11d8   : > { %5956 = vmatpush.msra.mxu0 %v5910_v3  ;;  %6002 = vmatpush.msra.mxu2 %v5911_v2  ;;  %v5891_v3 = vld [vmem:[#allocation6 + $0x3818] sm:$0xff] }
0x11d9   : > { %5979 = vmatpush.msra.mxu1 %v5942_v7  ;;  %6025 = vmatpush.msra.mxu3 %v5943_v51  ;;  %v5923_v7 = vld [vmem:[#allocation6 + $0x3918] sm:$0xff]  ;;  %v5920_v51 = vld [vmem:[#allocation6 + $0x3900] sm:$0xff] }
0x11da   : > { %5957 = vmatpush.msra.mxu0 %v5908_v20  ;;  %6003 = vmatpush.msra.mxu2 %v5909_v27  ;;  %v5888_v20 = vld [vmem:[#allocation6 + $0x3800] sm:$0xff]  ;;  %v5889_v27 = vld [vmem:[#allocation6 + $0x3808] sm:$0xff] }
0x11db   : > { %5980 = vmatpush.msra.mxu1 %v5940_v32  ;;  %6026 = vmatpush.msra.mxu3 %v5941_v16 }
0x11dc   : > { %5958 = vmatpush.msra.mxu0 %v5906_v46  ;;  %6004 = vmatpush.msra.mxu2 %v5907_v33  ;;  %v5924_v46 = vld [vmem:[#allocation6 + $0x3920] sm:$0xff] }
0x11dd   : > { %5981 = vmatpush.msra.mxu1 %v5938_v55  ;;  %6027 = vmatpush.msra.mxu3 %v5939_v63 }
0x11de   : > { %5959 = vmatpush.msra.mxu0 %v5904_v8  ;;  %6005 = vmatpush.msra.mxu2 %v5905_v25  ;;  %v5922_v8 = vld [vmem:[#allocation6 + $0x3910] sm:$0xff] }
0x11df   : > { %5982 = vmatpush.msra.mxu1 %v5936_v1  ;;  %6028 = vmatpush.msra.mxu3 %v5937_v49  ;;  %v5132_v25 = vld [vmem:[#allocation8 + $0x10] sm:$0x3] }
0x11e0   : > { %5960 = vmatpush.msra.mxu0 %v5902_v52  ;;  %6006 = vmatpush.msra.mxu2 %v5903_v43  ;;  %v5921_v52 = vld [vmem:[#allocation6 + $0x3908] sm:$0xff]  ;;  %v5317_v43 = vperm.slane %v5132_v25, 0 }
0x11e1   : > { %5983 = vmatpush.msra.mxu1 %v5934_v9  ;;  %6029 = vmatpush.msra.mxu3 %v5935_v14  ;;  %v5693_v14 = vld [vmem:[#allocation2 + $0x30] sm:$0x80] }
0x11e2   : > { %5961 = vmatpush.msra.mxu0 %v5900_v53  ;;  %6007 = vmatpush.msra.mxu2 %v5901_v30 }
0x11e3   : > { %5984 = vmatpush.msra.mxu1 %v5932_v19  ;;  %6030 = vmatpush.msra.mxu3 %v5933_v40 }
0x11e4   : > { %5962 = vmatpush.msra.mxu0 %v5898_v35  ;;  %6008 = vmatpush.msra.mxu2 %v5899_v45 }
0x11e5   : > { %5985 = vmatpush.msra.mxu1 %v5930_v26  ;;  %6031 = vmatpush.msra.mxu3 %v5931_v15 }
0x11e6   : > { %5963 = vmatpush.msra.mxu0 %v5896_v48  ;;  %6009 = vmatpush.msra.mxu2 %v5897_v62  ;;  %v5318_v48 = vperm.slane %v5132_v25, 1 }
0x11e7   : > { %5986 = vmatpush.msra.mxu1 %v5928_v23  ;;  %6032 = vmatpush.msra.mxu3 %v5929_v38  ;;  %v6086_v23 = vld [vmem:[#allocation6 + $0x3af8] sm:$0xff] }
0x11e8   : > { %5964 = vmatpush.msra.mxu0 %v5894_v18  ;;  %6010 = vmatpush.msra.mxu2 %v5895_v61  ;;  %v5770_v18 = vrot.slane %v5693_v14, 7  ;;  %v6113_v14 = vld [vmem:[#allocation6 + $0x3bd0] sm:$0xff] }
0x11e9   : > { %5987 = vmatpush.msra.mxu1 %v5926_v11  ;;  %6033 = vmatpush.msra.mxu3 %v5927_v42  ;;  %v6083_v11 = vld [vmem:[#allocation6 + $0x3ae0] sm:$0xff] }
0x11ea   : > { %5965 = vmatpush.msra.mxu0 %v5892_v58  ;;  %6011 = vmatpush.msra.mxu2 %v5893_v36 }
0x11eb   : > { %5988 = vmatpush.msra.mxu1 %v5924_v46  ;;  %6034 = vmatpush.msra.mxu3 %v5925_v5 }
0x11ec   : > { %5966 = vmatpush.msra.mxu0 %v5890_v41  ;;  %6012 = vmatpush.msra.mxu2 %v5891_v3  ;;  %v6085_v41 = vld [vmem:[#allocation6 + $0x3af0] sm:$0xff] }
0x11ed   : > { %5989 = vmatpush.msra.mxu1 %v5922_v8  ;;  %6035 = vmatpush.msra.mxu3 %v5923_v7 }
0x11ee   : > { %5967 = vmatpush.msra.mxu0 %v5888_v20  ;;  %6013 = vmatpush.msra.mxu2 %v5889_v27  ;;  %v6084_v27 = vld [vmem:[#allocation6 + $0x3ae8] sm:$0xff] }
0x11ef   : > { %5990 = vmatpush.msra.mxu1 %v5920_v51  ;;  %6036 = vmatpush.msra.mxu3 %v5921_v52 }
0x1201   : > { %v8810_v24 = vpop.f32.mrf.mxu0  ;;  %v8812_v21 = vpop.f32.mrf.mxu1 }
0x1202   : > { %v5265_v32 = vadd.f32 %v8812_v21, %v8810_v24 }
0x1204   : > { %v5321_v30 = vadd.f32 %v5317_v43, %v5265_v32 }
0x1208   : > { %v8814_v17 = vpop.f32.mrf.mxu2  ;;  %v8816_v6 = vpop.f32.mrf.mxu3 }
0x1209   : > { %v5311_v49 = vadd.f32 %v8816_v6, %v8814_v17 }
0x120b   : > { %v8818_v10 = vpop.f32.mrf.mxu0  ;;  %v8820_v22 = vpop.f32.mrf.mxu1 }
0x120c   : > { %v5268_v9 = vadd.f32 %v8820_v22, %v8818_v10 }
0x120e   : > { %v5323_v19 = vadd.f32 %v5317_v43, %v5268_v9 }
0x1212   : > { %v8822_v0 = vpop.f32.mrf.mxu2  ;;  %v8824_v44 = vpop.f32.mrf.mxu3 }
0x1213   : > { %v5314_v3 = vadd.f32 %v8824_v44, %v8822_v0  ;;  %v6082_v0 = vld [vmem:[#allocation6 + $0x3ad8] sm:$0xff] }
0x1215   : > { %v5409_v12 = vpop.f32.mrf.mxu0  ;;  %v5432_v13 = vpop.f32.mrf.mxu1 }
0x1216   : > { %v5433_v16 = vadd.f32 %v5432_v13, %v5409_v12  ;;  %v5322_v13 = vadd.f32 %v5318_v48, %v5311_v49  ;;  %v6078_v49 = vld [vmem:[#allocation6 + $0x3ab8] sm:$0xff] }
0x1218   : > { %v5484_v1 = vadd.f32 %v5433_v16, %v5321_v30  ;;  %v6079_v16 = vld [vmem:[#allocation6 + $0x3ac0] sm:$0xff]  ;;  %v6080_v30 = vld [vmem:[#allocation6 + $0x3ac8] sm:$0xff] }
0x121c   : > { %v5455_v2 = vpop.f32.mrf.mxu2  ;;  %v5478_v39 = vpop.f32.mrf.mxu3 }
0x121d   : > { %v5479_v24 = vadd.f32 %v5478_v39, %v5455_v2  ;;  %v5694_v39 = vld [vmem:[#allocation2] sm:$0x80] }
0x121e   : > { %v5773_v44 = vrot.slane %v5694_v39, 7  ;;  %v6105_v39 = vld [vmem:[#allocation6 + $0x3b90] sm:$0xff] }
0x121f   : > { %v5412_v33 = vpop.f32.mrf.mxu0  ;;  %v5435_v50 = vpop.f32.mrf.mxu1  ;;  %v5485_v26 = vadd.f32 %v5479_v24, %v5322_v13  ;;  %v6076_v24 = vld [vmem:[#allocation6 + $0x3aa8] sm:$0xff]  ;;  %v6073_v13 = vld [vmem:[#allocation6 + $0x3a90] sm:$0xff] }
0x1220   : > { %v5436_v21 = vadd.f32 %v5435_v50, %v5412_v33  ;;  %v6081_v33 = vld [vmem:[#allocation6 + $0x3ad0] sm:$0xff]  ;;  %v5324_v50 = vadd.f32 %v5318_v48, %v5314_v3  ;;  %v6116_v48 = vld [vmem:[#allocation6 + $0x3be8] sm:$0xff]  ;;  %v6070_v3 = vld [vmem:[#allocation6 + $0x3a78] sm:$0xff] }
0x1222   : > { %v5486_v22 = vadd.f32 %v5436_v21, %v5323_v19  ;;  %v6114_v21 = vld [vmem:[#allocation6 + $0x3bd8] sm:$0xff] }
0x1226   : > { %v5458_v53 = vpop.f32.mrf.mxu2  ;;  %v5481_v55 = vpop.f32.mrf.mxu3 }
0x1227   : > { %v5482_v42 = vadd.f32 %v5481_v55, %v5458_v53  ;;  %v6117_v53 = vld [vmem:[#allocation6 + $0x3bf0] sm:$0xff] }
0x1229   : > { %v5596_v63 = vpop.f32.mrf.mxu0  ;;  %v5619_v35 = vpop.f32.mrf.mxu1  ;;  %v5487_v32 = vadd.f32 %v5482_v42, %v5324_v50  ;;  %v6101_v50 = vld [vmem:[#allocation6 + $0x3b70] sm:$0xff] }
0x122a   : > { %v5620_v45 = vadd.f32 %v5619_v35, %v5596_v63  ;;  %v6118_v63 = vld [vmem:[#allocation6 + $0x3bf8] sm:$0xff] }
0x122c   : > { %v5671_v62 = vadd.f32 %v5620_v45, %v5484_v1  ;;  %v6077_v1 = vld [vmem:[#allocation6 + $0x3ab0] sm:$0xff]  ;;  %v6115_v45 = vld [vmem:[#allocation6 + $0x3be0] sm:$0xff] }
0x122e   : > { %vm5675_vm7 = vcmp.gt.f32.partialorder %v5671_v62, 0.0  ;;  %v5679_v12 = vmul.f32 0.2, %v5671_v62 }
0x1230   : > { %v8832_v61 = vsel %vm5675_vm7, %v5671_v62, %v5679_v12  ;;  %v5642_v40 = vpop.f32.mrf.mxu2  ;;  %v5665_v58 = vpop.f32.mrf.mxu3  ;;  %v6075_v62 = vld [vmem:[#allocation6 + $0x3aa0] sm:$0xff] }
0x1231   : > { %5687 = vst [vmem:[#allocation2 + $0x18] sm:$0xff] %v8832_v61  ;;  %v5666_v17 = vadd.f32 %v5665_v58, %v5642_v40  ;;  %v5599_v6 = vpop.f32.mrf.mxu0  ;;  %v5622_v36 = vpop.f32.mrf.mxu1  ;;  %v5771_v10 = vrot.slane %v8832_v61, 7  ;;  %v6074_v40 = vld [vmem:[#allocation6 + $0x3a98] sm:$0xff]  ;;  %v6112_v58 = vld [vmem:[#allocation6 + $0x3bc8] sm:$0xff] }
0x1232   : > { %v5623_v15 = vadd.f32 %v5622_v36, %v5599_v6  ;;  %v6109_v6 = vld [vmem:[#allocation6 + $0x3bb0] sm:$0xff] }
0x1233   : > { %v5672_v38 = vadd.f32 %v5666_v17, %v5485_v26  ;;  %v5772_v2 = vsel %vm475_vm0, %v5770_v18, %v5771_v10  ;;  %v6111_v18 = vld [vmem:[#allocation6 + $0x3bc0] sm:$0xff] }
0x1234   : > { %v5673_v20 = vadd.f32 %v5623_v15, %v5486_v22  ;;  %5800 = vmatmul.f32.vlgmr.msrb.gmra.mxu0 %v5772_v2  ;;  %5846 = vmatmul.f32.vlgmr.msrb.gmra.mxu2 %v5772_v2  ;;  %v6071_v17 = vld [vmem:[#allocation6 + $0x3a80] sm:$0xff]  ;;  %v6072_v22 = vld [vmem:[#allocation6 + $0x3a88] sm:$0xff]  ;;  %v6110_v15 = vld [vmem:[#allocation6 + $0x3bb8] sm:$0xff] }
0x1235   : > { %vm5676_vm8 = vcmp.gt.f32.partialorder %v5672_v38, 0.0  ;;  %v5680_v46 = vmul.f32 0.2, %v5672_v38  ;;  %6139 = vmatpush.msrb.mxu0 %v6085_v41  ;;  %6185 = vmatpush.msrb.mxu2 %v6086_v23  ;;  %v6069_v41 = vld [vmem:[#allocation6 + $0x3a70] sm:$0xff]  ;;  %v6107_v23 = vld [vmem:[#allocation6 + $0x3ba0] sm:$0xff] }
0x1236   : > { %vm5677_vm9 = vcmp.gt.f32.partialorder %v5673_v20, 0.0  ;;  %v5681_v5 = vmul.f32 0.2, %v5673_v20  ;;  %v6067_v2 = vld [vmem:[#allocation6 + $0x3a60] sm:$0xff] }
0x1237   : > { %v8841_v8 = vsel %vm5676_vm8, %v5672_v38, %v5680_v46  ;;  %6140 = vmatpush.msrb.mxu0 %v6083_v11  ;;  %6186 = vmatpush.msrb.mxu2 %v6084_v27  ;;  %v6108_v38 = vld [vmem:[#allocation6 + $0x3ba8] sm:$0xff]  ;;  %v6106_v11 = vld [vmem:[#allocation6 + $0x3b98] sm:$0xff]  ;;  %v6065_v46 = vld [vmem:[#allocation6 + $0x3a50] sm:$0xff] }
0x1238   : > { %5688 = vst [vmem:[#allocation2 + $0x10] sm:$0xff] %v8841_v8  ;;  %v8844_v7 = vsel %vm5677_vm9, %v5673_v20, %v5681_v5  ;;  %v5645_v25 = vpop.f32.mrf.mxu2  ;;  %v5668_v51 = vpop.f32.mrf.mxu3  ;;  %v5774_v52 = vrot.slane %v8841_v8, 7  ;;  %v6103_v5 = vld [vmem:[#allocation6 + $0x3b80] sm:$0xff] }
0x1239   : > { %5689 = vst [vmem:[#allocation2 + $0x8] sm:$0xff] %v8844_v7  ;;  %v5669_v43 = vadd.f32 %v5668_v51, %v5645_v25  ;;  %6141 = vmatpush.msrb.mxu0 %v6081_v33  ;;  %6187 = vmatpush.msrb.mxu2 %v6082_v0  ;;  %v6066_v33 = vld [vmem:[#allocation6 + $0x3a58] sm:$0xff]  ;;  %v6104_v0 = vld [vmem:[#allocation6 + $0x3b88] sm:$0xff] }
0x123a   : > { %v5775_v55 = vsel %vm475_vm0, %v5773_v44, %v5774_v52  ;;  %v6063_v44 = vld [vmem:[#allocation6 + $0x3a40] sm:$0xff]  ;;  %v6064_v25 = vld [vmem:[#allocation6 + $0x3a48] sm:$0xff]  ;;  %v6102_v51 = vld [vmem:[#allocation6 + $0x3b78] sm:$0xff] }
0x123b   : > { %v5674_v35 = vadd.f32 %v5669_v43, %v5487_v32  ;;  %5823 = vmatmul.f32.vlgmr.msrb.gmra.mxu1 %v5775_v55  ;;  %5869 = vmatmul.f32.vlgmr.msrb.gmra.mxu3 %v5775_v55  ;;  %v6099_v32 = vld [vmem:[#allocation6 + $0x3b60] sm:$0xff]  ;;  %v6062_v43 = vld [vmem:[#allocation6 + $0x3a38] sm:$0xff]  ;;  %v6060_v55 = vld [vmem:[#allocation6 + $0x3a28] sm:$0xff] }
0x123c   : > { %6142 = vmatpush.msrb.mxu0 %v6079_v16  ;;  %6162 = vmatpush.msrb.mxu1 %v6117_v53  ;;  %v6100_v16 = vld [vmem:[#allocation6 + $0x3b68] sm:$0xff]  ;;  %v6097_v53 = vld [vmem:[#allocation6 + $0x3b50] sm:$0xff] }
0x123d   : > { %vm5678_vm10 = vcmp.gt.f32.partialorder %v5674_v35, 0.0  ;;  %v5682_v9 = vmul.f32 0.2, %v5674_v35  ;;  %6188 = vmatpush.msrb.mxu2 %v6080_v30  ;;  %6208 = vmatpush.msrb.mxu3 %v6118_v63  ;;  %v6098_v30 = vld [vmem:[#allocation6 + $0x3b58] sm:$0xff]  ;;  %v6057_v63 = vld [vmem:[#allocation6 + $0x3a10] sm:$0xff] }
0x123e   : > { %6143 = vmatpush.msrb.mxu0 %v6077_v1  ;;  %6163 = vmatpush.msrb.mxu1 %v6115_v45  ;;  %v6048_v1 = vld [vmem:[#allocation2 + $0x18] sm:$0xfe] }
0x123f   : > { %v8851_v12 = vsel %vm5678_vm10, %v5674_v35, %v5682_v9  ;;  %6189 = vmatpush.msrb.mxu2 %v6078_v49  ;;  %6209 = vmatpush.msrb.mxu3 %v6116_v48  ;;  %v6095_v35 = vld [vmem:[#allocation6 + $0x3b40] sm:$0xff]  ;;  %v6058_v45 = vld [vmem:[#allocation6 + $0x3a18] sm:$0xff]  ;;  %v6096_v49 = vld [vmem:[#allocation6 + $0x3b48] sm:$0xff] }
0x1240   : > { %5690 = vst [vmem:[#allocation2 + $0x20] sm:$0xff] %v8851_v12  ;;  %v5697_v19 = vld [vmem:[#allocation2 + $0x8] sm:$0x7f]  ;;  %6144 = vmatpush.msrb.mxu0 %v6075_v62  ;;  %6164 = vmatpush.msrb.mxu1 %v6113_v14  ;;  %v6055_v48 = vld [vmem:[#allocation6 + $0x3a00] sm:$0xff]  ;;  %v6093_v9 = vld [vmem:[#allocation6 + $0x3b30] sm:$0xff]  ;;  %v6125_v14 = vrot.slane %v6048_v1, 1 }
0x1241   : > { %v5776_v26 = vrot.slane %v5697_v19, 7  ;;  %6190 = vmatpush.msrb.mxu2 %v6076_v24  ;;  %6210 = vmatpush.msrb.mxu3 %v6114_v21  ;;  %v6094_v62 = vld [vmem:[#allocation6 + $0x3b38] sm:$0xff]  ;;  %v6126_v24 = vrot.slane %v8844_v7, 1  ;;  %v6091_v21 = vld [vmem:[#allocation6 + $0x3b20] sm:$0xff]  ;;  %v6049_v19 = vld [vmem:[#allocation2 + $0x10] sm:$0xfe] }
0x1242   : > { %6145 = vmatpush.msrb.mxu0 %v6073_v13  ;;  %6165 = vmatpush.msrb.mxu1 %v6111_v18  ;;  %v6092_v13 = vld [vmem:[#allocation6 + $0x3b28] sm:$0xff] }
0x1243   : > { %v5777_v36 = vsel %vm475_vm0, %v5771_v10, %v5776_v26  ;;  %6191 = vmatpush.msrb.mxu2 %v6074_v40  ;;  %6211 = vmatpush.msrb.mxu3 %v6112_v58  ;;  %v6068_v10 = vld [vmem:[#allocation6 + $0x3a68] sm:$0xff]  ;;  %v6127_v18 = vsel %vm831_vm1, %v6125_v14, %v6126_v24  ;;  %v6089_v40 = vld [vmem:[#allocation6 + $0x3b10] sm:$0xff]  ;;  %v6090_v58 = vld [vmem:[#allocation6 + $0x3b18] sm:$0xff] }
0x1244   : > { %5803 = vmatmul.f32.gmra.mxu0 %v5777_v36  ;;  %5849 = vmatmul.f32.gmra.mxu2 %v5777_v36  ;;  %v6087_v26 = vld [vmem:[#allocation6 + $0x3b00] sm:$0xff]  ;;  %v6129_v36 = vrot.slane %v8851_v12, 1 }
0x1245   : > { %6146 = vmatpush.msrb.mxu0 %v6071_v17  ;;  %6166 = vmatpush.msrb.mxu1 %v6109_v6  ;;  %v6088_v17 = vld [vmem:[#allocation6 + $0x3b08] sm:$0xff]  ;;  %v6128_v6 = vrot.slane %v6049_v19, 1 }
0x1246   : > { %6192 = vmatpush.msrb.mxu2 %v6072_v22  ;;  %6212 = vmatpush.msrb.mxu3 %v6110_v15 }
0x1247   : > { %v5698_v20 = vld [vmem:[#allocation2 + $0x20] sm:$0x7f]  ;;  %6147 = vmatpush.msrb.mxu0 %v6069_v41  ;;  %6167 = vmatpush.msrb.mxu1 %v6107_v23  ;;  %v6130_v15 = vsel %vm831_vm1, %v6128_v6, %v6129_v36  ;;  %v6053_v23 = vld [vmem:[#allocation2 + $0x38] sm:$0x1] }
0x1248   : > { %v5778_v27 = vrot.slane %v5698_v20, 7  ;;  %6193 = vmatpush.msrb.mxu2 %v6070_v3  ;;  %6213 = vmatpush.msrb.mxu3 %v6108_v38  ;;  %v6133_v3 = vrot.slane %v6053_v23, 1 }
0x1249   : > { %6148 = vmatpush.msrb.mxu0 %v6067_v2  ;;  %6168 = vmatpush.msrb.mxu1 %v6105_v39 }
0x124a   : > { %v5779_v42 = vsel %vm475_vm0, %v5774_v52, %v5778_v27  ;;  %6194 = vmatpush.msrb.mxu2 %v6068_v10  ;;  %6214 = vmatpush.msrb.mxu3 %v6106_v11  ;;  %v6061_v52 = vld [vmem:[#allocation6 + $0x3a30] sm:$0xff]  ;;  %v6134_v38 = vsel %vm831_vm1, %v6129_v36, %v6133_v3 }
0x124b   : > { %5826 = vmatmul.f32.gmra.mxu1 %v5779_v42  ;;  %5872 = vmatmul.f32.gmra.mxu3 %v5779_v42 }
0x124c   : > { %5968 = vmatmul.f32.vlgmr.msra.gmra.mxu0 %v8832_v61  ;;  %6014 = vmatmul.f32.vlgmr.msra.gmra.mxu2 %v8832_v61  ;;  %v6059_v61 = vld [vmem:[#allocation6 + $0x3a20] sm:$0xff] }
0x124d   : > { %6149 = vmatpush.msrb.mxu0 %v6065_v46  ;;  %6169 = vmatpush.msrb.mxu1 %v6103_v5 }
0x124e   : > { %6195 = vmatpush.msrb.mxu2 %v6066_v33  ;;  %6215 = vmatpush.msrb.mxu3 %v6104_v0 }
0x124f   : > { %6150 = vmatpush.msrb.mxu0 %v6063_v44  ;;  %6170 = vmatpush.msrb.mxu1 %v6101_v50 }
0x1250   : > { %6196 = vmatpush.msrb.mxu2 %v6064_v25  ;;  %6216 = vmatpush.msrb.mxu3 %v6102_v51 }
0x1251   : > { %6151 = vmatpush.msrb.mxu0 %v6061_v52  ;;  %6171 = vmatpush.msrb.mxu1 %v6099_v32  ;;  %v5692_v32 = vld [vmem:[#allocation8 + $0x12] sm:$0x3] }
0x1252   : > { %6197 = vmatpush.msrb.mxu2 %v6062_v43  ;;  %6217 = vmatpush.msrb.mxu3 %v6100_v16 }
0x1253   : > { %5991 = vmatmul.f32.vlgmr.msra.gmra.mxu1 %v8841_v8  ;;  %6037 = vmatmul.f32.vlgmr.msra.gmra.mxu3 %v8841_v8  ;;  %v6056_v8 = vld [vmem:[#allocation6 + $0x3a08] sm:$0xff] }
0x1254   : > { %5971 = vmatmul.f32.gmra.mxu0 %v8844_v7  ;;  %6017 = vmatmul.f32.gmra.mxu2 %v8844_v7  ;;  %v6052_v7 = vld [vmem:[#allocation2 + $0x28] sm:$0x1] }
0x1255   : > { %6152 = vmatpush.msrb.mxu0 %v6059_v61  ;;  %6172 = vmatpush.msrb.mxu1 %v6097_v53  ;;  %v6131_v22 = vrot.slane %v6052_v7, 1  ;;  %v5877_v61 = vperm.slane %v5692_v32, 0 }
0x1256   : > { %6198 = vmatpush.msrb.mxu2 %v6060_v55  ;;  %6218 = vmatpush.msrb.mxu3 %v6098_v30 }
0x1257   : > { %6153 = vmatpush.msrb.mxu0 %v6057_v63  ;;  %6173 = vmatpush.msrb.mxu1 %v6095_v35  ;;  %v6132_v41 = vsel %vm831_vm1, %v6126_v24, %v6131_v22 }
0x1258   : > { %6199 = vmatpush.msrb.mxu2 %v6058_v45  ;;  %6219 = vmatpush.msrb.mxu3 %v6096_v49 }
0x1259   : > { %6154 = vmatpush.msrb.mxu0 %v6055_v48  ;;  %6174 = vmatpush.msrb.mxu1 %v6093_v9  ;;  %v5878_v9 = vperm.slane %v5692_v32, 1 }
0x125a   : > { %6200 = vmatpush.msrb.mxu2 %v6056_v8  ;;  %6220 = vmatpush.msrb.mxu3 %v6094_v62 }
0x125b   : > { %5994 = vmatmul.f32.gmra.mxu1 %v8851_v12  ;;  %6040 = vmatmul.f32.gmra.mxu3 %v8851_v12 }
0x125c   : > { %6155 = vmatmul.f32.vlgmr.msrb.gmra.mxu0 %v6127_v18  ;;  %6201 = vmatmul.f32.vlgmr.msrb.gmra.mxu2 %v6127_v18 }
0x125d   : > { %6175 = vmatpush.msrb.mxu1 %v6091_v21  ;;  %6221 = vmatpush.msrb.mxu3 %v6092_v13 }
0x125f   : > { %6176 = vmatpush.msrb.mxu1 %v6089_v40  ;;  %6222 = vmatpush.msrb.mxu3 %v6090_v58 }
0x1261   : > { %6177 = vmatpush.msrb.mxu1 %v6087_v26  ;;  %6223 = vmatpush.msrb.mxu3 %v6088_v17 }
0x1263   : > { %6178 = vmatmul.f32.vlgmr.msrb.gmra.mxu1 %v6130_v15  ;;  %6224 = vmatmul.f32.vlgmr.msrb.gmra.mxu3 %v6130_v15 }
0x1264   : > { %6158 = vmatmul.f32.gmra.mxu0 %v6132_v41  ;;  %6204 = vmatmul.f32.gmra.mxu2 %v6132_v41 }
0x126b   : > { %6181 = vmatmul.f32.gmra.mxu1 %v6134_v38  ;;  %6227 = vmatmul.f32.gmra.mxu3 %v6134_v38 }
0x12b1   : > { %v5801_v12 = vpop.f32.mrf.mxu0 }
0x12b7   : > { %v5847_v2 = vpop.f32.mrf.mxu2 }
0x12b8   : > { %v5824_v39 = vpop.f32.mrf.mxu1 }
0x12b9   : > { %v5825_v16 = vadd.f32 %v5824_v39, %v5801_v12 }
0x12bb   : > { %v5881_v1 = vadd.f32 %v5877_v61, %v5825_v16 }
0x12be   : > { %v5870_v10 = vpop.f32.mrf.mxu3 }
0x12bf   : > { %v5871_v48 = vadd.f32 %v5870_v10, %v5847_v2 }
0x12c1   : > { %v5804_v20 = vpop.f32.mrf.mxu0  ;;  %v5882_v7 = vadd.f32 %v5878_v9, %v5871_v48  ;;  %v6278_v48 = vld [vmem:[#allocation11 + $0xc] sm:$0xf] }
0x12c7   : > { %v5850_v11 = vpop.f32.mrf.mxu2 }
0x12c8   : > { %v5827_v27 = vpop.f32.mrf.mxu1 }
0x12c9   : > { %v5969_v42 = vpop.f32.mrf.mxu0  ;;  %v5828_v53 = vadd.f32 %v5827_v27, %v5804_v20 }
0x12cb   : > { %v5883_v45 = vadd.f32 %v5877_v61, %v5828_v53  ;;  %v6267_v53 = vld [vmem:[#allocation9 + $0xc] sm:$0xf] }
0x12ce   : > { %v5873_v46 = vpop.f32.mrf.mxu3 }
0x12cf   : > { %v6015_v33 = vpop.f32.mrf.mxu2  ;;  %v5874_v14 = vadd.f32 %v5873_v46, %v5850_v11 }
0x12d0   : > { %v5992_v5 = vpop.f32.mrf.mxu1 }
0x12d1   : > { %v5972_v0 = vpop.f32.mrf.mxu0  ;;  %v5993_v30 = vadd.f32 %v5992_v5, %v5969_v42  ;;  %v5884_v26 = vadd.f32 %v5878_v9, %v5874_v14 }
0x12d3   : > { %v6044_v24 = vadd.f32 %v5993_v30, %v5881_v1 }
0x12d6   : > { %v6038_v44 = vpop.f32.mrf.mxu3 }
0x12d7   : > { %v6018_v25 = vpop.f32.mrf.mxu2  ;;  %v6039_v18 = vadd.f32 %v6038_v44, %v6015_v33 }
0x12d8   : > { %v5995_v50 = vpop.f32.mrf.mxu1 }
0x12d9   : > { %v6156_v51 = vpop.f32.mrf.mxu0  ;;  %v5996_v63 = vadd.f32 %v5995_v50, %v5972_v0  ;;  %v6045_v15 = vadd.f32 %v6039_v18, %v5882_v7 }
0x12db   : > { %v6046_v21 = vadd.f32 %v5996_v63, %v5883_v45 }
0x12de   : > { %v6041_v52 = vpop.f32.mrf.mxu3 }
0x12df   : > { %v6202_v55 = vpop.f32.mrf.mxu2  ;;  %v6042_v19 = vadd.f32 %v6041_v52, %v6018_v25 }
0x12e0   : > { %v6179_v43 = vpop.f32.mrf.mxu1 }
0x12e1   : > { %v6180_v49 = vadd.f32 %v6179_v43, %v6156_v51  ;;  %v6159_v8 = vpop.f32.mrf.mxu0  ;;  %v6047_v41 = vadd.f32 %v6042_v19, %v5884_v26  ;;  %v6293_v19 = vld [vmem:[#allocation12 + $0x3] sm:$0x1] }
0x12e3   : > { %v8874_v40 = vadd.f32 %v6180_v49, %v6044_v24 }
0x12e6   : > { %v6225_v35 = vpop.f32.mrf.mxu3 }
0x12e7   : > { %v6226_v17 = vadd.f32 %v6225_v35, %v6202_v55  ;;  %v6205_v36 = vpop.f32.mrf.mxu2  ;;  %v7607_v35 = vld [vmem:[%s9063_s4 + $0xc] sm:$0xf] }
0x12e8   : > { %v6182_v62 = vpop.f32.mrf.mxu1 }
0x12e9   : > { %v6183_v13 = vadd.f32 %v6182_v62, %v6159_v8  ;;  %v8880_v38 = vadd.f32 %v6226_v17, %v6045_v15 }
0x12eb   : > { %v8876_v58 = vadd.f32 %v6183_v13, %v6046_v21 }
0x12ed   : > { %v6235_v6 = vadd.f32 %v8876_v58, %v8874_v40 }
0x12ee   : > { %v6228_v22 = vpop.f32.mrf.mxu3 }
0x12ef   : > { %v6236_v23 = vrot.slane %v6235_v6, 4  ;;  %v6229_v3 = vadd.f32 %v6228_v22, %v6205_v36 }
0x12f1   : > { %v6237_v12 = vadd.f32 %v6236_v23, %v6235_v6  ;;  %v8882_v2 = vadd.f32 %v6229_v3, %v6047_v41 }
0x12f3   : > { %v6238_v39 = vrot.slane %v6237_v12, 2  ;;  %v6242_v20 = vadd.f32 %v8882_v2, %v8880_v38 }
0x12f5   : > { %v6243_v10 = vrot.slane %v6242_v20, 4  ;;  %v6239_v27 = vadd.f32 %v6238_v39, %v6237_v12 }
0x12f7   : > { %v6244_v11 = vadd.f32 %v6243_v10, %v6242_v20  ;;  %v6240_v46 = vrot.slane %v6239_v27, 1 }
0x12f9   : > { %v6245_v42 = vrot.slane %v6244_v11, 2  ;;  %v6241_v0 = vadd.f32 %v6240_v46, %v6239_v27  ;;  %v6381_v46 = vld [vmem:[#allocation6 + $0x3cf0] sm:$0xff] }
0x12fa   : > { %6435 = vmatpush.msra.mxu0 %v6381_v46  ;;  %v6392_v46 = vld [vmem:[#allocation6 + $0x3d48] sm:$0xff] }
0x12fb   : > { %v6246_v5 = vadd.f32 %v6245_v42, %v6244_v11 }
0x12fd   : > { %v6247_v33 = vrot.slane %v6246_v5, 1 }
0x12ff   : > { %v6248_v44 = vadd.f32 %v6247_v33, %v6246_v5  ;;  %v6413_v5 = vld [vmem:[#allocation6 + $0x3df0] sm:$0xff]  ;;  %v6382_v33 = vld [vmem:[#allocation6 + $0x3cf8] sm:$0xff] }
0x1300   : > { %6458 = vmatpush.msra.mxu1 %v6413_v5  ;;  %6481 = vmatpush.msra.mxu2 %v6382_v33  ;;  %v6357_v5 = vld [vmem:[#allocation6 + $0x3c30] sm:$0xff] }
0x1301   : > { %v6249_v50 = vadd.f32 %v6248_v44, %v6241_v0  ;;  %v6414_v0 = vld [vmem:[#allocation6 + $0x3df8] sm:$0xff]  ;;  %v6379_v44 = vld [vmem:[#allocation6 + $0x3ce0] sm:$0xff]  ;;  %v6389_v33 = vld [vmem:[#allocation6 + $0x3d30] sm:$0xff] }
0x1302   : > { %6504 = vmatpush.msra.mxu3 %v6414_v0  ;;  %6436 = vmatpush.msra.mxu0 %v6379_v44  ;;  %v6358_v0 = vld [vmem:[#allocation6 + $0x3c38] sm:$0xff] }
0x1303   : > { %6251 = vrot.lane.b32.xlu2 %v6249_v50, %s8020_s9  ;;  %v6390_v44 = vld [vmem:[#allocation6 + $0x3d38] sm:$0xff] }
0x135d   : > { %v6252_v25 = vpop.permute.xlu2 %6251 }
0x135e   : > { %v6254_v51 = vadd.f32 %v6252_v25, %v6249_v50  ;;  %v6411_v50 = vld [vmem:[#allocation6 + $0x3de0] sm:$0xff]  ;;  %v6380_v25 = vld [vmem:[#allocation6 + $0x3ce8] sm:$0xff] }
0x135f   : > { %6459 = vmatpush.msra.mxu1 %v6411_v50  ;;  %6482 = vmatpush.msra.mxu2 %v6380_v25  ;;  %v6355_v50 = vld [vmem:[#allocation6 + $0x3c20] sm:$0xff] }
0x1360   : > { %6256 = vrot.lane.b32.xlu1 %v6254_v51, %s8021_s18  ;;  %v6387_v25 = vld [vmem:[#allocation6 + $0x3d20] sm:$0xff] }
0x13d2   : > { %v6257_v52 = vpop.permute.xlu1 %6256 }
0x13d3   : > { %v6259_v32 = vadd.f32 %v6257_v52, %v6254_v51  ;;  %v6412_v51 = vld [vmem:[#allocation6 + $0x3de8] sm:$0xff]  ;;  %v6377_v52 = vld [vmem:[#allocation6 + $0x3cd0] sm:$0xff] }
0x13d4   : > { %6505 = vmatpush.msra.mxu3 %v6412_v51  ;;  %6437 = vmatpush.msra.mxu0 %v6377_v52  ;;  %v6356_v51 = vld [vmem:[#allocation6 + $0x3c28] sm:$0xff] }
0x13d5   : > { %6261 = vrot.lane.b32.xlu2 %v6259_v32, %s8022_s19  ;;  %v6388_v52 = vld [vmem:[#allocation6 + $0x3d28] sm:$0xff] }
0x142f   : > { %v6262_v43 = vpop.permute.xlu2 %6261 }
0x1430   : > { %v6264_v16 = vadd.f32 %v6262_v43, %v6259_v32  ;;  %v6409_v32 = vld [vmem:[#allocation6 + $0x3dd0] sm:$0xff]  ;;  %v6378_v43 = vld [vmem:[#allocation6 + $0x3cd8] sm:$0xff] }
0x1431   : > { %6460 = vmatpush.msra.mxu1 %v6409_v32  ;;  %6483 = vmatpush.msra.mxu2 %v6378_v43  ;;  %v6353_v32 = vld [vmem:[#allocation6 + $0x3c10] sm:$0xff] }
0x1432   : > { %v6265_v61 = vmul.f32 0.00390625, %v6264_v16  ;;  %v6410_v16 = vld [vmem:[#allocation6 + $0x3dd8] sm:$0xff]  ;;  %v6385_v43 = vld [vmem:[#allocation6 + $0x3d10] sm:$0xff] }
0x1433   : > { %6506 = vmatpush.msra.mxu3 %v6410_v16  ;;  %v6354_v16 = vld [vmem:[#allocation6 + $0x3c18] sm:$0xff] }
0x1434   : > { %v6268_v55 = vperm.slane %v6265_v61, 0  ;;  %v6375_v61 = vld [vmem:[#allocation6 + $0x3cc0] sm:$0xff] }
0x1435   : > { %6438 = vmatpush.msra.mxu0 %v6375_v61  ;;  %v6386_v61 = vld [vmem:[#allocation6 + $0x3d18] sm:$0xff] }
0x1436   : > { %v6269_v30 = vmul.f32 %v6268_v55, %v6267_v53  ;;  %v6407_v53 = vld [vmem:[#allocation6 + $0x3dc0] sm:$0xff]  ;;  %v6376_v55 = vld [vmem:[#allocation6 + $0x3cc8] sm:$0xff] }
0x1437   : > { %6461 = vmatpush.msra.mxu1 %v6407_v53  ;;  %6484 = vmatpush.msra.mxu2 %v6376_v55  ;;  %v6351_v53 = vld [vmem:[#allocation6 + $0x3c00] sm:$0xff] }
0x1438   : > { %v6270_v63 = vsel %vm2084_vm6, %v6269_v30, 0.0  ;;  %v6408_v30 = vld [vmem:[#allocation6 + $0x3dc8] sm:$0xff]  ;;  %v6383_v55 = vld [vmem:[#allocation6 + $0x3d00] sm:$0xff] }
0x1439   : > { %6271 = vadd.xlane.f32.xlu1 %v6270_v63  ;;  %v6373_v63 = vld [vmem:[#allocation6 + $0x3cb0] sm:$0xff]  ;;  %6507 = vmatpush.msra.mxu3 %v6408_v30  ;;  %v6352_v30 = vld [vmem:[#allocation6 + $0x3c08] sm:$0xff] }
0x143a   : > { %6439 = vmatpush.msra.mxu0 %v6373_v63 }
0x14ac   : > { %v6272_v1 = vpop.xlane.xlu1 %6271 }
0x14ad   : > { %v6275_v45 = vadd.f32 %v7607_v35, %v6272_v1  ;;  %v6405_v35 = vld [vmem:[#allocation6 + $0x3db0] sm:$0xff]  ;;  %v6374_v1 = vld [vmem:[#allocation6 + $0x3cb8] sm:$0xff] }
0x14ae   : > { %6462 = vmatpush.msra.mxu1 %v6405_v35  ;;  %6485 = vmatpush.msra.mxu2 %v6374_v1  ;;  %v6384_v35 = vld [vmem:[#allocation6 + $0x3d08] sm:$0xff]  ;;  %v6569_v1 = vld [vmem:[#allocation6 + $0x3ef0] sm:$0xff] }
0x14af   : > { %v6276_v49 = vmax.f32 %v6275_v45, 0.0  ;;  %v6406_v45 = vld [vmem:[#allocation6 + $0x3db8] sm:$0xff] }
0x14b0   : > { %6508 = vmatpush.msra.mxu3 %v6406_v45 }
0x14b1   : > { %6281 = vperm.xlu2 %7728, %v6276_v49   ;;  %v6371_v49 = vld [vmem:[#allocation6 + $0x3ca0] sm:$0xff] }
0x14b2   : > { %6440 = vmatpush.msra.mxu0 %v6371_v49  ;;  %v6601_v49 = vld [vmem:[#allocation6 + $0x3ff0] sm:$0xff] }
0x150b   : > { %v6282_v9 = vpop.permute.xlu2 %6281 }
0x150c   : > { %v6284_v8 = vmul.f32 %v6282_v9, %v6278_v48  ;;  %v6403_v48 = vld [vmem:[#allocation6 + $0x3da0] sm:$0xff]  ;;  %v6372_v9 = vld [vmem:[#allocation6 + $0x3ca8] sm:$0xff] }
0x150d   : > { %6463 = vmatpush.msra.mxu1 %v6403_v48  ;;  %6486 = vmatpush.msra.mxu2 %v6372_v9  ;;  %v6570_v48 = vld [vmem:[#allocation6 + $0x3ef8] sm:$0xff] }
0x150e   : > { %v6285_v62 = vsel %vm2084_vm6, %v6284_v8, 0.0  ;;  %v6404_v8 = vld [vmem:[#allocation6 + $0x3da8] sm:$0xff]  ;;  %v6602_v9 = vld [vmem:[#allocation6 + $0x3ff8] sm:$0xff] }
0x150f   : > { %v6286_v14 = vrot.slane %v6285_v62, 4  ;;  %6509 = vmatpush.msra.mxu3 %v6404_v8  ;;  %v6567_v8 = vld [vmem:[#allocation6 + $0x3ee0] sm:$0xff] }
0x1511   : > { %v6287_v24 = vadd.f32 %v6286_v14, %v6285_v62  ;;  %v6369_v62 = vld [vmem:[#allocation6 + $0x3c90] sm:$0xff] }
0x1512   : > { %v6401_v14 = vld [vmem:[#allocation6 + $0x3d90] sm:$0xff]  ;;  %6441 = vmatpush.msra.mxu0 %v6369_v62  ;;  %v6599_v62 = vld [vmem:[#allocation6 + $0x3fe0] sm:$0xff] }
0x1513   : > { %v6288_v21 = vrot.slane %v6287_v24, 2  ;;  %6464 = vmatpush.msra.mxu1 %v6401_v14  ;;  %v6568_v14 = vld [vmem:[#allocation6 + $0x3ee8] sm:$0xff] }
0x1515   : > { %v6289_v13 = vadd.f32 %v6288_v21, %v6287_v24  ;;  %v6370_v24 = vld [vmem:[#allocation6 + $0x3c98] sm:$0xff] }
0x1516   : > { %v6402_v21 = vld [vmem:[#allocation6 + $0x3d98] sm:$0xff]  ;;  %6487 = vmatpush.msra.mxu2 %v6370_v24  ;;  %v6600_v24 = vld [vmem:[#allocation6 + $0x3fe8] sm:$0xff] }
0x1517   : > { %v6290_v18 = vrot.slane %v6289_v13, 1  ;;  %6510 = vmatpush.msra.mxu3 %v6402_v21  ;;  %v6565_v21 = vld [vmem:[#allocation6 + $0x3ed0] sm:$0xff] }
0x1519   : > { %v6291_v7 = vadd.f32 %v6290_v18, %v6289_v13  ;;  %v6367_v13 = vld [vmem:[#allocation6 + $0x3c80] sm:$0xff] }
0x151a   : > { %v6399_v18 = vld [vmem:[#allocation6 + $0x3d80] sm:$0xff]  ;;  %6442 = vmatpush.msra.mxu0 %v6367_v13  ;;  %v6566_v13 = vld [vmem:[#allocation6 + $0x3ed8] sm:$0xff] }
0x151b   : > { %v6294_v26 = vadd.f32 %v6293_v19, %v6291_v7  ;;  %v6368_v19 = vld [vmem:[#allocation6 + $0x3c88] sm:$0xff]  ;;  %6465 = vmatpush.msra.mxu1 %v6399_v18  ;;  %v6598_v18 = vld [vmem:[#allocation6 + $0x3fd8] sm:$0xff] }
0x151c   : > { %v6400_v7 = vld [vmem:[#allocation6 + $0x3d88] sm:$0xff]  ;;  %6488 = vmatpush.msra.mxu2 %v6368_v19  ;;  %v6563_v19 = vld [vmem:[#allocation6 + $0x3ec0] sm:$0xff] }
0x151d   : > { %v7608_v17 = vmul.f32 -1.442695, %v6294_v26  ;;  %v6365_v26 = vld [vmem:[#allocation6 + $0x3c70] sm:$0xff]  ;;  %6511 = vmatpush.msra.mxu3 %v6400_v7  ;;  %v6595_v7 = vld [vmem:[#allocation6 + $0x3fc0] sm:$0xff] }
0x151e   : > { %6443 = vmatpush.msra.mxu0 %v6365_v26  ;;  %v6564_v26 = vld [vmem:[#allocation6 + $0x3ec8] sm:$0xff] }
0x151f   : > { %7743 = vpow2.f32 %v7608_v17  ;;  %v6397_v17 = vld [vmem:[#allocation6 + $0x3d70] sm:$0xff] }
0x1520   : > { %6466 = vmatpush.msra.mxu1 %v6397_v17  ;;  %v6596_v17 = vld [vmem:[#allocation6 + $0x3fc8] sm:$0xff] }
0x1525   : > { %v7744_v6 = vpop.eup %7743 }
0x1526   : > { %v6298_v36 = vadd.f32 1.0, %v7744_v6  ;;  %v6366_v6 = vld [vmem:[#allocation6 + $0x3c78] sm:$0xff] }
0x1527   : > { %6489 = vmatpush.msra.mxu2 %v6366_v6  ;;  %v6561_v6 = vld [vmem:[#allocation6 + $0x3eb0] sm:$0xff] }
0x1528   : > { %7745 = vrcp.f32 %v6298_v36  ;;  %v6310_v23 = vand.u32 2147483648, %v6298_v36  ;;  %v6308_v12 = vand.u32 2147483647, %v6298_v36  ;;  %vm6304_vm6 = vweird.f32 %v6298_v36 }
0x152a   : > { %v6311_v20 = vor.u32 1.1754944e-38, %v6310_v23  ;;  %vm6309_vm2 = vcmp.eq.f32.partialorder %v6308_v12, 8.507059e+37  ;;  %v6396_v23 = vld [vmem:[#allocation6 + $0x3d68] sm:$0xff]  ;;  %v6393_v12 = vld [vmem:[#allocation6 + $0x3d50] sm:$0xff] }
0x152e   : > { %v7746_v22 = vpop.eup %7745 }
0x152f   : > { %v6300_v15 = vmul.f32 %v7746_v22, %v6298_v36  ;;  %vm6305_vm14 = vweird.f32 %v7746_v22  ;;  %v6398_v36 = vld [vmem:[#allocation6 + $0x3d78] sm:$0xff] }
0x1530   : > { %vm6306_vm15 = vmor %vm6304_vm6, %vm6305_vm14  ;;  %6512 = vmatpush.msra.mxu3 %v6398_v36  ;;  %v6593_v36 = vld [vmem:[#allocation6 + $0x3fb0] sm:$0xff] }
0x1531   : > { %v6301_v41 = vsub.f32 1.0, %v6300_v15  ;;  %v6395_v15 = vld [vmem:[#allocation6 + $0x3d60] sm:$0xff] }
0x1532   : > { %6467 = vmatpush.msra.mxu1 %v6395_v15  ;;  %6513 = vmatpush.msra.mxu3 %v6396_v23  ;;  %v6594_v15 = vld [vmem:[#allocation6 + $0x3fb8] sm:$0xff]  ;;  %v6591_v23 = vld [vmem:[#allocation6 + $0x3fa0] sm:$0xff] }
0x1533   : > { %v6302_v3 = vmul.f32 %v7746_v22, %v6301_v41  ;;  %v6364_v41 = vld [vmem:[#allocation6 + $0x3c68] sm:$0xff] }
0x1534   : > { %6490 = vmatpush.msra.mxu2 %v6364_v41  ;;  %6468 = vmatpush.msra.mxu1 %v6393_v12  ;;  %v6559_v41 = vld [vmem:[#allocation6 + $0x3ea0] sm:$0xff]  ;;  %v6592_v12 = vld [vmem:[#allocation6 + $0x3fa8] sm:$0xff] }
0x1535   : > { %v6303_v39 = vadd.f32 %v7746_v22, %v6302_v3  ;;  %v6361_v3 = vld [vmem:[#allocation6 + $0x3c50] sm:$0xff] }
0x1537   : > { %v6307_v10 = vsel %vm6306_vm15, %v7746_v22, %v6303_v39  ;;  %v6363_v22 = vld [vmem:[#allocation6 + $0x3c60] sm:$0xff]  ;;  %v6362_v39 = vld [vmem:[#allocation6 + $0x3c58] sm:$0xff] }
0x1538   : > { %v6312_v11 = vsel %vm6309_vm2, %v6311_v20, %v6307_v10  ;;  %6444 = vmatpush.msra.mxu0 %v6363_v22  ;;  %v6394_v20 = vld [vmem:[#allocation6 + $0x3d58] sm:$0xff]  ;;  %v6359_v10 = vld [vmem:[#allocation6 + $0x3c40] sm:$0xff]  ;;  %6491 = vmatpush.msra.mxu2 %v6362_v39  ;;  %v6557_v39 = vld [vmem:[#allocation6 + $0x3e90] sm:$0xff] }
0x1539   : > { %6315 = vrot.lane.b32.xlu0 %v6312_v11, %s8024_s13  ;;  %6514 = vmatpush.msra.mxu3 %v6394_v20  ;;  %v6562_v22 = vld [vmem:[#allocation6 + $0x3eb8] sm:$0xff]  ;;  %v6589_v20 = vld [vmem:[#allocation6 + $0x3f90] sm:$0xff] }
0x153a   : > { %6445 = vmatpush.msra.mxu0 %v6361_v3  ;;  %v6560_v3 = vld [vmem:[#allocation6 + $0x3ea8] sm:$0xff] }
0x153b   : > { %6515 = vmatpush.msra.mxu3 %v6392_v46  ;;  %v6587_v46 = vld [vmem:[#allocation6 + $0x3f80] sm:$0xff] }
0x153c   : > { %6446 = vmatpush.msra.mxu0 %v6359_v10  ;;  %v6558_v10 = vld [vmem:[#allocation6 + $0x3e98] sm:$0xff] }
0x153d   : > { %6516 = vmatpush.msra.mxu3 %v6390_v44  ;;  %v6585_v44 = vld [vmem:[#allocation6 + $0x3f70] sm:$0xff] }
0x153e   : > { %6447 = vmatpush.msra.mxu0 %v6357_v5  ;;  %v6556_v5 = vld [vmem:[#allocation6 + $0x3e88] sm:$0xff] }
0x153f   : > { %6517 = vmatpush.msra.mxu3 %v6388_v52  ;;  %v6583_v52 = vld [vmem:[#allocation6 + $0x3f60] sm:$0xff] }
0x1540   : > { %6448 = vmatpush.msra.mxu0 %v6355_v50  ;;  %v6554_v50 = vld [vmem:[#allocation6 + $0x3e78] sm:$0xff] }
0x1541   : > { %6518 = vmatpush.msra.mxu3 %v6386_v61  ;;  %v6581_v61 = vld [vmem:[#allocation6 + $0x3f50] sm:$0xff] }
0x1542   : > { %6449 = vmatpush.msra.mxu0 %v6353_v32  ;;  %v6552_v32 = vld [vmem:[#allocation6 + $0x3e68] sm:$0xff] }
0x1543   : > { %6519 = vmatpush.msra.mxu3 %v6384_v35  ;;  %v6548_v35 = vld [vmem:[#allocation6 + $0x3e48] sm:$0xff] }
0x1544   : > { %6450 = vmatpush.msra.mxu0 %v6351_v53  ;;  %v6550_v53 = vld [vmem:[#allocation6 + $0x3e58] sm:$0xff] }
0x1545   : > { %6672 = vmatpush.msrb.mxu3 %v6602_v9  ;;  %v6546_v9 = vld [vmem:[#allocation6 + $0x3e38] sm:$0xff] }
0x1546   : > { %6603 = vmatpush.msrb.mxu0 %v6569_v1  ;;  %v6580_v1 = vld [vmem:[#allocation6 + $0x3f48] sm:$0xff] }
0x1547   : > { %6673 = vmatpush.msrb.mxu3 %v6600_v24  ;;  %v6544_v24 = vld [vmem:[#allocation6 + $0x3e28] sm:$0xff] }
0x1548   : > { %6604 = vmatpush.msrb.mxu0 %v6567_v8  ;;  %v6578_v8 = vld [vmem:[#allocation6 + $0x3f38] sm:$0xff] }
0x1549   : > { %6674 = vmatpush.msrb.mxu3 %v6598_v18  ;;  %v6542_v18 = vld [vmem:[#allocation6 + $0x3e18] sm:$0xff] }
0x154a   : > { %6605 = vmatpush.msrb.mxu0 %v6565_v21  ;;  %v6576_v21 = vld [vmem:[#allocation6 + $0x3f28] sm:$0xff] }
0x154b   : > { %6675 = vmatpush.msrb.mxu3 %v6596_v17  ;;  %v6540_v17 = vld [vmem:[#allocation6 + $0x3e08] sm:$0xff] }
0x154c   : > { %6606 = vmatpush.msrb.mxu0 %v6563_v19  ;;  %v6574_v19 = vld [vmem:[#allocation6 + $0x3f18] sm:$0xff] }
0x154d   : > { %6676 = vmatpush.msrb.mxu3 %v6594_v15 }
0x154e   : > { %6607 = vmatpush.msrb.mxu0 %v6561_v6  ;;  %v6572_v6 = vld [vmem:[#allocation6 + $0x3f08] sm:$0xff] }
0x154f   : > { %6677 = vmatpush.msrb.mxu3 %v6592_v12 }
0x1550   : > { %6608 = vmatpush.msrb.mxu0 %v6559_v41  ;;  %v6344_v41 = vld [vmem:[#allocation2 + $0x30] sm:$0x80] }
0x1552   : > { %6609 = vmatpush.msrb.mxu0 %v6557_v39 }
0x15ab   : > { %v6316_v27 = vpop.permute.xlu0 %6315 }
0x15ac   : > { %v8896_v42 = vsel %vm2130_vm11, %v6312_v11, %v6316_v27  ;;  %v6391_v11 = vld [vmem:[#allocation6 + $0x3d40] sm:$0xff]  ;;  %v6360_v27 = vld [vmem:[#allocation6 + $0x3c48] sm:$0xff] }
0x15ad   : > { %6320 = vrot.lane.b32.xlu2 %v8896_v42, %s8025_s29  ;;  %6469 = vmatpush.msra.mxu1 %v6391_v11  ;;  %v6590_v11 = vld [vmem:[#allocation6 + $0x3f98] sm:$0xff] }
0x15ae   : > { %6492 = vmatpush.msra.mxu2 %v6360_v27  ;;  %6678 = vmatpush.msrb.mxu3 %v6590_v11  ;;  %v6555_v27 = vld [vmem:[#allocation6 + $0x3e80] sm:$0xff] }
0x15af   : > { %6470 = vmatpush.msra.mxu1 %v6389_v33  ;;  %6610 = vmatpush.msrb.mxu0 %v6555_v27  ;;  %v6588_v33 = vld [vmem:[#allocation6 + $0x3f88] sm:$0xff] }
0x15b0   : > { %6493 = vmatpush.msra.mxu2 %v6358_v0  ;;  %6679 = vmatpush.msrb.mxu3 %v6588_v33  ;;  %v6553_v0 = vld [vmem:[#allocation6 + $0x3e70] sm:$0xff]  ;;  %v6734_v33 = vld [vmem:[#allocation6 + $0x40e0] sm:$0xff] }
0x15b1   : > { %6471 = vmatpush.msra.mxu1 %v6387_v25  ;;  %6611 = vmatpush.msrb.mxu0 %v6553_v0  ;;  %v6586_v25 = vld [vmem:[#allocation6 + $0x3f78] sm:$0xff]  ;;  %v6766_v0 = vld [vmem:[#allocation6 + $0x41e0] sm:$0xff] }
0x15b2   : > { %6494 = vmatpush.msra.mxu2 %v6356_v51  ;;  %6680 = vmatpush.msrb.mxu3 %v6586_v25  ;;  %v6551_v51 = vld [vmem:[#allocation6 + $0x3e60] sm:$0xff]  ;;  %v6732_v25 = vld [vmem:[#allocation6 + $0x40d0] sm:$0xff] }
0x15b3   : > { %6472 = vmatpush.msra.mxu1 %v6385_v43  ;;  %6612 = vmatpush.msrb.mxu0 %v6551_v51  ;;  %v6584_v43 = vld [vmem:[#allocation6 + $0x3f68] sm:$0xff]  ;;  %v6764_v51 = vld [vmem:[#allocation6 + $0x41d0] sm:$0xff] }
0x15b4   : > { %6495 = vmatpush.msra.mxu2 %v6354_v16  ;;  %6681 = vmatpush.msrb.mxu3 %v6584_v43  ;;  %v6549_v16 = vld [vmem:[#allocation6 + $0x3e50] sm:$0xff] }
0x15b5   : > { %6473 = vmatpush.msra.mxu1 %v6383_v55  ;;  %6613 = vmatpush.msrb.mxu0 %v6549_v16  ;;  %v6582_v55 = vld [vmem:[#allocation6 + $0x3f58] sm:$0xff]  ;;  %v6730_v16 = vld [vmem:[#allocation6 + $0x40c0] sm:$0xff] }
0x15b6   : > { %6496 = vmatpush.msra.mxu2 %v6352_v30  ;;  %6682 = vmatpush.msrb.mxu3 %v6582_v55  ;;  %v6547_v30 = vld [vmem:[#allocation6 + $0x3e40] sm:$0xff] }
0x15b7   : > { %6626 = vmatpush.msrb.mxu1 %v6601_v49  ;;  %6614 = vmatpush.msrb.mxu0 %v6547_v30  ;;  %v6545_v49 = vld [vmem:[#allocation6 + $0x3e30] sm:$0xff]  ;;  %v6731_v30 = vld [vmem:[#allocation6 + $0x40c8] sm:$0xff] }
0x15b8   : > { %6649 = vmatpush.msrb.mxu2 %v6570_v48  ;;  %6683 = vmatpush.msrb.mxu3 %v6580_v1  ;;  %v6577_v48 = vld [vmem:[#allocation6 + $0x3f30] sm:$0xff] }
0x15b9   : > { %6627 = vmatpush.msrb.mxu1 %v6599_v62  ;;  %6615 = vmatpush.msrb.mxu0 %v6545_v49  ;;  %v6543_v62 = vld [vmem:[#allocation6 + $0x3e20] sm:$0xff] }
0x15ba   : > { %6650 = vmatpush.msrb.mxu2 %v6568_v14  ;;  %6684 = vmatpush.msrb.mxu3 %v6578_v8  ;;  %v6575_v14 = vld [vmem:[#allocation6 + $0x3f20] sm:$0xff]  ;;  %v6729_v8 = vld [vmem:[#allocation6 + $0x40b8] sm:$0xff] }
0x15bb   : > { %6616 = vmatpush.msrb.mxu0 %v6543_v62  ;;  %v6761_v62 = vld [vmem:[#allocation6 + $0x41b8] sm:$0xff] }
0x15bc   : > { %6651 = vmatpush.msrb.mxu2 %v6566_v13  ;;  %6685 = vmatpush.msrb.mxu3 %v6576_v21  ;;  %v6573_v13 = vld [vmem:[#allocation6 + $0x3f10] sm:$0xff]  ;;  %v6727_v21 = vld [vmem:[#allocation6 + $0x40a8] sm:$0xff] }
0x15be   : > { %6652 = vmatpush.msrb.mxu2 %v6564_v26  ;;  %v6571_v26 = vld [vmem:[#allocation6 + $0x3f00] sm:$0xff]  ;;  %6686 = vmatpush.msrb.mxu3 %v6574_v19  ;;  %v6725_v19 = vld [vmem:[#allocation6 + $0x4098] sm:$0xff] }
0x15c0   : > { %6653 = vmatpush.msrb.mxu2 %v6562_v22  ;;  %6687 = vmatpush.msrb.mxu3 %v6572_v6  ;;  %v6723_v6 = vld [vmem:[#allocation6 + $0x4088] sm:$0xff] }
0x15c2   : > { %6654 = vmatpush.msrb.mxu2 %v6560_v3 }
0x15c4   : > { %6655 = vmatpush.msrb.mxu2 %v6558_v10  ;;  %v6421_v10 = vrot.slane %v6344_v41, 7  ;;  %v6721_v41 = vld [vmem:[#allocation6 + $0x4078] sm:$0xff] }
0x15c6   : > { %6656 = vmatpush.msrb.mxu2 %v6556_v5 }
0x15c8   : > { %6657 = vmatpush.msrb.mxu2 %v6554_v50  ;;  %v6767_v50 = vld [vmem:[#allocation6 + $0x41e8] sm:$0xff] }
0x15ca   : > { %6658 = vmatpush.msrb.mxu2 %v6552_v32  ;;  %v6765_v32 = vld [vmem:[#allocation6 + $0x41d8] sm:$0xff] }
0x15cc   : > { %6659 = vmatpush.msrb.mxu2 %v6550_v53 }
0x15ce   : > { %6660 = vmatpush.msrb.mxu2 %v6548_v35 }
0x15d0   : > { %6661 = vmatpush.msrb.mxu2 %v6546_v9  ;;  %v6760_v9 = vld [vmem:[#allocation6 + $0x41b0] sm:$0xff] }
0x15d2   : > { %6662 = vmatpush.msrb.mxu2 %v6544_v24  ;;  %v6758_v24 = vld [vmem:[#allocation6 + $0x41a0] sm:$0xff] }
0x15d4   : > { %6663 = vmatpush.msrb.mxu2 %v6542_v18  ;;  %v6756_v18 = vld [vmem:[#allocation6 + $0x4190] sm:$0xff] }
0x15d6   : > { %6664 = vmatpush.msrb.mxu2 %v6540_v17  ;;  %v6754_v17 = vld [vmem:[#allocation6 + $0x4180] sm:$0xff] }
0x1607   : > { %v6321_v63 = vpop.permute.xlu2 %6320 }
0x1608   : > { %v8902_v45 = vsel %vm2136_vm12, %v8896_v42, %v6321_v63  ;;  %v6597_v42 = vld [vmem:[#allocation6 + $0x3fd0] sm:$0xff]  ;;  %v6579_v63 = vld [vmem:[#allocation6 + $0x3f40] sm:$0xff] }
0x1609   : > { %6325 = vrot.lane.b32.xlu2 %v8902_v45, %s8020_s9  ;;  %6628 = vmatpush.msrb.mxu1 %v6597_v42  ;;  %v6541_v42 = vld [vmem:[#allocation6 + $0x3e10] sm:$0xff]  ;;  %s7615_s9 = sshll.u32 %s8091_s8, 5  ;;  %s7447_s8 = scalar_lea.sflag [#allocation5], %s8198_s11 }
0x160a   : > { %6617 = vmatpush.msrb.mxu0 %v6541_v42  ;;  %v6759_v42 = vld [vmem:[#allocation6 + $0x41a8] sm:$0xff]  ;;  %s7458_s1 = scalar_lea.hbm %s9066_s7, %s7615_s9 }
0x160b   : > { %6629 = vmatpush.msrb.mxu1 %v6595_v7  ;;  %v6539_v7 = vld [vmem:[#allocation6 + $0x3e00] sm:$0xff]  ;;  %s7461_s14 = sshll.u32 %s7458_s1, 4  ;;  %s7462_s14 = int_to_ptr.hbm [resolvable:$true] %s7461_s14 }
0x160c   : > { %6618 = vmatpush.msrb.mxu0 %v6539_v7  ;;  %v6757_v7 = vld [vmem:[#allocation6 + $0x4198] sm:$0xff]  ;;  %s7941_s29 = sshra.s32 %s7462_s14, 4  ;;  %s7942_s29 = int_to_ptr.hbm [resolvable:$true] %s7941_s29 }
0x160d   : > { %6630 = vmatpush.msrb.mxu1 %v6593_v36  ;;  %s7943_s28 = scalar_lea.hbm %s7942_s29, 32  ;;  %p7948_p12 = scmp.lt.s32.totalorder %s7942_s29, %s9066_s7 }
0x160e   : > { %p7944_p1 = scmp.ne.s32.totalorder %s7942_s29, %s7943_s28  ;;  %p7949_p7 = scmp.lt.s32.totalorder %s7947_s16, %s7943_s28 }
0x160f   : > { %6631 = vmatpush.msrb.mxu1 %v6591_v23  ;;  %v6345_v23 = vld [vmem:[#allocation2] sm:$0x80] }
0x1610   : > { %v6424_v11 = vrot.slane %v6345_v23, 7  ;;  %v6753_v23 = vld [vmem:[#allocation6 + $0x4178] sm:$0xff]  ;;  %p7945_p3 = pnand %p7944_p1, %p8164_p4  ;;  %p7950_p8 = por %p7949_p7, %p7948_p12 }
0x1611   : > { %6632 = vmatpush.msrb.mxu1 %v6589_v20 }
0x1612   : > { %p7946_p5 = pneg %p7945_p3 }
0x1613   : > { %6633 = vmatpush.msrb.mxu1 %v6587_v46 }
0x1614   : > { %p7951_p9 = pnand %p7950_p8, %p7946_p5 }
0x1615   : > { %6634 = vmatpush.msrb.mxu1 %v6585_v44  ;;  %v6735_v44 = vld [vmem:[#allocation6 + $0x40e8] sm:$0xff] }
0x1617   : > { %6635 = vmatpush.msrb.mxu1 %v6583_v52  ;;  %v6733_v52 = vld [vmem:[#allocation6 + $0x40d8] sm:$0xff] }
0x1619   : > { %6636 = vmatpush.msrb.mxu1 %v6581_v61  ;;  %v6762_v61 = vld [vmem:[#allocation6 + $0x41c0] sm:$0xff] }
0x161b   : > { %6637 = vmatpush.msrb.mxu1 %v6579_v63  ;;  %v6763_v63 = vld [vmem:[#allocation6 + $0x41c8] sm:$0xff] }
0x161d   : > { %6638 = vmatpush.msrb.mxu1 %v6577_v48  ;;  %v6728_v48 = vld [vmem:[#allocation6 + $0x40b0] sm:$0xff] }
0x161f   : > { %6639 = vmatpush.msrb.mxu1 %v6575_v14  ;;  %v6726_v14 = vld [vmem:[#allocation6 + $0x40a0] sm:$0xff] }
0x1621   : > { %6640 = vmatpush.msrb.mxu1 %v6573_v13  ;;  %v6724_v13 = vld [vmem:[#allocation6 + $0x4090] sm:$0xff] }
0x1623   : > { %6641 = vmatpush.msrb.mxu1 %v6571_v26  ;;  %v6722_v26 = vld [vmem:[#allocation6 + $0x4080] sm:$0xff] }
0x1663   : > { %v6326_v36 = vpop.permute.xlu2 %6325 }
0x1664   : > { %v6328_v22 = vsel %vm2142_vm13, %v8902_v45, %v6326_v36  ;;  %v6755_v36 = vld [vmem:[#allocation6 + $0x4188] sm:$0xff] }
0x1665   : > { %v6329_v15 = vperm.slane %v6328_v22, 0  ;;  %v6720_v22 = vld [vmem:[#allocation6 + $0x4070] sm:$0xff] }
0x1667   : > { %v6330_v3 = vmul.f32 %v6329_v15, %v8874_v40  ;;  %v6331_v12 = vmul.f32 %v6329_v15, %v8880_v38  ;;  %v6332_v39 = vmul.f32 %v6329_v15, %v8876_v58  ;;  %v6333_v20 = vmul.f32 %v6329_v15, %v8882_v2  ;;  %v6736_v38 = vld [vmem:[#allocation6 + $0x40f0] sm:$0xff]  ;;  %v6769_v2 = vld [vmem:[#allocation6 + $0x41f8] sm:$0xff] }
0x1668   : > { %v6752_v15 = vld [vmem:[#allocation6 + $0x4170] sm:$0xff] }
0x1669   : > { %v8913_v27 = vadd.f32 %v6330_v3, %v8775_v29  ;;  %v8916_v46 = vadd.f32 %v6331_v12, %v8778_v37  ;;  %v8919_v45 = vadd.f32 %v6332_v39, %v8781_v56  ;;  %v8922_v5 = vadd.f32 %v6333_v20, %v8784_v34  ;;  %v6768_v56 = vld [vmem:[#allocation6 + $0x41f0] sm:$0xff]  ;;  %v6737_v34 = vld [vmem:[#allocation6 + $0x40f8] sm:$0xff]  ;;  %v6718_v3 = vld [vmem:[#allocation6 + $0x4060] sm:$0xff] }
0x166a   : > { %v6750_v12 = vld [vmem:[#allocation6 + $0x4160] sm:$0xff]  ;;  %v6719_v39 = vld [vmem:[#allocation6 + $0x4068] sm:$0xff] }
0x166b   : > { %6340 = vst [vmem:[#allocation2 + $0x8] sm:$0xff] %v8919_v45  ;;  %v6422_v40 = vrot.slane %v8913_v27, 7  ;;  %v6425_v58 = vrot.slane %v8916_v46, 7  ;;  %v6751_v20 = vld [vmem:[#allocation6 + $0x4168] sm:$0xff] }
0x166c   : > { %6341 = vst [vmem:[#allocation2 + $0x20] sm:$0xff] %v8922_v5 }
0x166d   : > { %6338 = vst [vmem:[#allocation2 + $0x18] sm:$0xff] %v8913_v27  ;;  %v6423_v29 = vsel %vm475_vm0, %v6421_v10, %v6422_v40  ;;  %v6426_v37 = vsel %vm475_vm0, %v6424_v11, %v6425_v58  ;;  %v6716_v10 = vld [vmem:[#allocation6 + $0x4050] sm:$0xff] }
0x166e   : > { %6339 = vst [vmem:[#allocation2 + $0x10] sm:$0xff] %v8916_v46  ;;  %6451 = vmatmul.f32.vlgmr.msra.gmra.mxu0 %v6423_v29  ;;  %6474 = vmatmul.f32.vlgmr.msra.gmra.mxu1 %v6426_v37  ;;  %v6748_v11 = vld [vmem:[#allocation6 + $0x4150] sm:$0xff] }
0x166f   : > { %6497 = vmatmul.f32.vlgmr.msra.gmra.mxu2 %v6423_v29  ;;  %6520 = vmatmul.f32.vlgmr.msra.gmra.mxu3 %v6426_v37  ;;  %v6714_v29 = vld [vmem:[#allocation6 + $0x4040] sm:$0xff]  ;;  %v6747_v37 = vld [vmem:[#allocation6 + $0x4148] sm:$0xff] }
0x1670   : > { %6790 = vmatpush.msra.mxu0 %v6736_v38  ;;  %6813 = vmatpush.msra.mxu1 %v6768_v56  ;;  %v6712_v38 = vld [vmem:[#allocation6 + $0x4030] sm:$0xff] }
0x1671   : > { %6836 = vmatpush.msra.mxu2 %v6737_v34  ;;  %6859 = vmatpush.msra.mxu3 %v6769_v2  ;;  %v6744_v56 = vld [vmem:[#allocation6 + $0x4130] sm:$0xff]  ;;  %v6713_v34 = vld [vmem:[#allocation6 + $0x4038] sm:$0xff] }
0x1672   : > { %6791 = vmatpush.msra.mxu0 %v6734_v33  ;;  %6814 = vmatpush.msra.mxu1 %v6766_v0  ;;  %v6348_v43 = vld [vmem:[#allocation2 + $0x8] sm:$0x7f]  ;;  %v6745_v2 = vld [vmem:[#allocation6 + $0x4138] sm:$0xff]  ;;  %v6710_v33 = vld [vmem:[#allocation6 + $0x4020] sm:$0xff] }
0x1673   : > { %6837 = vmatpush.msra.mxu2 %v6735_v44  ;;  %6860 = vmatpush.msra.mxu3 %v6767_v50  ;;  %v6427_v53 = vrot.slane %v6348_v43, 7  ;;  %v6349_v55 = vld [vmem:[#allocation2 + $0x20] sm:$0x7f]  ;;  %v6711_v44 = vld [vmem:[#allocation6 + $0x4028] sm:$0xff]  ;;  %v6709_v43 = vld [vmem:[#allocation6 + $0x4018] sm:$0xff] }
0x1674   : > { %6792 = vmatpush.msra.mxu0 %v6732_v25  ;;  %6815 = vmatpush.msra.mxu1 %v6764_v51  ;;  %v6429_v35 = vrot.slane %v6349_v55, 7  ;;  %v6742_v0 = vld [vmem:[#allocation6 + $0x4120] sm:$0xff]  ;;  %v6743_v50 = vld [vmem:[#allocation6 + $0x4128] sm:$0xff]  ;;  %v6699_v25 = vld [vmem:[#allocation2 + $0x18] sm:$0xfe] }
0x1675   : > { %6838 = vmatpush.msra.mxu2 %v6733_v52  ;;  %6861 = vmatpush.msra.mxu3 %v6765_v32  ;;  %v6428_v1 = vsel %vm475_vm0, %v6422_v40, %v6427_v53  ;;  %v6717_v40 = vld [vmem:[#allocation6 + $0x4058] sm:$0xff]  ;;  %v6700_v51 = vld [vmem:[#allocation2 + $0x10] sm:$0xfe]  ;;  %v6738_v53 = vld [vmem:[#allocation6 + $0x4100] sm:$0xff]  ;;  %v6776_v55 = vrot.slane %v6699_v25, 1 }
0x1676   : > { %6793 = vmatpush.msra.mxu0 %v6730_v16  ;;  %6816 = vmatpush.msra.mxu1 %v6762_v61  ;;  %v6430_v49 = vsel %vm475_vm0, %v6425_v58, %v6429_v35  ;;  %v6749_v58 = vld [vmem:[#allocation6 + $0x4158] sm:$0xff]  ;;  %v6708_v52 = vld [vmem:[#allocation6 + $0x4010] sm:$0xff]  ;;  %v6706_v61 = vld [vmem:[#allocation6 + $0x4000] sm:$0xff] }
0x1677   : > { %6839 = vmatpush.msra.mxu2 %v6731_v30  ;;  %6862 = vmatpush.msra.mxu3 %v6763_v63  ;;  %v6740_v32 = vld [vmem:[#allocation6 + $0x4110] sm:$0xff]  ;;  %v6741_v16 = vld [vmem:[#allocation6 + $0x4118] sm:$0xff]  ;;  %v6779_v30 = vrot.slane %v6700_v51, 1  ;;  %v6707_v63 = vld [vmem:[#allocation6 + $0x4008] sm:$0xff] }
0x1678   : > { %6454 = vmatmul.f32.gmra.mxu0 %v6428_v1  ;;  %6477 = vmatmul.f32.gmra.mxu1 %v6430_v49  ;;  %v6739_v35 = vld [vmem:[#allocation6 + $0x4108] sm:$0xff]  ;;  %v6917_v25 = vld [vmem:[#allocation6 + $0x4250] sm:$0xff]  ;;  %v6955_v51 = vld [vmem:[#allocation6 + $0x4380] sm:$0xff] }
0x1679   : > { %6500 = vmatmul.f32.gmra.mxu2 %v6428_v1  ;;  %6523 = vmatmul.f32.gmra.mxu3 %v6430_v49  ;;  %v6777_v1 = vrot.slane %v8919_v45, 1  ;;  %v6780_v49 = vrot.slane %v8922_v5, 1 }
0x167a   : > { %6794 = vmatpush.msra.mxu0 %v6728_v48  ;;  %6817 = vmatpush.msra.mxu1 %v6760_v9 }
0x167b   : > { %6840 = vmatpush.msra.mxu2 %v6729_v8  ;;  %6863 = vmatpush.msra.mxu3 %v6761_v62  ;;  %v6778_v48 = vsel %vm831_vm1, %v6776_v55, %v6777_v1  ;;  %v6781_v9 = vsel %vm831_vm1, %v6779_v30, %v6780_v49  ;;  %v6703_v8 = vld [vmem:[#allocation2 + $0x28] sm:$0x1]  ;;  %v6937_v62 = vld [vmem:[#allocation6 + $0x42f0] sm:$0xff]  ;;  %v6951_v30 = vld [vmem:[#allocation6 + $0x4360] sm:$0xff] }
0x167c   : > { %6795 = vmatpush.msra.mxu0 %v6726_v14  ;;  %6818 = vmatpush.msra.mxu1 %v6758_v24  ;;  %v6938_v14 = vld [vmem:[#allocation6 + $0x42f8] sm:$0xff]  ;;  %v6913_v55 = vld [vmem:[#allocation6 + $0x4230] sm:$0xff] }
0x167d   : > { %6841 = vmatpush.msra.mxu2 %v6727_v21  ;;  %6864 = vmatpush.msra.mxu3 %v6759_v42  ;;  %v6704_v24 = vld [vmem:[#allocation2 + $0x38] sm:$0x1]  ;;  %v6969_v21 = vld [vmem:[#allocation6 + $0x43f0] sm:$0xff] }
0x167e   : > { %6796 = vmatpush.msra.mxu0 %v6724_v13  ;;  %6819 = vmatpush.msra.mxu1 %v6756_v18  ;;  %v6970_v42 = vld [vmem:[#allocation6 + $0x43f8] sm:$0xff]  ;;  %v6967_v13 = vld [vmem:[#allocation6 + $0x43e0] sm:$0xff]  ;;  %v6968_v18 = vld [vmem:[#allocation6 + $0x43e8] sm:$0xff] }
0x167f   : > { %6842 = vmatpush.msra.mxu2 %v6725_v19  ;;  %6865 = vmatpush.msra.mxu3 %v6757_v7  ;;  %v6782_v19 = vrot.slane %v6703_v8, 1  ;;  %v6784_v7 = vrot.slane %v6704_v24, 1  ;;  %v6909_v8 = vld [vmem:[#allocation6 + $0x4210] sm:$0xff]  ;;  %v6948_v24 = vld [vmem:[#allocation6 + $0x4348] sm:$0xff] }
0x1680   : > { %6797 = vmatpush.msra.mxu0 %v6722_v26  ;;  %6820 = vmatpush.msra.mxu1 %v6754_v17  ;;  %v6933_v26 = vld [vmem:[#allocation6 + $0x42d0] sm:$0xff]  ;;  %v6934_v17 = vld [vmem:[#allocation6 + $0x42d8] sm:$0xff] }
0x1681   : > { %6843 = vmatpush.msra.mxu2 %v6723_v6  ;;  %6866 = vmatpush.msra.mxu3 %v6755_v36  ;;  %v6783_v6 = vsel %vm831_vm1, %v6777_v1, %v6782_v19  ;;  %v6785_v36 = vsel %vm831_vm1, %v6780_v49, %v6784_v7  ;;  %v6911_v1 = vld [vmem:[#allocation6 + $0x4220] sm:$0xff]  ;;  %v6949_v49 = vld [vmem:[#allocation6 + $0x4350] sm:$0xff]  ;;  %v6944_v7 = vld [vmem:[#allocation6 + $0x4328] sm:$0xff] }
0x1682   : > { %6619 = vmatmul.f32.vlgmr.msrb.gmra.mxu0 %v8913_v27  ;;  %6642 = vmatmul.f32.vlgmr.msrb.gmra.mxu1 %v8916_v46  ;;  %v6943_v19 = vld [vmem:[#allocation6 + $0x4320] sm:$0xff] }
0x1683   : > { %6665 = vmatmul.f32.vlgmr.msrb.gmra.mxu2 %v8913_v27  ;;  %6688 = vmatmul.f32.vlgmr.msrb.gmra.mxu3 %v8916_v46  ;;  %v6746_v27 = vld [vmem:[#allocation6 + $0x4140] sm:$0xff]  ;;  %v6715_v46 = vld [vmem:[#allocation6 + $0x4048] sm:$0xff] }
0x1684   : > { %6798 = vmatpush.msra.mxu0 %v6720_v22  ;;  %6821 = vmatpush.msra.mxu1 %v6752_v15  ;;  %v6931_v22 = vld [vmem:[#allocation6 + $0x42c0] sm:$0xff]  ;;  %v6932_v15 = vld [vmem:[#allocation6 + $0x42c8] sm:$0xff] }
0x1685   : > { %6844 = vmatpush.msra.mxu2 %v6721_v41  ;;  %6867 = vmatpush.msra.mxu3 %v6753_v23  ;;  %v6929_v41 = vld [vmem:[#allocation6 + $0x42b0] sm:$0xff]  ;;  %v6930_v23 = vld [vmem:[#allocation6 + $0x42b8] sm:$0xff] }
0x1686   : > { %6799 = vmatpush.msra.mxu0 %v6718_v3  ;;  %6822 = vmatpush.msra.mxu1 %v6750_v12  ;;  %v6927_v3 = vld [vmem:[#allocation6 + $0x42a0] sm:$0xff]  ;;  %v6965_v12 = vld [vmem:[#allocation6 + $0x43d0] sm:$0xff] }
0x1687   : > { %6845 = vmatpush.msra.mxu2 %v6719_v39  ;;  %6868 = vmatpush.msra.mxu3 %v6751_v20  ;;  %v6928_v39 = vld [vmem:[#allocation6 + $0x42a8] sm:$0xff]  ;;  %v6966_v20 = vld [vmem:[#allocation6 + $0x43d8] sm:$0xff] }
0x1688   : > { %6800 = vmatpush.msra.mxu0 %v6716_v10  ;;  %6823 = vmatpush.msra.mxu1 %v6748_v11  ;;  %v6925_v10 = vld [vmem:[#allocation6 + $0x4290] sm:$0xff]  ;;  %v6963_v11 = vld [vmem:[#allocation6 + $0x43c0] sm:$0xff] }
0x1689   : > { %6846 = vmatpush.msra.mxu2 %v6717_v40  ;;  %6869 = vmatpush.msra.mxu3 %v6749_v58  ;;  %v6926_v40 = vld [vmem:[#allocation6 + $0x4298] sm:$0xff]  ;;  %v6964_v58 = vld [vmem:[#allocation6 + $0x43c8] sm:$0xff] }
0x168a   : > { %6801 = vmatpush.msra.mxu0 %v6714_v29  ;;  %6824 = vmatpush.msra.mxu1 %v6746_v27  ;;  %v6923_v29 = vld [vmem:[#allocation6 + $0x4280] sm:$0xff]  ;;  %v6961_v27 = vld [vmem:[#allocation6 + $0x43b0] sm:$0xff] }
0x168b   : > { %6847 = vmatpush.msra.mxu2 %v6715_v46  ;;  %6870 = vmatpush.msra.mxu3 %v6747_v37  ;;  %v6924_v46 = vld [vmem:[#allocation6 + $0x4288] sm:$0xff]  ;;  %v6962_v37 = vld [vmem:[#allocation6 + $0x43b8] sm:$0xff] }
0x168c   : > { %6622 = vmatmul.f32.gmra.mxu0 %v8919_v45  ;;  %6645 = vmatmul.f32.gmra.mxu1 %v8922_v5 }
0x168d   : > { %6668 = vmatmul.f32.gmra.mxu2 %v8919_v45  ;;  %6691 = vmatmul.f32.gmra.mxu3 %v8922_v5  ;;  %v6935_v45 = vld [vmem:[#allocation6 + $0x42e0] sm:$0xff]  ;;  %v6936_v5 = vld [vmem:[#allocation6 + $0x42e8] sm:$0xff] }
0x168e   : > { %6802 = vmatpush.msra.mxu0 %v6712_v38  ;;  %6825 = vmatpush.msra.mxu1 %v6744_v56  ;;  %v6921_v38 = vld [vmem:[#allocation6 + $0x4270] sm:$0xff]  ;;  %v6959_v56 = vld [vmem:[#allocation6 + $0x43a0] sm:$0xff] }
0x168f   : > { %6848 = vmatpush.msra.mxu2 %v6713_v34  ;;  %6871 = vmatpush.msra.mxu3 %v6745_v2  ;;  %v6922_v34 = vld [vmem:[#allocation6 + $0x4278] sm:$0xff]  ;;  %v6960_v2 = vld [vmem:[#allocation6 + $0x43a8] sm:$0xff] }
0x1690   : > { %6803 = vmatpush.msra.mxu0 %v6710_v33  ;;  %6826 = vmatpush.msra.mxu1 %v6742_v0  ;;  %v6919_v33 = vld [vmem:[#allocation6 + $0x4260] sm:$0xff]  ;;  %v6957_v0 = vld [vmem:[#allocation6 + $0x4390] sm:$0xff] }
0x1691   : > { %6849 = vmatpush.msra.mxu2 %v6711_v44  ;;  %6872 = vmatpush.msra.mxu3 %v6743_v50  ;;  %v6920_v44 = vld [vmem:[#allocation6 + $0x4268] sm:$0xff]  ;;  %v6958_v50 = vld [vmem:[#allocation6 + $0x4398] sm:$0xff] }
0x1692   : > { %6804 = vmatpush.msra.mxu0 %v6708_v52  ;;  %6827 = vmatpush.msra.mxu1 %v6740_v32  ;;  %v6918_v52 = vld [vmem:[#allocation6 + $0x4258] sm:$0xff]  ;;  %v6956_v32 = vld [vmem:[#allocation6 + $0x4388] sm:$0xff] }
0x1693   : > { %6850 = vmatpush.msra.mxu2 %v6709_v43  ;;  %6873 = vmatpush.msra.mxu3 %v6741_v16  ;;  %v6915_v43 = vld [vmem:[#allocation6 + $0x4240] sm:$0xff]  ;;  %v6953_v16 = vld [vmem:[#allocation6 + $0x4370] sm:$0xff] }
0x1694   : > { %6805 = vmatpush.msra.mxu0 %v6706_v61  ;;  %6828 = vmatpush.msra.mxu1 %v6738_v53  ;;  %v6916_v61 = vld [vmem:[#allocation6 + $0x4248] sm:$0xff]  ;;  %v6954_v53 = vld [vmem:[#allocation6 + $0x4378] sm:$0xff] }
0x1695   : > { %6851 = vmatpush.msra.mxu2 %v6707_v63  ;;  %6874 = vmatpush.msra.mxu3 %v6739_v35  ;;  %v6914_v63 = vld [vmem:[#allocation6 + $0x4238] sm:$0xff]  ;;  %v6952_v35 = vld [vmem:[#allocation6 + $0x4368] sm:$0xff] }
0x1696   : > { %6806 = vmatmul.f32.vlgmr.msra.gmra.mxu0 %v6778_v48  ;;  %6829 = vmatmul.f32.vlgmr.msra.gmra.mxu1 %v6781_v9 }
0x1697   : > { %6852 = vmatmul.f32.vlgmr.msra.gmra.mxu2 %v6778_v48  ;;  %6875 = vmatmul.f32.vlgmr.msra.gmra.mxu3 %v6781_v9  ;;  %v6912_v48 = vld [vmem:[#allocation6 + $0x4228] sm:$0xff]  ;;  %v6950_v9 = vld [vmem:[#allocation6 + $0x4358] sm:$0xff] }
0x1698   : > { %6991 = vmatpush.msrb.mxu0 %v6937_v62  ;;  %7037 = vmatpush.msrb.mxu2 %v6938_v14  ;;  %v6947_v62 = vld [vmem:[#allocation6 + $0x4340] sm:$0xff]  ;;  %v6910_v14 = vld [vmem:[#allocation6 + $0x4218] sm:$0xff] }
0x1699   : > { %7014 = vmatpush.msrb.mxu1 %v6969_v21  ;;  %7060 = vmatpush.msrb.mxu3 %v6970_v42  ;;  %v6907_v21 = vld [vmem:[#allocation6 + $0x4200] sm:$0xff]  ;;  %v6945_v42 = vld [vmem:[#allocation6 + $0x4330] sm:$0xff] }
0x169a   : > { %6992 = vmatpush.msrb.mxu0 %v6935_v45  ;;  %7038 = vmatpush.msrb.mxu2 %v6936_v5  ;;  %v6908_v45 = vld [vmem:[#allocation6 + $0x4208] sm:$0xff]  ;;  %v6946_v5 = vld [vmem:[#allocation6 + $0x4338] sm:$0xff] }
0x169b   : > { %7015 = vmatpush.msrb.mxu1 %v6967_v13  ;;  %7061 = vmatpush.msrb.mxu3 %v6968_v18  ;;  %v7125_v13 = vld [vmem:[#allocation6 + $0x44f0] sm:$0xff]  ;;  %v7126_v18 = vld [vmem:[#allocation6 + $0x44f8] sm:$0xff] }
0x169c   : > { %6993 = vmatpush.msrb.mxu0 %v6933_v26  ;;  %7039 = vmatpush.msrb.mxu2 %v6934_v17 }
0x169d   : > { %7016 = vmatpush.msrb.mxu1 %v6965_v12  ;;  %7062 = vmatpush.msrb.mxu3 %v6966_v20  ;;  %v6940_v12 = vld [vmem:[#allocation6 + $0x4308] sm:$0xff]  ;;  %v7157_v20 = vld [vmem:[#allocation6 + $0x45f0] sm:$0xff] }
0x169e   : > { %6809 = vmatmul.f32.gmra.mxu0 %v6783_v6  ;;  %6832 = vmatmul.f32.gmra.mxu1 %v6785_v36 }
0x169f   : > { %6855 = vmatmul.f32.gmra.mxu2 %v6783_v6  ;;  %6878 = vmatmul.f32.gmra.mxu3 %v6785_v36  ;;  %v7123_v6 = vld [vmem:[#allocation6 + $0x44e0] sm:$0xff]  ;;  %v7124_v36 = vld [vmem:[#allocation6 + $0x44e8] sm:$0xff] }
0x16a0   : > { %6994 = vmatpush.msrb.mxu0 %v6931_v22  ;;  %7040 = vmatpush.msrb.mxu2 %v6932_v15  ;;  %v6941_v22 = vld [vmem:[#allocation6 + $0x4310] sm:$0xff]  ;;  %v6942_v15 = vld [vmem:[#allocation6 + $0x4318] sm:$0xff] }
0x16a1   : > { %7017 = vmatpush.msrb.mxu1 %v6963_v11  ;;  %7063 = vmatpush.msrb.mxu3 %v6964_v58  ;;  %v7158_v11 = vld [vmem:[#allocation6 + $0x45f8] sm:$0xff]  ;;  %v7155_v58 = vld [vmem:[#allocation6 + $0x45e0] sm:$0xff] }
0x16a2   : > { %6995 = vmatpush.msrb.mxu0 %v6929_v41  ;;  %7041 = vmatpush.msrb.mxu2 %v6930_v23  ;;  %v7121_v41 = vld [vmem:[#allocation6 + $0x44d0] sm:$0xff]  ;;  %v7122_v23 = vld [vmem:[#allocation6 + $0x44d8] sm:$0xff] }
0x16a3   : > { %7018 = vmatpush.msrb.mxu1 %v6961_v27  ;;  %7064 = vmatpush.msrb.mxu3 %v6962_v37  ;;  %v7156_v37 = vld [vmem:[#allocation6 + $0x45e8] sm:$0xff] }
0x16a4   : > { %6996 = vmatpush.msrb.mxu0 %v6927_v3  ;;  %7042 = vmatpush.msrb.mxu2 %v6928_v39  ;;  %v6939_v3 = vld [vmem:[#allocation6 + $0x4300] sm:$0xff] }
0x16a5   : > { %7019 = vmatpush.msrb.mxu1 %v6959_v56  ;;  %7065 = vmatpush.msrb.mxu3 %v6960_v2  ;;  %v7119_v39 = vld [vmem:[#allocation6 + $0x44c0] sm:$0xff]  ;;  %v7153_v56 = vld [vmem:[#allocation6 + $0x45d0] sm:$0xff]  ;;  %v7154_v2 = vld [vmem:[#allocation6 + $0x45d8] sm:$0xff] }
0x16a6   : > { %6997 = vmatpush.msrb.mxu0 %v6925_v10  ;;  %7043 = vmatpush.msrb.mxu2 %v6926_v40  ;;  %v7120_v10 = vld [vmem:[#allocation6 + $0x44c8] sm:$0xff]  ;;  %v7117_v40 = vld [vmem:[#allocation6 + $0x44b0] sm:$0xff] }
0x16a7   : > { %7020 = vmatpush.msrb.mxu1 %v6957_v0  ;;  %7066 = vmatpush.msrb.mxu3 %v6958_v50  ;;  %v7151_v50 = vld [vmem:[#allocation6 + $0x45c0] sm:$0xff] }
0x16a8   : > { %6998 = vmatpush.msrb.mxu0 %v6923_v29  ;;  %7044 = vmatpush.msrb.mxu2 %v6924_v46  ;;  %v7118_v29 = vld [vmem:[#allocation6 + $0x44b8] sm:$0xff] }
0x16a9   : > { %7021 = vmatpush.msrb.mxu1 %v6955_v51  ;;  %7067 = vmatpush.msrb.mxu3 %v6956_v32  ;;  %v7152_v51 = vld [vmem:[#allocation6 + $0x45c8] sm:$0xff]  ;;  %v7149_v32 = vld [vmem:[#allocation6 + $0x45b0] sm:$0xff] }
0x16aa   : > { %6999 = vmatpush.msrb.mxu0 %v6921_v38  ;;  %7045 = vmatpush.msrb.mxu2 %v6922_v34  ;;  %v7115_v38 = vld [vmem:[#allocation6 + $0x44a0] sm:$0xff]  ;;  %v7116_v34 = vld [vmem:[#allocation6 + $0x44a8] sm:$0xff] }
0x16ab   : > { %7022 = vmatpush.msrb.mxu1 %v6953_v16  ;;  %7068 = vmatpush.msrb.mxu3 %v6954_v53  ;;  %v7150_v16 = vld [vmem:[#allocation6 + $0x45b8] sm:$0xff]  ;;  %v7147_v53 = vld [vmem:[#allocation6 + $0x45a0] sm:$0xff] }
0x16ac   : > { %7000 = vmatpush.msrb.mxu0 %v6919_v33  ;;  %7046 = vmatpush.msrb.mxu2 %v6920_v44  ;;  %v7113_v44 = vld [vmem:[#allocation6 + $0x4490] sm:$0xff] }
0x16ad   : > { %7023 = vmatpush.msrb.mxu1 %v6951_v30  ;;  %7069 = vmatpush.msrb.mxu3 %v6952_v35  ;;  %v7148_v30 = vld [vmem:[#allocation6 + $0x45a8] sm:$0xff]  ;;  %v7145_v35 = vld [vmem:[#allocation6 + $0x4590] sm:$0xff] }
0x16ae   : > { %7001 = vmatpush.msrb.mxu0 %v6917_v25  ;;  %7047 = vmatpush.msrb.mxu2 %v6918_v52  ;;  %v7114_v25 = vld [vmem:[#allocation6 + $0x4498] sm:$0xff]  ;;  %v7111_v52 = vld [vmem:[#allocation6 + $0x4480] sm:$0xff] }
0x16af   : > { %7024 = vmatpush.msrb.mxu1 %v6949_v49  ;;  %7070 = vmatpush.msrb.mxu3 %v6950_v9  ;;  %v7146_v9 = vld [vmem:[#allocation6 + $0x4598] sm:$0xff] }
0x16b0   : > { %7002 = vmatpush.msrb.mxu0 %v6915_v43  ;;  %7048 = vmatpush.msrb.mxu2 %v6916_v61  ;;  %v7112_v43 = vld [vmem:[#allocation6 + $0x4488] sm:$0xff]  ;;  %v7109_v61 = vld [vmem:[#allocation6 + $0x4470] sm:$0xff] }
0x16b1   : > { %7025 = vmatpush.msrb.mxu1 %v6947_v62  ;;  %7071 = vmatpush.msrb.mxu3 %v6948_v24  ;;  %v7143_v62 = vld [vmem:[#allocation6 + $0x4580] sm:$0xff]  ;;  %v7144_v24 = vld [vmem:[#allocation6 + $0x4588] sm:$0xff] }
0x16b2   : > { %7003 = vmatpush.msrb.mxu0 %v6913_v55  ;;  %7049 = vmatpush.msrb.mxu2 %v6914_v63  ;;  %v7110_v55 = vld [vmem:[#allocation6 + $0x4478] sm:$0xff]  ;;  %v7107_v63 = vld [vmem:[#allocation6 + $0x4460] sm:$0xff] }
0x16b3   : > { %7026 = vmatpush.msrb.mxu1 %v6945_v42  ;;  %7072 = vmatpush.msrb.mxu3 %v6946_v5  ;;  %v7141_v5 = vld [vmem:[#allocation6 + $0x4570] sm:$0xff] }
0x16b4   : > { %7004 = vmatpush.msrb.mxu0 %v6911_v1  ;;  %7050 = vmatpush.msrb.mxu2 %v6912_v48  ;;  %v7108_v1 = vld [vmem:[#allocation6 + $0x4468] sm:$0xff] }
0x16b5   : > { %7027 = vmatpush.msrb.mxu1 %v6943_v19  ;;  %7073 = vmatpush.msrb.mxu3 %v6944_v7  ;;  %v7101_v19 = vld [vmem:[#allocation6 + $0x4430] sm:$0xff]  ;;  %v7139_v7 = vld [vmem:[#allocation6 + $0x4560] sm:$0xff] }
0x16b6   : > { %7005 = vmatpush.msrb.mxu0 %v6909_v8  ;;  %7051 = vmatpush.msrb.mxu2 %v6910_v14  ;;  %v7105_v8 = vld [vmem:[#allocation6 + $0x4450] sm:$0xff]  ;;  %v7106_v14 = vld [vmem:[#allocation6 + $0x4458] sm:$0xff] }
0x16b7   : > { %7028 = vmatpush.msrb.mxu1 %v6941_v22  ;;  %7074 = vmatpush.msrb.mxu3 %v6942_v15  ;;  %v7099_v22 = vld [vmem:[#allocation6 + $0x4420] sm:$0xff]  ;;  %v7137_v15 = vld [vmem:[#allocation6 + $0x4550] sm:$0xff] }
0x16b8   : > { %7006 = vmatpush.msrb.mxu0 %v6907_v21  ;;  %7052 = vmatpush.msrb.mxu2 %v6908_v45  ;;  %v7103_v45 = vld [vmem:[#allocation6 + $0x4440] sm:$0xff] }
0x16b9   : > { %7029 = vmatpush.msrb.mxu1 %v6939_v3  ;;  %7075 = vmatpush.msrb.mxu3 %v6940_v12  ;;  %v7097_v3 = vld [vmem:[#allocation6 + $0x4410] sm:$0xff]  ;;  %v7135_v12 = vld [vmem:[#allocation6 + $0x4540] sm:$0xff] }
0x16ba   : > { %7159 = vmatpush.msra.mxu0 %v7125_v13  ;;  %7205 = vmatpush.msra.mxu2 %v7126_v18  ;;  %v7104_v13 = vld [vmem:[#allocation6 + $0x4448] sm:$0xff]  ;;  %v7142_v18 = vld [vmem:[#allocation6 + $0x4578] sm:$0xff] }
0x16bb   : > { %7182 = vmatpush.msra.mxu1 %v7157_v20  ;;  %7228 = vmatpush.msra.mxu3 %v7158_v11  ;;  %v7136_v11 = vld [vmem:[#allocation6 + $0x4548] sm:$0xff] }
0x16bc   : > { %7160 = vmatpush.msra.mxu0 %v7123_v6  ;;  %7206 = vmatpush.msra.mxu2 %v7124_v36  ;;  %v7102_v6 = vld [vmem:[#allocation6 + $0x4438] sm:$0xff]  ;;  %v7140_v36 = vld [vmem:[#allocation6 + $0x4568] sm:$0xff] }
0x16bd   : > { %7183 = vmatpush.msra.mxu1 %v7155_v58  ;;  %7229 = vmatpush.msra.mxu3 %v7156_v37  ;;  %v7133_v58 = vld [vmem:[#allocation6 + $0x4530] sm:$0xff]  ;;  %v7134_v37 = vld [vmem:[#allocation6 + $0x4538] sm:$0xff] }
0x16be   : > { %7161 = vmatpush.msra.mxu0 %v7121_v41  ;;  %7207 = vmatpush.msra.mxu2 %v7122_v23  ;;  %v7100_v41 = vld [vmem:[#allocation6 + $0x4428] sm:$0xff]  ;;  %v7138_v23 = vld [vmem:[#allocation6 + $0x4558] sm:$0xff] }
0x16bf   : > { %7184 = vmatpush.msra.mxu1 %v7153_v56  ;;  %7230 = vmatpush.msra.mxu3 %v7154_v2  ;;  %v7132_v2 = vld [vmem:[#allocation6 + $0x4528] sm:$0xff] }
0x16c0   : > { %7162 = vmatpush.msra.mxu0 %v7119_v39  ;;  %7208 = vmatpush.msra.mxu2 %v7120_v10  ;;  %v7098_v39 = vld [vmem:[#allocation6 + $0x4418] sm:$0xff] }
0x16c1   : > { %7185 = vmatpush.msra.mxu1 %v7151_v50  ;;  %7231 = vmatpush.msra.mxu3 %v7152_v51  ;;  %v7129_v50 = vld [vmem:[#allocation6 + $0x4510] sm:$0xff]  ;;  %v7127_v51 = vld [vmem:[#allocation6 + $0x4500] sm:$0xff] }
0x16c2   : > { %7163 = vmatpush.msra.mxu0 %v7117_v40  ;;  %7209 = vmatpush.msra.mxu2 %v7118_v29  ;;  %v7095_v40 = vld [vmem:[#allocation6 + $0x4400] sm:$0xff]  ;;  %v7096_v29 = vld [vmem:[#allocation6 + $0x4408] sm:$0xff] }
0x16c3   : > { %7186 = vmatpush.msra.mxu1 %v7149_v32  ;;  %7232 = vmatpush.msra.mxu3 %v7150_v16 }
0x16c4   : > { %7164 = vmatpush.msra.mxu0 %v7115_v38  ;;  %7210 = vmatpush.msra.mxu2 %v7116_v34  ;;  %v7131_v34 = vld [vmem:[#allocation6 + $0x4520] sm:$0xff] }
0x16c5   : > { %7187 = vmatpush.msra.mxu1 %v7147_v53  ;;  %7233 = vmatpush.msra.mxu3 %v7148_v30 }
0x16c6   : > { %7165 = vmatpush.msra.mxu0 %v7113_v44  ;;  %7211 = vmatpush.msra.mxu2 %v7114_v25  ;;  %v6343_v44 = vld [vmem:[#allocation8 + $0x14] sm:$0x3]  ;;  %v7130_v25 = vld [vmem:[#allocation6 + $0x4518] sm:$0xff] }
0x16c7   : > { %7188 = vmatpush.msra.mxu1 %v7145_v35  ;;  %7234 = vmatpush.msra.mxu3 %v7146_v9 }
0x16c8   : > { %7166 = vmatpush.msra.mxu0 %v7111_v52  ;;  %7212 = vmatpush.msra.mxu2 %v7112_v43  ;;  %v7128_v52 = vld [vmem:[#allocation6 + $0x4508] sm:$0xff]  ;;  %v6528_v43 = vperm.slane %v6343_v44, 0 }
0x16c9   : > { %7189 = vmatpush.msra.mxu1 %v7143_v62  ;;  %7235 = vmatpush.msra.mxu3 %v7144_v24 }
0x16ca   : > { %7167 = vmatpush.msra.mxu0 %v7109_v61  ;;  %7213 = vmatpush.msra.mxu2 %v7110_v55 }
0x16cb   : > { %7190 = vmatpush.msra.mxu1 %v7141_v5  ;;  %7236 = vmatpush.msra.mxu3 %v7142_v18 }
0x16cc   : > { %7168 = vmatpush.msra.mxu0 %v7107_v63  ;;  %7214 = vmatpush.msra.mxu2 %v7108_v1 }
0x16cd   : > { %7191 = vmatpush.msra.mxu1 %v7139_v7  ;;  %7237 = vmatpush.msra.mxu3 %v7140_v36 }
0x16ce   : > { %7169 = vmatpush.msra.mxu0 %v7105_v8  ;;  %7215 = vmatpush.msra.mxu2 %v7106_v14  ;;  %v6529_v8 = vperm.slane %v6343_v44, 1  ;;  %v6900_v14 = vld [vmem:[#allocation2 + $0x30] sm:$0x80] }
0x16cf   : > { %7192 = vmatpush.msra.mxu1 %v7137_v15  ;;  %7238 = vmatpush.msra.mxu3 %v7138_v23  ;;  %v7292_v15 = vld [vmem:[#allocation6 + $0x46f0] sm:$0xff] }
0x16d0   : > { %7170 = vmatpush.msra.mxu0 %v7103_v45  ;;  %7216 = vmatpush.msra.mxu2 %v7104_v13 }
0x16d1   : > { %7193 = vmatpush.msra.mxu1 %v7135_v12  ;;  %7239 = vmatpush.msra.mxu3 %v7136_v11 }
0x16d2   : > { %7171 = vmatpush.msra.mxu0 %v7101_v19  ;;  %7217 = vmatpush.msra.mxu2 %v7102_v6  ;;  %v6977_v19 = vrot.slane %v6900_v14, 7  ;;  %v7279_v14 = vld [vmem:[#allocation6 + $0x4688] sm:$0xff] }
0x16d3   : > { %7194 = vmatpush.msra.mxu1 %v7133_v58  ;;  %7240 = vmatpush.msra.mxu3 %v7134_v37  ;;  %v7289_v58 = vld [vmem:[#allocation6 + $0x46d8] sm:$0xff] }
0x16d4   : > { %7172 = vmatpush.msra.mxu0 %v7099_v22  ;;  %7218 = vmatpush.msra.mxu2 %v7100_v41 }
0x16d5   : > { %7195 = vmatpush.msra.mxu1 %v7131_v34  ;;  %7241 = vmatpush.msra.mxu3 %v7132_v2  ;;  %v7324_v2 = vld [vmem:[#allocation6 + $0x47f0] sm:$0xff] }
0x16d6   : > { %7173 = vmatpush.msra.mxu0 %v7097_v3  ;;  %7219 = vmatpush.msra.mxu2 %v7098_v39  ;;  %v6901_v3 = vld [vmem:[#allocation2] sm:$0x80] }
0x16d7   : > { %7196 = vmatpush.msra.mxu1 %v7129_v50  ;;  %7242 = vmatpush.msra.mxu3 %v7130_v25  ;;  %v7287_v50 = vld [vmem:[#allocation6 + $0x46c8] sm:$0xff]  ;;  %v7325_v25 = vld [vmem:[#allocation6 + $0x47f8] sm:$0xff] }
0x16d8   : > { %7174 = vmatpush.msra.mxu0 %v7095_v40  ;;  %7220 = vmatpush.msra.mxu2 %v7096_v29  ;;  %v7288_v40 = vld [vmem:[#allocation6 + $0x46d0] sm:$0xff]  ;;  %v6980_v29 = vrot.slane %v6901_v3, 7 }
0x16d9   : > { %7197 = vmatpush.msra.mxu1 %v7127_v51  ;;  %7243 = vmatpush.msra.mxu3 %v7128_v52  ;;  %v7284_v51 = vld [vmem:[#allocation6 + $0x46b0] sm:$0xff]  ;;  %v7322_v52 = vld [vmem:[#allocation6 + $0x47e0] sm:$0xff] }
0x16da   : > { %v7268_v3 = vld [vmem:[#allocation6 + $0x4630] sm:$0xff] }
0x16eb   : > { %v8948_v26 = vpop.f32.mrf.mxu0  ;;  %v8950_v17 = vpop.f32.mrf.mxu1 }
0x16ec   : > { %v6476_v32 = vadd.f32 %v8950_v17, %v8948_v26 }
0x16ee   : > { %v6532_v55 = vadd.f32 %v6528_v43, %v6476_v32 }
0x16f2   : > { %v8952_v27 = vpop.f32.mrf.mxu2  ;;  %v8954_v46 = vpop.f32.mrf.mxu3 }
0x16f3   : > { %v6522_v9 = vadd.f32 %v8954_v46, %v8952_v27 }
0x16f5   : > { %v8956_v33 = vpop.f32.mrf.mxu0  ;;  %v8958_v0 = vpop.f32.mrf.mxu1 }
0x16f6   : > { %v6479_v62 = vadd.f32 %v8958_v0, %v8956_v33 }
0x16f8   : > { %v6534_v45 = vadd.f32 %v6528_v43, %v6479_v62  ;;  %v7285_v43 = vld [vmem:[#allocation6 + $0x46b8] sm:$0xff] }
0x16fc   : > { %v8960_v49 = vpop.f32.mrf.mxu2  ;;  %v8962_v48 = vpop.f32.mrf.mxu3 }
0x16ff   : > { %v8964_v21 = vpop.f32.mrf.mxu0  ;;  %v6643_v42 = vpop.f32.mrf.mxu1 }
0x1700   : > { %v6644_v16 = vadd.f32 %v6643_v42, %v8964_v21  ;;  %v6533_v42 = vadd.f32 %v6529_v8, %v6522_v9  ;;  %v7281_v9 = vld [vmem:[#allocation6 + $0x4698] sm:$0xff] }
0x1702   : > { %v6695_v35 = vadd.f32 %v6644_v16, %v6532_v55  ;;  %v7323_v16 = vld [vmem:[#allocation6 + $0x47e8] sm:$0xff] }
0x1706   : > { %v6666_v20 = vpop.f32.mrf.mxu2  ;;  %v6689_v10 = vpop.f32.mrf.mxu3 }
0x1707   : > { %v6690_v17 = vadd.f32 %v6689_v10, %v6666_v20  ;;  %v7290_v20 = vld [vmem:[#allocation6 + $0x46e0] sm:$0xff]  ;;  %v7291_v10 = vld [vmem:[#allocation6 + $0x46e8] sm:$0xff] }
0x1709   : > { %v6623_v38 = vpop.f32.mrf.mxu0  ;;  %v6646_v56 = vpop.f32.mrf.mxu1  ;;  %v6696_v7 = vadd.f32 %v6690_v17, %v6533_v42  ;;  %v7314_v42 = vld [vmem:[#allocation6 + $0x47a0] sm:$0xff] }
0x170a   : > { %v6647_v24 = vadd.f32 %v6646_v56, %v6623_v38 }
0x170c   : > { %v6697_v36 = vadd.f32 %v6647_v24, %v6534_v45  ;;  %v7317_v24 = vld [vmem:[#allocation6 + $0x47b8] sm:$0xff] }
0x170d   : > { %v7277_v45 = vld [vmem:[#allocation6 + $0x4678] sm:$0xff] }
0x1710   : > { %v6669_v61 = vpop.f32.mrf.mxu2  ;;  %v6692_v53 = vpop.f32.mrf.mxu3 }
0x1711   : > { %v6693_v12 = vadd.f32 %v6692_v53, %v6669_v61  ;;  %v7282_v61 = vld [vmem:[#allocation6 + $0x46a0] sm:$0xff]  ;;  %v7320_v53 = vld [vmem:[#allocation6 + $0x47d0] sm:$0xff] }
0x1713   : > { %v6807_v30 = vpop.f32.mrf.mxu0  ;;  %v6830_v63 = vpop.f32.mrf.mxu1 }
0x1714   : > { %v6831_v1 = vadd.f32 %v6830_v63, %v6807_v30  ;;  %v7283_v30 = vld [vmem:[#allocation6 + $0x46a8] sm:$0xff]  ;;  %v7321_v63 = vld [vmem:[#allocation6 + $0x47d8] sm:$0xff] }
0x1716   : > { %v6882_v26 = vadd.f32 %v6831_v1, %v6695_v35  ;;  %v7280_v35 = vld [vmem:[#allocation6 + $0x4690] sm:$0xff]  ;;  %v7318_v1 = vld [vmem:[#allocation6 + $0x47c0] sm:$0xff] }
0x1718   : > { %v6886_v21 = vadd.f32 %v6882_v26, %v8624_v59  ;;  %v6525_v59 = vadd.f32 %v8962_v48, %v8960_v49  ;;  %v7316_v26 = vld [vmem:[#allocation6 + $0x47b0] sm:$0xff] }
0x171a   : > { %v8975_v5 = vadd.f32 %v6886_v21, %v8280_v4  ;;  %v6853_v13 = vpop.f32.mrf.mxu2  ;;  %v6876_v18 = vpop.f32.mrf.mxu3  ;;  %v7293_v4 = vld [vmem:[#allocation6 + $0x46f8] sm:$0xff]  ;;  %v6535_v49 = vadd.f32 %v6529_v8, %v6525_v59  ;;  %v7319_v8 = vld [vmem:[#allocation6 + $0x47c8] sm:$0xff]  ;;  %v7276_v21 = vld [vmem:[#allocation6 + $0x4670] sm:$0xff] }
0x171b   : > { %v6877_v27 = vadd.f32 %v6876_v18, %v6853_v13  ;;  %v6810_v46 = vpop.f32.mrf.mxu0  ;;  %v6833_v6 = vpop.f32.mrf.mxu1  ;;  %v7315_v13 = vld [vmem:[#allocation6 + $0x47a8] sm:$0xff]  ;;  %v7274_v18 = vld [vmem:[#allocation6 + $0x4660] sm:$0xff]  ;;  %v7273_v59 = vld [vmem:[#allocation6 + $0x4658] sm:$0xff] }
0x171c   : > { %6894 = vst [vmem:[#allocation2 + $0x18] sm:$0xff] %v8975_v5  ;;  %v6834_v33 = vadd.f32 %v6833_v6, %v6810_v46  ;;  %v6978_v0 = vrot.slane %v8975_v5, 7  ;;  %v6698_v56 = vadd.f32 %v6693_v12, %v6535_v49  ;;  %v7313_v46 = vld [vmem:[#allocation6 + $0x4798] sm:$0xff]  ;;  %v7306_v12 = vld [vmem:[#allocation6 + $0x4760] sm:$0xff] }
0x171d   : > { %v6883_v22 = vadd.f32 %v6877_v27, %v6696_v7  ;;  %v7275_v27 = vld [vmem:[#allocation6 + $0x4668] sm:$0xff]  ;;  %v7305_v49 = vld [vmem:[#allocation6 + $0x4758] sm:$0xff] }
0x171e   : > { %v6884_v41 = vadd.f32 %v6834_v33, %v6697_v36  ;;  %v6979_v23 = vsel %vm475_vm0, %v6977_v19, %v6978_v0  ;;  %v7312_v19 = vld [vmem:[#allocation6 + $0x4790] sm:$0xff] }
0x171f   : > { %v6887_v39 = vadd.f32 %v6883_v22, %v8634_v57  ;;  %7007 = vmatmul.f32.vlgmr.msrb.gmra.mxu0 %v6979_v23  ;;  %7053 = vmatmul.f32.vlgmr.msrb.gmra.mxu2 %v6979_v23  ;;  %v7272_v33 = vld [vmem:[#allocation6 + $0x4650] sm:$0xff]  ;;  %v7311_v22 = vld [vmem:[#allocation6 + $0x4788] sm:$0xff]  ;;  %v7309_v23 = vld [vmem:[#allocation6 + $0x4778] sm:$0xff] }
0x1720   : > { %v6888_v11 = vadd.f32 %v6884_v41, %v8637_v54  ;;  %7346 = vmatpush.msrb.mxu0 %v7292_v15  ;;  %7392 = vmatpush.msrb.mxu2 %v7293_v4  ;;  %v7270_v15 = vld [vmem:[#allocation6 + $0x4640] sm:$0xff]  ;;  %v7308_v4 = vld [vmem:[#allocation6 + $0x4770] sm:$0xff]  ;;  %v7271_v41 = vld [vmem:[#allocation6 + $0x4648] sm:$0xff] }
0x1721   : > { %v8987_v48 = vadd.f32 %v6887_v39, %v8289_v28  ;;  %v7286_v28 = vld [vmem:[#allocation6 + $0x46c0] sm:$0xff]  ;;  %v7269_v39 = vld [vmem:[#allocation6 + $0x4638] sm:$0xff] }
0x1722   : > { %v8990_v37 = vadd.f32 %v6888_v11, %v8291_v31  ;;  %v6856_v38 = vpop.f32.mrf.mxu2  ;;  %v6879_v57 = vpop.f32.mrf.mxu3  ;;  %7347 = vmatpush.msrb.mxu0 %v7290_v20  ;;  %7393 = vmatpush.msrb.mxu2 %v7291_v10  ;;  %v7307_v20 = vld [vmem:[#allocation6 + $0x4768] sm:$0xff]  ;;  %v7304_v10 = vld [vmem:[#allocation6 + $0x4750] sm:$0xff] }
0x1723   : > { %6895 = vst [vmem:[#allocation2 + $0x10] sm:$0xff] %v8987_v48  ;;  %v6880_v54 = vadd.f32 %v6879_v57, %v6856_v38  ;;  %v6981_v34 = vrot.slane %v8987_v48, 7  ;;  %v7267_v11 = vld [vmem:[#allocation6 + $0x4628] sm:$0xff]  ;;  %v7265_v38 = vld [vmem:[#allocation6 + $0x4618] sm:$0xff] }
0x1724   : > { %6896 = vst [vmem:[#allocation2 + $0x8] sm:$0xff] %v8990_v37  ;;  %7348 = vmatpush.msrb.mxu0 %v7288_v40  ;;  %7394 = vmatpush.msrb.mxu2 %v7289_v58  ;;  %v7264_v40 = vld [vmem:[#allocation6 + $0x4610] sm:$0xff]  ;;  %v7302_v58 = vld [vmem:[#allocation6 + $0x4740] sm:$0xff]  ;;  %v7303_v57 = vld [vmem:[#allocation6 + $0x4748] sm:$0xff] }
0x1725   : > { %v6885_v44 = vadd.f32 %v6880_v54, %v6698_v56  ;;  %v6982_v31 = vsel %vm475_vm0, %v6980_v29, %v6981_v34  ;;  %v7255_v29 = vld [vmem:[#allocation2 + $0x18] sm:$0xfe]  ;;  %v7262_v56 = vld [vmem:[#allocation6 + $0x4600] sm:$0xff]  ;;  %v7300_v54 = vld [vmem:[#allocation6 + $0x4730] sm:$0xff] }
0x1726   : > { %7030 = vmatmul.f32.vlgmr.msrb.gmra.mxu1 %v6982_v31  ;;  %7076 = vmatmul.f32.vlgmr.msrb.gmra.mxu3 %v6982_v31  ;;  %v7299_v31 = vld [vmem:[#allocation6 + $0x4728] sm:$0xff] }
0x1727   : > { %v6889_v32 = vadd.f32 %v6885_v44, %v8646_v60  ;;  %7349 = vmatpush.msrb.mxu0 %v7286_v28  ;;  %7369 = vmatpush.msrb.mxu1 %v7324_v2  ;;  %v7332_v28 = vrot.slane %v7255_v29, 1  ;;  %v7333_v2 = vrot.slane %v8990_v37, 1  ;;  %v7298_v44 = vld [vmem:[#allocation6 + $0x4720] sm:$0xff] }
0x1728   : > { %7395 = vmatpush.msrb.mxu2 %v7287_v50  ;;  %7415 = vmatpush.msrb.mxu3 %v7325_v25 }
0x1729   : > { %v9000_v55 = vadd.f32 %v6889_v32, %v8299_v47  ;;  %7350 = vmatpush.msrb.mxu0 %v7284_v51  ;;  %7370 = vmatpush.msrb.mxu1 %v7322_v52  ;;  %v7278_v47 = vld [vmem:[#allocation6 + $0x4680] sm:$0xff]  ;;  %v7334_v50 = vsel %vm831_vm1, %v7332_v28, %v7333_v2  ;;  %v7296_v51 = vld [vmem:[#allocation6 + $0x4710] sm:$0xff]  ;;  %v7297_v52 = vld [vmem:[#allocation6 + $0x4718] sm:$0xff] }
0x172a   : > { %7396 = vmatpush.msrb.mxu2 %v7285_v43  ;;  %7416 = vmatpush.msrb.mxu3 %v7323_v16  ;;  %v7256_v25 = vld [vmem:[#allocation2 + $0x10] sm:$0xfe]  ;;  %v7294_v32 = vld [vmem:[#allocation6 + $0x4700] sm:$0xff]  ;;  %v7295_v43 = vld [vmem:[#allocation6 + $0x4708] sm:$0xff] }
0x172b   : > { %6897 = vst [vmem:[#allocation2 + $0x20] sm:$0xff] %v9000_v55  ;;  %v6904_v60 = vld [vmem:[#allocation2 + $0x8] sm:$0x7f]  ;;  %7351 = vmatpush.msrb.mxu0 %v7282_v61  ;;  %7371 = vmatpush.msrb.mxu1 %v7320_v53  ;;  %v7335_v16 = vrot.slane %v7256_v25, 1  ;;  %v7336_v61 = vrot.slane %v9000_v55, 1 }
0x172c   : > { %v6983_v62 = vrot.slane %v6904_v60, 7  ;;  %7397 = vmatpush.msrb.mxu2 %v7283_v30  ;;  %7417 = vmatpush.msrb.mxu3 %v7321_v63 }
0x172d   : > { %7352 = vmatpush.msrb.mxu0 %v7280_v35  ;;  %7372 = vmatpush.msrb.mxu1 %v7318_v1  ;;  %v7337_v30 = vsel %vm831_vm1, %v7335_v16, %v7336_v61  ;;  %v7260_v35 = vld [vmem:[#allocation2 + $0x38] sm:$0x1] }
0x172e   : > { %v6984_v17 = vsel %vm475_vm0, %v6978_v0, %v6983_v62  ;;  %7398 = vmatpush.msrb.mxu2 %v7281_v9  ;;  %7418 = vmatpush.msrb.mxu3 %v7319_v8  ;;  %v7310_v0 = vld [vmem:[#allocation6 + $0x4780] sm:$0xff]  ;;  %v7340_v1 = vrot.slane %v7260_v35, 1 }
0x172f   : > { %7010 = vmatmul.f32.gmra.mxu0 %v6984_v17  ;;  %7056 = vmatmul.f32.gmra.mxu2 %v6984_v17 }
0x1730   : > { %7353 = vmatpush.msrb.mxu0 %v7278_v47  ;;  %7373 = vmatpush.msrb.mxu1 %v7316_v26  ;;  %v7341_v60 = vsel %vm831_vm1, %v7336_v61, %v7340_v1 }
0x1731   : > { %7399 = vmatpush.msrb.mxu2 %v7279_v14  ;;  %7419 = vmatpush.msrb.mxu3 %v7317_v24 }
0x1732   : > { %v6905_v7 = vld [vmem:[#allocation2 + $0x20] sm:$0x7f]  ;;  %7354 = vmatpush.msrb.mxu0 %v7276_v21  ;;  %7374 = vmatpush.msrb.mxu1 %v7314_v42 }
0x1733   : > { %v6985_v6 = vrot.slane %v6905_v7, 7  ;;  %7400 = vmatpush.msrb.mxu2 %v7277_v45  ;;  %7420 = vmatpush.msrb.mxu3 %v7315_v13 }
0x1734   : > { %7355 = vmatpush.msrb.mxu0 %v7274_v18  ;;  %7375 = vmatpush.msrb.mxu1 %v7312_v19  ;;  %v6899_v18 = vld [vmem:[#allocation8 + $0x16] sm:$0x3] }
0x1735   : > { %v6986_v36 = vsel %vm475_vm0, %v6981_v34, %v6985_v6  ;;  %7401 = vmatpush.msrb.mxu2 %v7275_v27  ;;  %7421 = vmatpush.msrb.mxu3 %v7313_v46  ;;  %v7301_v34 = vld [vmem:[#allocation6 + $0x4738] sm:$0xff]  ;;  %v7084_v46 = vperm.slane %v6899_v18, 0 }
0x1736   : > { %7033 = vmatmul.f32.gmra.mxu1 %v6986_v36  ;;  %7079 = vmatmul.f32.gmra.mxu3 %v6986_v36 }
0x1737   : > { %7175 = vmatmul.f32.vlgmr.msra.gmra.mxu0 %v8975_v5  ;;  %7221 = vmatmul.f32.vlgmr.msra.gmra.mxu2 %v8975_v5  ;;  %v7266_v5 = vld [vmem:[#allocation6 + $0x4620] sm:$0xff] }
0x1738   : > { %7356 = vmatpush.msrb.mxu0 %v7272_v33  ;;  %7376 = vmatpush.msrb.mxu1 %v7310_v0 }
0x1739   : > { %7402 = vmatpush.msrb.mxu2 %v7273_v59  ;;  %7422 = vmatpush.msrb.mxu3 %v7311_v22 }
0x173a   : > { %7357 = vmatpush.msrb.mxu0 %v7270_v15  ;;  %7377 = vmatpush.msrb.mxu1 %v7308_v4  ;;  %v7085_v15 = vperm.slane %v6899_v18, 1 }
0x173b   : > { %7403 = vmatpush.msrb.mxu2 %v7271_v41  ;;  %7423 = vmatpush.msrb.mxu3 %v7309_v23 }
0x173c   : > { %7358 = vmatpush.msrb.mxu0 %v7268_v3  ;;  %7378 = vmatpush.msrb.mxu1 %v7306_v12 }
0x173d   : > { %7404 = vmatpush.msrb.mxu2 %v7269_v39  ;;  %7424 = vmatpush.msrb.mxu3 %v7307_v20 }
0x173e   : > { %7198 = vmatmul.f32.vlgmr.msra.gmra.mxu1 %v8987_v48  ;;  %7244 = vmatmul.f32.vlgmr.msra.gmra.mxu3 %v8987_v48  ;;  %v7263_v48 = vld [vmem:[#allocation6 + $0x4608] sm:$0xff] }
0x173f   : > { %7178 = vmatmul.f32.gmra.mxu0 %v8990_v37  ;;  %7224 = vmatmul.f32.gmra.mxu2 %v8990_v37  ;;  %v7259_v37 = vld [vmem:[#allocation2 + $0x28] sm:$0x1] }
0x1740   : > { %7359 = vmatpush.msrb.mxu0 %v7266_v5  ;;  %7379 = vmatpush.msrb.mxu1 %v7304_v10  ;;  %v7338_v53 = vrot.slane %v7259_v37, 1 }
0x1741   : > { %7405 = vmatpush.msrb.mxu2 %v7267_v11  ;;  %7425 = vmatpush.msrb.mxu3 %v7305_v49 }
0x1742   : > { %7360 = vmatpush.msrb.mxu0 %v7264_v40  ;;  %7380 = vmatpush.msrb.mxu1 %v7302_v58  ;;  %v7339_v63 = vsel %vm831_vm1, %v7333_v2, %v7338_v53 }
0x1743   : > { %7406 = vmatpush.msrb.mxu2 %v7265_v38  ;;  %7426 = vmatpush.msrb.mxu3 %v7303_v57 }
0x1744   : > { %7361 = vmatpush.msrb.mxu0 %v7262_v56  ;;  %7381 = vmatpush.msrb.mxu1 %v7300_v54 }
0x1745   : > { %7407 = vmatpush.msrb.mxu2 %v7263_v48  ;;  %7427 = vmatpush.msrb.mxu3 %v7301_v34 }
0x1746   : > { %7201 = vmatmul.f32.gmra.mxu1 %v9000_v55  ;;  %7247 = vmatmul.f32.gmra.mxu3 %v9000_v55 }
0x1747   : > { %7362 = vmatmul.f32.vlgmr.msrb.gmra.mxu0 %v7334_v50  ;;  %7408 = vmatmul.f32.vlgmr.msrb.gmra.mxu2 %v7334_v50 }
0x1748   : > { %7382 = vmatpush.msrb.mxu1 %v7298_v44  ;;  %7428 = vmatpush.msrb.mxu3 %v7299_v31 }
0x174a   : > { %7383 = vmatpush.msrb.mxu1 %v7296_v51  ;;  %7429 = vmatpush.msrb.mxu3 %v7297_v52 }
0x174c   : > { %7384 = vmatpush.msrb.mxu1 %v7294_v32  ;;  %7430 = vmatpush.msrb.mxu3 %v7295_v43 }
0x174e   : > { %7385 = vmatmul.f32.vlgmr.msrb.gmra.mxu1 %v7337_v30  ;;  %7431 = vmatmul.f32.vlgmr.msrb.gmra.mxu3 %v7337_v30 }
0x174f   : > { %7365 = vmatmul.f32.gmra.mxu0 %v7339_v63  ;;  %7411 = vmatmul.f32.gmra.mxu2 %v7339_v63 }
0x1756   : > { %7388 = vmatmul.f32.gmra.mxu1 %v7341_v60  ;;  %7434 = vmatmul.f32.gmra.mxu3 %v7341_v60 }
0x179c   : > { %v7008_v55 = vpop.f32.mrf.mxu0 }
0x17a2   : > { %v7054_v9 = vpop.f32.mrf.mxu2 }
0x17a3   : > { %v7031_v8 = vpop.f32.mrf.mxu1 }
0x17a4   : > { %v7032_v27 = vadd.f32 %v7031_v8, %v7008_v55 }
0x17a6   : > { %v7088_v0 = vadd.f32 %v7084_v46, %v7032_v27 }
0x17a9   : > { %v7077_v47 = vpop.f32.mrf.mxu3 }
0x17aa   : > { %v7078_v22 = vadd.f32 %v7077_v47, %v7054_v9 }
0x17ac   : > { %v7011_v62 = vpop.f32.mrf.mxu0  ;;  %v7089_v20 = vadd.f32 %v7085_v15, %v7078_v22 }
0x17b2   : > { %v7057_v26 = vpop.f32.mrf.mxu2 }
0x17b3   : > { %v7034_v17 = vpop.f32.mrf.mxu1 }
0x17b4   : > { %v7176_v14 = vpop.f32.mrf.mxu0  ;;  %v7035_v23 = vadd.f32 %v7034_v17, %v7011_v62 }
0x17b6   : > { %v7090_v11 = vadd.f32 %v7084_v46, %v7035_v23 }
0x17b9   : > { %v7080_v24 = vpop.f32.mrf.mxu3 }
0x17ba   : > { %v7222_v42 = vpop.f32.mrf.mxu2  ;;  %v7081_v38 = vadd.f32 %v7080_v24, %v7057_v26 }
0x17bb   : > { %v7199_v21 = vpop.f32.mrf.mxu1 }
0x17bc   : > { %v7179_v45 = vpop.f32.mrf.mxu0  ;;  %v7200_v6 = vadd.f32 %v7199_v21, %v7176_v14  ;;  %v7091_v28 = vadd.f32 %v7085_v15, %v7081_v38 }
0x17be   : > { %v7251_v4 = vadd.f32 %v7200_v6, %v7088_v0 }
0x17c1   : > { %v7245_v13 = vpop.f32.mrf.mxu3 }
0x17c2   : > { %v7225_v7 = vpop.f32.mrf.mxu2  ;;  %v7246_v3 = vadd.f32 %v7245_v13, %v7222_v42 }
0x17c3   : > { %v7202_v19 = vpop.f32.mrf.mxu1 }
0x17c4   : > { %v7363_v36 = vpop.f32.mrf.mxu0  ;;  %v7203_v5 = vadd.f32 %v7202_v19, %v7179_v45  ;;  %v7252_v49 = vadd.f32 %v7246_v3, %v7089_v20 }
0x17c6   : > { %v7253_v57 = vadd.f32 %v7203_v5, %v7090_v11 }
0x17c9   : > { %v7248_v33 = vpop.f32.mrf.mxu3 }
0x17ca   : > { %v7409_v39 = vpop.f32.mrf.mxu2  ;;  %v7249_v48 = vadd.f32 %v7248_v33, %v7225_v7 }
0x17cb   : > { %v7386_v59 = vpop.f32.mrf.mxu1 }
0x17cc   : > { %v7387_v41 = vadd.f32 %v7386_v59, %v7363_v36  ;;  %v7366_v58 = vpop.f32.mrf.mxu0  ;;  %v7254_v31 = vadd.f32 %v7249_v48, %v7091_v28 }
0x17ce   : > { %v7438_v12 = vadd.f32 %v7387_v41, %v7251_v4 }
0x17d0   : > { %7442 = vst [vmem:[%s381_s23] sm:$0xff] %v7438_v12 }
0x17d1   : > { %v7432_v10 = vpop.f32.mrf.mxu3 }
0x17d2   : > { %v7433_v40 = vadd.f32 %v7432_v10, %v7409_v39  ;;  %v7412_v2 = vpop.f32.mrf.mxu2 }
0x17d3   : > { %v7389_v29 = vpop.f32.mrf.mxu1 }
0x17d4   : > { %v7439_v56 = vadd.f32 %v7433_v40, %v7252_v49  ;;  %v7390_v54 = vadd.f32 %v7389_v29, %v7366_v58 }
0x17d6   : > { %7443 = vst [vmem:[%s381_s23 + $0x8] sm:$0xff] %v7439_v56  ;;  %v7440_v34 = vadd.f32 %v7390_v54, %v7253_v57 }
0x17d8   : > { %7444 = vst [vmem:[%s381_s23 + $0x10] sm:$0xff] %v7440_v34 }
0x17d9   : > { %v7435_v44 = vpop.f32.mrf.mxu3 }
0x17da   : > { %v7436_v50 = vadd.f32 %v7435_v44, %v7412_v2 }
0x17dc   : > { %v7441_v25 = vadd.f32 %v7436_v50, %v7254_v31 }
0x17de   : > { %7445 = vst [vmem:[%s381_s23 + $0x18] sm:$0xff] %v7441_v25 }
0x17df   : > { %7954 = shalt.err (!%p7951_p9)
}
0x17e0   : > { %s8026_s11 = smov 256  }
0x17e1   : > { %7638 = dma.vmem_to_hbm [thread:$0]  (%p8164_p4), %s7460_s15, 512, %s7462_s14, %s7447_s8, %s8026_s11, %s8026_s11, %s8024_s13  }
0x17e2 PF: > { %s7476_s23 = sand.u32 1, %s7993_s24   ;;  %p9082_p10 = scmp.ge.s32.totalorder %s8005_s27, 2 }
0x17e3   : > { %s7477_s9 = scalar_lea.sflag [#allocation5], %s7476_s23 }
0x17e4   : > { %p7661_p13 = pnand %p9082_p10, %p8168_p6 }
0x17e6   : > { %p7662_p11 = pneg %p7661_p13 }
0x17e8   : > { %7988 = dma.done.wait (%p7662_p11), %s7477_s9, 512  }
0x17e9   : > { %7990 = vsyncadd (%p7662_p11), %s7477_s9, 4294966784  ;;  %p23_p0 = scmp.ge.s32.totalorder %s8138_s30, 4   ;;  %s9083_s24 = smov %s7997_s25 }
0x17ea   : > { %s9084_s25 = smov %s8001_s26  ;;  %s9085_s26 = smov %s8149_s20 }
0x17eb   : > { %s9086_s27 = smov %s8138_s30  ;;  %25 = sbr.rel (!%p23_p0) target bundleno = 11 (0xb), region = 171 }
0x17f0   :  { %7483 = vsyncpa [#allocation4], 1 }
0x17f1   :  { %7485 = vsyncpa [#allocation4 + $0x1], 1 }
0x17f2   :  { %7486 = vsyncpa [#allocation7], 1 }
0x17f3   :  { %7487 = vsyncpa [#allocation10], 1 }
0x17f4   :  { %7488 = vsyncpa [#allocation13], 1 }
0x17f5   :  { %7489 = vsyncpa [#allocation5], 1 }
0x17f6   :  { %7491 = vsyncpa [#allocation5 + $0x1], 1 }

</bundles_post_ra>
